<compile_context>
chip_gen: v6e
topology: v6e:2x2x1
jax: 0.10.0
libtpu: 0.0.40
codegen_flags: <defaults>
</compile_context>

<pallas_src>
import math
import functools

import numpy as np
import jax
import jax.numpy as jnp
from jax.experimental import pallas as pl
from jax.experimental.pallas import tpu as pltpu

F32 = jnp.float32
BF16 = jnp.bfloat16
LN_EPS = 1e-5
VMEM_LIMIT = 32 * 1024 * 1024   # explicit scoped-VMEM limit, valid on v5e/v6e/v7x


# ----------------------------- in-kernel helpers -----------------------------

def _ln(x, g, b, eps=LN_EPS):
    mean = jnp.mean(x, axis=-1, keepdims=True)
    var = jnp.mean((x - mean) ** 2, axis=-1, keepdims=True)
    return (x - mean) * jax.lax.rsqrt(var + eps) * g + b


def _mha(q2d, k2d, v2d, B, Sq, Sk, nhead, scale, kv_len=None):
    """Multi-head attention on batch-first 2-D slabs.

    q2d: (B*Sq, E), k2d/v2d: (B*Sk, E).  Each head runs one batched-over-B
    contraction ('bqd,bkd->bqk') so there is no per-batch grid and no 4-D
    transpose; head extraction uses static lane slices.  If kv_len is set,
    keys with index >= kv_len are masked out (padded decoder query rows).
    """
    E = q2d.shape[-1]
    dh = E // nhead
    key_idx = None
    if kv_len is not None:
        key_idx = jax.lax.broadcasted_iota(jnp.int32, (B, Sq, Sk), 2)
    outs = []
    for h in range(nhead):
        sl = slice(h * dh, (h + 1) * dh)
        qh = q2d[:, sl].reshape(B, Sq, dh).astype(BF16)
        kh = k2d[:, sl].reshape(B, Sk, dh).astype(BF16)
        vh = v2d[:, sl].reshape(B, Sk, dh).astype(BF16)
        s = jnp.einsum('bqd,bkd->bqk', qh, kh,
                       preferred_element_type=F32) * scale
        if key_idx is not None:
            s = jnp.where(key_idx < kv_len, s, -1e30)
        s = s - jnp.max(s, axis=-1, keepdims=True)
        p = jnp.exp(s)
        p = p / jnp.sum(p, axis=-1, keepdims=True)   # exact divide (parity)
        oh = jnp.einsum('bqk,bkd->bqd', p.astype(BF16), vh,
                        preferred_element_type=F32)
        outs.append(oh.reshape(B * Sq, dh))
    return jnp.concatenate(outs, axis=-1)            # (B*Sq, E) f32


# ------------------------------- stack kernels --------------------------------

def _encoder_stack_kernel(emb_ref, ew_ref, eb_ref, pe_ref,
                          wqkv_ref, bqkv_ref, wout_ref, bout_ref,
                          w1_ref, b1_ref, w2_ref, b2_ref,
                          ln_ref, fln_ref,
                          out_ref, acc_ref,
                          *, B, S, nhead, emb_scale):
    l = pl.program_id(0)
    E = acc_ref.shape[-1]
    scale = 1.0 / math.sqrt(E // nhead)

    # Layer-0 input: embedding projection (* sqrt(E)) + positional encoding,
    # fused into the first grid step (selected away on later steps).
    x0 = jnp.dot(emb_ref[...].astype(BF16), ew_ref[...],
                 preferred_element_type=F32) + eb_ref[...]
    x0 = x0 * emb_scale + jnp.tile(pe_ref[...], (B, 1))
    x = jnp.where(l == 0, x0, acc_ref[...])

    lnp = ln_ref[0]                                        # (4, E): g1,b1,g2,b2
    # --- self-attention + residual + LayerNorm ---
    qkv = jnp.dot(x.astype(BF16), wqkv_ref[0],
                  preferred_element_type=F32) + bqkv_ref[0]
    att = _mha(qkv[:, :E], qkv[:, E:2 * E], qkv[:, 2 * E:],
               B, S, S, nhead, scale)
    att = jnp.dot(att.astype(BF16), wout_ref[0],
                  preferred_element_type=F32) + bout_ref[0]
    x = _ln(x + att, lnp[0:1], lnp[1:2])
    # --- FFN + residual + LayerNorm ---
    h = jnp.maximum(jnp.dot(x.astype(BF16), w1_ref[0],
                            preferred_element_type=F32) + b1_ref[0], 0.0)
    f = jnp.dot(h.astype(BF16), w2_ref[0],
                preferred_element_type=F32) + b2_ref[0]
    x = _ln(x + f, lnp[2:3], lnp[3:4])

    acc_ref[...] = x
    # Final encoder LayerNorm; output block index is constant so the HBM
    # writeback only happens once at grid end.
    fln = fln_ref[...]
    out_ref[...] = _ln(x, fln[0:1], fln[1:2])


def _decoder_stack_kernel(qe_ref, mem_ref,
                          swqkv_ref, sbqkv_ref, swout_ref, sbout_ref,
                          cwq_ref, cbq_ref, cwkv_ref, cbkv_ref,
                          cwout_ref, cbout_ref,
                          w1_ref, b1_ref, w2_ref, b2_ref,
                          ln_ref, fln_ref,
                          out_ref, acc_ref,
                          *, B, nq, nq_pad, S, nhead):
    l = pl.program_id(0)
    E = acc_ref.shape[-1]
    scale = 1.0 / math.sqrt(E // nhead)

    # Layer-0 input: learned instruction queries tiled over the batch.
    x0 = jnp.tile(qe_ref[...], (B, 1))
    x = jnp.where(l == 0, x0, acc_ref[...])

    lnp = ln_ref[0]                                        # (6, E)
    # --- masked self-attention over the (padded) queries ---
    qkv = jnp.dot(x.astype(BF16), swqkv_ref[0],
                  preferred_element_type=F32) + sbqkv_ref[0]
    att = _mha(qkv[:, :E], qkv[:, E:2 * E], qkv[:, 2 * E:],
               B, nq_pad, nq_pad, nhead, scale, kv_len=nq)
    att = jnp.dot(att.astype(BF16), swout_ref[0],
                  preferred_element_type=F32) + sbout_ref[0]
    x = _ln(x + att, lnp[0:1], lnp[1:2])
    # --- cross-attention over the encoder memory ---
    q = jnp.dot(x.astype(BF16), cwq_ref[0],
                preferred_element_type=F32) + cbq_ref[0]
    kv = jnp.dot(mem_ref[...].astype(BF16), cwkv_ref[0],
                 preferred_element_type=F32) + cbkv_ref[0]
    att = _mha(q, kv[:, :E], kv[:, E:], B, nq_pad, S, nhead, scale)
    att = jnp.dot(att.astype(BF16), cwout_ref[0],
                  preferred_element_type=F32) + cbout_ref[0]
    x = _ln(x + att, lnp[2:3], lnp[3:4])
    # --- FFN + residual + LayerNorm ---
    h = jnp.maximum(jnp.dot(x.astype(BF16), w1_ref[0],
                            preferred_element_type=F32) + b1_ref[0], 0.0)
    f = jnp.dot(h.astype(BF16), w2_ref[0],
                preferred_element_type=F32) + b2_ref[0]
    x = _ln(x + f, lnp[4:5], lnp[5:6])

    acc_ref[...] = x
    fln = fln_ref[...]
    out_ref[...] = _ln(x, fln[0:1], fln[1:2])


# ------------------------------ pallas_call glue ------------------------------

def _spec(arr, stacked):
    nd = arr.ndim
    if stacked:   # leading layer dim indexed by the grid -> pipelined weight DMA
        return pl.BlockSpec((1,) + tuple(arr.shape[1:]),
                            lambda l, n=nd: (l,) + (0,) * (n - 1))
    return pl.BlockSpec(tuple(arr.shape), lambda l, n=nd: (0,) * n)


def _stack_call(kernel, args_stacked, out_rows, E, n_layers):
    args = [a for a, _ in args_stacked]
    in_specs = [_spec(a, s) for a, s in args_stacked]
    return pl.pallas_call(
        kernel,
        out_shape=jax.ShapeDtypeStruct((out_rows, E), F32),
        grid=(n_layers,),
        in_specs=in_specs,
        out_specs=pl.BlockSpec((out_rows, E), lambda l: (0, 0)),
        scratch_shapes=[pltpu.VMEM((out_rows, E), F32)],
        compiler_params=pltpu.CompilerParams(
            dimension_semantics=("arbitrary",),
            vmem_limit_bytes=VMEM_LIMIT),
    )(*args)


def encoder_stack_forward(emb2d, pe, p, B, S, nhead):
    E = pe.shape[-1]
    L = p["w_qkv"].shape[0]
    kernel = functools.partial(_encoder_stack_kernel, B=B, S=S, nhead=nhead,
                               emb_scale=math.sqrt(E))
    args = [(emb2d, False), (p["emb_w"], False), (p["emb_b"], False), (pe, False),
            (p["w_qkv"], True), (p["b_qkv"], True),
            (p["w_out"], True), (p["b_out"], True),
            (p["w1"], True), (p["b1"], True), (p["w2"], True), (p["b2"], True),
            (p["ln"], True), (p["final_ln"], False)]
    return _stack_call(kernel, args, B * S, E, L)


def decoder_stack_forward(query_embed, mem2d, p, B, nq, nq_pad, S, nhead):
    E = mem2d.shape[-1]
    L = p["s_wqkv"].shape[0]
    kernel = functools.partial(_decoder_stack_kernel, B=B, nq=nq, nq_pad=nq_pad,
                               S=S, nhead=nhead)
    args = [(query_embed, False), (mem2d, False),
            (p["s_wqkv"], True), (p["s_bqkv"], True),
            (p["s_wout"], True), (p["s_bout"], True),
            (p["c_wq"], True), (p["c_bq"], True),
            (p["c_wkv"], True), (p["c_bkv"], True),
            (p["c_wout"], True), (p["c_bout"], True),
            (p["w1"], True), (p["b1"], True), (p["w2"], True), (p["b2"], True),
            (p["ln"], True), (p["final_ln"], False)]
    return _stack_call(kernel, args, B * nq_pad, E, L)


# ------------------------------- Parameters ---------------------------------

def init_dga_params(key, cfg):
    E = cfg["q_hidden"]
    Lq, Ld = cfg["q_nlayers"], cfg["nlayers"]
    qhid, dhid = cfg["q_nhid"], cfg["nhid"]
    emb_dim, emb_pad = cfg["text_emb_dim"], cfg["text_emb_dim_pad"]
    nq, nq_pad = cfg["num_queries"], cfg["num_queries_pad"]
    ks = iter(jax.random.split(key, 32))

    def w(shape, fan_in):
        # pre-transposed (K, N) bf16 weights (no per-call transpose HLO)
        return (jax.random.normal(next(ks), shape, F32)
                / math.sqrt(fan_in)).astype(BF16)

    def b(shape):
        return jnp.zeros(shape, F32)

    ones = jnp.ones((E,), F32)
    zeros = jnp.zeros((E,), F32)

    # vocab embedding (padding_idx row zeroed) + emb projection, zero-padded
    # 300 -> 384 input features (numerically identical, lane-aligned K).
    vocab_emb = jax.random.normal(next(ks), (cfg["vocab_size"], emb_dim), F32) * 0.02
    vocab_emb = vocab_emb.at[cfg["pad_idx"]].set(0.0)
    vocab_emb = jnp.pad(vocab_emb, ((0, 0), (0, emb_pad - emb_dim)))
    emb_w = jax.random.normal(next(ks), (emb_dim, E), F32) / math.sqrt(emb_dim)
    emb_w = jnp.pad(emb_w, ((0, emb_pad - emb_dim), (0, 0))).astype(BF16)

    # sinusoidal positional encoding (same formula as PositionalEncoding)
    pe = np.zeros((cfg["max_len"], E), np.float32)
    pos = np.arange(cfg["max_len"], dtype=np.float32)[:, None]
    div = np.exp(np.arange(0, E, 2, dtype=np.float32) * (-math.log(10000.0) / E))
    pe[:, 0::2] = np.sin(pos * div)
    pe[:, 1::2] = np.cos(pos * div)

    enc = dict(
        emb_w=emb_w, emb_b=b((1, E)),
        w_qkv=w((Lq, E, 3 * E), E), b_qkv=b((Lq, 1, 3 * E)),
        w_out=w((Lq, E, E), E), b_out=b((Lq, 1, E)),
        w1=w((Lq, E, qhid), E), b1=b((Lq, 1, qhid)),
        w2=w((Lq, qhid, E), qhid), b2=b((Lq, 1, E)),
        ln=jnp.tile(jnp.stack([ones, zeros, ones, zeros])[None], (Lq, 1, 1)),
        final_ln=jnp.stack([ones, zeros]),
    )
    dec = dict(
        s_wqkv=w((Ld, E, 3 * E), E), s_bqkv=b((Ld, 1, 3 * E)),
        s_wout=w((Ld, E, E), E), s_bout=b((Ld, 1, E)),
        c_wq=w((Ld, E, E), E), c_bq=b((Ld, 1, E)),
        c_wkv=w((Ld, E, 2 * E), E), c_bkv=b((Ld, 1, 2 * E)),
        c_wout=w((Ld, E, E), E), c_bout=b((Ld, 1, E)),
        w1=w((Ld, E, dhid), E), b1=b((Ld, 1, dhid)),
        w2=w((Ld, dhid, E), dhid), b2=b((Ld, 1, E)),
        ln=jnp.tile(jnp.stack([ones, zeros, ones, zeros, ones, zeros])[None],
                    (Ld, 1, 1)),
        final_ln=jnp.stack([ones, zeros]),
    )
    # learned instruction queries, zero-padded 5 -> 8 rows (masked in self-attn)
    query_embed = jax.random.normal(next(ks), (nq, cfg["ninp"]), F32) * 0.02
    query_embed = jnp.pad(query_embed, ((0, nq_pad - nq), (0, 0)))

    return dict(vocab_emb=vocab_emb, pe=jnp.asarray(pe), enc=enc, dec=dec,
                query_embed=query_embed)


# -------------------------------- Forward ------------------------------------

def dga_numeric_forward(params, questions, cfg):
    S, B = questions.shape
    E = cfg["q_hidden"]
    nq, nq_pad = cfg["num_queries"], cfg["num_queries_pad"]

    # token-embedding gather (XLA) -> batch-first (B*S, 384) slab
    emb = jnp.take(params["vocab_emb"], questions.T, axis=0)
    emb2d = emb.reshape(B * S, -1)
    pe = params["pe"][:S]

    mem2d = encoder_stack_forward(emb2d, pe, params["enc"], B, S, cfg["q_nhead"])
    y2d = decoder_stack_forward(params["query_embed"], mem2d, params["dec"],
                                B, nq, nq_pad, S, cfg["nhead"])

    # drop the padded query rows; return sequence-first (num_queries, B, ninp)
    y = y2d.reshape(B, nq_pad, E)[:, :nq]
    return jnp.transpose(y, (1, 0, 2))


def compute_use_flags(questions, sg_x, batch_idx):
    # mirrors the reference python control flow exactly (match_num accumulates
    # across questions; one flag per sequence position)
    nodes = np.asarray(sg_x)[np.asarray(batch_idx)]
    nodes_flat = nodes.reshape(-1)
    match_num = 0
    use_flags = []
    for q in np.asarray(questions):
        for w in q:
            if (nodes_flat == w).any():
                match_num += 1
            # else branch in reference (`q = 1`) is a no-op
        use_flags.append(True if match_num != 0 else False)
    return use_flags


def dga_forward(params, questions, sg_x, batch_idx, cfg, jitted_numeric):
    # dispatch the TPU forward first (async), then overlap host control flow
    guided_instr_vectors = jitted_numeric(params, questions)
    use_flags = compute_use_flags(questions, sg_x, batch_idx)
    return guided_instr_vectors, use_flags


# ---------------------------------- Main -------------------------------------

if __name__ == "__main__":
    cfg = dict(
        vocab_size=50, text_emb_dim=300, text_emb_dim_pad=384, pad_idx=0,
        max_len=64,
        q_hidden=128, q_nhead=8, q_nhid=4 * 128, q_nlayers=3,   # question encoder (fixed in module)
        ninp=128, nhead=8, nhid=256, nlayers=2,                 # dga constructor args
        num_queries=5, num_queries_pad=8,                       # MAX_EXECUTION_STEP (padded)
    )
    assert cfg["ninp"] == cfg["q_hidden"], "cross-attention requires matching dims"

    key = jax.random.PRNGKey(0)
    pkey, qkey, xkey, bkey = jax.random.split(key, 4)
    params = init_dga_params(pkey, cfg)

    S, B = 8, 2
    questions = jax.random.randint(qkey, (S, B), 0, cfg["vocab_size"], dtype=jnp.int32)
    sg_x = jax.random.randint(xkey, (10, 4), 0, cfg["vocab_size"], dtype=jnp.int32)   # gt_scene_graphs.x
    batch_idx = jax.random.randint(bkey, (6,), 0, 10, dtype=jnp.int32)                # batch

    jitted_numeric = jax.jit(lambda p, q: dga_numeric_forward(p, q, cfg))

    guided, use_flags = dga_forward(params, questions, sg_x, batch_idx, cfg,
                                    jitted_numeric)
    guided = jax.block_until_ready(guided)
    assert guided.shape == (cfg["num_queries"], B, cfg["ninp"])
    assert len(use_flags) == S
    print("KERNEL_OK")
</pallas_src>

<mosaic_0001>
module attributes {stable_mosaic.version = 11 : i64} {
  func.func @_encoder_stack_kernel(%arg0: i32, %arg1: memref<16x384xf32, #tpu.memory_space<vmem>>, %arg2: memref<384x128xbf16, #tpu.memory_space<vmem>>, %arg3: memref<1x128xf32, #tpu.memory_space<vmem>>, %arg4: memref<8x128xf32, #tpu.memory_space<vmem>>, %arg5: memref<1x128x384xbf16, #tpu.memory_space<vmem>>, %arg6: memref<1x1x384xf32, #tpu.memory_space<vmem>>, %arg7: memref<1x128x128xbf16, #tpu.memory_space<vmem>>, %arg8: memref<1x1x128xf32, #tpu.memory_space<vmem>>, %arg9: memref<1x128x512xbf16, #tpu.memory_space<vmem>>, %arg10: memref<1x1x512xf32, #tpu.memory_space<vmem>>, %arg11: memref<1x512x128xbf16, #tpu.memory_space<vmem>>, %arg12: memref<1x1x128xf32, #tpu.memory_space<vmem>>, %arg13: memref<1x4x128xf32, #tpu.memory_space<vmem>>, %arg14: memref<2x128xf32, #tpu.memory_space<vmem>>, %arg15: memref<16x128xf32, #tpu.memory_space<vmem>>, %arg16: memref<16x128xf32, #tpu.memory_space<vmem>>) attributes {dimension_semantics = [#tpu.dimension_semantics<arbitrary>], iteration_bounds = array<i64: 3>, scalar_prefetch = 0 : i64, scratch_operands = 1 : i64, tpu.core_type = #tpu.core_type<tc>, window_params = [{pipeline_mode = #tpu.pipeline_mode<synchronous>, transform_indices = @transform_0, window_bounds = array<i64: 16, 384>}, {pipeline_mode = #tpu.pipeline_mode<synchronous>, transform_indices = @transform_1, window_bounds = array<i64: 384, 128>}, {pipeline_mode = #tpu.pipeline_mode<synchronous>, transform_indices = @transform_2, window_bounds = array<i64: 1, 128>}, {pipeline_mode = #tpu.pipeline_mode<synchronous>, transform_indices = @transform_3, window_bounds = array<i64: 8, 128>}, {transform_indices = @transform_4, window_bounds = array<i64: 1, 128, 384>}, {transform_indices = @transform_5, window_bounds = array<i64: 1, 1, 384>}, {transform_indices = @transform_6, window_bounds = array<i64: 1, 128, 128>}, {transform_indices = @transform_7, window_bounds = array<i64: 1, 1, 128>}, {transform_indices = @transform_8, window_bounds = array<i64: 1, 128, 512>}, {transform_indices = @transform_9, window_bounds = array<i64: 1, 1, 512>}, {transform_indices = @transform_10, window_bounds = array<i64: 1, 512, 128>}, {transform_indices = @transform_11, window_bounds = array<i64: 1, 1, 128>}, {transform_indices = @transform_12, window_bounds = array<i64: 1, 4, 128>}, {pipeline_mode = #tpu.pipeline_mode<synchronous>, transform_indices = @transform_13, window_bounds = array<i64: 2, 128>}, {pipeline_mode = #tpu.pipeline_mode<synchronous>, transform_indices = @transform_14, window_bounds = array<i64: 16, 128>}]} {
    %c0 = arith.constant 0 : index
    %c0_0 = arith.constant 0 : index
    %0 = vector.load %arg1[%c0, %c0_0] : memref<16x384xf32, #tpu.memory_space<vmem>>, vector<16x384xf32>
    %1 = arith.truncf %0 : vector<16x384xf32> to vector<16x384xbf16>
    %c0_1 = arith.constant 0 : index
    %c0_2 = arith.constant 0 : index
    %2 = vector.load %arg2[%c0_1, %c0_2] : memref<384x128xbf16, #tpu.memory_space<vmem>>, vector<384x128xbf16>
    %cst = arith.constant dense<0.000000e+00> : vector<16x128xf32>
    %3 = tpu.matmul %1, %2, %cst {dimension_numbers = #tpu.dot_dimension_numbers<[1], [0], [0], [1], [0, 0, 1, 1], [], []>} : vector<16x384xbf16>, vector<384x128xbf16>, vector<16x128xf32> -> vector<16x128xf32>
    %c0_3 = arith.constant 0 : index
    %c0_4 = arith.constant 0 : index
    %4 = vector.load %arg3[%c0_3, %c0_4] : memref<1x128xf32, #tpu.memory_space<vmem>>, vector<1x128xf32>
    %5 = vector.broadcast %4 : vector<1x128xf32> to vector<16x128xf32>
    %6 = arith.addf %3, %5 : vector<16x128xf32>
    %cst_5 = arith.constant 11.3137083 : f32
    %7 = vector.broadcast %cst_5 : f32 to vector<16x128xf32>
    %8 = arith.mulf %6, %7 : vector<16x128xf32>
    %c0_6 = arith.constant 0 : index
    %c0_7 = arith.constant 0 : index
    %9 = vector.load %arg4[%c0_6, %c0_7] : memref<8x128xf32, #tpu.memory_space<vmem>>, vector<8x128xf32>
    %10 = tpu.concatenate %9, %9 in 0 : vector<8x128xf32>, vector<8x128xf32> -> vector<16x128xf32>
    %11 = arith.addf %8, %10 : vector<16x128xf32>
    %c0_i32 = arith.constant 0 : i32
    %12 = arith.cmpi eq, %arg0, %c0_i32 : i32
    %c0_8 = arith.constant 0 : index
    %c0_9 = arith.constant 0 : index
    %13 = vector.load %arg16[%c0_8, %c0_9] : memref<16x128xf32, #tpu.memory_space<vmem>>, vector<16x128xf32>
    %14 = arith.select %12, %11, %13 : vector<16x128xf32>
    %c0_10 = arith.constant 0 : index
    %c0_11 = arith.constant 0 : index
    %c0_12 = arith.constant 0 : index
    %15 = vector.load %arg13[%c0_10, %c0_11, %c0_12] : memref<1x4x128xf32, #tpu.memory_space<vmem>>, vector<1x4x128xf32>
    %16 = vector.shape_cast %15 : vector<1x4x128xf32> to vector<4x128xf32>
    %17 = arith.truncf %14 : vector<16x128xf32> to vector<16x128xbf16>
    %c0_13 = arith.constant 0 : index
    %c0_14 = arith.constant 0 : index
    %c0_15 = arith.constant 0 : index
    %18 = vector.load %arg5[%c0_13, %c0_14, %c0_15] : memref<1x128x384xbf16, #tpu.memory_space<vmem>>, vector<1x128x384xbf16>
    %19 = vector.shape_cast %18 : vector<1x128x384xbf16> to vector<128x384xbf16>
    %cst_16 = arith.constant dense<0.000000e+00> : vector<16x384xf32>
    %20 = tpu.matmul %17, %19, %cst_16 {dimension_numbers = #tpu.dot_dimension_numbers<[1], [0], [0], [1], [0, 0, 1, 1], [], []>} : vector<16x128xbf16>, vector<128x384xbf16>, vector<16x384xf32> -> vector<16x384xf32>
    %c0_17 = arith.constant 0 : index
    %c0_18 = arith.constant 0 : index
    %c0_19 = arith.constant 0 : index
    %21 = vector.load %arg6[%c0_17, %c0_18, %c0_19] : memref<1x1x384xf32, #tpu.memory_space<vmem>>, vector<1x1x384xf32>
    %22 = vector.shape_cast %21 : vector<1x1x384xf32> to vector<1x384xf32>
    %23 = vector.broadcast %22 : vector<1x384xf32> to vector<16x384xf32>
    %24 = arith.addf %20, %23 : vector<16x384xf32>
    %25 = vector.extract_strided_slice %24 {offsets = [0, 0], sizes = [16, 128], strides = [1, 1]} : vector<16x384xf32> to vector<16x128xf32>
    %26 = vector.extract_strided_slice %24 {offsets = [0, 128], sizes = [16, 128], strides = [1, 1]} : vector<16x384xf32> to vector<16x128xf32>
    %27 = vector.extract_strided_slice %24 {offsets = [0, 256], sizes = [16, 128], strides = [1, 1]} : vector<16x384xf32> to vector<16x128xf32>
    %28 = vector.extract_strided_slice %25 {offsets = [0, 0], sizes = [16, 16], strides = [1, 1]} : vector<16x128xf32> to vector<16x16xf32>
    %29 = vector.shape_cast %28 : vector<16x16xf32> to vector<2x8x16xf32>
    %30 = arith.truncf %29 : vector<2x8x16xf32> to vector<2x8x16xbf16>
    %31 = vector.extract_strided_slice %26 {offsets = [0, 0], sizes = [16, 16], strides = [1, 1]} : vector<16x128xf32> to vector<16x16xf32>
    %32 = vector.shape_cast %31 : vector<16x16xf32> to vector<2x8x16xf32>
    %33 = arith.truncf %32 : vector<2x8x16xf32> to vector<2x8x16xbf16>
    %34 = vector.extract_strided_slice %27 {offsets = [0, 0], sizes = [16, 16], strides = [1, 1]} : vector<16x128xf32> to vector<16x16xf32>
    %35 = vector.shape_cast %34 : vector<16x16xf32> to vector<2x8x16xf32>
    %36 = arith.truncf %35 : vector<2x8x16xf32> to vector<2x8x16xbf16>
    "tpu.trace_start"() <{level = 10 : i32, message = "bqd,bkd->bqk"}> : () -> ()
    %cst_20 = arith.constant dense<0.000000e+00> : vector<2x8x8xf32>
    %37 = tpu.matmul %30, %33, %cst_20 {dimension_numbers = #tpu.dot_dimension_numbers<[2], [2], [1], [1], [0, 0, 0, 1, 1, 1], [0], [0]>} : vector<2x8x16xbf16>, vector<2x8x16xbf16>, vector<2x8x8xf32> -> vector<2x8x8xf32>
    "tpu.trace_stop"() : () -> ()
    %cst_21 = arith.constant 2.500000e-01 : f32
    %38 = vector.broadcast %cst_21 : f32 to vector<2x8x8xf32>
    %39 = arith.mulf %37, %38 : vector<2x8x8xf32>
    %cst_22 = arith.constant dense<0xFF800000> : vector<2x8xf32>
    %40 = vector.multi_reduction <maximumf>, %39, %cst_22 [2] : vector<2x8x8xf32> to vector<2x8xf32>
    %41 = vector.shape_cast %40 : vector<2x8xf32> to vector<2x8x1xf32>
    %42 = vector.broadcast %41 : vector<2x8x1xf32> to vector<2x8x8xf32>
    %43 = arith.subf %39, %42 : vector<2x8x8xf32>
    %44 = math.exp %43 : vector<2x8x8xf32>
    %cst_23 = arith.constant dense<0.000000e+00> : vector<2x8xf32>
    %45 = vector.multi_reduction <add>, %44, %cst_23 [2] : vector<2x8x8xf32> to vector<2x8xf32>
    %46 = vector.shape_cast %45 : vector<2x8xf32> to vector<2x8x1xf32>
    %47 = vector.broadcast %46 : vector<2x8x1xf32> to vector<2x8x8xf32>
    %48 = arith.divf %44, %47 : vector<2x8x8xf32>
    %49 = arith.truncf %48 : vector<2x8x8xf32> to vector<2x8x8xbf16>
    "tpu.trace_start"() <{level = 10 : i32, message = "bqk,bkd->bqd"}> : () -> ()
    %cst_24 = arith.constant dense<0.000000e+00> : vector<2x8x16xf32>
    %50 = tpu.matmul %49, %36, %cst_24 {dimension_numbers = #tpu.dot_dimension_numbers<[2], [1], [1], [2], [0, 0, 0, 1, 1, 2], [0], [0]>} : vector<2x8x8xbf16>, vector<2x8x16xbf16>, vector<2x8x16xf32> -> vector<2x8x16xf32>
    "tpu.trace_stop"() : () -> ()
    %51 = vector.shape_cast %50 : vector<2x8x16xf32> to vector<16x16xf32>
    %52 = vector.extract_strided_slice %25 {offsets = [0, 16], sizes = [16, 16], strides = [1, 1]} : vector<16x128xf32> to vector<16x16xf32>
    %53 = vector.shape_cast %52 : vector<16x16xf32> to vector<2x8x16xf32>
    %54 = arith.truncf %53 : vector<2x8x16xf32> to vector<2x8x16xbf16>
    %55 = vector.extract_strided_slice %26 {offsets = [0, 16], sizes = [16, 16], strides = [1, 1]} : vector<16x128xf32> to vector<16x16xf32>
    %56 = vector.shape_cast %55 : vector<16x16xf32> to vector<2x8x16xf32>
    %57 = arith.truncf %56 : vector<2x8x16xf32> to vector<2x8x16xbf16>
    %58 = vector.extract_strided_slice %27 {offsets = [0, 16], sizes = [16, 16], strides = [1, 1]} : vector<16x128xf32> to vector<16x16xf32>
    %59 = vector.shape_cast %58 : vector<16x16xf32> to vector<2x8x16xf32>
    %60 = arith.truncf %59 : vector<2x8x16xf32> to vector<2x8x16xbf16>
    "tpu.trace_start"() <{level = 10 : i32, message = "bqd,bkd->bqk"}> : () -> ()
    %cst_25 = arith.constant dense<0.000000e+00> : vector<2x8x8xf32>
    %61 = tpu.matmul %54, %57, %cst_25 {dimension_numbers = #tpu.dot_dimension_numbers<[2], [2], [1], [1], [0, 0, 0, 1, 1, 1], [0], [0]>} : vector<2x8x16xbf16>, vector<2x8x16xbf16>, vector<2x8x8xf32> -> vector<2x8x8xf32>
    "tpu.trace_stop"() : () -> ()
    %cst_26 = arith.constant 2.500000e-01 : f32
    %62 = vector.broadcast %cst_26 : f32 to vector<2x8x8xf32>
    %63 = arith.mulf %61, %62 : vector<2x8x8xf32>
    %cst_27 = arith.constant dense<0xFF800000> : vector<2x8xf32>
    %64 = vector.multi_reduction <maximumf>, %63, %cst_27 [2] : vector<2x8x8xf32> to vector<2x8xf32>
    %65 = vector.shape_cast %64 : vector<2x8xf32> to vector<2x8x1xf32>
    %66 = vector.broadcast %65 : vector<2x8x1xf32> to vector<2x8x8xf32>
    %67 = arith.subf %63, %66 : vector<2x8x8xf32>
    %68 = math.exp %67 : vector<2x8x8xf32>
    %cst_28 = arith.constant dense<0.000000e+00> : vector<2x8xf32>
    %69 = vector.multi_reduction <add>, %68, %cst_28 [2] : vector<2x8x8xf32> to vector<2x8xf32>
    %70 = vector.shape_cast %69 : vector<2x8xf32> to vector<2x8x1xf32>
    %71 = vector.broadcast %70 : vector<2x8x1xf32> to vector<2x8x8xf32>
    %72 = arith.divf %68, %71 : vector<2x8x8xf32>
    %73 = arith.truncf %72 : vector<2x8x8xf32> to vector<2x8x8xbf16>
    "tpu.trace_start"() <{level = 10 : i32, message = "bqk,bkd->bqd"}> : () -> ()
    %cst_29 = arith.constant dense<0.000000e+00> : vector<2x8x16xf32>
    %74 = tpu.matmul %73, %60, %cst_29 {dimension_numbers = #tpu.dot_dimension_numbers<[2], [1], [1], [2], [0, 0, 0, 1, 1, 2], [0], [0]>} : vector<2x8x8xbf16>, vector<2x8x16xbf16>, vector<2x8x16xf32> -> vector<2x8x16xf32>
    "tpu.trace_stop"() : () -> ()
    %75 = vector.shape_cast %74 : vector<2x8x16xf32> to vector<16x16xf32>
    %76 = vector.extract_strided_slice %25 {offsets = [0, 32], sizes = [16, 16], strides = [1, 1]} : vector<16x128xf32> to vector<16x16xf32>
    %77 = vector.shape_cast %76 : vector<16x16xf32> to vector<2x8x16xf32>
    %78 = arith.truncf %77 : vector<2x8x16xf32> to vector<2x8x16xbf16>
    %79 = vector.extract_strided_slice %26 {offsets = [0, 32], sizes = [16, 16], strides = [1, 1]} : vector<16x128xf32> to vector<16x16xf32>
    %80 = vector.shape_cast %79 : vector<16x16xf32> to vector<2x8x16xf32>
    %81 = arith.truncf %80 : vector<2x8x16xf32> to vector<2x8x16xbf16>
    %82 = vector.extract_strided_slice %27 {offsets = [0, 32], sizes = [16, 16], strides = [1, 1]} : vector<16x128xf32> to vector<16x16xf32>
    %83 = vector.shape_cast %82 : vector<16x16xf32> to vector<2x8x16xf32>
    %84 = arith.truncf %83 : vector<2x8x16xf32> to vector<2x8x16xbf16>
    "tpu.trace_start"() <{level = 10 : i32, message = "bqd,bkd->bqk"}> : () -> ()
    %cst_30 = arith.constant dense<0.000000e+00> : vector<2x8x8xf32>
    %85 = tpu.matmul %78, %81, %cst_30 {dimension_numbers = #tpu.dot_dimension_numbers<[2], [2], [1], [1], [0, 0, 0, 1, 1, 1], [0], [0]>} : vector<2x8x16xbf16>, vector<2x8x16xbf16>, vector<2x8x8xf32> -> vector<2x8x8xf32>
    "tpu.trace_stop"() : () -> ()
    %cst_31 = arith.constant 2.500000e-01 : f32
    %86 = vector.broadcast %cst_31 : f32 to vector<2x8x8xf32>
    %87 = arith.mulf %85, %86 : vector<2x8x8xf32>
    %cst_32 = arith.constant dense<0xFF800000> : vector<2x8xf32>
    %88 = vector.multi_reduction <maximumf>, %87, %cst_32 [2] : vector<2x8x8xf32> to vector<2x8xf32>
    %89 = vector.shape_cast %88 : vector<2x8xf32> to vector<2x8x1xf32>
    %90 = vector.broadcast %89 : vector<2x8x1xf32> to vector<2x8x8xf32>
    %91 = arith.subf %87, %90 : vector<2x8x8xf32>
    %92 = math.exp %91 : vector<2x8x8xf32>
    %cst_33 = arith.constant dense<0.000000e+00> : vector<2x8xf32>
    %93 = vector.multi_reduction <add>, %92, %cst_33 [2] : vector<2x8x8xf32> to vector<2x8xf32>
    %94 = vector.shape_cast %93 : vector<2x8xf32> to vector<2x8x1xf32>
    %95 = vector.broadcast %94 : vector<2x8x1xf32> to vector<2x8x8xf32>
    %96 = arith.divf %92, %95 : vector<2x8x8xf32>
    %97 = arith.truncf %96 : vector<2x8x8xf32> to vector<2x8x8xbf16>
    "tpu.trace_start"() <{level = 10 : i32, message = "bqk,bkd->bqd"}> : () -> ()
    %cst_34 = arith.constant dense<0.000000e+00> : vector<2x8x16xf32>
    %98 = tpu.matmul %97, %84, %cst_34 {dimension_numbers = #tpu.dot_dimension_numbers<[2], [1], [1], [2], [0, 0, 0, 1, 1, 2], [0], [0]>} : vector<2x8x8xbf16>, vector<2x8x16xbf16>, vector<2x8x16xf32> -> vector<2x8x16xf32>
    "tpu.trace_stop"() : () -> ()
    %99 = vector.shape_cast %98 : vector<2x8x16xf32> to vector<16x16xf32>
    %100 = vector.extract_strided_slice %25 {offsets = [0, 48], sizes = [16, 16], strides = [1, 1]} : vector<16x128xf32> to vector<16x16xf32>
    %101 = vector.shape_cast %100 : vector<16x16xf32> to vector<2x8x16xf32>
    %102 = arith.truncf %101 : vector<2x8x16xf32> to vector<2x8x16xbf16>
    %103 = vector.extract_strided_slice %26 {offsets = [0, 48], sizes = [16, 16], strides = [1, 1]} : vector<16x128xf32> to vector<16x16xf32>
    %104 = vector.shape_cast %103 : vector<16x16xf32> to vector<2x8x16xf32>
    %105 = arith.truncf %104 : vector<2x8x16xf32> to vector<2x8x16xbf16>
    %106 = vector.extract_strided_slice %27 {offsets = [0, 48], sizes = [16, 16], strides = [1, 1]} : vector<16x128xf32> to vector<16x16xf32>
    %107 = vector.shape_cast %106 : vector<16x16xf32> to vector<2x8x16xf32>
    %108 = arith.truncf %107 : vector<2x8x16xf32> to vector<2x8x16xbf16>
    "tpu.trace_start"() <{level = 10 : i32, message = "bqd,bkd->bqk"}> : () -> ()
    %cst_35 = arith.constant dense<0.000000e+00> : vector<2x8x8xf32>
    %109 = tpu.matmul %102, %105, %cst_35 {dimension_numbers = #tpu.dot_dimension_numbers<[2], [2], [1], [1], [0, 0, 0, 1, 1, 1], [0], [0]>} : vector<2x8x16xbf16>, vector<2x8x16xbf16>, vector<2x8x8xf32> -> vector<2x8x8xf32>
    "tpu.trace_stop"() : () -> ()
    %cst_36 = arith.constant 2.500000e-01 : f32
    %110 = vector.broadcast %cst_36 : f32 to vector<2x8x8xf32>
    %111 = arith.mulf %109, %110 : vector<2x8x8xf32>
    %cst_37 = arith.constant dense<0xFF800000> : vector<2x8xf32>
    %112 = vector.multi_reduction <maximumf>, %111, %cst_37 [2] : vector<2x8x8xf32> to vector<2x8xf32>
    %113 = vector.shape_cast %112 : vector<2x8xf32> to vector<2x8x1xf32>
    %114 = vector.broadcast %113 : vector<2x8x1xf32> to vector<2x8x8xf32>
    %115 = arith.subf %111, %114 : vector<2x8x8xf32>
    %116 = math.exp %115 : vector<2x8x8xf32>
    %cst_38 = arith.constant dense<0.000000e+00> : vector<2x8xf32>
    %117 = vector.multi_reduction <add>, %116, %cst_38 [2] : vector<2x8x8xf32> to vector<2x8xf32>
    %118 = vector.shape_cast %117 : vector<2x8xf32> to vector<2x8x1xf32>
    %119 = vector.broadcast %118 : vector<2x8x1xf32> to vector<2x8x8xf32>
    %120 = arith.divf %116, %119 : vector<2x8x8xf32>
    %121 = arith.truncf %120 : vector<2x8x8xf32> to vector<2x8x8xbf16>
    "tpu.trace_start"() <{level = 10 : i32, message = "bqk,bkd->bqd"}> : () -> ()
    %cst_39 = arith.constant dense<0.000000e+00> : vector<2x8x16xf32>
    %122 = tpu.matmul %121, %108, %cst_39 {dimension_numbers = #tpu.dot_dimension_numbers<[2], [1], [1], [2], [0, 0, 0, 1, 1, 2], [0], [0]>} : vector<2x8x8xbf16>, vector<2x8x16xbf16>, vector<2x8x16xf32> -> vector<2x8x16xf32>
    "tpu.trace_stop"() : () -> ()
    %123 = vector.shape_cast %122 : vector<2x8x16xf32> to vector<16x16xf32>
    %124 = vector.extract_strided_slice %25 {offsets = [0, 64], sizes = [16, 16], strides = [1, 1]} : vector<16x128xf32> to vector<16x16xf32>
    %125 = vector.shape_cast %124 : vector<16x16xf32> to vector<2x8x16xf32>
    %126 = arith.truncf %125 : vector<2x8x16xf32> to vector<2x8x16xbf16>
    %127 = vector.extract_strided_slice %26 {offsets = [0, 64], sizes = [16, 16], strides = [1, 1]} : vector<16x128xf32> to vector<16x16xf32>
    %128 = vector.shape_cast %127 : vector<16x16xf32> to vector<2x8x16xf32>
    %129 = arith.truncf %128 : vector<2x8x16xf32> to vector<2x8x16xbf16>
    %130 = vector.extract_strided_slice %27 {offsets = [0, 64], sizes = [16, 16], strides = [1, 1]} : vector<16x128xf32> to vector<16x16xf32>
    %131 = vector.shape_cast %130 : vector<16x16xf32> to vector<2x8x16xf32>
    %132 = arith.truncf %131 : vector<2x8x16xf32> to vector<2x8x16xbf16>
    "tpu.trace_start"() <{level = 10 : i32, message = "bqd,bkd->bqk"}> : () -> ()
    %cst_40 = arith.constant dense<0.000000e+00> : vector<2x8x8xf32>
    %133 = tpu.matmul %126, %129, %cst_40 {dimension_numbers = #tpu.dot_dimension_numbers<[2], [2], [1], [1], [0, 0, 0, 1, 1, 1], [0], [0]>} : vector<2x8x16xbf16>, vector<2x8x16xbf16>, vector<2x8x8xf32> -> vector<2x8x8xf32>
    "tpu.trace_stop"() : () -> ()
    %cst_41 = arith.constant 2.500000e-01 : f32
    %134 = vector.broadcast %cst_41 : f32 to vector<2x8x8xf32>
    %135 = arith.mulf %133, %134 : vector<2x8x8xf32>
    %cst_42 = arith.constant dense<0xFF800000> : vector<2x8xf32>
    %136 = vector.multi_reduction <maximumf>, %135, %cst_42 [2] : vector<2x8x8xf32> to vector<2x8xf32>
    %137 = vector.shape_cast %136 : vector<2x8xf32> to vector<2x8x1xf32>
    %138 = vector.broadcast %137 : vector<2x8x1xf32> to vector<2x8x8xf32>
    %139 = arith.subf %135, %138 : vector<2x8x8xf32>
    %140 = math.exp %139 : vector<2x8x8xf32>
    %cst_43 = arith.constant dense<0.000000e+00> : vector<2x8xf32>
    %141 = vector.multi_reduction <add>, %140, %cst_43 [2] : vector<2x8x8xf32> to vector<2x8xf32>
    %142 = vector.shape_cast %141 : vector<2x8xf32> to vector<2x8x1xf32>
    %143 = vector.broadcast %142 : vector<2x8x1xf32> to vector<2x8x8xf32>
    %144 = arith.divf %140, %143 : vector<2x8x8xf32>
    %145 = arith.truncf %144 : vector<2x8x8xf32> to vector<2x8x8xbf16>
    "tpu.trace_start"() <{level = 10 : i32, message = "bqk,bkd->bqd"}> : () -> ()
    %cst_44 = arith.constant dense<0.000000e+00> : vector<2x8x16xf32>
    %146 = tpu.matmul %145, %132, %cst_44 {dimension_numbers = #tpu.dot_dimension_numbers<[2], [1], [1], [2], [0, 0, 0, 1, 1, 2], [0], [0]>} : vector<2x8x8xbf16>, vector<2x8x16xbf16>, vector<2x8x16xf32> -> vector<2x8x16xf32>
    "tpu.trace_stop"() : () -> ()
    %147 = vector.shape_cast %146 : vector<2x8x16xf32> to vector<16x16xf32>
    %148 = vector.extract_strided_slice %25 {offsets = [0, 80], sizes = [16, 16], strides = [1, 1]} : vector<16x128xf32> to vector<16x16xf32>
    %149 = vector.shape_cast %148 : vector<16x16xf32> to vector<2x8x16xf32>
    %150 = arith.truncf %149 : vector<2x8x16xf32> to vector<2x8x16xbf16>
    %151 = vector.extract_strided_slice %26 {offsets = [0, 80], sizes = [16, 16], strides = [1, 1]} : vector<16x128xf32> to vector<16x16xf32>
    %152 = vector.shape_cast %151 : vector<16x16xf32> to vector<2x8x16xf32>
    %153 = arith.truncf %152 : vector<2x8x16xf32> to vector<2x8x16xbf16>
    %154 = vector.extract_strided_slice %27 {offsets = [0, 80], sizes = [16, 16], strides = [1, 1]} : vector<16x128xf32> to vector<16x16xf32>
    %155 = vector.shape_cast %154 : vector<16x16xf32> to vector<2x8x16xf32>
    %156 = arith.truncf %155 : vector<2x8x16xf32> to vector<2x8x16xbf16>
    "tpu.trace_start"() <{level = 10 : i32, message = "bqd,bkd->bqk"}> : () -> ()
    %cst_45 = arith.constant dense<0.000000e+00> : vector<2x8x8xf32>
    %157 = tpu.matmul %150, %153, %cst_45 {dimension_numbers = #tpu.dot_dimension_numbers<[2], [2], [1], [1], [0, 0, 0, 1, 1, 1], [0], [0]>} : vector<2x8x16xbf16>, vector<2x8x16xbf16>, vector<2x8x8xf32> -> vector<2x8x8xf32>
    "tpu.trace_stop"() : () -> ()
    %cst_46 = arith.constant 2.500000e-01 : f32
    %158 = vector.broadcast %cst_46 : f32 to vector<2x8x8xf32>
    %159 = arith.mulf %157, %158 : vector<2x8x8xf32>
    %cst_47 = arith.constant dense<0xFF800000> : vector<2x8xf32>
    %160 = vector.multi_reduction <maximumf>, %159, %cst_47 [2] : vector<2x8x8xf32> to vector<2x8xf32>
    %161 = vector.shape_cast %160 : vector<2x8xf32> to vector<2x8x1xf32>
    %162 = vector.broadcast %161 : vector<2x8x1xf32> to vector<2x8x8xf32>
    %163 = arith.subf %159, %162 : vector<2x8x8xf32>
    %164 = math.exp %163 : vector<2x8x8xf32>
    %cst_48 = arith.constant dense<0.000000e+00> : vector<2x8xf32>
    %165 = vector.multi_reduction <add>, %164, %cst_48 [2] : vector<2x8x8xf32> to vector<2x8xf32>
    %166 = vector.shape_cast %165 : vector<2x8xf32> to vector<2x8x1xf32>
    %167 = vector.broadcast %166 : vector<2x8x1xf32> to vector<2x8x8xf32>
    %168 = arith.divf %164, %167 : vector<2x8x8xf32>
    %169 = arith.truncf %168 : vector<2x8x8xf32> to vector<2x8x8xbf16>
    "tpu.trace_start"() <{level = 10 : i32, message = "bqk,bkd->bqd"}> : () -> ()
    %cst_49 = arith.constant dense<0.000000e+00> : vector<2x8x16xf32>
    %170 = tpu.matmul %169, %156, %cst_49 {dimension_numbers = #tpu.dot_dimension_numbers<[2], [1], [1], [2], [0, 0, 0, 1, 1, 2], [0], [0]>} : vector<2x8x8xbf16>, vector<2x8x16xbf16>, vector<2x8x16xf32> -> vector<2x8x16xf32>
    "tpu.trace_stop"() : () -> ()
    %171 = vector.shape_cast %170 : vector<2x8x16xf32> to vector<16x16xf32>
    %172 = vector.extract_strided_slice %25 {offsets = [0, 96], sizes = [16, 16], strides = [1, 1]} : vector<16x128xf32> to vector<16x16xf32>
    %173 = vector.shape_cast %172 : vector<16x16xf32> to vector<2x8x16xf32>
    %174 = arith.truncf %173 : vector<2x8x16xf32> to vector<2x8x16xbf16>
    %175 = vector.extract_strided_slice %26 {offsets = [0, 96], sizes = [16, 16], strides = [1, 1]} : vector<16x128xf32> to vector<16x16xf32>
    %176 = vector.shape_cast %175 : vector<16x16xf32> to vector<2x8x16xf32>
    %177 = arith.truncf %176 : vector<2x8x16xf32> to vector<2x8x16xbf16>
    %178 = vector.extract_strided_slice %27 {offsets = [0, 96], sizes = [16, 16], strides = [1, 1]} : vector<16x128xf32> to vector<16x16xf32>
    %179 = vector.shape_cast %178 : vector<16x16xf32> to vector<2x8x16xf32>
    %180 = arith.truncf %179 : vector<2x8x16xf32> to vector<2x8x16xbf16>
    "tpu.trace_start"() <{level = 10 : i32, message = "bqd,bkd->bqk"}> : () -> ()
    %cst_50 = arith.constant dense<0.000000e+00> : vector<2x8x8xf32>
    %181 = tpu.matmul %174, %177, %cst_50 {dimension_numbers = #tpu.dot_dimension_numbers<[2], [2], [1], [1], [0, 0, 0, 1, 1, 1], [0], [0]>} : vector<2x8x16xbf16>, vector<2x8x16xbf16>, vector<2x8x8xf32> -> vector<2x8x8xf32>
    "tpu.trace_stop"() : () -> ()
    %cst_51 = arith.constant 2.500000e-01 : f32
    %182 = vector.broadcast %cst_51 : f32 to vector<2x8x8xf32>
    %183 = arith.mulf %181, %182 : vector<2x8x8xf32>
    %cst_52 = arith.constant dense<0xFF800000> : vector<2x8xf32>
    %184 = vector.multi_reduction <maximumf>, %183, %cst_52 [2] : vector<2x8x8xf32> to vector<2x8xf32>
    %185 = vector.shape_cast %184 : vector<2x8xf32> to vector<2x8x1xf32>
    %186 = vector.broadcast %185 : vector<2x8x1xf32> to vector<2x8x8xf32>
    %187 = arith.subf %183, %186 : vector<2x8x8xf32>
    %188 = math.exp %187 : vector<2x8x8xf32>
    %cst_53 = arith.constant dense<0.000000e+00> : vector<2x8xf32>
    %189 = vector.multi_reduction <add>, %188, %cst_53 [2] : vector<2x8x8xf32> to vector<2x8xf32>
    %190 = vector.shape_cast %189 : vector<2x8xf32> to vector<2x8x1xf32>
    %191 = vector.broadcast %190 : vector<2x8x1xf32> to vector<2x8x8xf32>
    %192 = arith.divf %188, %191 : vector<2x8x8xf32>
    %193 = arith.truncf %192 : vector<2x8x8xf32> to vector<2x8x8xbf16>
    "tpu.trace_start"() <{level = 10 : i32, message = "bqk,bkd->bqd"}> : () -> ()
    %cst_54 = arith.constant dense<0.000000e+00> : vector<2x8x16xf32>
    %194 = tpu.matmul %193, %180, %cst_54 {dimension_numbers = #tpu.dot_dimension_numbers<[2], [1], [1], [2], [0, 0, 0, 1, 1, 2], [0], [0]>} : vector<2x8x8xbf16>, vector<2x8x16xbf16>, vector<2x8x16xf32> -> vector<2x8x16xf32>
    "tpu.trace_stop"() : () -> ()
    %195 = vector.shape_cast %194 : vector<2x8x16xf32> to vector<16x16xf32>
    %196 = vector.extract_strided_slice %25 {offsets = [0, 112], sizes = [16, 16], strides = [1, 1]} : vector<16x128xf32> to vector<16x16xf32>
    %197 = vector.shape_cast %196 : vector<16x16xf32> to vector<2x8x16xf32>
    %198 = arith.truncf %197 : vector<2x8x16xf32> to vector<2x8x16xbf16>
    %199 = vector.extract_strided_slice %26 {offsets = [0, 112], sizes = [16, 16], strides = [1, 1]} : vector<16x128xf32> to vector<16x16xf32>
    %200 = vector.shape_cast %199 : vector<16x16xf32> to vector<2x8x16xf32>
    %201 = arith.truncf %200 : vector<2x8x16xf32> to vector<2x8x16xbf16>
    %202 = vector.extract_strided_slice %27 {offsets = [0, 112], sizes = [16, 16], strides = [1, 1]} : vector<16x128xf32> to vector<16x16xf32>
    %203 = vector.shape_cast %202 : vector<16x16xf32> to vector<2x8x16xf32>
    %204 = arith.truncf %203 : vector<2x8x16xf32> to vector<2x8x16xbf16>
    "tpu.trace_start"() <{level = 10 : i32, message = "bqd,bkd->bqk"}> : () -> ()
    %cst_55 = arith.constant dense<0.000000e+00> : vector<2x8x8xf32>
    %205 = tpu.matmul %198, %201, %cst_55 {dimension_numbers = #tpu.dot_dimension_numbers<[2], [2], [1], [1], [0, 0, 0, 1, 1, 1], [0], [0]>} : vector<2x8x16xbf16>, vector<2x8x16xbf16>, vector<2x8x8xf32> -> vector<2x8x8xf32>
    "tpu.trace_stop"() : () -> ()
    %cst_56 = arith.constant 2.500000e-01 : f32
    %206 = vector.broadcast %cst_56 : f32 to vector<2x8x8xf32>
    %207 = arith.mulf %205, %206 : vector<2x8x8xf32>
    %cst_57 = arith.constant dense<0xFF800000> : vector<2x8xf32>
    %208 = vector.multi_reduction <maximumf>, %207, %cst_57 [2] : vector<2x8x8xf32> to vector<2x8xf32>
    %209 = vector.shape_cast %208 : vector<2x8xf32> to vector<2x8x1xf32>
    %210 = vector.broadcast %209 : vector<2x8x1xf32> to vector<2x8x8xf32>
    %211 = arith.subf %207, %210 : vector<2x8x8xf32>
    %212 = math.exp %211 : vector<2x8x8xf32>
    %cst_58 = arith.constant dense<0.000000e+00> : vector<2x8xf32>
    %213 = vector.multi_reduction <add>, %212, %cst_58 [2] : vector<2x8x8xf32> to vector<2x8xf32>
    %214 = vector.shape_cast %213 : vector<2x8xf32> to vector<2x8x1xf32>
    %215 = vector.broadcast %214 : vector<2x8x1xf32> to vector<2x8x8xf32>
    %216 = arith.divf %212, %215 : vector<2x8x8xf32>
    %217 = arith.truncf %216 : vector<2x8x8xf32> to vector<2x8x8xbf16>
    "tpu.trace_start"() <{level = 10 : i32, message = "bqk,bkd->bqd"}> : () -> ()
    %cst_59 = arith.constant dense<0.000000e+00> : vector<2x8x16xf32>
    %218 = tpu.matmul %217, %204, %cst_59 {dimension_numbers = #tpu.dot_dimension_numbers<[2], [1], [1], [2], [0, 0, 0, 1, 1, 2], [0], [0]>} : vector<2x8x8xbf16>, vector<2x8x16xbf16>, vector<2x8x16xf32> -> vector<2x8x16xf32>
    "tpu.trace_stop"() : () -> ()
    %219 = vector.shape_cast %218 : vector<2x8x16xf32> to vector<16x16xf32>
    %220 = tpu.concatenate %51, %75, %99, %123, %147, %171, %195, %219 in 1 : vector<16x16xf32>, vector<16x16xf32>, vector<16x16xf32>, vector<16x16xf32>, vector<16x16xf32>, vector<16x16xf32>, vector<16x16xf32>, vector<16x16xf32> -> vector<16x128xf32>
    %221 = arith.truncf %220 : vector<16x128xf32> to vector<16x128xbf16>
    %c0_60 = arith.constant 0 : index
    %c0_61 = arith.constant 0 : index
    %c0_62 = arith.constant 0 : index
    %222 = vector.load %arg7[%c0_60, %c0_61, %c0_62] : memref<1x128x128xbf16, #tpu.memory_space<vmem>>, vector<1x128x128xbf16>
    %223 = vector.shape_cast %222 : vector<1x128x128xbf16> to vector<128x128xbf16>
    %cst_63 = arith.constant dense<0.000000e+00> : vector<16x128xf32>
    %224 = tpu.matmul %221, %223, %cst_63 {dimension_numbers = #tpu.dot_dimension_numbers<[1], [0], [0], [1], [0, 0, 1, 1], [], []>} : vector<16x128xbf16>, vector<128x128xbf16>, vector<16x128xf32> -> vector<16x128xf32>
    %c0_64 = arith.constant 0 : index
    %c0_65 = arith.constant 0 : index
    %c0_66 = arith.constant 0 : index
    %225 = vector.load %arg8[%c0_64, %c0_65, %c0_66] : memref<1x1x128xf32, #tpu.memory_space<vmem>>, vector<1x1x128xf32>
    %226 = vector.shape_cast %225 : vector<1x1x128xf32> to vector<1x128xf32>
    %227 = vector.broadcast %226 : vector<1x128xf32> to vector<16x128xf32>
    %228 = arith.addf %224, %227 : vector<16x128xf32>
    %229 = arith.addf %14, %228 : vector<16x128xf32>
    %230 = vector.extract_strided_slice %16 {offsets = [0, 0], sizes = [1, 128], strides = [1, 1]} : vector<4x128xf32> to vector<1x128xf32>
    %231 = vector.extract_strided_slice %16 {offsets = [1, 0], sizes = [1, 128], strides = [1, 1]} : vector<4x128xf32> to vector<1x128xf32>
    %cst_67 = arith.constant dense<0.000000e+00> : vector<16xf32>
    %232 = vector.multi_reduction <add>, %229, %cst_67 [1] : vector<16x128xf32> to vector<16xf32>
    %233 = vector.shape_cast %232 : vector<16xf32> to vector<16x1xf32>
    %cst_68 = arith.constant 1.280000e+02 : f32
    %234 = vector.broadcast %cst_68 : f32 to vector<16x1xf32>
    %235 = arith.divf %233, %234 : vector<16x1xf32>
    %236 = vector.broadcast %235 : vector<16x1xf32> to vector<16x128xf32>
    %237 = arith.subf %229, %236 : vector<16x128xf32>
    %238 = arith.mulf %237, %237 : vector<16x128xf32>
    %cst_69 = arith.constant dense<0.000000e+00> : vector<16xf32>
    %239 = vector.multi_reduction <add>, %238, %cst_69 [1] : vector<16x128xf32> to vector<16xf32>
    %240 = vector.shape_cast %239 : vector<16xf32> to vector<16x1xf32>
    %cst_70 = arith.constant 1.280000e+02 : f32
    %241 = vector.broadcast %cst_70 : f32 to vector<16x1xf32>
    %242 = arith.divf %240, %241 : vector<16x1xf32>
    %243 = vector.broadcast %235 : vector<16x1xf32> to vector<16x128xf32>
    %244 = arith.subf %229, %243 : vector<16x128xf32>
    %cst_71 = arith.constant 9.99999974E-6 : f32
    %245 = vector.broadcast %cst_71 : f32 to vector<16x1xf32>
    %246 = arith.addf %242, %245 : vector<16x1xf32>
    %247 = math.rsqrt %246 : vector<16x1xf32>
    %248 = vector.broadcast %247 : vector<16x1xf32> to vector<16x128xf32>
    %249 = arith.mulf %244, %248 : vector<16x128xf32>
    %250 = vector.broadcast %230 : vector<1x128xf32> to vector<16x128xf32>
    %251 = arith.mulf %249, %250 : vector<16x128xf32>
    %252 = vector.broadcast %231 : vector<1x128xf32> to vector<16x128xf32>
    %253 = arith.addf %251, %252 : vector<16x128xf32>
    %254 = arith.truncf %253 : vector<16x128xf32> to vector<16x128xbf16>
    %c0_72 = arith.constant 0 : index
    %c0_73 = arith.constant 0 : index
    %c0_74 = arith.constant 0 : index
    %255 = vector.load %arg9[%c0_72, %c0_73, %c0_74] : memref<1x128x512xbf16, #tpu.memory_space<vmem>>, vector<1x128x512xbf16>
    %256 = vector.shape_cast %255 : vector<1x128x512xbf16> to vector<128x512xbf16>
    %cst_75 = arith.constant dense<0.000000e+00> : vector<16x512xf32>
    %257 = tpu.matmul %254, %256, %cst_75 {dimension_numbers = #tpu.dot_dimension_numbers<[1], [0], [0], [1], [0, 0, 1, 1], [], []>} : vector<16x128xbf16>, vector<128x512xbf16>, vector<16x512xf32> -> vector<16x512xf32>
    %c0_76 = arith.constant 0 : index
    %c0_77 = arith.constant 0 : index
    %c0_78 = arith.constant 0 : index
    %258 = vector.load %arg10[%c0_76, %c0_77, %c0_78] : memref<1x1x512xf32, #tpu.memory_space<vmem>>, vector<1x1x512xf32>
    %259 = vector.shape_cast %258 : vector<1x1x512xf32> to vector<1x512xf32>
    %260 = vector.broadcast %259 : vector<1x512xf32> to vector<16x512xf32>
    %261 = arith.addf %257, %260 : vector<16x512xf32>
    %cst_79 = arith.constant 0.000000e+00 : f32
    %262 = vector.broadcast %cst_79 : f32 to vector<16x512xf32>
    %263 = arith.maximumf %261, %262 : vector<16x512xf32>
    %264 = arith.truncf %263 : vector<16x512xf32> to vector<16x512xbf16>
    %c0_80 = arith.constant 0 : index
    %c0_81 = arith.constant 0 : index
    %c0_82 = arith.constant 0 : index
    %265 = vector.load %arg11[%c0_80, %c0_81, %c0_82] : memref<1x512x128xbf16, #tpu.memory_space<vmem>>, vector<1x512x128xbf16>
    %266 = vector.shape_cast %265 : vector<1x512x128xbf16> to vector<512x128xbf16>
    %cst_83 = arith.constant dense<0.000000e+00> : vector<16x128xf32>
    %267 = tpu.matmul %264, %266, %cst_83 {dimension_numbers = #tpu.dot_dimension_numbers<[1], [0], [0], [1], [0, 0, 1, 1], [], []>} : vector<16x512xbf16>, vector<512x128xbf16>, vector<16x128xf32> -> vector<16x128xf32>
    %c0_84 = arith.constant 0 : index
    %c0_85 = arith.constant 0 : index
    %c0_86 = arith.constant 0 : index
    %268 = vector.load %arg12[%c0_84, %c0_85, %c0_86] : memref<1x1x128xf32, #tpu.memory_space<vmem>>, vector<1x1x128xf32>
    %269 = vector.shape_cast %268 : vector<1x1x128xf32> to vector<1x128xf32>
    %270 = vector.broadcast %269 : vector<1x128xf32> to vector<16x128xf32>
    %271 = arith.addf %267, %270 : vector<16x128xf32>
    %272 = arith.addf %253, %271 : vector<16x128xf32>
    %273 = vector.extract_strided_slice %16 {offsets = [2, 0], sizes = [1, 128], strides = [1, 1]} : vector<4x128xf32> to vector<1x128xf32>
    %274 = vector.extract_strided_slice %16 {offsets = [3, 0], sizes = [1, 128], strides = [1, 1]} : vector<4x128xf32> to vector<1x128xf32>
    %cst_87 = arith.constant dense<0.000000e+00> : vector<16xf32>
    %275 = vector.multi_reduction <add>, %272, %cst_87 [1] : vector<16x128xf32> to vector<16xf32>
    %276 = vector.shape_cast %275 : vector<16xf32> to vector<16x1xf32>
    %cst_88 = arith.constant 1.280000e+02 : f32
    %277 = vector.broadcast %cst_88 : f32 to vector<16x1xf32>
    %278 = arith.divf %276, %277 : vector<16x1xf32>
    %279 = vector.broadcast %278 : vector<16x1xf32> to vector<16x128xf32>
    %280 = arith.subf %272, %279 : vector<16x128xf32>
    %281 = arith.mulf %280, %280 : vector<16x128xf32>
    %cst_89 = arith.constant dense<0.000000e+00> : vector<16xf32>
    %282 = vector.multi_reduction <add>, %281, %cst_89 [1] : vector<16x128xf32> to vector<16xf32>
    %283 = vector.shape_cast %282 : vector<16xf32> to vector<16x1xf32>
    %cst_90 = arith.constant 1.280000e+02 : f32
    %284 = vector.broadcast %cst_90 : f32 to vector<16x1xf32>
    %285 = arith.divf %283, %284 : vector<16x1xf32>
    %286 = vector.broadcast %278 : vector<16x1xf32> to vector<16x128xf32>
    %287 = arith.subf %272, %286 : vector<16x128xf32>
    %cst_91 = arith.constant 9.99999974E-6 : f32
    %288 = vector.broadcast %cst_91 : f32 to vector<16x1xf32>
    %289 = arith.addf %285, %288 : vector<16x1xf32>
    %290 = math.rsqrt %289 : vector<16x1xf32>
    %291 = vector.broadcast %290 : vector<16x1xf32> to vector<16x128xf32>
    %292 = arith.mulf %287, %291 : vector<16x128xf32>
    %293 = vector.broadcast %273 : vector<1x128xf32> to vector<16x128xf32>
    %294 = arith.mulf %292, %293 : vector<16x128xf32>
    %295 = vector.broadcast %274 : vector<1x128xf32> to vector<16x128xf32>
    %296 = arith.addf %294, %295 : vector<16x128xf32>
    %c0_92 = arith.constant 0 : index
    %c0_93 = arith.constant 0 : index
    %297 = vector.load %arg16[%c0_92, %c0_93] : memref<16x128xf32, #tpu.memory_space<vmem>>, vector<16x128xf32>
    tpu.vector_store %arg16[%c0_92, %c0_93], %296 {strides = array<i32>} : memref<16x128xf32, #tpu.memory_space<vmem>>, vector<16x128xf32>,
    %c0_94 = arith.constant 0 : index
    %c0_95 = arith.constant 0 : index
    %298 = vector.load %arg14[%c0_94, %c0_95] : memref<2x128xf32, #tpu.memory_space<vmem>>, vector<2x128xf32>
    %299 = vector.extract_strided_slice %298 {offsets = [0, 0], sizes = [1, 128], strides = [1, 1]} : vector<2x128xf32> to vector<1x128xf32>
    %300 = vector.extract_strided_slice %298 {offsets = [1, 0], sizes = [1, 128], strides = [1, 1]} : vector<2x128xf32> to vector<1x128xf32>
    %cst_96 = arith.constant dense<0.000000e+00> : vector<16xf32>
    %301 = vector.multi_reduction <add>, %296, %cst_96 [1] : vector<16x128xf32> to vector<16xf32>
    %302 = vector.shape_cast %301 : vector<16xf32> to vector<16x1xf32>
    %cst_97 = arith.constant 1.280000e+02 : f32
    %303 = vector.broadcast %cst_97 : f32 to vector<16x1xf32>
    %304 = arith.divf %302, %303 : vector<16x1xf32>
    %305 = vector.broadcast %304 : vector<16x1xf32> to vector<16x128xf32>
    %306 = arith.subf %296, %305 : vector<16x128xf32>
    %307 = arith.mulf %306, %306 : vector<16x128xf32>
    %cst_98 = arith.constant dense<0.000000e+00> : vector<16xf32>
    %308 = vector.multi_reduction <add>, %307, %cst_98 [1] : vector<16x128xf32> to vector<16xf32>
    %309 = vector.shape_cast %308 : vector<16xf32> to vector<16x1xf32>
    %cst_99 = arith.constant 1.280000e+02 : f32
    %310 = vector.broadcast %cst_99 : f32 to vector<16x1xf32>
    %311 = arith.divf %309, %310 : vector<16x1xf32>
    %312 = vector.broadcast %304 : vector<16x1xf32> to vector<16x128xf32>
    %313 = arith.subf %296, %312 : vector<16x128xf32>
    %cst_100 = arith.constant 9.99999974E-6 : f32
    %314 = vector.broadcast %cst_100 : f32 to vector<16x1xf32>
    %315 = arith.addf %311, %314 : vector<16x1xf32>
    %316 = math.rsqrt %315 : vector<16x1xf32>
    %317 = vector.broadcast %316 : vector<16x1xf32> to vector<16x128xf32>
    %318 = arith.mulf %313, %317 : vector<16x128xf32>
    %319 = vector.broadcast %299 : vector<1x128xf32> to vector<16x128xf32>
    %320 = arith.mulf %318, %319 : vector<16x128xf32>
    %321 = vector.broadcast %300 : vector<1x128xf32> to vector<16x128xf32>
    %322 = arith.addf %320, %321 : vector<16x128xf32>
    %c0_101 = arith.constant 0 : index
    %c0_102 = arith.constant 0 : index
    %323 = vector.load %arg15[%c0_101, %c0_102] : memref<16x128xf32, #tpu.memory_space<vmem>>, vector<16x128xf32>
    tpu.vector_store %arg15[%c0_101, %c0_102], %322 {strides = array<i32>} : memref<16x128xf32, #tpu.memory_space<vmem>>, vector<16x128xf32>,
    return
  }
  func.func @transform_0(%arg0: i32) -> (i32, i32) {
    %c0_i32 = arith.constant 0 : i32
    %c0_i32_0 = arith.constant 0 : i32
    %c0_i32_1 = arith.constant 0 : i32
    return %c0_i32, %c0_i32_0 : i32, i32
  }
  func.func @transform_1(%arg0: i32) -> (i32, i32) {
    %c0_i32 = arith.constant 0 : i32
    %c0_i32_0 = arith.constant 0 : i32
    %c0_i32_1 = arith.constant 0 : i32
    return %c0_i32, %c0_i32_0 : i32, i32
  }
  func.func @transform_2(%arg0: i32) -> (i32, i32) {
    %c0_i32 = arith.constant 0 : i32
    %c0_i32_0 = arith.constant 0 : i32
    %c0_i32_1 = arith.constant 0 : i32
    return %c0_i32, %c0_i32_0 : i32, i32
  }
  func.func @transform_3(%arg0: i32) -> (i32, i32) {
    %c0_i32 = arith.constant 0 : i32
    %c0_i32_0 = arith.constant 0 : i32
    %c0_i32_1 = arith.constant 0 : i32
    return %c0_i32, %c0_i32_0 : i32, i32
  }
  func.func @transform_4(%arg0: i32) -> (i32, i32, i32) {
    %c0_i32 = arith.constant 0 : i32
    %c0_i32_0 = arith.constant 0 : i32
    %c0_i32_1 = arith.constant 0 : i32
    return %arg0, %c0_i32, %c0_i32_0 : i32, i32, i32
  }
  func.func @transform_5(%arg0: i32) -> (i32, i32, i32) {
    %c0_i32 = arith.constant 0 : i32
    %c0_i32_0 = arith.constant 0 : i32
    %c0_i32_1 = arith.constant 0 : i32
    return %arg0, %c0_i32, %c0_i32_0 : i32, i32, i32
  }
  func.func @transform_6(%arg0: i32) -> (i32, i32, i32) {
    %c0_i32 = arith.constant 0 : i32
    %c0_i32_0 = arith.constant 0 : i32
    %c0_i32_1 = arith.constant 0 : i32
    return %arg0, %c0_i32, %c0_i32_0 : i32, i32, i32
  }
  func.func @transform_7(%arg0: i32) -> (i32, i32, i32) {
    %c0_i32 = arith.constant 0 : i32
    %c0_i32_0 = arith.constant 0 : i32
    %c0_i32_1 = arith.constant 0 : i32
    return %arg0, %c0_i32, %c0_i32_0 : i32, i32, i32
  }
  func.func @transform_8(%arg0: i32) -> (i32, i32, i32) {
    %c0_i32 = arith.constant 0 : i32
    %c0_i32_0 = arith.constant 0 : i32
    %c0_i32_1 = arith.constant 0 : i32
    return %arg0, %c0_i32, %c0_i32_0 : i32, i32, i32
  }
  func.func @transform_9(%arg0: i32) -> (i32, i32, i32) {
    %c0_i32 = arith.constant 0 : i32
    %c0_i32_0 = arith.constant 0 : i32
    %c0_i32_1 = arith.constant 0 : i32
    return %arg0, %c0_i32, %c0_i32_0 : i32, i32, i32
  }
  func.func @transform_10(%arg0: i32) -> (i32, i32, i32) {
    %c0_i32 = arith.constant 0 : i32
    %c0_i32_0 = arith.constant 0 : i32
    %c0_i32_1 = arith.constant 0 : i32
    return %arg0, %c0_i32, %c0_i32_0 : i32, i32, i32
  }
  func.func @transform_11(%arg0: i32) -> (i32, i32, i32) {
    %c0_i32 = arith.constant 0 : i32
    %c0_i32_0 = arith.constant 0 : i32
    %c0_i32_1 = arith.constant 0 : i32
    return %arg0, %c0_i32, %c0_i32_0 : i32, i32, i32
  }
  func.func @transform_12(%arg0: i32) -> (i32, i32, i32) {
    %c0_i32 = arith.constant 0 : i32
    %c0_i32_0 = arith.constant 0 : i32
    %c0_i32_1 = arith.constant 0 : i32
    return %arg0, %c0_i32, %c0_i32_0 : i32, i32, i32
  }
  func.func @transform_13(%arg0: i32) -> (i32, i32) {
    %c0_i32 = arith.constant 0 : i32
    %c0_i32_0 = arith.constant 0 : i32
    %c0_i32_1 = arith.constant 0 : i32
    return %c0_i32, %c0_i32_0 : i32, i32
  }
  func.func @transform_14(%arg0: i32) -> (i32, i32) {
    %c0_i32 = arith.constant 0 : i32
    %c0_i32_0 = arith.constant 0 : i32
    %c0_i32_1 = arith.constant 0 : i32
    return %c0_i32, %c0_i32_0 : i32, i32
  }
}

module attributes {stable_mosaic.version = 11 : i64} {
  func.func @_decoder_stack_kernel(%arg0: i32, %arg1: memref<8x128xf32, #tpu.memory_space<vmem>>, %arg2: memref<16x128xf32, #tpu.memory_space<vmem>>, %arg3: memref<1x128x384xbf16, #tpu.memory_space<vmem>>, %arg4: memref<1x1x384xf32, #tpu.memory_space<vmem>>, %arg5: memref<1x128x128xbf16, #tpu.memory_space<vmem>>, %arg6: memref<1x1x128xf32, #tpu.memory_space<vmem>>, %arg7: memref<1x128x128xbf16, #tpu.memory_space<vmem>>, %arg8: memref<1x1x128xf32, #tpu.memory_space<vmem>>, %arg9: memref<1x128x256xbf16, #tpu.memory_space<vmem>>, %arg10: memref<1x1x256xf32, #tpu.memory_space<vmem>>, %arg11: memref<1x128x128xbf16, #tpu.memory_space<vmem>>, %arg12: memref<1x1x128xf32, #tpu.memory_space<vmem>>, %arg13: memref<1x128x256xbf16, #tpu.memory_space<vmem>>, %arg14: memref<1x1x256xf32, #tpu.memory_space<vmem>>, %arg15: memref<1x256x128xbf16, #tpu.memory_space<vmem>>, %arg16: memref<1x1x128xf32, #tpu.memory_space<vmem>>, %arg17: memref<1x6x128xf32, #tpu.memory_space<vmem>>, %arg18: memref<2x128xf32, #tpu.memory_space<vmem>>, %arg19: memref<16x128xf32, #tpu.memory_space<vmem>>, %arg20: memref<16x128xf32, #tpu.memory_space<vmem>>) attributes {dimension_semantics = [#tpu.dimension_semantics<arbitrary>], iteration_bounds = array<i64: 2>, scalar_prefetch = 0 : i64, scratch_operands = 1 : i64, tpu.core_type = #tpu.core_type<tc>, window_params = [{pipeline_mode = #tpu.pipeline_mode<synchronous>, transform_indices = @transform_0, window_bounds = array<i64: 8, 128>}, {pipeline_mode = #tpu.pipeline_mode<synchronous>, transform_indices = @transform_1, window_bounds = array<i64: 16, 128>}, {transform_indices = @transform_2, window_bounds = array<i64: 1, 128, 384>}, {transform_indices = @transform_3, window_bounds = array<i64: 1, 1, 384>}, {transform_indices = @transform_4, window_bounds = array<i64: 1, 128, 128>}, {transform_indices = @transform_5, window_bounds = array<i64: 1, 1, 128>}, {transform_indices = @transform_6, window_bounds = array<i64: 1, 128, 128>}, {transform_indices = @transform_7, window_bounds = array<i64: 1, 1, 128>}, {transform_indices = @transform_8, window_bounds = array<i64: 1, 128, 256>}, {transform_indices = @transform_9, window_bounds = array<i64: 1, 1, 256>}, {transform_indices = @transform_10, window_bounds = array<i64: 1, 128, 128>}, {transform_indices = @transform_11, window_bounds = array<i64: 1, 1, 128>}, {transform_indices = @transform_12, window_bounds = array<i64: 1, 128, 256>}, {transform_indices = @transform_13, window_bounds = array<i64: 1, 1, 256>}, {transform_indices = @transform_14, window_bounds = array<i64: 1, 256, 128>}, {transform_indices = @transform_15, window_bounds = array<i64: 1, 1, 128>}, {transform_indices = @transform_16, window_bounds = array<i64: 1, 6, 128>}, {pipeline_mode = #tpu.pipeline_mode<synchronous>, transform_indices = @transform_17, window_bounds = array<i64: 2, 128>}, {pipeline_mode = #tpu.pipeline_mode<synchronous>, transform_indices = @transform_18, window_bounds = array<i64: 16, 128>}]} {
    %c0 = arith.constant 0 : index
    %c0_0 = arith.constant 0 : index
    %0 = vector.load %arg1[%c0, %c0_0] : memref<8x128xf32, #tpu.memory_space<vmem>>, vector<8x128xf32>
    %1 = tpu.concatenate %0, %0 in 0 : vector<8x128xf32>, vector<8x128xf32> -> vector<16x128xf32>
    %c0_i32 = arith.constant 0 : i32
    %2 = arith.cmpi eq, %arg0, %c0_i32 : i32
    %c0_1 = arith.constant 0 : index
    %c0_2 = arith.constant 0 : index
    %3 = vector.load %arg20[%c0_1, %c0_2] : memref<16x128xf32, #tpu.memory_space<vmem>>, vector<16x128xf32>
    %4 = arith.select %2, %1, %3 : vector<16x128xf32>
    %c0_3 = arith.constant 0 : index
    %c0_4 = arith.constant 0 : index
    %c0_5 = arith.constant 0 : index
    %5 = vector.load %arg17[%c0_3, %c0_4, %c0_5] : memref<1x6x128xf32, #tpu.memory_space<vmem>>, vector<1x6x128xf32>
    %6 = vector.shape_cast %5 : vector<1x6x128xf32> to vector<6x128xf32>
    %7 = arith.truncf %4 : vector<16x128xf32> to vector<16x128xbf16>
    %c0_6 = arith.constant 0 : index
    %c0_7 = arith.constant 0 : index
    %c0_8 = arith.constant 0 : index
    %8 = vector.load %arg3[%c0_6, %c0_7, %c0_8] : memref<1x128x384xbf16, #tpu.memory_space<vmem>>, vector<1x128x384xbf16>
    %9 = vector.shape_cast %8 : vector<1x128x384xbf16> to vector<128x384xbf16>
    %cst = arith.constant dense<0.000000e+00> : vector<16x384xf32>
    %10 = tpu.matmul %7, %9, %cst {dimension_numbers = #tpu.dot_dimension_numbers<[1], [0], [0], [1], [0, 0, 1, 1], [], []>} : vector<16x128xbf16>, vector<128x384xbf16>, vector<16x384xf32> -> vector<16x384xf32>
    %c0_9 = arith.constant 0 : index
    %c0_10 = arith.constant 0 : index
    %c0_11 = arith.constant 0 : index
    %11 = vector.load %arg4[%c0_9, %c0_10, %c0_11] : memref<1x1x384xf32, #tpu.memory_space<vmem>>, vector<1x1x384xf32>
    %12 = vector.shape_cast %11 : vector<1x1x384xf32> to vector<1x384xf32>
    %13 = vector.broadcast %12 : vector<1x384xf32> to vector<16x384xf32>
    %14 = arith.addf %10, %13 : vector<16x384xf32>
    %15 = vector.extract_strided_slice %14 {offsets = [0, 0], sizes = [16, 128], strides = [1, 1]} : vector<16x384xf32> to vector<16x128xf32>
    %16 = vector.extract_strided_slice %14 {offsets = [0, 128], sizes = [16, 128], strides = [1, 1]} : vector<16x384xf32> to vector<16x128xf32>
    %17 = vector.extract_strided_slice %14 {offsets = [0, 256], sizes = [16, 128], strides = [1, 1]} : vector<16x384xf32> to vector<16x128xf32>
    %18 = tpu.iota {dimensions = array<i32: 2>} : vector<2x8x8xi32>
    %19 = vector.extract_strided_slice %15 {offsets = [0, 0], sizes = [16, 16], strides = [1, 1]} : vector<16x128xf32> to vector<16x16xf32>
    %20 = vector.shape_cast %19 : vector<16x16xf32> to vector<2x8x16xf32>
    %21 = arith.truncf %20 : vector<2x8x16xf32> to vector<2x8x16xbf16>
    %22 = vector.extract_strided_slice %16 {offsets = [0, 0], sizes = [16, 16], strides = [1, 1]} : vector<16x128xf32> to vector<16x16xf32>
    %23 = vector.shape_cast %22 : vector<16x16xf32> to vector<2x8x16xf32>
    %24 = arith.truncf %23 : vector<2x8x16xf32> to vector<2x8x16xbf16>
    %25 = vector.extract_strided_slice %17 {offsets = [0, 0], sizes = [16, 16], strides = [1, 1]} : vector<16x128xf32> to vector<16x16xf32>
    %26 = vector.shape_cast %25 : vector<16x16xf32> to vector<2x8x16xf32>
    %27 = arith.truncf %26 : vector<2x8x16xf32> to vector<2x8x16xbf16>
    "tpu.trace_start"() <{level = 10 : i32, message = "bqd,bkd->bqk"}> : () -> ()
    %cst_12 = arith.constant dense<0.000000e+00> : vector<2x8x8xf32>
    %28 = tpu.matmul %21, %24, %cst_12 {dimension_numbers = #tpu.dot_dimension_numbers<[2], [2], [1], [1], [0, 0, 0, 1, 1, 1], [0], [0]>} : vector<2x8x16xbf16>, vector<2x8x16xbf16>, vector<2x8x8xf32> -> vector<2x8x8xf32>
    "tpu.trace_stop"() : () -> ()
    %cst_13 = arith.constant 2.500000e-01 : f32
    %29 = vector.broadcast %cst_13 : f32 to vector<2x8x8xf32>
    %30 = arith.mulf %28, %29 : vector<2x8x8xf32>
    %c5_i32 = arith.constant 5 : i32
    %31 = vector.broadcast %c5_i32 : i32 to vector<2x8x8xi32>
    %32 = arith.cmpi slt, %18, %31 : vector<2x8x8xi32>
    %cst_14 = arith.constant -1.000000e+30 : f32
    %33 = vector.broadcast %cst_14 : f32 to vector<2x8x8xf32>
    %34 = arith.select %32, %30, %33 : vector<2x8x8xi1>, vector<2x8x8xf32>
    %cst_15 = arith.constant dense<0xFF800000> : vector<2x8xf32>
    %35 = vector.multi_reduction <maximumf>, %34, %cst_15 [2] : vector<2x8x8xf32> to vector<2x8xf32>
    %36 = vector.shape_cast %35 : vector<2x8xf32> to vector<2x8x1xf32>
    %37 = vector.broadcast %36 : vector<2x8x1xf32> to vector<2x8x8xf32>
    %38 = arith.subf %34, %37 : vector<2x8x8xf32>
    %39 = math.exp %38 : vector<2x8x8xf32>
    %cst_16 = arith.constant dense<0.000000e+00> : vector<2x8xf32>
    %40 = vector.multi_reduction <add>, %39, %cst_16 [2] : vector<2x8x8xf32> to vector<2x8xf32>
    %41 = vector.shape_cast %40 : vector<2x8xf32> to vector<2x8x1xf32>
    %42 = vector.broadcast %41 : vector<2x8x1xf32> to vector<2x8x8xf32>
    %43 = arith.divf %39, %42 : vector<2x8x8xf32>
    %44 = arith.truncf %43 : vector<2x8x8xf32> to vector<2x8x8xbf16>
    "tpu.trace_start"() <{level = 10 : i32, message = "bqk,bkd->bqd"}> : () -> ()
    %cst_17 = arith.constant dense<0.000000e+00> : vector<2x8x16xf32>
    %45 = tpu.matmul %44, %27, %cst_17 {dimension_numbers = #tpu.dot_dimension_numbers<[2], [1], [1], [2], [0, 0, 0, 1, 1, 2], [0], [0]>} : vector<2x8x8xbf16>, vector<2x8x16xbf16>, vector<2x8x16xf32> -> vector<2x8x16xf32>
    "tpu.trace_stop"() : () -> ()
    %46 = vector.shape_cast %45 : vector<2x8x16xf32> to vector<16x16xf32>
    %47 = vector.extract_strided_slice %15 {offsets = [0, 16], sizes = [16, 16], strides = [1, 1]} : vector<16x128xf32> to vector<16x16xf32>
    %48 = vector.shape_cast %47 : vector<16x16xf32> to vector<2x8x16xf32>
    %49 = arith.truncf %48 : vector<2x8x16xf32> to vector<2x8x16xbf16>
    %50 = vector.extract_strided_slice %16 {offsets = [0, 16], sizes = [16, 16], strides = [1, 1]} : vector<16x128xf32> to vector<16x16xf32>
    %51 = vector.shape_cast %50 : vector<16x16xf32> to vector<2x8x16xf32>
    %52 = arith.truncf %51 : vector<2x8x16xf32> to vector<2x8x16xbf16>
    %53 = vector.extract_strided_slice %17 {offsets = [0, 16], sizes = [16, 16], strides = [1, 1]} : vector<16x128xf32> to vector<16x16xf32>
    %54 = vector.shape_cast %53 : vector<16x16xf32> to vector<2x8x16xf32>
    %55 = arith.truncf %54 : vector<2x8x16xf32> to vector<2x8x16xbf16>
    "tpu.trace_start"() <{level = 10 : i32, message = "bqd,bkd->bqk"}> : () -> ()
    %cst_18 = arith.constant dense<0.000000e+00> : vector<2x8x8xf32>
    %56 = tpu.matmul %49, %52, %cst_18 {dimension_numbers = #tpu.dot_dimension_numbers<[2], [2], [1], [1], [0, 0, 0, 1, 1, 1], [0], [0]>} : vector<2x8x16xbf16>, vector<2x8x16xbf16>, vector<2x8x8xf32> -> vector<2x8x8xf32>
    "tpu.trace_stop"() : () -> ()
    %cst_19 = arith.constant 2.500000e-01 : f32
    %57 = vector.broadcast %cst_19 : f32 to vector<2x8x8xf32>
    %58 = arith.mulf %56, %57 : vector<2x8x8xf32>
    %c5_i32_20 = arith.constant 5 : i32
    %59 = vector.broadcast %c5_i32_20 : i32 to vector<2x8x8xi32>
    %60 = arith.cmpi slt, %18, %59 : vector<2x8x8xi32>
    %cst_21 = arith.constant -1.000000e+30 : f32
    %61 = vector.broadcast %cst_21 : f32 to vector<2x8x8xf32>
    %62 = arith.select %60, %58, %61 : vector<2x8x8xi1>, vector<2x8x8xf32>
    %cst_22 = arith.constant dense<0xFF800000> : vector<2x8xf32>
    %63 = vector.multi_reduction <maximumf>, %62, %cst_22 [2] : vector<2x8x8xf32> to vector<2x8xf32>
    %64 = vector.shape_cast %63 : vector<2x8xf32> to vector<2x8x1xf32>
    %65 = vector.broadcast %64 : vector<2x8x1xf32> to vector<2x8x8xf32>
    %66 = arith.subf %62, %65 : vector<2x8x8xf32>
    %67 = math.exp %66 : vector<2x8x8xf32>
    %cst_23 = arith.constant dense<0.000000e+00> : vector<2x8xf32>
    %68 = vector.multi_reduction <add>, %67, %cst_23 [2] : vector<2x8x8xf32> to vector<2x8xf32>
    %69 = vector.shape_cast %68 : vector<2x8xf32> to vector<2x8x1xf32>
    %70 = vector.broadcast %69 : vector<2x8x1xf32> to vector<2x8x8xf32>
    %71 = arith.divf %67, %70 : vector<2x8x8xf32>
    %72 = arith.truncf %71 : vector<2x8x8xf32> to vector<2x8x8xbf16>
    "tpu.trace_start"() <{level = 10 : i32, message = "bqk,bkd->bqd"}> : () -> ()
    %cst_24 = arith.constant dense<0.000000e+00> : vector<2x8x16xf32>
    %73 = tpu.matmul %72, %55, %cst_24 {dimension_numbers = #tpu.dot_dimension_numbers<[2], [1], [1], [2], [0, 0, 0, 1, 1, 2], [0], [0]>} : vector<2x8x8xbf16>, vector<2x8x16xbf16>, vector<2x8x16xf32> -> vector<2x8x16xf32>
    "tpu.trace_stop"() : () -> ()
    %74 = vector.shape_cast %73 : vector<2x8x16xf32> to vector<16x16xf32>
    %75 = vector.extract_strided_slice %15 {offsets = [0, 32], sizes = [16, 16], strides = [1, 1]} : vector<16x128xf32> to vector<16x16xf32>
    %76 = vector.shape_cast %75 : vector<16x16xf32> to vector<2x8x16xf32>
    %77 = arith.truncf %76 : vector<2x8x16xf32> to vector<2x8x16xbf16>
    %78 = vector.extract_strided_slice %16 {offsets = [0, 32], sizes = [16, 16], strides = [1, 1]} : vector<16x128xf32> to vector<16x16xf32>
    %79 = vector.shape_cast %78 : vector<16x16xf32> to vector<2x8x16xf32>
    %80 = arith.truncf %79 : vector<2x8x16xf32> to vector<2x8x16xbf16>
    %81 = vector.extract_strided_slice %17 {offsets = [0, 32], sizes = [16, 16], strides = [1, 1]} : vector<16x128xf32> to vector<16x16xf32>
    %82 = vector.shape_cast %81 : vector<16x16xf32> to vector<2x8x16xf32>
    %83 = arith.truncf %82 : vector<2x8x16xf32> to vector<2x8x16xbf16>
    "tpu.trace_start"() <{level = 10 : i32, message = "bqd,bkd->bqk"}> : () -> ()
    %cst_25 = arith.constant dense<0.000000e+00> : vector<2x8x8xf32>
    %84 = tpu.matmul %77, %80, %cst_25 {dimension_numbers = #tpu.dot_dimension_numbers<[2], [2], [1], [1], [0, 0, 0, 1, 1, 1], [0], [0]>} : vector<2x8x16xbf16>, vector<2x8x16xbf16>, vector<2x8x8xf32> -> vector<2x8x8xf32>
    "tpu.trace_stop"() : () -> ()
    %cst_26 = arith.constant 2.500000e-01 : f32
    %85 = vector.broadcast %cst_26 : f32 to vector<2x8x8xf32>
    %86 = arith.mulf %84, %85 : vector<2x8x8xf32>
    %c5_i32_27 = arith.constant 5 : i32
    %87 = vector.broadcast %c5_i32_27 : i32 to vector<2x8x8xi32>
    %88 = arith.cmpi slt, %18, %87 : vector<2x8x8xi32>
    %cst_28 = arith.constant -1.000000e+30 : f32
    %89 = vector.broadcast %cst_28 : f32 to vector<2x8x8xf32>
    %90 = arith.select %88, %86, %89 : vector<2x8x8xi1>, vector<2x8x8xf32>
    %cst_29 = arith.constant dense<0xFF800000> : vector<2x8xf32>
    %91 = vector.multi_reduction <maximumf>, %90, %cst_29 [2] : vector<2x8x8xf32> to vector<2x8xf32>
    %92 = vector.shape_cast %91 : vector<2x8xf32> to vector<2x8x1xf32>
    %93 = vector.broadcast %92 : vector<2x8x1xf32> to vector<2x8x8xf32>
    %94 = arith.subf %90, %93 : vector<2x8x8xf32>
    %95 = math.exp %94 : vector<2x8x8xf32>
    %cst_30 = arith.constant dense<0.000000e+00> : vector<2x8xf32>
    %96 = vector.multi_reduction <add>, %95, %cst_30 [2] : vector<2x8x8xf32> to vector<2x8xf32>
    %97 = vector.shape_cast %96 : vector<2x8xf32> to vector<2x8x1xf32>
    %98 = vector.broadcast %97 : vector<2x8x1xf32> to vector<2x8x8xf32>
    %99 = arith.divf %95, %98 : vector<2x8x8xf32>
    %100 = arith.truncf %99 : vector<2x8x8xf32> to vector<2x8x8xbf16>
    "tpu.trace_start"() <{level = 10 : i32, message = "bqk,bkd->bqd"}> : () -> ()
    %cst_31 = arith.constant dense<0.000000e+00> : vector<2x8x16xf32>
    %101 = tpu.matmul %100, %83, %cst_31 {dimension_numbers = #tpu.dot_dimension_numbers<[2], [1], [1], [2], [0, 0, 0, 1, 1, 2], [0], [0]>} : vector<2x8x8xbf16>, vector<2x8x16xbf16>, vector<2x8x16xf32> -> vector<2x8x16xf32>
    "tpu.trace_stop"() : () -> ()
    %102 = vector.shape_cast %101 : vector<2x8x16xf32> to vector<16x16xf32>
    %103 = vector.extract_strided_slice %15 {offsets = [0, 48], sizes = [16, 16], strides = [1, 1]} : vector<16x128xf32> to vector<16x16xf32>
    %104 = vector.shape_cast %103 : vector<16x16xf32> to vector<2x8x16xf32>
    %105 = arith.truncf %104 : vector<2x8x16xf32> to vector<2x8x16xbf16>
    %106 = vector.extract_strided_slice %16 {offsets = [0, 48], sizes = [16, 16], strides = [1, 1]} : vector<16x128xf32> to vector<16x16xf32>
    %107 = vector.shape_cast %106 : vector<16x16xf32> to vector<2x8x16xf32>
    %108 = arith.truncf %107 : vector<2x8x16xf32> to vector<2x8x16xbf16>
    %109 = vector.extract_strided_slice %17 {offsets = [0, 48], sizes = [16, 16], strides = [1, 1]} : vector<16x128xf32> to vector<16x16xf32>
    %110 = vector.shape_cast %109 : vector<16x16xf32> to vector<2x8x16xf32>
    %111 = arith.truncf %110 : vector<2x8x16xf32> to vector<2x8x16xbf16>
    "tpu.trace_start"() <{level = 10 : i32, message = "bqd,bkd->bqk"}> : () -> ()
    %cst_32 = arith.constant dense<0.000000e+00> : vector<2x8x8xf32>
    %112 = tpu.matmul %105, %108, %cst_32 {dimension_numbers = #tpu.dot_dimension_numbers<[2], [2], [1], [1], [0, 0, 0, 1, 1, 1], [0], [0]>} : vector<2x8x16xbf16>, vector<2x8x16xbf16>, vector<2x8x8xf32> -> vector<2x8x8xf32>
    "tpu.trace_stop"() : () -> ()
    %cst_33 = arith.constant 2.500000e-01 : f32
    %113 = vector.broadcast %cst_33 : f32 to vector<2x8x8xf32>
    %114 = arith.mulf %112, %113 : vector<2x8x8xf32>
    %c5_i32_34 = arith.constant 5 : i32
    %115 = vector.broadcast %c5_i32_34 : i32 to vector<2x8x8xi32>
    %116 = arith.cmpi slt, %18, %115 : vector<2x8x8xi32>
    %cst_35 = arith.constant -1.000000e+30 : f32
    %117 = vector.broadcast %cst_35 : f32 to vector<2x8x8xf32>
    %118 = arith.select %116, %114, %117 : vector<2x8x8xi1>, vector<2x8x8xf32>
    %cst_36 = arith.constant dense<0xFF800000> : vector<2x8xf32>
    %119 = vector.multi_reduction <maximumf>, %118, %cst_36 [2] : vector<2x8x8xf32> to vector<2x8xf32>
    %120 = vector.shape_cast %119 : vector<2x8xf32> to vector<2x8x1xf32>
    %121 = vector.broadcast %120 : vector<2x8x1xf32> to vector<2x8x8xf32>
    %122 = arith.subf %118, %121 : vector<2x8x8xf32>
    %123 = math.exp %122 : vector<2x8x8xf32>
    %cst_37 = arith.constant dense<0.000000e+00> : vector<2x8xf32>
    %124 = vector.multi_reduction <add>, %123, %cst_37 [2] : vector<2x8x8xf32> to vector<2x8xf32>
    %125 = vector.shape_cast %124 : vector<2x8xf32> to vector<2x8x1xf32>
    %126 = vector.broadcast %125 : vector<2x8x1xf32> to vector<2x8x8xf32>
    %127 = arith.divf %123, %126 : vector<2x8x8xf32>
    %128 = arith.truncf %127 : vector<2x8x8xf32> to vector<2x8x8xbf16>
    "tpu.trace_start"() <{level = 10 : i32, message = "bqk,bkd->bqd"}> : () -> ()
    %cst_38 = arith.constant dense<0.000000e+00> : vector<2x8x16xf32>
    %129 = tpu.matmul %128, %111, %cst_38 {dimension_numbers = #tpu.dot_dimension_numbers<[2], [1], [1], [2], [0, 0, 0, 1, 1, 2], [0], [0]>} : vector<2x8x8xbf16>, vector<2x8x16xbf16>, vector<2x8x16xf32> -> vector<2x8x16xf32>
    "tpu.trace_stop"() : () -> ()
    %130 = vector.shape_cast %129 : vector<2x8x16xf32> to vector<16x16xf32>
    %131 = vector.extract_strided_slice %15 {offsets = [0, 64], sizes = [16, 16], strides = [1, 1]} : vector<16x128xf32> to vector<16x16xf32>
    %132 = vector.shape_cast %131 : vector<16x16xf32> to vector<2x8x16xf32>
    %133 = arith.truncf %132 : vector<2x8x16xf32> to vector<2x8x16xbf16>
    %134 = vector.extract_strided_slice %16 {offsets = [0, 64], sizes = [16, 16], strides = [1, 1]} : vector<16x128xf32> to vector<16x16xf32>
    %135 = vector.shape_cast %134 : vector<16x16xf32> to vector<2x8x16xf32>
    %136 = arith.truncf %135 : vector<2x8x16xf32> to vector<2x8x16xbf16>
    %137 = vector.extract_strided_slice %17 {offsets = [0, 64], sizes = [16, 16], strides = [1, 1]} : vector<16x128xf32> to vector<16x16xf32>
    %138 = vector.shape_cast %137 : vector<16x16xf32> to vector<2x8x16xf32>
    %139 = arith.truncf %138 : vector<2x8x16xf32> to vector<2x8x16xbf16>
    "tpu.trace_start"() <{level = 10 : i32, message = "bqd,bkd->bqk"}> : () -> ()
    %cst_39 = arith.constant dense<0.000000e+00> : vector<2x8x8xf32>
    %140 = tpu.matmul %133, %136, %cst_39 {dimension_numbers = #tpu.dot_dimension_numbers<[2], [2], [1], [1], [0, 0, 0, 1, 1, 1], [0], [0]>} : vector<2x8x16xbf16>, vector<2x8x16xbf16>, vector<2x8x8xf32> -> vector<2x8x8xf32>
    "tpu.trace_stop"() : () -> ()
    %cst_40 = arith.constant 2.500000e-01 : f32
    %141 = vector.broadcast %cst_40 : f32 to vector<2x8x8xf32>
    %142 = arith.mulf %140, %141 : vector<2x8x8xf32>
    %c5_i32_41 = arith.constant 5 : i32
    %143 = vector.broadcast %c5_i32_41 : i32 to vector<2x8x8xi32>
    %144 = arith.cmpi slt, %18, %143 : vector<2x8x8xi32>
    %cst_42 = arith.constant -1.000000e+30 : f32
    %145 = vector.broadcast %cst_42 : f32 to vector<2x8x8xf32>
    %146 = arith.select %144, %142, %145 : vector<2x8x8xi1>, vector<2x8x8xf32>
    %cst_43 = arith.constant dense<0xFF800000> : vector<2x8xf32>
    %147 = vector.multi_reduction <maximumf>, %146, %cst_43 [2] : vector<2x8x8xf32> to vector<2x8xf32>
    %148 = vector.shape_cast %147 : vector<2x8xf32> to vector<2x8x1xf32>
    %149 = vector.broadcast %148 : vector<2x8x1xf32> to vector<2x8x8xf32>
    %150 = arith.subf %146, %149 : vector<2x8x8xf32>
    %151 = math.exp %150 : vector<2x8x8xf32>
    %cst_44 = arith.constant dense<0.000000e+00> : vector<2x8xf32>
    %152 = vector.multi_reduction <add>, %151, %cst_44 [2] : vector<2x8x8xf32> to vector<2x8xf32>
    %153 = vector.shape_cast %152 : vector<2x8xf32> to vector<2x8x1xf32>
    %154 = vector.broadcast %153 : vector<2x8x1xf32> to vector<2x8x8xf32>
    %155 = arith.divf %151, %154 : vector<2x8x8xf32>
    %156 = arith.truncf %155 : vector<2x8x8xf32> to vector<2x8x8xbf16>
    "tpu.trace_start"() <{level = 10 : i32, message = "bqk,bkd->bqd"}> : () -> ()
    %cst_45 = arith.constant dense<0.000000e+00> : vector<2x8x16xf32>
    %157 = tpu.matmul %156, %139, %cst_45 {dimension_numbers = #tpu.dot_dimension_numbers<[2], [1], [1], [2], [0, 0, 0, 1, 1, 2], [0], [0]>} : vector<2x8x8xbf16>, vector<2x8x16xbf16>, vector<2x8x16xf32> -> vector<2x8x16xf32>
    "tpu.trace_stop"() : () -> ()
    %158 = vector.shape_cast %157 : vector<2x8x16xf32> to vector<16x16xf32>
    %159 = vector.extract_strided_slice %15 {offsets = [0, 80], sizes = [16, 16], strides = [1, 1]} : vector<16x128xf32> to vector<16x16xf32>
    %160 = vector.shape_cast %159 : vector<16x16xf32> to vector<2x8x16xf32>
    %161 = arith.truncf %160 : vector<2x8x16xf32> to vector<2x8x16xbf16>
    %162 = vector.extract_strided_slice %16 {offsets = [0, 80], sizes = [16, 16], strides = [1, 1]} : vector<16x128xf32> to vector<16x16xf32>
    %163 = vector.shape_cast %162 : vector<16x16xf32> to vector<2x8x16xf32>
    %164 = arith.truncf %163 : vector<2x8x16xf32> to vector<2x8x16xbf16>
    %165 = vector.extract_strided_slice %17 {offsets = [0, 80], sizes = [16, 16], strides = [1, 1]} : vector<16x128xf32> to vector<16x16xf32>
    %166 = vector.shape_cast %165 : vector<16x16xf32> to vector<2x8x16xf32>
    %167 = arith.truncf %166 : vector<2x8x16xf32> to vector<2x8x16xbf16>
    "tpu.trace_start"() <{level = 10 : i32, message = "bqd,bkd->bqk"}> : () -> ()
    %cst_46 = arith.constant dense<0.000000e+00> : vector<2x8x8xf32>
    %168 = tpu.matmul %161, %164, %cst_46 {dimension_numbers = #tpu.dot_dimension_numbers<[2], [2], [1], [1], [0, 0, 0, 1, 1, 1], [0], [0]>} : vector<2x8x16xbf16>, vector<2x8x16xbf16>, vector<2x8x8xf32> -> vector<2x8x8xf32>
    "tpu.trace_stop"() : () -> ()
    %cst_47 = arith.constant 2.500000e-01 : f32
    %169 = vector.broadcast %cst_47 : f32 to vector<2x8x8xf32>
    %170 = arith.mulf %168, %169 : vector<2x8x8xf32>
    %c5_i32_48 = arith.constant 5 : i32
    %171 = vector.broadcast %c5_i32_48 : i32 to vector<2x8x8xi32>
    %172 = arith.cmpi slt, %18, %171 : vector<2x8x8xi32>
    %cst_49 = arith.constant -1.000000e+30 : f32
    %173 = vector.broadcast %cst_49 : f32 to vector<2x8x8xf32>
    %174 = arith.select %172, %170, %173 : vector<2x8x8xi1>, vector<2x8x8xf32>
    %cst_50 = arith.constant dense<0xFF800000> : vector<2x8xf32>
    %175 = vector.multi_reduction <maximumf>, %174, %cst_50 [2] : vector<2x8x8xf32> to vector<2x8xf32>
    %176 = vector.shape_cast %175 : vector<2x8xf32> to vector<2x8x1xf32>
    %177 = vector.broadcast %176 : vector<2x8x1xf32> to vector<2x8x8xf32>
    %178 = arith.subf %174, %177 : vector<2x8x8xf32>
    %179 = math.exp %178 : vector<2x8x8xf32>
    %cst_51 = arith.constant dense<0.000000e+00> : vector<2x8xf32>
    %180 = vector.multi_reduction <add>, %179, %cst_51 [2] : vector<2x8x8xf32> to vector<2x8xf32>
    %181 = vector.shape_cast %180 : vector<2x8xf32> to vector<2x8x1xf32>
    %182 = vector.broadcast %181 : vector<2x8x1xf32> to vector<2x8x8xf32>
    %183 = arith.divf %179, %182 : vector<2x8x8xf32>
    %184 = arith.truncf %183 : vector<2x8x8xf32> to vector<2x8x8xbf16>
    "tpu.trace_start"() <{level = 10 : i32, message = "bqk,bkd->bqd"}> : () -> ()
    %cst_52 = arith.constant dense<0.000000e+00> : vector<2x8x16xf32>
    %185 = tpu.matmul %184, %167, %cst_52 {dimension_numbers = #tpu.dot_dimension_numbers<[2], [1], [1], [2], [0, 0, 0, 1, 1, 2], [0], [0]>} : vector<2x8x8xbf16>, vector<2x8x16xbf16>, vector<2x8x16xf32> -> vector<2x8x16xf32>
    "tpu.trace_stop"() : () -> ()
    %186 = vector.shape_cast %185 : vector<2x8x16xf32> to vector<16x16xf32>
    %187 = vector.extract_strided_slice %15 {offsets = [0, 96], sizes = [16, 16], strides = [1, 1]} : vector<16x128xf32> to vector<16x16xf32>
    %188 = vector.shape_cast %187 : vector<16x16xf32> to vector<2x8x16xf32>
    %189 = arith.truncf %188 : vector<2x8x16xf32> to vector<2x8x16xbf16>
    %190 = vector.extract_strided_slice %16 {offsets = [0, 96], sizes = [16, 16], strides = [1, 1]} : vector<16x128xf32> to vector<16x16xf32>
    %191 = vector.shape_cast %190 : vector<16x16xf32> to vector<2x8x16xf32>
    %192 = arith.truncf %191 : vector<2x8x16xf32> to vector<2x8x16xbf16>
    %193 = vector.extract_strided_slice %17 {offsets = [0, 96], sizes = [16, 16], strides = [1, 1]} : vector<16x128xf32> to vector<16x16xf32>
    %194 = vector.shape_cast %193 : vector<16x16xf32> to vector<2x8x16xf32>
    %195 = arith.truncf %194 : vector<2x8x16xf32> to vector<2x8x16xbf16>
    "tpu.trace_start"() <{level = 10 : i32, message = "bqd,bkd->bqk"}> : () -> ()
    %cst_53 = arith.constant dense<0.000000e+00> : vector<2x8x8xf32>
    %196 = tpu.matmul %189, %192, %cst_53 {dimension_numbers = #tpu.dot_dimension_numbers<[2], [2], [1], [1], [0, 0, 0, 1, 1, 1], [0], [0]>} : vector<2x8x16xbf16>, vector<2x8x16xbf16>, vector<2x8x8xf32> -> vector<2x8x8xf32>
    "tpu.trace_stop"() : () -> ()
    %cst_54 = arith.constant 2.500000e-01 : f32
    %197 = vector.broadcast %cst_54 : f32 to vector<2x8x8xf32>
    %198 = arith.mulf %196, %197 : vector<2x8x8xf32>
    %c5_i32_55 = arith.constant 5 : i32
    %199 = vector.broadcast %c5_i32_55 : i32 to vector<2x8x8xi32>
    %200 = arith.cmpi slt, %18, %199 : vector<2x8x8xi32>
    %cst_56 = arith.constant -1.000000e+30 : f32
    %201 = vector.broadcast %cst_56 : f32 to vector<2x8x8xf32>
    %202 = arith.select %200, %198, %201 : vector<2x8x8xi1>, vector<2x8x8xf32>
    %cst_57 = arith.constant dense<0xFF800000> : vector<2x8xf32>
    %203 = vector.multi_reduction <maximumf>, %202, %cst_57 [2] : vector<2x8x8xf32> to vector<2x8xf32>
    %204 = vector.shape_cast %203 : vector<2x8xf32> to vector<2x8x1xf32>
    %205 = vector.broadcast %204 : vector<2x8x1xf32> to vector<2x8x8xf32>
    %206 = arith.subf %202, %205 : vector<2x8x8xf32>
    %207 = math.exp %206 : vector<2x8x8xf32>
    %cst_58 = arith.constant dense<0.000000e+00> : vector<2x8xf32>
    %208 = vector.multi_reduction <add>, %207, %cst_58 [2] : vector<2x8x8xf32> to vector<2x8xf32>
    %209 = vector.shape_cast %208 : vector<2x8xf32> to vector<2x8x1xf32>
    %210 = vector.broadcast %209 : vector<2x8x1xf32> to vector<2x8x8xf32>
    %211 = arith.divf %207, %210 : vector<2x8x8xf32>
    %212 = arith.truncf %211 : vector<2x8x8xf32> to vector<2x8x8xbf16>
    "tpu.trace_start"() <{level = 10 : i32, message = "bqk,bkd->bqd"}> : () -> ()
    %cst_59 = arith.constant dense<0.000000e+00> : vector<2x8x16xf32>
    %213 = tpu.matmul %212, %195, %cst_59 {dimension_numbers = #tpu.dot_dimension_numbers<[2], [1], [1], [2], [0, 0, 0, 1, 1, 2], [0], [0]>} : vector<2x8x8xbf16>, vector<2x8x16xbf16>, vector<2x8x16xf32> -> vector<2x8x16xf32>
    "tpu.trace_stop"() : () -> ()
    %214 = vector.shape_cast %213 : vector<2x8x16xf32> to vector<16x16xf32>
    %215 = vector.extract_strided_slice %15 {offsets = [0, 112], sizes = [16, 16], strides = [1, 1]} : vector<16x128xf32> to vector<16x16xf32>
    %216 = vector.shape_cast %215 : vector<16x16xf32> to vector<2x8x16xf32>
    %217 = arith.truncf %216 : vector<2x8x16xf32> to vector<2x8x16xbf16>
    %218 = vector.extract_strided_slice %16 {offsets = [0, 112], sizes = [16, 16], strides = [1, 1]} : vector<16x128xf32> to vector<16x16xf32>
    %219 = vector.shape_cast %218 : vector<16x16xf32> to vector<2x8x16xf32>
    %220 = arith.truncf %219 : vector<2x8x16xf32> to vector<2x8x16xbf16>
    %221 = vector.extract_strided_slice %17 {offsets = [0, 112], sizes = [16, 16], strides = [1, 1]} : vector<16x128xf32> to vector<16x16xf32>
    %222 = vector.shape_cast %221 : vector<16x16xf32> to vector<2x8x16xf32>
    %223 = arith.truncf %222 : vector<2x8x16xf32> to vector<2x8x16xbf16>
    "tpu.trace_start"() <{level = 10 : i32, message = "bqd,bkd->bqk"}> : () -> ()
    %cst_60 = arith.constant dense<0.000000e+00> : vector<2x8x8xf32>
    %224 = tpu.matmul %217, %220, %cst_60 {dimension_numbers = #tpu.dot_dimension_numbers<[2], [2], [1], [1], [0, 0, 0, 1, 1, 1], [0], [0]>} : vector<2x8x16xbf16>, vector<2x8x16xbf16>, vector<2x8x8xf32> -> vector<2x8x8xf32>
    "tpu.trace_stop"() : () -> ()
    %cst_61 = arith.constant 2.500000e-01 : f32
    %225 = vector.broadcast %cst_61 : f32 to vector<2x8x8xf32>
    %226 = arith.mulf %224, %225 : vector<2x8x8xf32>
    %c5_i32_62 = arith.constant 5 : i32
    %227 = vector.broadcast %c5_i32_62 : i32 to vector<2x8x8xi32>
    %228 = arith.cmpi slt, %18, %227 : vector<2x8x8xi32>
    %cst_63 = arith.constant -1.000000e+30 : f32
    %229 = vector.broadcast %cst_63 : f32 to vector<2x8x8xf32>
    %230 = arith.select %228, %226, %229 : vector<2x8x8xi1>, vector<2x8x8xf32>
    %cst_64 = arith.constant dense<0xFF800000> : vector<2x8xf32>
    %231 = vector.multi_reduction <maximumf>, %230, %cst_64 [2] : vector<2x8x8xf32> to vector<2x8xf32>
    %232 = vector.shape_cast %231 : vector<2x8xf32> to vector<2x8x1xf32>
    %233 = vector.broadcast %232 : vector<2x8x1xf32> to vector<2x8x8xf32>
    %234 = arith.subf %230, %233 : vector<2x8x8xf32>
    %235 = math.exp %234 : vector<2x8x8xf32>
    %cst_65 = arith.constant dense<0.000000e+00> : vector<2x8xf32>
    %236 = vector.multi_reduction <add>, %235, %cst_65 [2] : vector<2x8x8xf32> to vector<2x8xf32>
    %237 = vector.shape_cast %236 : vector<2x8xf32> to vector<2x8x1xf32>
    %238 = vector.broadcast %237 : vector<2x8x1xf32> to vector<2x8x8xf32>
    %239 = arith.divf %235, %238 : vector<2x8x8xf32>
    %240 = arith.truncf %239 : vector<2x8x8xf32> to vector<2x8x8xbf16>
    "tpu.trace_start"() <{level = 10 : i32, message = "bqk,bkd->bqd"}> : () -> ()
    %cst_66 = arith.constant dense<0.000000e+00> : vector<2x8x16xf32>
    %241 = tpu.matmul %240, %223, %cst_66 {dimension_numbers = #tpu.dot_dimension_numbers<[2], [1], [1], [2], [0, 0, 0, 1, 1, 2], [0], [0]>} : vector<2x8x8xbf16>, vector<2x8x16xbf16>, vector<2x8x16xf32> -> vector<2x8x16xf32>
    "tpu.trace_stop"() : () -> ()
    %242 = vector.shape_cast %241 : vector<2x8x16xf32> to vector<16x16xf32>
    %243 = tpu.concatenate %46, %74, %102, %130, %158, %186, %214, %242 in 1 : vector<16x16xf32>, vector<16x16xf32>, vector<16x16xf32>, vector<16x16xf32>, vector<16x16xf32>, vector<16x16xf32>, vector<16x16xf32>, vector<16x16xf32> -> vector<16x128xf32>
    %244 = arith.truncf %243 : vector<16x128xf32> to vector<16x128xbf16>
    %c0_67 = arith.constant 0 : index
    %c0_68 = arith.constant 0 : index
    %c0_69 = arith.constant 0 : index
    %245 = vector.load %arg5[%c0_67, %c0_68, %c0_69] : memref<1x128x128xbf16, #tpu.memory_space<vmem>>, vector<1x128x128xbf16>
    %246 = vector.shape_cast %245 : vector<1x128x128xbf16> to vector<128x128xbf16>
    %cst_70 = arith.constant dense<0.000000e+00> : vector<16x128xf32>
    %247 = tpu.matmul %244, %246, %cst_70 {dimension_numbers = #tpu.dot_dimension_numbers<[1], [0], [0], [1], [0, 0, 1, 1], [], []>} : vector<16x128xbf16>, vector<128x128xbf16>, vector<16x128xf32> -> vector<16x128xf32>
    %c0_71 = arith.constant 0 : index
    %c0_72 = arith.constant 0 : index
    %c0_73 = arith.constant 0 : index
    %248 = vector.load %arg6[%c0_71, %c0_72, %c0_73] : memref<1x1x128xf32, #tpu.memory_space<vmem>>, vector<1x1x128xf32>
    %249 = vector.shape_cast %248 : vector<1x1x128xf32> to vector<1x128xf32>
    %250 = vector.broadcast %249 : vector<1x128xf32> to vector<16x128xf32>
    %251 = arith.addf %247, %250 : vector<16x128xf32>
    %252 = arith.addf %4, %251 : vector<16x128xf32>
    %253 = vector.extract_strided_slice %6 {offsets = [0, 0], sizes = [1, 128], strides = [1, 1]} : vector<6x128xf32> to vector<1x128xf32>
    %254 = vector.extract_strided_slice %6 {offsets = [1, 0], sizes = [1, 128], strides = [1, 1]} : vector<6x128xf32> to vector<1x128xf32>
    %cst_74 = arith.constant dense<0.000000e+00> : vector<16xf32>
    %255 = vector.multi_reduction <add>, %252, %cst_74 [1] : vector<16x128xf32> to vector<16xf32>
    %256 = vector.shape_cast %255 : vector<16xf32> to vector<16x1xf32>
    %cst_75 = arith.constant 1.280000e+02 : f32
    %257 = vector.broadcast %cst_75 : f32 to vector<16x1xf32>
    %258 = arith.divf %256, %257 : vector<16x1xf32>
    %259 = vector.broadcast %258 : vector<16x1xf32> to vector<16x128xf32>
    %260 = arith.subf %252, %259 : vector<16x128xf32>
    %261 = arith.mulf %260, %260 : vector<16x128xf32>
    %cst_76 = arith.constant dense<0.000000e+00> : vector<16xf32>
    %262 = vector.multi_reduction <add>, %261, %cst_76 [1] : vector<16x128xf32> to vector<16xf32>
    %263 = vector.shape_cast %262 : vector<16xf32> to vector<16x1xf32>
    %cst_77 = arith.constant 1.280000e+02 : f32
    %264 = vector.broadcast %cst_77 : f32 to vector<16x1xf32>
    %265 = arith.divf %263, %264 : vector<16x1xf32>
    %266 = vector.broadcast %258 : vector<16x1xf32> to vector<16x128xf32>
    %267 = arith.subf %252, %266 : vector<16x128xf32>
    %cst_78 = arith.constant 9.99999974E-6 : f32
    %268 = vector.broadcast %cst_78 : f32 to vector<16x1xf32>
    %269 = arith.addf %265, %268 : vector<16x1xf32>
    %270 = math.rsqrt %269 : vector<16x1xf32>
    %271 = vector.broadcast %270 : vector<16x1xf32> to vector<16x128xf32>
    %272 = arith.mulf %267, %271 : vector<16x128xf32>
    %273 = vector.broadcast %253 : vector<1x128xf32> to vector<16x128xf32>
    %274 = arith.mulf %272, %273 : vector<16x128xf32>
    %275 = vector.broadcast %254 : vector<1x128xf32> to vector<16x128xf32>
    %276 = arith.addf %274, %275 : vector<16x128xf32>
    %277 = arith.truncf %276 : vector<16x128xf32> to vector<16x128xbf16>
    %c0_79 = arith.constant 0 : index
    %c0_80 = arith.constant 0 : index
    %c0_81 = arith.constant 0 : index
    %278 = vector.load %arg7[%c0_79, %c0_80, %c0_81] : memref<1x128x128xbf16, #tpu.memory_space<vmem>>, vector<1x128x128xbf16>
    %279 = vector.shape_cast %278 : vector<1x128x128xbf16> to vector<128x128xbf16>
    %cst_82 = arith.constant dense<0.000000e+00> : vector<16x128xf32>
    %280 = tpu.matmul %277, %279, %cst_82 {dimension_numbers = #tpu.dot_dimension_numbers<[1], [0], [0], [1], [0, 0, 1, 1], [], []>} : vector<16x128xbf16>, vector<128x128xbf16>, vector<16x128xf32> -> vector<16x128xf32>
    %c0_83 = arith.constant 0 : index
    %c0_84 = arith.constant 0 : index
    %c0_85 = arith.constant 0 : index
    %281 = vector.load %arg8[%c0_83, %c0_84, %c0_85] : memref<1x1x128xf32, #tpu.memory_space<vmem>>, vector<1x1x128xf32>
    %282 = vector.shape_cast %281 : vector<1x1x128xf32> to vector<1x128xf32>
    %283 = vector.broadcast %282 : vector<1x128xf32> to vector<16x128xf32>
    %284 = arith.addf %280, %283 : vector<16x128xf32>
    %c0_86 = arith.constant 0 : index
    %c0_87 = arith.constant 0 : index
    %285 = vector.load %arg2[%c0_86, %c0_87] : memref<16x128xf32, #tpu.memory_space<vmem>>, vector<16x128xf32>
    %286 = arith.truncf %285 : vector<16x128xf32> to vector<16x128xbf16>
    %c0_88 = arith.constant 0 : index
    %c0_89 = arith.constant 0 : index
    %c0_90 = arith.constant 0 : index
    %287 = vector.load %arg9[%c0_88, %c0_89, %c0_90] : memref<1x128x256xbf16, #tpu.memory_space<vmem>>, vector<1x128x256xbf16>
    %288 = vector.shape_cast %287 : vector<1x128x256xbf16> to vector<128x256xbf16>
    %cst_91 = arith.constant dense<0.000000e+00> : vector<16x256xf32>
    %289 = tpu.matmul %286, %288, %cst_91 {dimension_numbers = #tpu.dot_dimension_numbers<[1], [0], [0], [1], [0, 0, 1, 1], [], []>} : vector<16x128xbf16>, vector<128x256xbf16>, vector<16x256xf32> -> vector<16x256xf32>
    %c0_92 = arith.constant 0 : index
    %c0_93 = arith.constant 0 : index
    %c0_94 = arith.constant 0 : index
    %290 = vector.load %arg10[%c0_92, %c0_93, %c0_94] : memref<1x1x256xf32, #tpu.memory_space<vmem>>, vector<1x1x256xf32>
    %291 = vector.shape_cast %290 : vector<1x1x256xf32> to vector<1x256xf32>
    %292 = vector.broadcast %291 : vector<1x256xf32> to vector<16x256xf32>
    %293 = arith.addf %289, %292 : vector<16x256xf32>
    %294 = vector.extract_strided_slice %293 {offsets = [0, 0], sizes = [16, 128], strides = [1, 1]} : vector<16x256xf32> to vector<16x128xf32>
    %295 = vector.extract_strided_slice %293 {offsets = [0, 128], sizes = [16, 128], strides = [1, 1]} : vector<16x256xf32> to vector<16x128xf32>
    %296 = vector.extract_strided_slice %284 {offsets = [0, 0], sizes = [16, 16], strides = [1, 1]} : vector<16x128xf32> to vector<16x16xf32>
    %297 = vector.shape_cast %296 : vector<16x16xf32> to vector<2x8x16xf32>
    %298 = arith.truncf %297 : vector<2x8x16xf32> to vector<2x8x16xbf16>
    %299 = vector.extract_strided_slice %294 {offsets = [0, 0], sizes = [16, 16], strides = [1, 1]} : vector<16x128xf32> to vector<16x16xf32>
    %300 = vector.shape_cast %299 : vector<16x16xf32> to vector<2x8x16xf32>
    %301 = arith.truncf %300 : vector<2x8x16xf32> to vector<2x8x16xbf16>
    %302 = vector.extract_strided_slice %295 {offsets = [0, 0], sizes = [16, 16], strides = [1, 1]} : vector<16x128xf32> to vector<16x16xf32>
    %303 = vector.shape_cast %302 : vector<16x16xf32> to vector<2x8x16xf32>
    %304 = arith.truncf %303 : vector<2x8x16xf32> to vector<2x8x16xbf16>
    "tpu.trace_start"() <{level = 10 : i32, message = "bqd,bkd->bqk"}> : () -> ()
    %cst_95 = arith.constant dense<0.000000e+00> : vector<2x8x8xf32>
    %305 = tpu.matmul %298, %301, %cst_95 {dimension_numbers = #tpu.dot_dimension_numbers<[2], [2], [1], [1], [0, 0, 0, 1, 1, 1], [0], [0]>} : vector<2x8x16xbf16>, vector<2x8x16xbf16>, vector<2x8x8xf32> -> vector<2x8x8xf32>
    "tpu.trace_stop"() : () -> ()
    %cst_96 = arith.constant 2.500000e-01 : f32
    %306 = vector.broadcast %cst_96 : f32 to vector<2x8x8xf32>
    %307 = arith.mulf %305, %306 : vector<2x8x8xf32>
    %cst_97 = arith.constant dense<0xFF800000> : vector<2x8xf32>
    %308 = vector.multi_reduction <maximumf>, %307, %cst_97 [2] : vector<2x8x8xf32> to vector<2x8xf32>
    %309 = vector.shape_cast %308 : vector<2x8xf32> to vector<2x8x1xf32>
    %310 = vector.broadcast %309 : vector<2x8x1xf32> to vector<2x8x8xf32>
    %311 = arith.subf %307, %310 : vector<2x8x8xf32>
    %312 = math.exp %311 : vector<2x8x8xf32>
    %cst_98 = arith.constant dense<0.000000e+00> : vector<2x8xf32>
    %313 = vector.multi_reduction <add>, %312, %cst_98 [2] : vector<2x8x8xf32> to vector<2x8xf32>
    %314 = vector.shape_cast %313 : vector<2x8xf32> to vector<2x8x1xf32>
    %315 = vector.broadcast %314 : vector<2x8x1xf32> to vector<2x8x8xf32>
    %316 = arith.divf %312, %315 : vector<2x8x8xf32>
    %317 = arith.truncf %316 : vector<2x8x8xf32> to vector<2x8x8xbf16>
    "tpu.trace_start"() <{level = 10 : i32, message = "bqk,bkd->bqd"}> : () -> ()
    %cst_99 = arith.constant dense<0.000000e+00> : vector<2x8x16xf32>
    %318 = tpu.matmul %317, %304, %cst_99 {dimension_numbers = #tpu.dot_dimension_numbers<[2], [1], [1], [2], [0, 0, 0, 1, 1, 2], [0], [0]>} : vector<2x8x8xbf16>, vector<2x8x16xbf16>, vector<2x8x16xf32> -> vector<2x8x16xf32>
    "tpu.trace_stop"() : () -> ()
    %319 = vector.shape_cast %318 : vector<2x8x16xf32> to vector<16x16xf32>
    %320 = vector.extract_strided_slice %284 {offsets = [0, 16], sizes = [16, 16], strides = [1, 1]} : vector<16x128xf32> to vector<16x16xf32>
    %321 = vector.shape_cast %320 : vector<16x16xf32> to vector<2x8x16xf32>
    %322 = arith.truncf %321 : vector<2x8x16xf32> to vector<2x8x16xbf16>
    %323 = vector.extract_strided_slice %294 {offsets = [0, 16], sizes = [16, 16], strides = [1, 1]} : vector<16x128xf32> to vector<16x16xf32>
    %324 = vector.shape_cast %323 : vector<16x16xf32> to vector<2x8x16xf32>
    %325 = arith.truncf %324 : vector<2x8x16xf32> to vector<2x8x16xbf16>
    %326 = vector.extract_strided_slice %295 {offsets = [0, 16], sizes = [16, 16], strides = [1, 1]} : vector<16x128xf32> to vector<16x16xf32>
    %327 = vector.shape_cast %326 : vector<16x16xf32> to vector<2x8x16xf32>
    %328 = arith.truncf %327 : vector<2x8x16xf32> to vector<2x8x16xbf16>
    "tpu.trace_start"() <{level = 10 : i32, message = "bqd,bkd->bqk"}> : () -> ()
    %cst_100 = arith.constant dense<0.000000e+00> : vector<2x8x8xf32>
    %329 = tpu.matmul %322, %325, %cst_100 {dimension_numbers = #tpu.dot_dimension_numbers<[2], [2], [1], [1], [0, 0, 0, 1, 1, 1], [0], [0]>} : vector<2x8x16xbf16>, vector<2x8x16xbf16>, vector<2x8x8xf32> -> vector<2x8x8xf32>
    "tpu.trace_stop"() : () -> ()
    %cst_101 = arith.constant 2.500000e-01 : f32
    %330 = vector.broadcast %cst_101 : f32 to vector<2x8x8xf32>
    %331 = arith.mulf %329, %330 : vector<2x8x8xf32>
    %cst_102 = arith.constant dense<0xFF800000> : vector<2x8xf32>
    %332 = vector.multi_reduction <maximumf>, %331, %cst_102 [2] : vector<2x8x8xf32> to vector<2x8xf32>
    %333 = vector.shape_cast %332 : vector<2x8xf32> to vector<2x8x1xf32>
    %334 = vector.broadcast %333 : vector<2x8x1xf32> to vector<2x8x8xf32>
    %335 = arith.subf %331, %334 : vector<2x8x8xf32>
    %336 = math.exp %335 : vector<2x8x8xf32>
    %cst_103 = arith.constant dense<0.000000e+00> : vector<2x8xf32>
    %337 = vector.multi_reduction <add>, %336, %cst_103 [2] : vector<2x8x8xf32> to vector<2x8xf32>
    %338 = vector.shape_cast %337 : vector<2x8xf32> to vector<2x8x1xf32>
    %339 = vector.broadcast %338 : vector<2x8x1xf32> to vector<2x8x8xf32>
    %340 = arith.divf %336, %339 : vector<2x8x8xf32>
    %341 = arith.truncf %340 : vector<2x8x8xf32> to vector<2x8x8xbf16>
    "tpu.trace_start"() <{level = 10 : i32, message = "bqk,bkd->bqd"}> : () -> ()
    %cst_104 = arith.constant dense<0.000000e+00> : vector<2x8x16xf32>
    %342 = tpu.matmul %341, %328, %cst_104 {dimension_numbers = #tpu.dot_dimension_numbers<[2], [1], [1], [2], [0, 0, 0, 1, 1, 2], [0], [0]>} : vector<2x8x8xbf16>, vector<2x8x16xbf16>, vector<2x8x16xf32> -> vector<2x8x16xf32>
    "tpu.trace_stop"() : () -> ()
    %343 = vector.shape_cast %342 : vector<2x8x16xf32> to vector<16x16xf32>
    %344 = vector.extract_strided_slice %284 {offsets = [0, 32], sizes = [16, 16], strides = [1, 1]} : vector<16x128xf32> to vector<16x16xf32>
    %345 = vector.shape_cast %344 : vector<16x16xf32> to vector<2x8x16xf32>
    %346 = arith.truncf %345 : vector<2x8x16xf32> to vector<2x8x16xbf16>
    %347 = vector.extract_strided_slice %294 {offsets = [0, 32], sizes = [16, 16], strides = [1, 1]} : vector<16x128xf32> to vector<16x16xf32>
    %348 = vector.shape_cast %347 : vector<16x16xf32> to vector<2x8x16xf32>
    %349 = arith.truncf %348 : vector<2x8x16xf32> to vector<2x8x16xbf16>
    %350 = vector.extract_strided_slice %295 {offsets = [0, 32], sizes = [16, 16], strides = [1, 1]} : vector<16x128xf32> to vector<16x16xf32>
    %351 = vector.shape_cast %350 : vector<16x16xf32> to vector<2x8x16xf32>
    %352 = arith.truncf %351 : vector<2x8x16xf32> to vector<2x8x16xbf16>
    "tpu.trace_start"() <{level = 10 : i32, message = "bqd,bkd->bqk"}> : () -> ()
    %cst_105 = arith.constant dense<0.000000e+00> : vector<2x8x8xf32>
    %353 = tpu.matmul %346, %349, %cst_105 {dimension_numbers = #tpu.dot_dimension_numbers<[2], [2], [1], [1], [0, 0, 0, 1, 1, 1], [0], [0]>} : vector<2x8x16xbf16>, vector<2x8x16xbf16>, vector<2x8x8xf32> -> vector<2x8x8xf32>
    "tpu.trace_stop"() : () -> ()
    %cst_106 = arith.constant 2.500000e-01 : f32
    %354 = vector.broadcast %cst_106 : f32 to vector<2x8x8xf32>
    %355 = arith.mulf %353, %354 : vector<2x8x8xf32>
    %cst_107 = arith.constant dense<0xFF800000> : vector<2x8xf32>
    %356 = vector.multi_reduction <maximumf>, %355, %cst_107 [2] : vector<2x8x8xf32> to vector<2x8xf32>
    %357 = vector.shape_cast %356 : vector<2x8xf32> to vector<2x8x1xf32>
    %358 = vector.broadcast %357 : vector<2x8x1xf32> to vector<2x8x8xf32>
    %359 = arith.subf %355, %358 : vector<2x8x8xf32>
    %360 = math.exp %359 : vector<2x8x8xf32>
    %cst_108 = arith.constant dense<0.000000e+00> : vector<2x8xf32>
    %361 = vector.multi_reduction <add>, %360, %cst_108 [2] : vector<2x8x8xf32> to vector<2x8xf32>
    %362 = vector.shape_cast %361 : vector<2x8xf32> to vector<2x8x1xf32>
    %363 = vector.broadcast %362 : vector<2x8x1xf32> to vector<2x8x8xf32>
    %364 = arith.divf %360, %363 : vector<2x8x8xf32>
    %365 = arith.truncf %364 : vector<2x8x8xf32> to vector<2x8x8xbf16>
    "tpu.trace_start"() <{level = 10 : i32, message = "bqk,bkd->bqd"}> : () -> ()
    %cst_109 = arith.constant dense<0.000000e+00> : vector<2x8x16xf32>
    %366 = tpu.matmul %365, %352, %cst_109 {dimension_numbers = #tpu.dot_dimension_numbers<[2], [1], [1], [2], [0, 0, 0, 1, 1, 2], [0], [0]>} : vector<2x8x8xbf16>, vector<2x8x16xbf16>, vector<2x8x16xf32> -> vector<2x8x16xf32>
    "tpu.trace_stop"() : () -> ()
    %367 = vector.shape_cast %366 : vector<2x8x16xf32> to vector<16x16xf32>
    %368 = vector.extract_strided_slice %284 {offsets = [0, 48], sizes = [16, 16], strides = [1, 1]} : vector<16x128xf32> to vector<16x16xf32>
    %369 = vector.shape_cast %368 : vector<16x16xf32> to vector<2x8x16xf32>
    %370 = arith.truncf %369 : vector<2x8x16xf32> to vector<2x8x16xbf16>
    %371 = vector.extract_strided_slice %294 {offsets = [0, 48], sizes = [16, 16], strides = [1, 1]} : vector<16x128xf32> to vector<16x16xf32>
    %372 = vector.shape_cast %371 : vector<16x16xf32> to vector<2x8x16xf32>
    %373 = arith.truncf %372 : vector<2x8x16xf32> to vector<2x8x16xbf16>
    %374 = vector.extract_strided_slice %295 {offsets = [0, 48], sizes = [16, 16], strides = [1, 1]} : vector<16x128xf32> to vector<16x16xf32>
    %375 = vector.shape_cast %374 : vector<16x16xf32> to vector<2x8x16xf32>
    %376 = arith.truncf %375 : vector<2x8x16xf32> to vector<2x8x16xbf16>
    "tpu.trace_start"() <{level = 10 : i32, message = "bqd,bkd->bqk"}> : () -> ()
    %cst_110 = arith.constant dense<0.000000e+00> : vector<2x8x8xf32>
    %377 = tpu.matmul %370, %373, %cst_110 {dimension_numbers = #tpu.dot_dimension_numbers<[2], [2], [1], [1], [0, 0, 0, 1, 1, 1], [0], [0]>} : vector<2x8x16xbf16>, vector<2x8x16xbf16>, vector<2x8x8xf32> -> vector<2x8x8xf32>
    "tpu.trace_stop"() : () -> ()
    %cst_111 = arith.constant 2.500000e-01 : f32
    %378 = vector.broadcast %cst_111 : f32 to vector<2x8x8xf32>
    %379 = arith.mulf %377, %378 : vector<2x8x8xf32>
    %cst_112 = arith.constant dense<0xFF800000> : vector<2x8xf32>
    %380 = vector.multi_reduction <maximumf>, %379, %cst_112 [2] : vector<2x8x8xf32> to vector<2x8xf32>
    %381 = vector.shape_cast %380 : vector<2x8xf32> to vector<2x8x1xf32>
    %382 = vector.broadcast %381 : vector<2x8x1xf32> to vector<2x8x8xf32>
    %383 = arith.subf %379, %382 : vector<2x8x8xf32>
    %384 = math.exp %383 : vector<2x8x8xf32>
    %cst_113 = arith.constant dense<0.000000e+00> : vector<2x8xf32>
    %385 = vector.multi_reduction <add>, %384, %cst_113 [2] : vector<2x8x8xf32> to vector<2x8xf32>
    %386 = vector.shape_cast %385 : vector<2x8xf32> to vector<2x8x1xf32>
    %387 = vector.broadcast %386 : vector<2x8x1xf32> to vector<2x8x8xf32>
    %388 = arith.divf %384, %387 : vector<2x8x8xf32>
    %389 = arith.truncf %388 : vector<2x8x8xf32> to vector<2x8x8xbf16>
    "tpu.trace_start"() <{level = 10 : i32, message = "bqk,bkd->bqd"}> : () -> ()
    %cst_114 = arith.constant dense<0.000000e+00> : vector<2x8x16xf32>
    %390 = tpu.matmul %389, %376, %cst_114 {dimension_numbers = #tpu.dot_dimension_numbers<[2], [1], [1], [2], [0, 0, 0, 1, 1, 2], [0], [0]>} : vector<2x8x8xbf16>, vector<2x8x16xbf16>, vector<2x8x16xf32> -> vector<2x8x16xf32>
    "tpu.trace_stop"() : () -> ()
    %391 = vector.shape_cast %390 : vector<2x8x16xf32> to vector<16x16xf32>
    %392 = vector.extract_strided_slice %284 {offsets = [0, 64], sizes = [16, 16], strides = [1, 1]} : vector<16x128xf32> to vector<16x16xf32>
    %393 = vector.shape_cast %392 : vector<16x16xf32> to vector<2x8x16xf32>
    %394 = arith.truncf %393 : vector<2x8x16xf32> to vector<2x8x16xbf16>
    %395 = vector.extract_strided_slice %294 {offsets = [0, 64], sizes = [16, 16], strides = [1, 1]} : vector<16x128xf32> to vector<16x16xf32>
    %396 = vector.shape_cast %395 : vector<16x16xf32> to vector<2x8x16xf32>
    %397 = arith.truncf %396 : vector<2x8x16xf32> to vector<2x8x16xbf16>
    %398 = vector.extract_strided_slice %295 {offsets = [0, 64], sizes = [16, 16], strides = [1, 1]} : vector<16x128xf32> to vector<16x16xf32>
    %399 = vector.shape_cast %398 : vector<16x16xf32> to vector<2x8x16xf32>
    %400 = arith.truncf %399 : vector<2x8x16xf32> to vector<2x8x16xbf16>
    "tpu.trace_start"() <{level = 10 : i32, message = "bqd,bkd->bqk"}> : () -> ()
    %cst_115 = arith.constant dense<0.000000e+00> : vector<2x8x8xf32>
    %401 = tpu.matmul %394, %397, %cst_115 {dimension_numbers = #tpu.dot_dimension_numbers<[2], [2], [1], [1], [0, 0, 0, 1, 1, 1], [0], [0]>} : vector<2x8x16xbf16>, vector<2x8x16xbf16>, vector<2x8x8xf32> -> vector<2x8x8xf32>
    "tpu.trace_stop"() : () -> ()
    %cst_116 = arith.constant 2.500000e-01 : f32
    %402 = vector.broadcast %cst_116 : f32 to vector<2x8x8xf32>
    %403 = arith.mulf %401, %402 : vector<2x8x8xf32>
    %cst_117 = arith.constant dense<0xFF800000> : vector<2x8xf32>
    %404 = vector.multi_reduction <maximumf>, %403, %cst_117 [2] : vector<2x8x8xf32> to vector<2x8xf32>
    %405 = vector.shape_cast %404 : vector<2x8xf32> to vector<2x8x1xf32>
    %406 = vector.broadcast %405 : vector<2x8x1xf32> to vector<2x8x8xf32>
    %407 = arith.subf %403, %406 : vector<2x8x8xf32>
    %408 = math.exp %407 : vector<2x8x8xf32>
    %cst_118 = arith.constant dense<0.000000e+00> : vector<2x8xf32>
    %409 = vector.multi_reduction <add>, %408, %cst_118 [2] : vector<2x8x8xf32> to vector<2x8xf32>
    %410 = vector.shape_cast %409 : vector<2x8xf32> to vector<2x8x1xf32>
    %411 = vector.broadcast %410 : vector<2x8x1xf32> to vector<2x8x8xf32>
    %412 = arith.divf %408, %411 : vector<2x8x8xf32>
    %413 = arith.truncf %412 : vector<2x8x8xf32> to vector<2x8x8xbf16>
    "tpu.trace_start"() <{level = 10 : i32, message = "bqk,bkd->bqd"}> : () -> ()
    %cst_119 = arith.constant dense<0.000000e+00> : vector<2x8x16xf32>
    %414 = tpu.matmul %413, %400, %cst_119 {dimension_numbers = #tpu.dot_dimension_numbers<[2], [1], [1], [2], [0, 0, 0, 1, 1, 2], [0], [0]>} : vector<2x8x8xbf16>, vector<2x8x16xbf16>, vector<2x8x16xf32> -> vector<2x8x16xf32>
    "tpu.trace_stop"() : () -> ()
    %415 = vector.shape_cast %414 : vector<2x8x16xf32> to vector<16x16xf32>
    %416 = vector.extract_strided_slice %284 {offsets = [0, 80], sizes = [16, 16], strides = [1, 1]} : vector<16x128xf32> to vector<16x16xf32>
    %417 = vector.shape_cast %416 : vector<16x16xf32> to vector<2x8x16xf32>
    %418 = arith.truncf %417 : vector<2x8x16xf32> to vector<2x8x16xbf16>
    %419 = vector.extract_strided_slice %294 {offsets = [0, 80], sizes = [16, 16], strides = [1, 1]} : vector<16x128xf32> to vector<16x16xf32>
    %420 = vector.shape_cast %419 : vector<16x16xf32> to vector<2x8x16xf32>
    %421 = arith.truncf %420 : vector<2x8x16xf32> to vector<2x8x16xbf16>
    %422 = vector.extract_strided_slice %295 {offsets = [0, 80], sizes = [16, 16], strides = [1, 1]} : vector<16x128xf32> to vector<16x16xf32>
    %423 = vector.shape_cast %422 : vector<16x16xf32> to vector<2x8x16xf32>
    %424 = arith.truncf %423 : vector<2x8x16xf32> to vector<2x8x16xbf16>
    "tpu.trace_start"() <{level = 10 : i32, message = "bqd,bkd->bqk"}> : () -> ()
    %cst_120 = arith.constant dense<0.000000e+00> : vector<2x8x8xf32>
    %425 = tpu.matmul %418, %421, %cst_120 {dimension_numbers = #tpu.dot_dimension_numbers<[2], [2], [1], [1], [0, 0, 0, 1, 1, 1], [0], [0]>} : vector<2x8x16xbf16>, vector<2x8x16xbf16>, vector<2x8x8xf32> -> vector<2x8x8xf32>
    "tpu.trace_stop"() : () -> ()
    %cst_121 = arith.constant 2.500000e-01 : f32
    %426 = vector.broadcast %cst_121 : f32 to vector<2x8x8xf32>
    %427 = arith.mulf %425, %426 : vector<2x8x8xf32>
    %cst_122 = arith.constant dense<0xFF800000> : vector<2x8xf32>
    %428 = vector.multi_reduction <maximumf>, %427, %cst_122 [2] : vector<2x8x8xf32> to vector<2x8xf32>
    %429 = vector.shape_cast %428 : vector<2x8xf32> to vector<2x8x1xf32>
    %430 = vector.broadcast %429 : vector<2x8x1xf32> to vector<2x8x8xf32>
    %431 = arith.subf %427, %430 : vector<2x8x8xf32>
    %432 = math.exp %431 : vector<2x8x8xf32>
    %cst_123 = arith.constant dense<0.000000e+00> : vector<2x8xf32>
    %433 = vector.multi_reduction <add>, %432, %cst_123 [2] : vector<2x8x8xf32> to vector<2x8xf32>
    %434 = vector.shape_cast %433 : vector<2x8xf32> to vector<2x8x1xf32>
    %435 = vector.broadcast %434 : vector<2x8x1xf32> to vector<2x8x8xf32>
    %436 = arith.divf %432, %435 : vector<2x8x8xf32>
    %437 = arith.truncf %436 : vector<2x8x8xf32> to vector<2x8x8xbf16>
    "tpu.trace_start"() <{level = 10 : i32, message = "bqk,bkd->bqd"}> : () -> ()
    %cst_124 = arith.constant dense<0.000000e+00> : vector<2x8x16xf32>
    %438 = tpu.matmul %437, %424, %cst_124 {dimension_numbers = #tpu.dot_dimension_numbers<[2], [1], [1], [2], [0, 0, 0, 1, 1, 2], [0], [0]>} : vector<2x8x8xbf16>, vector<2x8x16xbf16>, vector<2x8x16xf32> -> vector<2x8x16xf32>
    "tpu.trace_stop"() : () -> ()
    %439 = vector.shape_cast %438 : vector<2x8x16xf32> to vector<16x16xf32>
    %440 = vector.extract_strided_slice %284 {offsets = [0, 96], sizes = [16, 16], strides = [1, 1]} : vector<16x128xf32> to vector<16x16xf32>
    %441 = vector.shape_cast %440 : vector<16x16xf32> to vector<2x8x16xf32>
    %442 = arith.truncf %441 : vector<2x8x16xf32> to vector<2x8x16xbf16>
    %443 = vector.extract_strided_slice %294 {offsets = [0, 96], sizes = [16, 16], strides = [1, 1]} : vector<16x128xf32> to vector<16x16xf32>
    %444 = vector.shape_cast %443 : vector<16x16xf32> to vector<2x8x16xf32>
    %445 = arith.truncf %444 : vector<2x8x16xf32> to vector<2x8x16xbf16>
    %446 = vector.extract_strided_slice %295 {offsets = [0, 96], sizes = [16, 16], strides = [1, 1]} : vector<16x128xf32> to vector<16x16xf32>
    %447 = vector.shape_cast %446 : vector<16x16xf32> to vector<2x8x16xf32>
    %448 = arith.truncf %447 : vector<2x8x16xf32> to vector<2x8x16xbf16>
    "tpu.trace_start"() <{level = 10 : i32, message = "bqd,bkd->bqk"}> : () -> ()
    %cst_125 = arith.constant dense<0.000000e+00> : vector<2x8x8xf32>
    %449 = tpu.matmul %442, %445, %cst_125 {dimension_numbers = #tpu.dot_dimension_numbers<[2], [2], [1], [1], [0, 0, 0, 1, 1, 1], [0], [0]>} : vector<2x8x16xbf16>, vector<2x8x16xbf16>, vector<2x8x8xf32> -> vector<2x8x8xf32>
    "tpu.trace_stop"() : () -> ()
    %cst_126 = arith.constant 2.500000e-01 : f32
    %450 = vector.broadcast %cst_126 : f32 to vector<2x8x8xf32>
    %451 = arith.mulf %449, %450 : vector<2x8x8xf32>
    %cst_127 = arith.constant dense<0xFF800000> : vector<2x8xf32>
    %452 = vector.multi_reduction <maximumf>, %451, %cst_127 [2] : vector<2x8x8xf32> to vector<2x8xf32>
    %453 = vector.shape_cast %452 : vector<2x8xf32> to vector<2x8x1xf32>
    %454 = vector.broadcast %453 : vector<2x8x1xf32> to vector<2x8x8xf32>
    %455 = arith.subf %451, %454 : vector<2x8x8xf32>
    %456 = math.exp %455 : vector<2x8x8xf32>
    %cst_128 = arith.constant dense<0.000000e+00> : vector<2x8xf32>
    %457 = vector.multi_reduction <add>, %456, %cst_128 [2] : vector<2x8x8xf32> to vector<2x8xf32>
    %458 = vector.shape_cast %457 : vector<2x8xf32> to vector<2x8x1xf32>
    %459 = vector.broadcast %458 : vector<2x8x1xf32> to vector<2x8x8xf32>
    %460 = arith.divf %456, %459 : vector<2x8x8xf32>
    %461 = arith.truncf %460 : vector<2x8x8xf32> to vector<2x8x8xbf16>
    "tpu.trace_start"() <{level = 10 : i32, message = "bqk,bkd->bqd"}> : () -> ()
    %cst_129 = arith.constant dense<0.000000e+00> : vector<2x8x16xf32>
    %462 = tpu.matmul %461, %448, %cst_129 {dimension_numbers = #tpu.dot_dimension_numbers<[2], [1], [1], [2], [0, 0, 0, 1, 1, 2], [0], [0]>} : vector<2x8x8xbf16>, vector<2x8x16xbf16>, vector<2x8x16xf32> -> vector<2x8x16xf32>
    "tpu.trace_stop"() : () -> ()
    %463 = vector.shape_cast %462 : vector<2x8x16xf32> to vector<16x16xf32>
    %464 = vector.extract_strided_slice %284 {offsets = [0, 112], sizes = [16, 16], strides = [1, 1]} : vector<16x128xf32> to vector<16x16xf32>
    %465 = vector.shape_cast %464 : vector<16x16xf32> to vector<2x8x16xf32>
    %466 = arith.truncf %465 : vector<2x8x16xf32> to vector<2x8x16xbf16>
    %467 = vector.extract_strided_slice %294 {offsets = [0, 112], sizes = [16, 16], strides = [1, 1]} : vector<16x128xf32> to vector<16x16xf32>
    %468 = vector.shape_cast %467 : vector<16x16xf32> to vector<2x8x16xf32>
    %469 = arith.truncf %468 : vector<2x8x16xf32> to vector<2x8x16xbf16>
    %470 = vector.extract_strided_slice %295 {offsets = [0, 112], sizes = [16, 16], strides = [1, 1]} : vector<16x128xf32> to vector<16x16xf32>
    %471 = vector.shape_cast %470 : vector<16x16xf32> to vector<2x8x16xf32>
    %472 = arith.truncf %471 : vector<2x8x16xf32> to vector<2x8x16xbf16>
    "tpu.trace_start"() <{level = 10 : i32, message = "bqd,bkd->bqk"}> : () -> ()
    %cst_130 = arith.constant dense<0.000000e+00> : vector<2x8x8xf32>
    %473 = tpu.matmul %466, %469, %cst_130 {dimension_numbers = #tpu.dot_dimension_numbers<[2], [2], [1], [1], [0, 0, 0, 1, 1, 1], [0], [0]>} : vector<2x8x16xbf16>, vector<2x8x16xbf16>, vector<2x8x8xf32> -> vector<2x8x8xf32>
    "tpu.trace_stop"() : () -> ()
    %cst_131 = arith.constant 2.500000e-01 : f32
    %474 = vector.broadcast %cst_131 : f32 to vector<2x8x8xf32>
    %475 = arith.mulf %473, %474 : vector<2x8x8xf32>
    %cst_132 = arith.constant dense<0xFF800000> : vector<2x8xf32>
    %476 = vector.multi_reduction <maximumf>, %475, %cst_132 [2] : vector<2x8x8xf32> to vector<2x8xf32>
    %477 = vector.shape_cast %476 : vector<2x8xf32> to vector<2x8x1xf32>
    %478 = vector.broadcast %477 : vector<2x8x1xf32> to vector<2x8x8xf32>
    %479 = arith.subf %475, %478 : vector<2x8x8xf32>
    %480 = math.exp %479 : vector<2x8x8xf32>
    %cst_133 = arith.constant dense<0.000000e+00> : vector<2x8xf32>
    %481 = vector.multi_reduction <add>, %480, %cst_133 [2] : vector<2x8x8xf32> to vector<2x8xf32>
    %482 = vector.shape_cast %481 : vector<2x8xf32> to vector<2x8x1xf32>
    %483 = vector.broadcast %482 : vector<2x8x1xf32> to vector<2x8x8xf32>
    %484 = arith.divf %480, %483 : vector<2x8x8xf32>
    %485 = arith.truncf %484 : vector<2x8x8xf32> to vector<2x8x8xbf16>
    "tpu.trace_start"() <{level = 10 : i32, message = "bqk,bkd->bqd"}> : () -> ()
    %cst_134 = arith.constant dense<0.000000e+00> : vector<2x8x16xf32>
    %486 = tpu.matmul %485, %472, %cst_134 {dimension_numbers = #tpu.dot_dimension_numbers<[2], [1], [1], [2], [0, 0, 0, 1, 1, 2], [0], [0]>} : vector<2x8x8xbf16>, vector<2x8x16xbf16>, vector<2x8x16xf32> -> vector<2x8x16xf32>
    "tpu.trace_stop"() : () -> ()
    %487 = vector.shape_cast %486 : vector<2x8x16xf32> to vector<16x16xf32>
    %488 = tpu.concatenate %319, %343, %367, %391, %415, %439, %463, %487 in 1 : vector<16x16xf32>, vector<16x16xf32>, vector<16x16xf32>, vector<16x16xf32>, vector<16x16xf32>, vector<16x16xf32>, vector<16x16xf32>, vector<16x16xf32> -> vector<16x128xf32>
    %489 = arith.truncf %488 : vector<16x128xf32> to vector<16x128xbf16>
    %c0_135 = arith.constant 0 : index
    %c0_136 = arith.constant 0 : index
    %c0_137 = arith.constant 0 : index
    %490 = vector.load %arg11[%c0_135, %c0_136, %c0_137] : memref<1x128x128xbf16, #tpu.memory_space<vmem>>, vector<1x128x128xbf16>
    %491 = vector.shape_cast %490 : vector<1x128x128xbf16> to vector<128x128xbf16>
    %cst_138 = arith.constant dense<0.000000e+00> : vector<16x128xf32>
    %492 = tpu.matmul %489, %491, %cst_138 {dimension_numbers = #tpu.dot_dimension_numbers<[1], [0], [0], [1], [0, 0, 1, 1], [], []>} : vector<16x128xbf16>, vector<128x128xbf16>, vector<16x128xf32> -> vector<16x128xf32>
    %c0_139 = arith.constant 0 : index
    %c0_140 = arith.constant 0 : index
    %c0_141 = arith.constant 0 : index
    %493 = vector.load %arg12[%c0_139, %c0_140, %c0_141] : memref<1x1x128xf32, #tpu.memory_space<vmem>>, vector<1x1x128xf32>
    %494 = vector.shape_cast %493 : vector<1x1x128xf32> to vector<1x128xf32>
    %495 = vector.broadcast %494 : vector<1x128xf32> to vector<16x128xf32>
    %496 = arith.addf %492, %495 : vector<16x128xf32>
    %497 = arith.addf %276, %496 : vector<16x128xf32>
    %498 = vector.extract_strided_slice %6 {offsets = [2, 0], sizes = [1, 128], strides = [1, 1]} : vector<6x128xf32> to vector<1x128xf32>
    %499 = vector.extract_strided_slice %6 {offsets = [3, 0], sizes = [1, 128], strides = [1, 1]} : vector<6x128xf32> to vector<1x128xf32>
    %cst_142 = arith.constant dense<0.000000e+00> : vector<16xf32>
    %500 = vector.multi_reduction <add>, %497, %cst_142 [1] : vector<16x128xf32> to vector<16xf32>
    %501 = vector.shape_cast %500 : vector<16xf32> to vector<16x1xf32>
    %cst_143 = arith.constant 1.280000e+02 : f32
    %502 = vector.broadcast %cst_143 : f32 to vector<16x1xf32>
    %503 = arith.divf %501, %502 : vector<16x1xf32>
    %504 = vector.broadcast %503 : vector<16x1xf32> to vector<16x128xf32>
    %505 = arith.subf %497, %504 : vector<16x128xf32>
    %506 = arith.mulf %505, %505 : vector<16x128xf32>
    %cst_144 = arith.constant dense<0.000000e+00> : vector<16xf32>
    %507 = vector.multi_reduction <add>, %506, %cst_144 [1] : vector<16x128xf32> to vector<16xf32>
    %508 = vector.shape_cast %507 : vector<16xf32> to vector<16x1xf32>
    %cst_145 = arith.constant 1.280000e+02 : f32
    %509 = vector.broadcast %cst_145 : f32 to vector<16x1xf32>
    %510 = arith.divf %508, %509 : vector<16x1xf32>
    %511 = vector.broadcast %503 : vector<16x1xf32> to vector<16x128xf32>
    %512 = arith.subf %497, %511 : vector<16x128xf32>
    %cst_146 = arith.constant 9.99999974E-6 : f32
    %513 = vector.broadcast %cst_146 : f32 to vector<16x1xf32>
    %514 = arith.addf %510, %513 : vector<16x1xf32>
    %515 = math.rsqrt %514 : vector<16x1xf32>
    %516 = vector.broadcast %515 : vector<16x1xf32> to vector<16x128xf32>
    %517 = arith.mulf %512, %516 : vector<16x128xf32>
    %518 = vector.broadcast %498 : vector<1x128xf32> to vector<16x128xf32>
    %519 = arith.mulf %517, %518 : vector<16x128xf32>
    %520 = vector.broadcast %499 : vector<1x128xf32> to vector<16x128xf32>
    %521 = arith.addf %519, %520 : vector<16x128xf32>
    %522 = arith.truncf %521 : vector<16x128xf32> to vector<16x128xbf16>
    %c0_147 = arith.constant 0 : index
    %c0_148 = arith.constant 0 : index
    %c0_149 = arith.constant 0 : index
    %523 = vector.load %arg13[%c0_147, %c0_148, %c0_149] : memref<1x128x256xbf16, #tpu.memory_space<vmem>>, vector<1x128x256xbf16>
    %524 = vector.shape_cast %523 : vector<1x128x256xbf16> to vector<128x256xbf16>
    %cst_150 = arith.constant dense<0.000000e+00> : vector<16x256xf32>
    %525 = tpu.matmul %522, %524, %cst_150 {dimension_numbers = #tpu.dot_dimension_numbers<[1], [0], [0], [1], [0, 0, 1, 1], [], []>} : vector<16x128xbf16>, vector<128x256xbf16>, vector<16x256xf32> -> vector<16x256xf32>
    %c0_151 = arith.constant 0 : index
    %c0_152 = arith.constant 0 : index
    %c0_153 = arith.constant 0 : index
    %526 = vector.load %arg14[%c0_151, %c0_152, %c0_153] : memref<1x1x256xf32, #tpu.memory_space<vmem>>, vector<1x1x256xf32>
    %527 = vector.shape_cast %526 : vector<1x1x256xf32> to vector<1x256xf32>
    %528 = vector.broadcast %527 : vector<1x256xf32> to vector<16x256xf32>
    %529 = arith.addf %525, %528 : vector<16x256xf32>
    %cst_154 = arith.constant 0.000000e+00 : f32
    %530 = vector.broadcast %cst_154 : f32 to vector<16x256xf32>
    %531 = arith.maximumf %529, %530 : vector<16x256xf32>
    %532 = arith.truncf %531 : vector<16x256xf32> to vector<16x256xbf16>
    %c0_155 = arith.constant 0 : index
    %c0_156 = arith.constant 0 : index
    %c0_157 = arith.constant 0 : index
    %533 = vector.load %arg15[%c0_155, %c0_156, %c0_157] : memref<1x256x128xbf16, #tpu.memory_space<vmem>>, vector<1x256x128xbf16>
    %534 = vector.shape_cast %533 : vector<1x256x128xbf16> to vector<256x128xbf16>
    %cst_158 = arith.constant dense<0.000000e+00> : vector<16x128xf32>
    %535 = tpu.matmul %532, %534, %cst_158 {dimension_numbers = #tpu.dot_dimension_numbers<[1], [0], [0], [1], [0, 0, 1, 1], [], []>} : vector<16x256xbf16>, vector<256x128xbf16>, vector<16x128xf32> -> vector<16x128xf32>
    %c0_159 = arith.constant 0 : index
    %c0_160 = arith.constant 0 : index
    %c0_161 = arith.constant 0 : index
    %536 = vector.load %arg16[%c0_159, %c0_160, %c0_161] : memref<1x1x128xf32, #tpu.memory_space<vmem>>, vector<1x1x128xf32>
    %537 = vector.shape_cast %536 : vector<1x1x128xf32> to vector<1x128xf32>
    %538 = vector.broadcast %537 : vector<1x128xf32> to vector<16x128xf32>
    %539 = arith.addf %535, %538 : vector<16x128xf32>
    %540 = arith.addf %521, %539 : vector<16x128xf32>
    %541 = vector.extract_strided_slice %6 {offsets = [4, 0], sizes = [1, 128], strides = [1, 1]} : vector<6x128xf32> to vector<1x128xf32>
    %542 = vector.extract_strided_slice %6 {offsets = [5, 0], sizes = [1, 128], strides = [1, 1]} : vector<6x128xf32> to vector<1x128xf32>
    %cst_162 = arith.constant dense<0.000000e+00> : vector<16xf32>
    %543 = vector.multi_reduction <add>, %540, %cst_162 [1] : vector<16x128xf32> to vector<16xf32>
    %544 = vector.shape_cast %543 : vector<16xf32> to vector<16x1xf32>
    %cst_163 = arith.constant 1.280000e+02 : f32
    %545 = vector.broadcast %cst_163 : f32 to vector<16x1xf32>
    %546 = arith.divf %544, %545 : vector<16x1xf32>
    %547 = vector.broadcast %546 : vector<16x1xf32> to vector<16x128xf32>
    %548 = arith.subf %540, %547 : vector<16x128xf32>
    %549 = arith.mulf %548, %548 : vector<16x128xf32>
    %cst_164 = arith.constant dense<0.000000e+00> : vector<16xf32>
    %550 = vector.multi_reduction <add>, %549, %cst_164 [1] : vector<16x128xf32> to vector<16xf32>
    %551 = vector.shape_cast %550 : vector<16xf32> to vector<16x1xf32>
    %cst_165 = arith.constant 1.280000e+02 : f32
    %552 = vector.broadcast %cst_165 : f32 to vector<16x1xf32>
    %553 = arith.divf %551, %552 : vector<16x1xf32>
    %554 = vector.broadcast %546 : vector<16x1xf32> to vector<16x128xf32>
    %555 = arith.subf %540, %554 : vector<16x128xf32>
    %cst_166 = arith.constant 9.99999974E-6 : f32
    %556 = vector.broadcast %cst_166 : f32 to vector<16x1xf32>
    %557 = arith.addf %553, %556 : vector<16x1xf32>
    %558 = math.rsqrt %557 : vector<16x1xf32>
    %559 = vector.broadcast %558 : vector<16x1xf32> to vector<16x128xf32>
    %560 = arith.mulf %555, %559 : vector<16x128xf32>
    %561 = vector.broadcast %541 : vector<1x128xf32> to vector<16x128xf32>
    %562 = arith.mulf %560, %561 : vector<16x128xf32>
    %563 = vector.broadcast %542 : vector<1x128xf32> to vector<16x128xf32>
    %564 = arith.addf %562, %563 : vector<16x128xf32>
    %c0_167 = arith.constant 0 : index
    %c0_168 = arith.constant 0 : index
    %565 = vector.load %arg20[%c0_167, %c0_168] : memref<16x128xf32, #tpu.memory_space<vmem>>, vector<16x128xf32>
    tpu.vector_store %arg20[%c0_167, %c0_168], %564 {strides = array<i32>} : memref<16x128xf32, #tpu.memory_space<vmem>>, vector<16x128xf32>,
    %c0_169 = arith.constant 0 : index
    %c0_170 = arith.constant 0 : index
    %566 = vector.load %arg18[%c0_169, %c0_170] : memref<2x128xf32, #tpu.memory_space<vmem>>, vector<2x128xf32>
    %567 = vector.extract_strided_slice %566 {offsets = [0, 0], sizes = [1, 128], strides = [1, 1]} : vector<2x128xf32> to vector<1x128xf32>
    %568 = vector.extract_strided_slice %566 {offsets = [1, 0], sizes = [1, 128], strides = [1, 1]} : vector<2x128xf32> to vector<1x128xf32>
    %cst_171 = arith.constant dense<0.000000e+00> : vector<16xf32>
    %569 = vector.multi_reduction <add>, %564, %cst_171 [1] : vector<16x128xf32> to vector<16xf32>
    %570 = vector.shape_cast %569 : vector<16xf32> to vector<16x1xf32>
    %cst_172 = arith.constant 1.280000e+02 : f32
    %571 = vector.broadcast %cst_172 : f32 to vector<16x1xf32>
    %572 = arith.divf %570, %571 : vector<16x1xf32>
    %573 = vector.broadcast %572 : vector<16x1xf32> to vector<16x128xf32>
    %574 = arith.subf %564, %573 : vector<16x128xf32>
    %575 = arith.mulf %574, %574 : vector<16x128xf32>
    %cst_173 = arith.constant dense<0.000000e+00> : vector<16xf32>
    %576 = vector.multi_reduction <add>, %575, %cst_173 [1] : vector<16x128xf32> to vector<16xf32>
    %577 = vector.shape_cast %576 : vector<16xf32> to vector<16x1xf32>
    %cst_174 = arith.constant 1.280000e+02 : f32
    %578 = vector.broadcast %cst_174 : f32 to vector<16x1xf32>
    %579 = arith.divf %577, %578 : vector<16x1xf32>
    %580 = vector.broadcast %572 : vector<16x1xf32> to vector<16x128xf32>
    %581 = arith.subf %564, %580 : vector<16x128xf32>
    %cst_175 = arith.constant 9.99999974E-6 : f32
    %582 = vector.broadcast %cst_175 : f32 to vector<16x1xf32>
    %583 = arith.addf %579, %582 : vector<16x1xf32>
    %584 = math.rsqrt %583 : vector<16x1xf32>
    %585 = vector.broadcast %584 : vector<16x1xf32> to vector<16x128xf32>
    %586 = arith.mulf %581, %585 : vector<16x128xf32>
    %587 = vector.broadcast %567 : vector<1x128xf32> to vector<16x128xf32>
    %588 = arith.mulf %586, %587 : vector<16x128xf32>
    %589 = vector.broadcast %568 : vector<1x128xf32> to vector<16x128xf32>
    %590 = arith.addf %588, %589 : vector<16x128xf32>
    %c0_176 = arith.constant 0 : index
    %c0_177 = arith.constant 0 : index
    %591 = vector.load %arg19[%c0_176, %c0_177] : memref<16x128xf32, #tpu.memory_space<vmem>>, vector<16x128xf32>
    tpu.vector_store %arg19[%c0_176, %c0_177], %590 {strides = array<i32>} : memref<16x128xf32, #tpu.memory_space<vmem>>, vector<16x128xf32>,
    return
  }
  func.func @transform_0(%arg0: i32) -> (i32, i32) {
    %c0_i32 = arith.constant 0 : i32
    %c0_i32_0 = arith.constant 0 : i32
    %c0_i32_1 = arith.constant 0 : i32
    return %c0_i32, %c0_i32_0 : i32, i32
  }
  func.func @transform_1(%arg0: i32) -> (i32, i32) {
    %c0_i32 = arith.constant 0 : i32
    %c0_i32_0 = arith.constant 0 : i32
    %c0_i32_1 = arith.constant 0 : i32
    return %c0_i32, %c0_i32_0 : i32, i32
  }
  func.func @transform_2(%arg0: i32) -> (i32, i32, i32) {
    %c0_i32 = arith.constant 0 : i32
    %c0_i32_0 = arith.constant 0 : i32
    %c0_i32_1 = arith.constant 0 : i32
    return %arg0, %c0_i32, %c0_i32_0 : i32, i32, i32
  }
  func.func @transform_3(%arg0: i32) -> (i32, i32, i32) {
    %c0_i32 = arith.constant 0 : i32
    %c0_i32_0 = arith.constant 0 : i32
    %c0_i32_1 = arith.constant 0 : i32
    return %arg0, %c0_i32, %c0_i32_0 : i32, i32, i32
  }
  func.func @transform_4(%arg0: i32) -> (i32, i32, i32) {
    %c0_i32 = arith.constant 0 : i32
    %c0_i32_0 = arith.constant 0 : i32
    %c0_i32_1 = arith.constant 0 : i32
    return %arg0, %c0_i32, %c0_i32_0 : i32, i32, i32
  }
  func.func @transform_5(%arg0: i32) -> (i32, i32, i32) {
    %c0_i32 = arith.constant 0 : i32
    %c0_i32_0 = arith.constant 0 : i32
    %c0_i32_1 = arith.constant 0 : i32
    return %arg0, %c0_i32, %c0_i32_0 : i32, i32, i32
  }
  func.func @transform_6(%arg0: i32) -> (i32, i32, i32) {
    %c0_i32 = arith.constant 0 : i32
    %c0_i32_0 = arith.constant 0 : i32
    %c0_i32_1 = arith.constant 0 : i32
    return %arg0, %c0_i32, %c0_i32_0 : i32, i32, i32
  }
  func.func @transform_7(%arg0: i32) -> (i32, i32, i32) {
    %c0_i32 = arith.constant 0 : i32
    %c0_i32_0 = arith.constant 0 : i32
    %c0_i32_1 = arith.constant 0 : i32
    return %arg0, %c0_i32, %c0_i32_0 : i32, i32, i32
  }
  func.func @transform_8(%arg0: i32) -> (i32, i32, i32) {
    %c0_i32 = arith.constant 0 : i32
    %c0_i32_0 = arith.constant 0 : i32
    %c0_i32_1 = arith.constant 0 : i32
    return %arg0, %c0_i32, %c0_i32_0 : i32, i32, i32
  }
  func.func @transform_9(%arg0: i32) -> (i32, i32, i32) {
    %c0_i32 = arith.constant 0 : i32
    %c0_i32_0 = arith.constant 0 : i32
    %c0_i32_1 = arith.constant 0 : i32
    return %arg0, %c0_i32, %c0_i32_0 : i32, i32, i32
  }
  func.func @transform_10(%arg0: i32) -> (i32, i32, i32) {
    %c0_i32 = arith.constant 0 : i32
    %c0_i32_0 = arith.constant 0 : i32
    %c0_i32_1 = arith.constant 0 : i32
    return %arg0, %c0_i32, %c0_i32_0 : i32, i32, i32
  }
  func.func @transform_11(%arg0: i32) -> (i32, i32, i32) {
    %c0_i32 = arith.constant 0 : i32
    %c0_i32_0 = arith.constant 0 : i32
    %c0_i32_1 = arith.constant 0 : i32
    return %arg0, %c0_i32, %c0_i32_0 : i32, i32, i32
  }
  func.func @transform_12(%arg0: i32) -> (i32, i32, i32) {
    %c0_i32 = arith.constant 0 : i32
    %c0_i32_0 = arith.constant 0 : i32
    %c0_i32_1 = arith.constant 0 : i32
    return %arg0, %c0_i32, %c0_i32_0 : i32, i32, i32
  }
  func.func @transform_13(%arg0: i32) -> (i32, i32, i32) {
    %c0_i32 = arith.constant 0 : i32
    %c0_i32_0 = arith.constant 0 : i32
    %c0_i32_1 = arith.constant 0 : i32
    return %arg0, %c0_i32, %c0_i32_0 : i32, i32, i32
  }
  func.func @transform_14(%arg0: i32) -> (i32, i32, i32) {
    %c0_i32 = arith.constant 0 : i32
    %c0_i32_0 = arith.constant 0 : i32
    %c0_i32_1 = arith.constant 0 : i32
    return %arg0, %c0_i32, %c0_i32_0 : i32, i32, i32
  }
  func.func @transform_15(%arg0: i32) -> (i32, i32, i32) {
    %c0_i32 = arith.constant 0 : i32
    %c0_i32_0 = arith.constant 0 : i32
    %c0_i32_1 = arith.constant 0 : i32
    return %arg0, %c0_i32, %c0_i32_0 : i32, i32, i32
  }
  func.func @transform_16(%arg0: i32) -> (i32, i32, i32) {
    %c0_i32 = arith.constant 0 : i32
    %c0_i32_0 = arith.constant 0 : i32
    %c0_i32_1 = arith.constant 0 : i32
    return %arg0, %c0_i32, %c0_i32_0 : i32, i32, i32
  }
  func.func @transform_17(%arg0: i32) -> (i32, i32) {
    %c0_i32 = arith.constant 0 : i32
    %c0_i32_0 = arith.constant 0 : i32
    %c0_i32_1 = arith.constant 0 : i32
    return %c0_i32, %c0_i32_0 : i32, i32
  }
  func.func @transform_18(%arg0: i32) -> (i32, i32) {
    %c0_i32 = arith.constant 0 : i32
    %c0_i32_0 = arith.constant 0 : i32
    %c0_i32_1 = arith.constant 0 : i32
    return %c0_i32, %c0_i32_0 : i32, i32
  }
}

</mosaic_0001>

<bundles_post_ra>
// kernel: _lambda_.2
= control target key start
LH: loop header
LB: loop body
LE: loop exit
PB: predicated region body
PF: predicated region fallthrough
CT: control target
= control target key end

     0   :  { %s6385_s0 = inlined_call_operand.vmem [shape: f32[16,384], index: 0, kind: input, shape index: {}]   ;;  %s6386_s1 = inlined_call_operand.hbm [shape: bf16[384,128], index: 1, kind: input, shape index: {}]   ;;  %s6387_s2 = inlined_call_operand.vmem [shape: f32[1,128], index: 2, kind: input, shape index: {}]   ;;  %s6388_s3 = inlined_call_operand.vmem [shape: f32[8,128], index: 3, kind: input, shape index: {}]   ;;  %s6389_s4 = inlined_call_operand.vmem [shape: bf16[3,128,384], index: 4, kind: input, shape index: {}]   ;;  %s6390_s5 = inlined_call_operand.vmem [shape: f32[3,1,384], index: 5, kind: input, shape index: {}]   ;;  %s6391_s6 = inlined_call_operand.hbm [shape: bf16[3,128,128], index: 6, kind: input, shape index: {}]   ;;  %s6392_s7 = inlined_call_operand.vmem [shape: f32[3,1,128], index: 7, kind: input, shape index: {}]   ;;  %s6393_s8 = inlined_call_operand.hbm [shape: bf16[3,128,512], index: 8, kind: input, shape index: {}]   ;;  %s6394_s9 = inlined_call_operand.vmem [shape: f32[3,1,512], index: 9, kind: input, shape index: {}]   ;;  %s6395_s10 = inlined_call_operand.hbm [shape: bf16[3,512,128], index: 10, kind: input, shape index: {}]   ;;  %s6396_s11 = inlined_call_operand.hbm [shape: f32[3,1,128], index: 11, kind: input, shape index: {}]   ;;  %s6397_s12 = inlined_call_operand.hbm [shape: f32[3,4,128], index: 12, kind: input, shape index: {}]   ;;  %s6398_s13 = inlined_call_operand.hbm [shape: f32[2,128], index: 13, kind: input, shape index: {}]   ;;  %s6399_s14 = inlined_call_operand.vmem [shape: f32[16,128], index: 14, kind: output, shape index: {}]  }
   0x1   :  { %6412 = sst [smem:[#allocation22_spill]] %s6385_s0 }
   0x2   :  { %6413 = sst [smem:[#allocation23_spill]] %s6387_s2 }
   0x3   :  { %6414 = sst [smem:[#allocation24_spill]] %s6388_s3 }
   0x4   :  { %6415 = sst [smem:[#allocation25_spill]] %s6389_s4 }
   0x5   :  { %6416 = sst [smem:[#allocation26_spill]] %s6390_s5 }
   0x6   :  { %6417 = sst [smem:[#allocation27_spill]] %s6391_s6 }
   0x7   :  { %6418 = sst [smem:[#allocation28_spill]] %s6392_s7 }
   0x8   :  { %6419 = sst [smem:[#allocation29_spill]] %s6394_s9 }
   0x9   :  { %6420 = sst [smem:[#allocation30_spill]] %s6398_s13 }
   0xa   :  { %6421 = sst [smem:[#allocation31_spill]] %s6399_s14 }
   0xb   :  { %19 = vsyncpa [#allocation4], 0 }
   0xc   :  { %20 = vsyncpa [#allocation6], 0 }
   0xd   :  { %22 = vsyncpa [#allocation6 + $0x1], 0 }
   0xe   :  { %23 = vsyncpa [#allocation9], 0 }
   0xf   :  { %25 = vsyncpa [#allocation9 + $0x1], 0 }
  0x10   :  { %26 = vsyncpa [#allocation12], 0 }
  0x11   :  { %28 = vsyncpa [#allocation12 + $0x1], 0  ;;  %s5492_s29 = smov 0   ;;  %s5494_s30 = smov 0  }
  0x12   :  { %s5496_s15 = smov 0   ;;  %s5498_s16 = smov 0  }
  0x13 LB: > { %6422 = sst [smem:[#allocation19_spill]] %s5390_s15  ;;  %s5511_s17 = sadd.s32 4294967295, %s5394_s16   ;;  %s5394_s16 = sphi %s5498_s16, %s6455_s16   ;;  %s5390_s15 = sphi %s5496_s15, %s6457_s15   ;;  %s5386_s30 = sphi %s5494_s30, %s6459_s30   ;;  %s5382_s29 = sphi %s5492_s29, %s6458_s29  }
  0x14   : > { %s5514_s18 = sadd.s32 1, %s5394_s16   ;;  %s177_s20 = sadd.s32 1, %s5390_s15 }
  0x15   : > { %6423 = sst [smem:[#allocation20_spill]] %s5514_s18  ;;  %s174_s19 = ssub.s32 %s5394_s16, %s5514_s18 }
  0x16   : > { %p175_p0 = scmp.eq.s32.totalorder %s174_s19, 0  ;;  %p184_p1 = scmp.ne.s32.totalorder %s5390_s15, %s5386_s30 }
  0x17   : > { %p185_p2 = scmp.eq.s32.totalorder %s5394_s16, 0  ;;  %p190_p3 = scmp.ne.s32.totalorder %s5386_s30, %s5382_s29 }
  0x18   : > { %s5524_s21 = scalar_select %p175_p0, %s5390_s15, %s177_s20  }
  0x19   : > { %p186_p4 = por %p185_p2, %p184_p1  ;;  %p6400_p5 = scmp.eq.s32.totalorder %s5511_s17, 0 }
  0x1a   : > { %6424 = sst [smem:[#allocation21_spill]] %s5524_s21  ;;  %p4207_p6 = scmp.ge.s32.totalorder %s5394_s16, 1 }
  0x1b   : > { %p399_p7 = scmp.lt.s32.totalorder %s5394_s16, 4  ;;  %p5531_p8 = por %p6400_p5, %p190_p3 }
  0x1c   : > { %s5396_s24 = smov [#allocation13]   ;;  %p4846_p11 = scmp.lt.s32.totalorder %s5394_s16, 3 }
  0x1d   : > { %s6425_s22 = scalar_select %p5531_p8, 1, 0 }
  0x1e   : > { %p5535_p9 = pnand %p4207_p6, %p399_p7  ;;  %s434_s25 = sshll.u32 %s5396_s24, 4  ;;  %s435_s25 = int_to_ptr.vmem [resolvable:$true] %s434_s25 }
  0x1f   : > { %p5548_p13 = pnand %p4846_p11, %p186_p4  ;;  %s5553_s28 = sand.u32 1, %s5394_s16  }
  0x20   : > { %s6426_s23 = scalar_select %p5535_p9, 1, 0 }
  0x21   : > { %p4821_p10 = pneg %p5535_p9  ;;  %s5163_s29 = scalar_lea.vmem %s435_s25, 32 }
  0x22   : > { %p5164_p1 = scmp.ne.s32.totalorder %s435_s25, %s5163_s29  ;;  %p5171_p6 = scmp.lt.s32.totalorder %s435_s25, %s435_s25 }
  0x23   : > { %p5544_p12 = pnand %p4821_p10, %p6400_p5  ;;  %p5172_p7 = scmp.lt.s32.totalorder %s5163_s29, %s5163_s29 }
  0x25   : > { %s6427_s26 = scalar_select %p5544_p12, 1, 0 }
  0x26   : > { %p6405_p0 = pneg %p5544_p12  ;;  %p5173_p10 = por %p5172_p7, %p5171_p6 }
  0x28   : > { %p5166_p2 = pnand %p5164_p1, %p6405_p0 }
  0x2a   : > { %p5167_p3 = pneg %p5166_p2 }
  0x2c   : > { %p5174_p5 = pnand %p5173_p10, %p5167_p3 }
  0x2e   : > { %5177 = shalt.err (!%p5174_p5)
}
  0x2f   : > { %s6429_s13 = sld [smem:[#allocation30_spill]]  ;;  %s5566_s24 = sand.u32 1, %s5390_s15  }
  0x30   : > { %s4211_s21 = sshll.u32 %s5566_s24, 6  ;;  %s4389_s18 = sshll.u32 %s5394_s16, 10 }
  0x31   : > { %s6430_s6 = sld [smem:[#allocation27_spill]]  ;;  %s464_s19 = scalar_lea.vmem [#allocation5], %s4211_s21 }
  0x32   : > { %s471_s20 = sshll.u32 %s464_s19, 4  ;;  %p5583_p5 = pneg %p5548_p13  ;;  %s5576_s20 = int_to_ptr.vmem [resolvable:$true] %s471_s20 }
  0x35   : > { %4827 = dma.hbm_to_vmem [thread:$0]  (!%p5544_p12), %s6429_s13, 32, %s435_s25, [#allocation12]  }
  0x37   : > { %s5573_s9 = scalar_lea.hbm %s6430_s6, %s4389_s18  ;;  %s5183_s21 = scalar_lea.hbm %s6430_s6, 3072 }
  0x38   : > { %s5178_s13 = scalar_lea.hbm %s5573_s9, 1024  ;;  %p5184_p2 = scmp.lt.s32.totalorder %s5573_s9, %s6430_s6 }
  0x39   : > { %p5179_p4 = scmp.ne.s32.totalorder %s5573_s9, %s5178_s13  ;;  %p5185_p3 = scmp.lt.s32.totalorder %s5183_s21, %s5178_s13 }
  0x3b   : > { %p5181_p11 = pnand %p5583_p5, %p5179_p4  ;;  %p5186_p6 = por %p5185_p3, %p5184_p2 }
  0x3d   : > { %p5182_p1 = pneg %p5181_p11 }
  0x3f   : > { %p5187_p7 = pnand %p5186_p6, %p5182_p1 }
  0x41   : > { %5190 = shalt.err (!%p5187_p7)
}
  0x42   : > { %s5191_s7 = scalar_lea.vmem %s5576_s20, 1024  ;;  %s5397_s25 = smov [#allocation5]  }
  0x43   : > { %p5192_p10 = scmp.ne.s32.totalorder %s5576_s20, %s5191_s7  ;;  %s5196_s14 = sshll.u32 %s5397_s25, 4  ;;  %s5197_s14 = int_to_ptr.vmem [resolvable:$false] %s5196_s14 }
  0x44   : > { %s5198_s18 = scalar_lea.vmem %s5197_s14, 2048  ;;  %p5199_p0 = scmp.lt.s32.totalorder %s5576_s20, %s5197_s14 }
  0x45   : > { %p5194_p4 = pnand %p5192_p10, %p5583_p5  ;;  %p5200_p8 = scmp.lt.s32.totalorder %s5198_s18, %s5191_s7 }
  0x47   : > { %p5195_p11 = pneg %p5194_p4  ;;  %p5201_p9 = por %p5200_p8, %p5199_p0 }
  0x49   : > { %p5202_p12 = pnand %p5201_p9, %p5195_p11 }
  0x4b   : > { %5205 = shalt.err (!%p5202_p12)
}
  0x4c   : > { %s5398_s13 = smov 64   ;;  %s5399_s21 = smov 4  }
  0x4d   : > { %s6432_s25 = scalar_lea.sflag [#allocation6], %s5553_s28  ;;  %s4390_s7 = sshll.u32 %s5394_s16, 12 }
  0x4e   : > { %4831 = dma.hbm_to_vmem [thread:$0]  (!%p5548_p13), %s5573_s9, 1024, %s5576_s20, %s6432_s25, %s5398_s13, %s5398_s13, %s5399_s21  }
  0x4f   : > { %s6433_s29 = sshll.u32 %s5566_s24, 8  ;;  %s5616_s5 = scalar_lea.hbm %s6393_s8, %s4390_s7 }
  0x50   : > { %s491_s19 = scalar_lea.vmem [#allocation7], %s6433_s29  ;;  %s5623_s4 = scalar_lea.hbm %s6395_s10, %s4390_s7 }
  0x51   : > { %s498_s14 = sshll.u32 %s491_s19, 4  ;;  %s6434_s0 = smov %s6433_s29  ;;  %s5618_s14 = int_to_ptr.vmem [resolvable:$true] %s498_s14 }
  0x52   : > { %s519_s9 = scalar_lea.vmem [#allocation8], %s6434_s0  ;;  %s6411_s25 = scalar_lea.sflag [#allocation9], %s5553_s28 }
  0x53   : > { %s526_s20 = sshll.u32 %s519_s9, 4  ;;  %s5206_s29 = scalar_lea.hbm %s5623_s4, 4096  ;;  %s5627_s20 = int_to_ptr.vmem [resolvable:$true] %s526_s20 }
  0x54   : > { %p5207_p8 = scmp.ne.s32.totalorder %s5623_s4, %s5206_s29  ;;  %s5211_s2 = scalar_lea.hbm %s6395_s10, 12288 }
  0x55   : > { %p5212_p0 = scmp.lt.s32.totalorder %s5623_s4, %s6395_s10  ;;  %p5213_p1 = scmp.lt.s32.totalorder %s5211_s2, %s5206_s29 }
  0x56   : > { %p5209_p9 = pnand %p5207_p8, %p5583_p5 }
  0x57   : > { %p5214_p2 = por %p5213_p1, %p5212_p0 }
  0x58   : > { %p5210_p12 = pneg %p5209_p9 }
  0x5a   : > { %p5215_p3 = pnand %p5214_p2, %p5210_p12 }
  0x5c   : > { %5218 = shalt.err (!%p5215_p3)
}
  0x5d   : > { %s5219_s0 = scalar_lea.vmem %s5627_s20, 4096  ;;  %s5400_s18 = smov [#allocation8]  }
  0x5e   : > { %p5220_p6 = scmp.ne.s32.totalorder %s5627_s20, %s5219_s0  ;;  %s5224_s9 = sshll.u32 %s5400_s18, 4  ;;  %s5225_s9 = int_to_ptr.vmem [resolvable:$false] %s5224_s9 }
  0x5f   : > { %s5226_s6 = scalar_lea.vmem %s5225_s9, 8192  ;;  %p5227_p4 = scmp.lt.s32.totalorder %s5627_s20, %s5225_s9 }
  0x60   : > { %p5222_p7 = pnand %p5220_p6, %p5583_p5  ;;  %p5228_p11 = scmp.lt.s32.totalorder %s5226_s6, %s5219_s0 }
  0x62   : > { %p5223_p10 = pneg %p5222_p7  ;;  %p5229_p8 = por %p5228_p11, %p5227_p4 }
  0x64   : > { %p5230_p9 = pnand %p5229_p8, %p5223_p10 }
  0x66   : > { %5233 = shalt.err (!%p5230_p9)
}
  0x67   : > { %4837 = dma.hbm_to_vmem [thread:$0]  (!%p5548_p13), %s5623_s4, 4096, %s5627_s20, %s6411_s25, %s5398_s13, %s5398_s13, %s5399_s21  }
  0x68   : > { %s5401_s29 = smov [#allocation3]   ;;  %p6435_p0 = scmp.ne.s32.totalorder %s6427_s26, 0 }
  0x69   : > { %s414_s19 = sshll.u32 %s5401_s29, 4  ;;  %s415_s19 = int_to_ptr.vmem [resolvable:$true] %s414_s19 }
  0x6a   : > { %s5245_s2 = scalar_lea.vmem %s415_s19, 3072  ;;  %p6436_p1 = pneg %p6435_p0 }
  0x6b   : > { %p5246_p12 = scmp.ne.s32.totalorder %s415_s19, %s5245_s2  ;;  %p5253_p6 = scmp.lt.s32.totalorder %s415_s19, %s415_s19 }
  0x6c   : > { %p5254_p7 = scmp.lt.s32.totalorder %s5245_s2, %s5245_s2 }
  0x6d   : > { %p5248_p2 = pnand %p5246_p12, %p6436_p1 }
  0x6e   : > { %p5255_p10 = por %p5254_p7, %p5253_p6 }
  0x6f   : > { %p5249_p3 = pneg %p5248_p2 }
  0x71   : > { %p5256_p4 = pnand %p5255_p10, %p5249_p3 }
  0x73   : > { %5259 = shalt.err (!%p5256_p4)
}
  0x74   : > { %4824 = dma.hbm_to_vmem [thread:$0]  (!%p6435_p0), %s6386_s1, 3072, %s415_s19, [#allocation4], %s5398_s13, %s5398_s13, %s5399_s21  }
  0x75   : > { %s5260_s3 = scalar_lea.hbm %s5616_s5, 4096  ;;  %s5265_s26 = scalar_lea.hbm %s6393_s8, 12288 }
  0x76   : > { %p5261_p11 = scmp.ne.s32.totalorder %s5616_s5, %s5260_s3  ;;  %p5266_p12 = scmp.lt.s32.totalorder %s5616_s5, %s6393_s8 }
  0x77   : > { %p5267_p1 = scmp.lt.s32.totalorder %s5265_s26, %s5260_s3 }
  0x78   : > { %p5263_p8 = pnand %p5261_p11, %p5583_p5 }
  0x79   : > { %p5268_p2 = por %p5267_p1, %p5266_p12 }
  0x7a   : > { %p5264_p9 = pneg %p5263_p8 }
  0x7c   : > { %p5269_p3 = pnand %p5268_p2, %p5264_p9 }
  0x7e   : > { %5272 = shalt.err (!%p5269_p3)
}
  0x7f   : > { %s5273_s13 = scalar_lea.vmem %s5618_s14, 4096  ;;  %s5402_s21 = smov [#allocation7]  }
  0x80   : > { %p5274_p0 = scmp.ne.s32.totalorder %s5618_s14, %s5273_s13  ;;  %s5278_s6 = sshll.u32 %s5402_s21, 4  ;;  %s5279_s6 = int_to_ptr.vmem [resolvable:$false] %s5278_s6 }
  0x81   : > { %s5280_s29 = scalar_lea.vmem %s5279_s6, 8192  ;;  %p5281_p10 = scmp.lt.s32.totalorder %s5618_s14, %s5279_s6 }
  0x82   : > { %p5276_p6 = pnand %p5274_p0, %p5583_p5  ;;  %p5282_p4 = scmp.lt.s32.totalorder %s5280_s29, %s5273_s13 }
  0x84   : > { %p5277_p7 = pneg %p5276_p6  ;;  %p5283_p11 = por %p5282_p4, %p5281_p10 }
  0x86   : > { %p5284_p8 = pnand %p5283_p11, %p5277_p7 }
  0x88   : > { %5287 = shalt.err (!%p5284_p8)
}
  0x89   : > { %s5403_s19 = smov 256   ;;  %s5404_s2 = smov 16  }
  0x8a   : > { %s6437_s4 = scalar_lea.sflag [#allocation6], %s5553_s28  ;;  %s4220_s20 = sshll.u32 %s5394_s16, 4 }
  0x8b   : > { %4834 = dma.hbm_to_vmem [thread:$0]  (!%p5548_p13), %s5616_s5, 4096, %s5618_s14, %s6437_s4, %s5403_s19, %s5403_s19, %s5404_s2  }
  0x8c   : > { %s544_s0 = scalar_lea.hbm %s6396_s11, %s4220_s20  ;;  %s539_s26 = scalar_lea.vmem [#allocation10], %s5566_s24 }
  0x8d   : > { %s546_s18 = sshll.u32 %s539_s26, 4  ;;  %s5288_s9 = scalar_lea.hbm %s544_s0, 16  ;;  %s547_s18 = int_to_ptr.vmem [resolvable:$true] %s546_s18 }
  0x8e   : > { %p5289_p9 = scmp.ne.s32.totalorder %s544_s0, %s5288_s9  ;;  %s5293_s6 = scalar_lea.hbm %s6396_s11, 48 }
  0x8f   : > { %p5294_p2 = scmp.lt.s32.totalorder %s544_s0, %s6396_s11  ;;  %p5295_p3 = scmp.lt.s32.totalorder %s5293_s6, %s5288_s9 }
  0x90   : > { %p5291_p12 = pnand %p5289_p9, %p5583_p5 }
  0x91   : > { %p5296_p0 = por %p5295_p3, %p5294_p2 }
  0x92   : > { %p5292_p1 = pneg %p5291_p12 }
  0x94   : > { %p5297_p6 = pnand %p5296_p0, %p5292_p1 }
  0x96   : > { %5300 = shalt.err (!%p5297_p6)
}
  0x97   : > { %s5301_s5 = scalar_lea.vmem %s547_s18, 16  ;;  %s5405_s14 = smov [#allocation10]  }
  0x98   : > { %p5302_p7 = scmp.ne.s32.totalorder %s547_s18, %s5301_s5  ;;  %s5306_s19 = sshll.u32 %s5405_s14, 4  ;;  %s5307_s19 = int_to_ptr.vmem [resolvable:$false] %s5306_s19 }
  0x99   : > { %s5308_s2 = scalar_lea.vmem %s5307_s19, 32  ;;  %p5309_p11 = scmp.lt.s32.totalorder %s547_s18, %s5307_s19 }
  0x9a   : > { %p5304_p10 = pnand %p5302_p7, %p5583_p5  ;;  %p5310_p8 = scmp.lt.s32.totalorder %s5308_s2, %s5301_s5 }
  0x9c   : > { %p5305_p4 = pneg %p5304_p10  ;;  %p5311_p9 = por %p5310_p8, %p5309_p11 }
  0x9e   : > { %p5312_p12 = pnand %p5311_p9, %p5305_p4 }
  0xa0   : > { %5315 = shalt.err (!%p5312_p12)
}
  0xa1   : > { %s6438_s25 = scalar_lea.sflag [#allocation9], %s5553_s28  ;;  %s4221_s4 = sshll.u32 %s5566_s24, 2 }
  0xa2   : > { %4840 = dma.hbm_to_vmem [thread:$0]  (!%p5548_p13), %s544_s0, 16, %s547_s18, %s6438_s25  }
  0xa3   : > { %s4222_s20 = sshll.u32 %s5394_s16, 6  ;;  %s557_s9 = scalar_lea.vmem [#allocation11], %s4221_s4 }
  0xa4   : > { %s5712_s26 = scalar_lea.hbm %s6397_s12, %s4222_s20  ;;  %s564_s13 = sshll.u32 %s557_s9, 4  ;;  %s565_s13 = int_to_ptr.vmem [resolvable:$true] %s564_s13 }
  0xa5   : > { %s554_s21 = scalar_lea.sflag [#allocation12], %s5553_s28  ;;  %s5316_s6 = scalar_lea.hbm %s5712_s26, 64 }
  0xa6   : > { %p5317_p1 = scmp.ne.s32.totalorder %s5712_s26, %s5316_s6  ;;  %s5321_s16 = scalar_lea.hbm %s6397_s12, 192 }
  0xa7   : > { %p5322_p0 = scmp.lt.s32.totalorder %s5712_s26, %s6397_s12  ;;  %p5323_p6 = scmp.lt.s32.totalorder %s5321_s16, %s5316_s6 }
  0xa8   : > { %p5319_p2 = pnand %p5317_p1, %p5583_p5 }
  0xa9   : > { %p5324_p7 = por %p5323_p6, %p5322_p0 }
  0xaa   : > { %p5320_p3 = pneg %p5319_p2 }
  0xac   : > { %p5325_p10 = pnand %p5324_p7, %p5320_p3 }
  0xae   : > { %5328 = shalt.err (!%p5325_p10)
}
  0xaf   : > { %s5329_s5 = scalar_lea.vmem %s565_s13, 64  ;;  %s5406_s28 = smov [#allocation11]  }
  0xb0   : > { %p5330_p4 = scmp.ne.s32.totalorder %s565_s13, %s5329_s5  ;;  %s5334_s14 = sshll.u32 %s5406_s28, 4  ;;  %s5335_s14 = int_to_ptr.vmem [resolvable:$false] %s5334_s14 }
  0xb1   : > { %s5336_s19 = scalar_lea.vmem %s5335_s14, 128  ;;  %p5337_p9 = scmp.lt.s32.totalorder %s565_s13, %s5335_s14 }
  0xb2   : > { %p5332_p11 = pnand %p5330_p4, %p5583_p5  ;;  %p5338_p12 = scmp.lt.s32.totalorder %s5336_s19, %s5329_s5 }
  0xb4   : > { %p5333_p8 = pneg %p5332_p11  ;;  %p5339_p1 = por %p5338_p12, %p5337_p9 }
  0xb6   : > { %p5340_p2 = pnand %p5339_p1, %p5333_p8 }
  0xb8   : > { %5343 = shalt.err (!%p5340_p2)
}
  0xb9   : > { %4843 = dma.hbm_to_vmem [thread:$0]  (!%p5548_p13), %s5712_s26, 64, %s565_s13, %s554_s21  }
  0xba   : > { %p6439_p3 = scmp.ne.s32.totalorder %s6426_s23, 0 }
  0xbb   : > { %p6440_p0 = scmp.eq.s32.totalorder (!%p6439_p3), %s5511_s17, 0 }
  0xbc   : > { %573 = sbr.rel (%p6439_p3) target bundleno = 6692 (0x1a24), region = 76 }
  0xc1   : > { %5361 = dma.done.wait (%p6440_p0), [#allocation4], 3072   ;;  %p6441_p5 = pmov %p6440_p0 }
  0xc2   : > { %s579_s15 = sand.u32 1, %s5511_s17   ;;  %s5739_s2 = sand.u32 1, %s5386_s30  }
  0xc3   : > { %5363 = vsyncadd (%p6441_p5), [#allocation4], 4294964224  ;;  %s4225_s25 = sshll.u32 %s5739_s2, 6  ;;  %s580_s27 = scalar_lea.sflag [#allocation6], %s579_s15 }
  0xc4   : > { %s5742_s4 = scalar_lea.vmem [#allocation5], %s4225_s25  ;;  %p6442_p13 = scmp.ne.s32.totalorder %s6425_s22, 0 }
  0xc6   : > { %5365 = dma.done.wait (%p6442_p13), %s580_s27, 5120  }
  0xc7   : > { %5367 = vsyncadd (%p6442_p13), %s580_s27, 4294962176  ;;  %s4226_s23 = sshll.u32 %s5739_s2, 8  ;;  %s598_s3 = scalar_lea.sflag [#allocation9], %s579_s15 }
  0xc8   : > { %s5749_s20 = scalar_lea.vmem [#allocation7], %s4226_s23  ;;  %s5751_s7 = scalar_lea.vmem [#allocation8], %s4226_s23 }
  0xc9   : > { %5369 = dma.done.wait (%p6442_p13), %s598_s3, 4112  }
  0xca   : > { %5371 = vsyncadd (%p6442_p13), %s598_s3, 4294963184  ;;  %s4228_s26 = sshll.u32 %s5739_s2, 2  ;;  %s609_s9 = scalar_lea.vmem [#allocation10], %s5739_s2 }
  0xcb   : > { %s615_s13 = scalar_lea.sflag [#allocation12], %s579_s15  ;;  %s5759_s21 = scalar_lea.vmem [#allocation11], %s4228_s26 }
  0xcc   : > { %5373 = dma.done.wait (%p6442_p13), %s615_s13, 64  }
  0xcd   : > { %5375 = vsyncadd (%p6442_p13), %s615_s13, 4294967232  ;;  %p6443_p6 = pmov %p6440_p0 }
  0xce   : > { %p6444_p7 = pmov %p6440_p0 }
  0xcf   : > { %5377 = dma.done.wait (%p6443_p6), [#allocation12], 32  }
  0xd0   : > { %5379 = vsyncadd (%p6444_p7), [#allocation12], 4294967264  ;;  %v5407_v0 = vmov 0.0   ;;  %vm5408_vm0 = vmmov 0   ;;  %v4932_v1 = vld [vmem:[#allocation3 + $0x78] sm:$0xff]   ;;  %v4935_v4 = vld [vmem:[#allocation3 + $0x70] sm:$0xff]   ;;  %p6449_p4 = pmov %p6440_p0 }
  0xd1   : > { %4549 = vmatprep.subr.bf16.mxu1 %v5407_v0  ;;  %4565 = vmatprep.mubr.msk.bf16.mxu1 %vm5408_vm0, %v5407_v0  ;;  %v4933_v2 = vld [vmem:[#allocation3 + $0x38] sm:$0xff]   ;;  %v4936_v5 = vld [vmem:[#allocation3 + $0x30] sm:$0xff]   ;;  %v4938_v7 = vld [vmem:[#allocation3 + $0x68] sm:$0xff]   ;;  %p697_p10 = scmp.lt.s32.totalorder %s5511_s17, 2  ;;  %s6445_s16 = sld [smem:[#allocation22_spill]]  ;;  %v5409_v58 = vmov 0  }
  0xd2   : > { %4392 = vmatprep.subr.bf16.mxu0 %v4932_v1  ;;  %v4934_v3 = vld [vmem:[#allocation3 + $0xb8] sm:$0xff]   ;;  %v4937_v6 = vld [vmem:[#allocation3 + $0xb0] sm:$0xff]   ;;  %v4939_v8 = vld [vmem:[#allocation3 + $0x28] sm:$0xff]   ;;  %s6447_s23 = sld [smem:[#allocation25_spill]]  ;;  %vm1286_vm2 = vcmask 130048   ;;  %vm1409_vm3 = vcmask 1043456  }
  0xd3   : > { %4393 = vmatpush3.bf16.msra.mxu0 %v4933_v2  ;;  %4550 = vmatpush3.bf16.msra.mxu1 %v4934_v3  ;;  %v4940_v9 = vld [vmem:[#allocation3 + $0xa8] sm:$0xff]   ;;  %v4941_v10 = vld [vmem:[#allocation3 + $0x60] sm:$0xff]   ;;  %v4944_v13 = vld [vmem:[#allocation3 + $0x58] sm:$0xff]   ;;  %s5778_s22 = scalar_select %p697_p10, %s5511_s17, 2  ;;  %vm1381_vm4 = vcmask 64512   ;;  %vm3117_vm5 = vcmask 261120  }
  0xd4   : > { %4394 = vmatprep.subr.bf16.mxu0 %v4935_v4  ;;  %4551 = vmatprep.subr.bf16.mxu1 %v5407_v0  ;;  %v4942_v11 = vld [vmem:[#allocation3 + $0x20] sm:$0xff]   ;;  %v4945_v14 = vld [vmem:[#allocation3 + $0x18] sm:$0xff]   ;;  %v4947_v16 = vld [vmem:[#allocation3 + $0x50] sm:$0xff]   ;;  %s6448_s29 = sld [smem:[#allocation23_spill]]  ;;  %s5411_s26 = smov 96   ;;  %vm3120_vm6 = vcmask 392192  }
  0xd5   : > { %v4943_v12 = vld [vmem:[#allocation3 + $0xa0] sm:$0xff]   ;;  %v4946_v15 = vld [vmem:[#allocation3 + $0x98] sm:$0xff]   ;;  %v4948_v17 = vld [vmem:[#allocation3 + $0x10] sm:$0xff]   ;;  %s4801_s6 = smul.u32 192, %s5778_s22  ;;  %s6450_s19 = sld [smem:[#allocation24_spill]]  ;;  %vm3123_vm7 = vcmask 523264  }
  0xd6   : > { %v4949_v18 = vld [vmem:[#allocation3 + $0x90] sm:$0xff]   ;;  %v4950_v19 = vld [vmem:[#allocation3 + $0x48] sm:$0xff]   ;;  %v4953_v22 = vld [vmem:[#allocation3 + $0x40] sm:$0xff]   ;;  %s1012_s5 = scalar_select %p6449_p4, 1, 0  ;;  %vm3126_vm8 = vcmask 654336  }
  0xd7   : > { %4395 = vmatpush3.bf16.msra.mxu0 %v4936_v5  ;;  %4552 = vmatpush3.bf16.msra.mxu1 %v4937_v6  ;;  %v4951_v20 = vld [vmem:[#allocation3 + $0x8] sm:$0xff]   ;;  %s6446_s18 = smov %s6445_s16  ;;  %v715_v23 = vld [vmem:[%s6445_s16 + $0x8] sm:$0xff]  ;;  %v4954_v25 = vld [vmem:[#allocation3] sm:$0xff]   ;;  %s4802_s17 = smul.u32 3, %s5778_s22  ;;  %vm3129_vm9 = vcmask 785408   ;;  %vm3132_vm10 = vcmask 916480  }
  0xd8   : > { %4396 = vmatprep.subr.bf16.mxu0 %v4938_v7  ;;  %4553 = vmatprep.subr.bf16.mxu1 %v5407_v0  ;;  %v4952_v21 = vld [vmem:[#allocation3 + $0x88] sm:$0xff]   ;;  %v718_v24 = vld [vmem:[%s6446_s18 + $0x20] sm:$0xff]  ;;  %s5798_s3 = scalar_lea.vmem %s6447_s23, %s4801_s6  ;;  %v4955_v29 = vld [vmem:[#allocation3 + $0x80] sm:$0xff]   ;;  %s6451_s27 = sld [smem:[#allocation26_spill]] }
  0xd9   : > { %v721_v26 = vpack.c.bf16 %v718_v24, %v715_v23  ;;  %v714_v27 = vld [vmem:[%s6446_s18] sm:$0xff]  ;;  %v717_v28 = vld [vmem:[%s6446_s18 + $0x18] sm:$0xff]  ;;  %v716_v30 = vld [vmem:[%s6446_s18 + $0x10] sm:$0xff]  ;;  %s5412_s13 = smov 80   ;;  %s5413_s0 = smov 64  }
  0xda   : > { %v719_v31 = vld [vmem:[%s6446_s18 + $0x28] sm:$0xff]  ;;  %v720_v33 = vpack.c.bf16 %v717_v28, %v714_v27  ;;  %v4959_v36 = vld [vmem:[%s5798_s3 + $0xb0] ss:$12 sps:$4 sm:$0xff]   ;;  %v4962_v37 = vld [vmem:[%s5798_s3 + $0x94] ss:$12 sps:$4 sm:$0xff]   ;;  %s5414_s24 = smov 48  }
  0xdb   : > { %4397 = vmatpush3.bf16.msra.mxu0 %v4939_v8  ;;  %4554 = vmatpush3.bf16.msra.mxu1 %v4940_v9  ;;  %v4958_v32 = vld [vmem:[%s5798_s3 + $0xac] ss:$12 sps:$4 sm:$0xff]   ;;  %v722_v34 = vpack.c.bf16 %v719_v31, %v716_v30  ;;  %v4956_v35 = vld [vmem:[%s5798_s3 + $0xa8] ss:$12 sps:$4 sm:$0xff]   ;;  %v4960_v38 = vld [vmem:[%s5798_s3 + $0x90] ss:$12 sps:$4 sm:$0xff]  }
  0xdc   : > { %4398 = vmatprep.subr.bf16.mxu0 %v4941_v10  ;;  %4555 = vmatprep.subr.bf16.mxu1 %v5407_v0  ;;  %v4963_v39 = vld [vmem:[%s5798_s3 + $0x98] ss:$12 sps:$4 sm:$0xff]   ;;  %v4966_v40 = vld [vmem:[%s5798_s3 + $0x7c] ss:$12 sps:$4 sm:$0xff]   ;;  %v4967_v42 = vld [vmem:[%s5798_s3 + $0x80] ss:$12 sps:$4 sm:$0xff]  }
  0xdd   : > { %954 = vmatprep.mubr.bf16.mxu0 %v721_v26  ;;  %v4964_v41 = vld [vmem:[%s5798_s3 + $0x78] ss:$12 sps:$4 sm:$0xff]   ;;  %v4968_v44 = vld [vmem:[%s5798_s3 + $0x60] ss:$12 sps:$4 sm:$0xff]   ;;  %v4971_v45 = vld [vmem:[%s5798_s3 + $0x68] ss:$12 sps:$4 sm:$0xff]  }
  0xde   : > { %v4970_v43 = vld [vmem:[%s5798_s3 + $0x64] ss:$12 sps:$4 sm:$0xff]   ;;  %v4974_v46 = vld [vmem:[%s5798_s3 + $0x4c] ss:$12 sps:$4 sm:$0xff]   ;;  %v4972_v47 = vld [vmem:[%s5798_s3 + $0x48] ss:$12 sps:$4 sm:$0xff]   ;;  %s705_s23 = scalar_lea.vmem %s6451_s27, %s4802_s17 }
  0xdf   : > { %4399 = vmatpush3.bf16.msra.mxu0 %v4942_v11  ;;  %4556 = vmatpush3.bf16.msra.mxu1 %v4943_v12  ;;  %v4975_v48 = vld [vmem:[%s5798_s3 + $0x50] ss:$12 sps:$4 sm:$0xff]   ;;  %v4978_v49 = vld [vmem:[%s5798_s3 + $0x34] ss:$12 sps:$4 sm:$0xff]   ;;  %v4979_v51 = vld [vmem:[%s5798_s3 + $0x38] ss:$12 sps:$4 sm:$0xff]  }
  0xe0   : > { %4400 = vmatprep.subr.bf16.mxu0 %v4944_v13  ;;  %4557 = vmatprep.subr.bf16.mxu1 %v5407_v0  ;;  %v4976_v50 = vld [vmem:[%s5798_s3 + $0x30] ss:$12 sps:$4 sm:$0xff]   ;;  %v4980_v53 = vld [vmem:[%s5798_s3 + $0x18] ss:$12 sps:$4 sm:$0xff]   ;;  %v4983_v54 = vld [vmem:[%s5798_s3 + $0x20] ss:$12 sps:$4 sm:$0xff]   ;;  %v1013_v13 = vstv %s1012_s5 }
  0xe1   : > { %v4982_v52 = vld [vmem:[%s5798_s3 + $0x1c] ss:$12 sps:$4 sm:$0xff]   ;;  %v4984_v55 = vld [vmem:[%s5798_s3] ss:$12 sps:$4 sm:$0xff]   ;;  %v4986_v56 = vld [vmem:[%s5798_s3 + $0x4] ss:$12 sps:$4 sm:$0xff]  }
  0xe2   : > { %v4987_v57 = vld [vmem:[%s5798_s3 + $0x8] ss:$12 sps:$4 sm:$0xff]   ;;  %v4232_v61 = vld [vmem:[%s6448_s29] ss:$0 sm:$0xff]  ;;  %vm1014_vm1 = vcmp.eq.s32.totalorder %v1013_v13, 1  ;;  %s5410_s3 = smov 112  }
  0xe3   : > { %4401 = vmatpush3.bf16.msra.mxu0 %v4945_v14  ;;  %4558 = vmatpush3.bf16.msra.mxu1 %v4946_v15  ;;  %v1006_v11 = vld [vmem:[%s6450_s19] sm:$0xff]  ;;  %s5415_s6 = smov 32   ;;  %s5416_s16 = smov 16  }
  0xe4   : > { %4402 = vmatprep.subr.bf16.mxu0 %v4947_v16  ;;  %4559 = vmatprep.subr.bf16.mxu1 %v5407_v0  ;;  %v1010_v16 = vld [vmem:[#allocation2] sm:$0xff]  ;;  %s6452_s5 = sld [smem:[#allocation28_spill]] }
  0xe5   : > { %s6453_s19 = sld [smem:[#allocation29_spill]] }
  0xe7   : > { %4403 = vmatpush3.bf16.msra.mxu0 %v4948_v17  ;;  %4560 = vmatpush3.bf16.msra.mxu1 %v4949_v18  ;;  %v1011_v17 = vld [vmem:[#allocation2 + $0x8] sm:$0xff] }
  0xe8   : > { %4404 = vmatprep.subr.bf16.mxu0 %v4950_v19  ;;  %4561 = vmatprep.subr.bf16.mxu1 %v5407_v0 }
  0xea   : > { %s708_s28 = scalar_lea.vmem %s6452_s5, %s5778_s22 }
  0xeb   : > { %4405 = vmatpush3.bf16.msra.mxu0 %v4951_v20  ;;  %4562 = vmatpush3.bf16.msra.mxu1 %v4952_v21 }
  0xec   : > { %4406 = vmatprep.subr.bf16.mxu0 %v4953_v22  ;;  %4563 = vmatprep.subr.bf16.mxu1 %v5407_v0  ;;  %v1053_v22 = vlaneseq }
  0xee   : > { %v5863_v23 = vshrl.u32 %v1053_v22, 7 }
  0xef   : > { %4407 = vmatpush3.bf16.msra.mxu0 %v4954_v25  ;;  %4564 = vmatpush3.bf16.msra.mxu1 %v4955_v29  ;;  %v1051_v25 = vld [vmem:[%s705_s23] sm:$0x7] }
  0xf0   : > { %1196 = vmatprep.subr.bf16.mxu0 %v4958_v32  ;;  %4569 = vmatprep.subr.bf16.mxu1 %v5407_v0  ;;  %v5869_v24 = vsub.s32 1, %v5863_v23  ;;  %v5872_v26 = vsub.s32 2, %v5863_v23  ;;  %v5876_v30 = vsub.s32 0, %v5863_v23 }
  0xf2   : > { %955 = vmatmul.mubr.bf16.vlgmr.msra.gmra.mxu0 %v720_v33  ;;  %4566 = vmatmul.mubr.bf16.vlgmr.msra.gmra.mxu1 %v722_v34  ;;  %v1060_v27 = vrot.slane %v1051_v25, %v5869_v24  ;;  %v1064_v33 = vrot.slane %v1051_v25, %v5872_v26 }
  0xf3   : > { %1197 = vmatpush1.bf16.msra.mxu0 %v4956_v35  ;;  %4570 = vmatpush3.bf16.msra.mxu1 %v4959_v36 }
  0xf4   : > { %1198 = vmatprep.subr.bf16.mxu0 %v4962_v37  ;;  %4571 = vmatprep.subr.bf16.mxu1 %v5407_v0  ;;  %v1056_v37 = vrot.slane %v1051_v25, %v5876_v30 }
  0xf5   : > { %4585 = vmatprep.mubr.msk.bf16.mxu1 %vm5408_vm0, %v5407_v0  ;;  %1228 = vmatprep.mubr.bf16.mxu0 %v5409_v58 }
  0xf7   : > { %1199 = vmatpush1.bf16.msra.mxu0 %v4960_v38  ;;  %4572 = vmatpush3.bf16.msra.mxu1 %v4963_v39 }
  0xf8   : > { %1200 = vmatprep.subr.bf16.mxu0 %v4966_v40  ;;  %4573 = vmatprep.subr.bf16.mxu1 %v5407_v0 }
  0xfb   : > { %1201 = vmatpush1.bf16.msra.mxu0 %v4964_v41  ;;  %4574 = vmatpush3.bf16.msra.mxu1 %v4967_v42 }
  0xfc   : > { %4575 = vmatprep.subr.bf16.mxu1 %v5407_v0  ;;  %1202 = vmatprep.subr.bf16.mxu0 %v4970_v43 }
  0xff   : > { %1203 = vmatpush1.bf16.msra.mxu0 %v4968_v44  ;;  %4576 = vmatpush3.bf16.msra.mxu1 %v4971_v45 }
 0x100   : > { %4577 = vmatprep.subr.bf16.mxu1 %v5407_v0  ;;  %1204 = vmatprep.subr.bf16.mxu0 %v4974_v46 }
 0x103   : > { %1205 = vmatpush1.bf16.msra.mxu0 %v4972_v47  ;;  %4578 = vmatpush3.bf16.msra.mxu1 %v4975_v48 }
 0x104   : > { %4579 = vmatprep.subr.bf16.mxu1 %v5407_v0  ;;  %1206 = vmatprep.subr.bf16.mxu0 %v4978_v49 }
 0x107   : > { %1207 = vmatpush1.bf16.msra.mxu0 %v4976_v50  ;;  %4580 = vmatpush3.bf16.msra.mxu1 %v4979_v51 }
 0x108   : > { %4581 = vmatprep.subr.bf16.mxu1 %v5407_v0  ;;  %1208 = vmatprep.subr.bf16.mxu0 %v4982_v52 }
 0x10b   : > { %1209 = vmatpush1.bf16.msra.mxu0 %v4980_v53  ;;  %4582 = vmatpush3.bf16.msra.mxu1 %v4983_v54 }
 0x10c   : > { %4583 = vmatprep.subr.bf16.mxu1 %v5407_v0  ;;  %1210 = vmatprep.subr.bf16.mxu0 %v4986_v56 }
 0x10f   : > { %1211 = vmatpush1.bf16.msra.mxu0 %v4984_v55  ;;  %4584 = vmatpush3.bf16.msra.mxu1 %v4987_v57 }
 0x110   : > { %4589 = vmatprep.subr.bf16.mxu1 %v5407_v0  ;;  %4613 = vmatprep.subr.bf16.mxu0 %v5407_v0 }
 0x1b2   : > { %v4408_v59 = vpop.f32.mrf.mxu0  ;;  %v997_v60 = vpop.f32.mrf.mxu1 }
 0x1b4   : > { %v4409_v62 = vpop.f32.mrf.mxu0  ;;  %v4567_v1 = vpop.f32.mrf.mxu1 }
 0x1b5   : > { %v4410_v63 = vadd.f32 %v4409_v62, %v4408_v59 }
 0x1b6   : > { %v4411_v2 = vpop.f32.mrf.mxu0  ;;  %v1000_v4 = vpop.f32.mrf.mxu1 }
 0x1b7   : > { %v957_v3 = vadd.f32 %v4410_v63, %v4232_v61 }
 0x1b8   : > { %v4412_v5 = vpop.f32.mrf.mxu0  ;;  %v4568_v8 = vpop.f32.mrf.mxu1 }
 0x1b9   : > { %v998_v6 = vadd.f32 %v997_v60, %v957_v3  ;;  %v4413_v7 = vadd.f32 %v4412_v5, %v4411_v2 }
 0x1bb   : > { %v1004_v9 = vmul.f32 11.313708, %v998_v6  ;;  %v960_v10 = vadd.f32 %v4413_v7, %v4232_v61 }
 0x1bd   : > { %v1001_v12 = vadd.f32 %v1000_v4, %v960_v10  ;;  %v1007_v14 = vadd.f32 %v1006_v11, %v1004_v9 }
 0x1bf   : > { %v1005_v15 = vmul.f32 11.313708, %v1001_v12  ;;  %v5852_v19 = vsel %vm1014_vm1, %v1007_v14, %v1010_v16 }
 0x1c1   : > { %v1008_v18 = vadd.f32 %v1006_v11, %v1005_v15 }
 0x1c3   : > { %v5854_v20 = vsel %vm1014_vm1, %v1008_v18, %v1011_v17 }
 0x1c4   : > { %v1018_v21 = vpack.c.bf16 %v5854_v20, %v5852_v19 }
 0x1c6   : > { %1229 = vmatmul.mubr.bf16.vlgmr.msra.gmra.mxu0 %v1018_v21  ;;  %4586 = vmatmul.mubr.bf16.vlgmr.msra.gmra.mxu1 %v1018_v21 }
 0x1c7   : > { %4591 = vmatprep.mubr.msk.bf16.mxu1 %vm5408_vm0, %v5407_v0  ;;  %4615 = vmatprep.mubr.msk.bf16.mxu0 %vm5408_vm0, %v5407_v0 }
 0x286   : > { %v1230_v28 = vpop.f32.mrf.mxu0  ;;  %v1273_v29 = vpop.f32.mrf.mxu1 }
 0x287   : > { %v1231_v44 = vadd.f32 %v1230_v28, %v1056_v37  ;;  %v1274_v47 = vadd.f32 %v1273_v29, %v1064_v33 }
 0x288   : > { %v1232_v31 = vpop.f32.mrf.mxu0  ;;  %v4587_v32 = vpop.f32.mrf.mxu1 }
 0x289   : > { %v1233_v34 = vadd.f32 %v1232_v31, %v1060_v27  ;;  %v5889_v46 = vpack.c.bf16 %v1231_v44, %v1231_v44  ;;  %v5898_v50 = vpack.c.bf16 %v1274_v47, %v1274_v47 }
 0x28a   : > { %v1234_v35 = vpop.f32.mrf.mxu0  ;;  %v1276_v36 = vpop.f32.mrf.mxu1 }
 0x28b   : > { %v5880_v38 = vpack.c.bf16 %v1233_v34, %v1233_v34  ;;  %v5882_v39 = vadd.f32 %v1276_v36, %v1064_v33  ;;  %v1235_v49 = vadd.f32 %v1234_v35, %v1056_v37  ;;  %v1411_v52 = vsel %vm1409_vm3, %v5898_v50, 0 }
 0x28c   : > { %v1236_v40 = vpop.f32.mrf.mxu0  ;;  %v4588_v41 = vpop.f32.mrf.mxu1 }
 0x28d   : > { %v1237_v42 = vadd.f32 %v1236_v40, %v1060_v27  ;;  %v1291_v43 = vsel %vm1286_vm2, %v5880_v38, 0  ;;  %v5900_v51 = vpack.c.bf16 %v1235_v49, %v1235_v49  ;;  %v5925_v17 = vpack.c.bf16 %v5882_v39, %v5882_v39 }
 0x28e   : > { %4590 = vmatpush3.bf16.xpose.msra.mxu1 %v1291_v43 }
 0x28f   : > { %4595 = vmatprep.subr.bf16.mxu1 %v5407_v0  ;;  %v5887_v45 = vpack.c.bf16 %v1237_v42, %v1237_v42  ;;  %v1457_v22 = vsel %vm1409_vm3, %v5925_v17, 0 }
 0x291   : > { %v1337_v48 = vsel %vm1286_vm2, %v5887_v45, 0 }
 0x295   : > { %4592 = vmatmul.mubr.msk.bf16.vlgmr.msra.gmra.mxu1 %vm1286_vm2, %v5889_v46 }
 0x296   : > { %4596 = vmatpush3.bf16.xpose.msra.mxu1 %v1337_v48  ;;  %4597 = vmatprep.mubr.msk.bf16.mxu1 %vm5408_vm0, %v5407_v0 }
 0x297   : > { %4601 = vmatprep.subr.bf16.mxu1 %v5407_v0 }
 0x29d   : > { %4598 = vmatmul.mubr.msk.bf16.vlgmr.msra.gmra.mxu1 %vm1286_vm2, %v5900_v51 }
 0x29e   : > { %4602 = vmatpush3.bf16.msra.mxu1 %v1411_v52  ;;  %4603 = vmatprep.mubr.msk.bf16.mxu1 %vm5408_vm0, %v5407_v0 }
 0x29f   : > { %4607 = vmatprep.subr.bf16.mxu1 %v5407_v0 }
 0x355   : > { %v1327_v53 = vpop.f32.mrf.mxu1 }
 0x356   : > { %v1379_v54 = vmul.f32 0.25, %v1327_v53 }
 0x357   : > { %v4593_v55 = vpop.f32.mrf.mxu1 }
 0x358   : > { %v1382_v56 = vsel %vm1381_vm4, %v1379_v54, -inf }
 0x359   : > { %1383 = vmax.xlane.f32.xlu0 %v1382_v56  ;;  %v1330_v57 = vpop.f32.mrf.mxu1 }
 0x35b   : > { %v4594_v59 = vpop.f32.mrf.mxu1 }
 0x35d   : > { %v1373_v60 = vpop.f32.mrf.mxu1 }
 0x35e   : > { %v1380_v61 = vmul.f32 0.25, %v1373_v60 }
 0x35f   : > { %v4599_v62 = vpop.f32.mrf.mxu1 }
 0x360   : > { %v1385_v63 = vsel %vm1381_vm4, %v1380_v61, -inf }
 0x361   : > { %1386 = vmax.xlane.f32.xlu0 %v1385_v63  ;;  %v1376_v1 = vpop.f32.mrf.mxu1 }
 0x363   : > { %v4600_v2 = vpop.f32.mrf.mxu1 }
 0x377   : > { %1503 = vrot.lane.b32.xlu0 %v5880_v38, %s5410_s3 }
 0x3e2   : > { %v1384_v3 = vpop.xlane.xlu0 %1383 }
 0x3e3   : > { %v1388_v4 = vsub.f32 %v1379_v54, %v1384_v3 }
 0x3e5   : > { %v1390_v5 = vmul.f32 1.442695, %v1388_v4 }
 0x3e7   : > { %5076 = vpow2.f32 %v1390_v5 }
 0x3ea   : > { %v1387_v6 = vpop.xlane.xlu0 %1386 }
 0x3eb   : > { %v1389_v11 = vsub.f32 %v1380_v61, %v1387_v6 }
 0x3ed   : > { %v1392_v12 = vmul.f32 1.442695, %v1389_v11 }
 0x3ee   : > { %v1504_v7 = vpop.permute.xlu0 %1503 }
 0x3ef   : > { %v1509_v8 = vsel %vm1286_vm2, %v1504_v7, 0  ;;  %5078 = vpow2.f32 %v1392_v12 }
 0x3f0   : > { %4614 = vmatpush3.bf16.xpose.msra.mxu0 %v1509_v8 }
 0x3f1   : > { %4625 = vmatprep.subr.bf16.mxu0 %v5407_v0 }
 0x3f4   : > { %v5077_v9 = vpop.eup %5076 }
 0x3f5   : > { %v1394_v10 = vsel %vm1381_vm4, %v5077_v9, 0.0 }
 0x3f6   : > { %1395 = vadd.xlane.f32.xlu1 %v1394_v10 }
 0x3fc   : > { %v5079_v13 = vpop.eup %5078 }
 0x3fd   : > { %v1397_v14 = vsel %vm1381_vm4, %v5079_v13, 0.0 }
 0x407   : > { %1555 = vrot.lane.b32.xlu1 %v5887_v45, %s5410_s3 }
 0x42b   : > { %1398 = vadd.xlane.f32.xlu1 %v1397_v14 }
 0x43c   : > { %1500 = vrot.lane.b32.xlu1 %v5889_v46, %s5410_s3 }
 0x440   : > { %1552 = vrot.lane.b32.xlu1 %v5900_v51, %s5410_s3 }
 0x47f   : > { %v1396_v15 = vpop.xlane.xlu1 %1395 }
 0x480   : > { %5080 = vrcp.f32 %v1396_v15 }
 0x483   : > { %v1556_v25 = vpop.permute.xlu1 %1555 }
 0x484   : > { %v1561_v33 = vsel %vm1286_vm2, %v1556_v25, 0 }
 0x48d   : > { %v5081_v16 = vpop.eup %5080 }
 0x48e   : > { %v1401_v18 = vmul.f32 %v5081_v16, %v5077_v9 }
 0x490   : > { %v1404_v21 = vpack.c.bf16 %v1401_v18, %v1401_v18 }
 0x492   : > { %4604 = vmatmul.mubr.msk.bf16.vlgmr.msra.gmra.mxu1 %vm1381_vm4, %v1404_v21 }
 0x493   : > { %4608 = vmatpush3.bf16.msra.mxu1 %v1457_v22  ;;  %4609 = vmatprep.mubr.msk.bf16.mxu1 %vm5408_vm0, %v5407_v0 }
 0x494   : > { %4619 = vmatprep.subr.bf16.mxu1 %v5407_v0 }
 0x4b4   : > { %v1399_v27 = vpop.xlane.xlu1 %1398 }
 0x4b5   : > { %5082 = vrcp.f32 %v1399_v27 }
 0x4b8   : > { %v1501_v28 = vpop.permute.xlu1 %1500 }
 0x4b9   : > { %4616 = vmatmul.mubr.msk.bf16.vlgmr.msra.gmra.mxu0 %vm1286_vm2, %v1501_v28 }
 0x4ba   : > { %4627 = vmatprep.mubr.msk.bf16.mxu0 %vm5408_vm0, %v5407_v0 }
 0x4bc   : > { %v1553_v34 = vpop.permute.xlu1 %1552 }
 0x4c2   : > { %v5083_v29 = vpop.eup %5082 }
 0x4c3   : > { %v1403_v31 = vmul.f32 %v5083_v29, %v5079_v13 }
 0x4c5   : > { %v1405_v32 = vpack.c.bf16 %v1403_v31, %v1403_v31 }
 0x4c7   : > { %4610 = vmatmul.mubr.msk.bf16.vlgmr.msra.gmra.mxu1 %vm1381_vm4, %v1405_v32 }
 0x4c8   : > { %4620 = vmatpush3.bf16.xpose.msra.mxu1 %v1561_v33  ;;  %4621 = vmatprep.mubr.msk.bf16.mxu1 %vm5408_vm0, %v5407_v0 }
 0x4c9   : > { %4631 = vmatprep.subr.bf16.mxu1 %v5407_v0 }
 0x4cf   : > { %4622 = vmatmul.mubr.msk.bf16.vlgmr.msra.gmra.mxu1 %vm1286_vm2, %v1553_v34 }
 0x4d0   : > { %4633 = vmatprep.mubr.msk.bf16.mxu1 %vm5408_vm0, %v5407_v0 }
 0x552   : > { %v5944_v35 = vpop.f32.mrf.mxu1 }
 0x554   : > { %v4605_v36 = vpop.f32.mrf.mxu1 }
 0x556   : > { %v1450_v37 = vpop.f32.mrf.mxu1 }
 0x558   : > { %v4606_v39 = vpop.f32.mrf.mxu1 }
 0x579   : > { %v1545_v40 = vpop.f32.mrf.mxu0 }
 0x57a   : > { %v1603_v41 = vmul.f32 0.25, %v1545_v40 }
 0x57b   : > { %v4617_v42 = vpop.f32.mrf.mxu0 }
 0x57c   : > { %v1605_v43 = vsel %vm1381_vm4, %v1603_v41, -inf }
 0x57d   : > { %1606 = vmax.xlane.f32.xlu0 %v1605_v43  ;;  %v1548_v44 = vpop.f32.mrf.mxu0 }
 0x57f   : > { %v4618_v47 = vpop.f32.mrf.mxu0 }
 0x587   : > { %v5947_v48 = vpop.f32.mrf.mxu1 }
 0x589   : > { %v4611_v49 = vpop.f32.mrf.mxu1 }
 0x58b   : > { %v1496_v52 = vpop.f32.mrf.mxu1 }
 0x58d   : > { %v4612_v53 = vpop.f32.mrf.mxu1 }
 0x58f   : > { %v1597_v54 = vpop.f32.mrf.mxu1 }
 0x590   : > { %v1604_v55 = vmul.f32 0.25, %v1597_v54 }
 0x591   : > { %v4623_v56 = vpop.f32.mrf.mxu1 }
 0x592   : > { %v1608_v57 = vsel %vm1381_vm4, %v1604_v55, -inf }
 0x593   : > { %1609 = vmax.xlane.f32.xlu1 %v1608_v57  ;;  %v1600_v59 = vpop.f32.mrf.mxu1 }
 0x595   : > { %v4624_v60 = vpop.f32.mrf.mxu1 }
 0x5a4   : > { %1679 = vrot.lane.b32.xlu1 %v5925_v17, %s5410_s3 }
 0x5a8   : > { %1729 = vrot.lane.b32.xlu1 %v5880_v38, %s5411_s26 }
 0x5ac   : > { %1779 = vrot.lane.b32.xlu1 %v5887_v45, %s5411_s26 }
 0x5b0   : > { %1777 = vrot.lane.b32.xlu1 %v5900_v51, %s5411_s26 }
 0x606   : > { %v1607_v61 = vpop.xlane.xlu0 %1606 }
 0x607   : > { %v1611_v62 = vsub.f32 %v1603_v41, %v1607_v61 }
 0x609   : > { %v1613_v63 = vmul.f32 1.442695, %v1611_v62 }
 0x60b   : > { %5084 = vpow2.f32 %v1613_v63 }
 0x618   : > { %v5085_v1 = vpop.eup %5084 }
 0x619   : > { %v1617_v2 = vsel %vm1381_vm4, %v5085_v1, 0.0 }
 0x61a   : > { %1618 = vadd.xlane.f32.xlu0 %v1617_v2 }
 0x61c   : > { %v1610_v3 = vpop.xlane.xlu1 %1609 }
 0x61d   : > { %v1612_v4 = vsub.f32 %v1604_v55, %v1610_v3 }
 0x61f   : > { %v1615_v5 = vmul.f32 1.442695, %v1612_v4 }
 0x620   : > { %v1680_v6 = vpop.permute.xlu1 %1679 }
 0x621   : > { %5086 = vpow2.f32 %v1615_v5  ;;  %v1685_v7 = vsel %vm1409_vm3, %v1680_v6, 0 }
 0x622   : > { %4632 = vmatpush3.bf16.msra.mxu1 %v1685_v7 }
 0x623   : > { %4643 = vmatprep.subr.bf16.mxu1 %v5407_v0 }
 0x624   : > { %v1730_v16 = vpop.permute.xlu1 %1729 }
 0x625   : > { %v1735_v21 = vsel %vm1286_vm2, %v1730_v16, 0 }
 0x628   : > { %v1780_v27 = vpop.permute.xlu1 %1779 }
 0x629   : > { %v1785_v31 = vsel %vm1286_vm2, %v1780_v27, 0 }
 0x62c   : > { %v1778_v32 = vpop.permute.xlu1 %1777 }
 0x62e   : > { %v5087_v8 = vpop.eup %5086 }
 0x62f   : > { %v1620_v9 = vsel %vm1381_vm4, %v5087_v8, 0.0 }
 0x630   : > { %1621 = vadd.xlane.f32.xlu0 %v1620_v9 }
 0x646   : > { %1630 = vrot.lane.b32.xlu0 %v5898_v50, %s5410_s3 }
 0x64a   : > { %1727 = vrot.lane.b32.xlu0 %v5889_v46, %s5411_s26 }
 0x6a3   : > { %v1619_v10 = vpop.xlane.xlu0 %1618 }
 0x6a4   : > { %5088 = vrcp.f32 %v1619_v10 }
 0x6b1   : > { %v5089_v11 = vpop.eup %5088 }
 0x6b2   : > { %v1624_v13 = vmul.f32 %v5089_v11, %v5085_v1 }
 0x6b4   : > { %v1627_v18 = vpack.c.bf16 %v1624_v13, %v1624_v13 }
 0x6b9   : > { %v1622_v12 = vpop.xlane.xlu0 %1621 }
 0x6ba   : > { %5090 = vrcp.f32 %v1622_v12 }
 0x6bd   : > { %v1631_v14 = vpop.permute.xlu0 %1630 }
 0x6be   : > { %v1636_v15 = vsel %vm1409_vm3, %v1631_v14, 0 }
 0x6bf   : > { %4626 = vmatpush3.bf16.msra.mxu0 %v1636_v15 }
 0x6c0   : > { %4637 = vmatprep.subr.bf16.mxu0 %v5407_v0 }
 0x6c1   : > { %v1728_v28 = vpop.permute.xlu0 %1727 }
 0x6c2   : > { %4628 = vmatmul.mubr.msk.bf16.vlgmr.msra.gmra.mxu0 %vm1381_vm4, %v1627_v18 }
 0x6c3   : > { %4638 = vmatpush3.bf16.xpose.msra.mxu0 %v1735_v21  ;;  %4639 = vmatprep.mubr.msk.bf16.mxu0 %vm5408_vm0, %v5407_v0 }
 0x6c4   : > { %4649 = vmatprep.subr.bf16.mxu0 %v5407_v0 }
 0x6c7   : > { %v5091_v22 = vpop.eup %5090 }
 0x6c8   : > { %v1626_v25 = vmul.f32 %v5091_v22, %v5087_v8 }
 0x6ca   : > { %4640 = vmatmul.mubr.msk.bf16.vlgmr.msra.gmra.mxu0 %vm1286_vm2, %v1728_v28  ;;  %v1628_v29 = vpack.c.bf16 %v1626_v25, %v1626_v25 }
 0x6cb   : > { %4651 = vmatprep.mubr.msk.bf16.mxu0 %vm5408_vm0, %v5407_v0 }
 0x6cc   : > { %4634 = vmatmul.mubr.msk.bf16.vlgmr.msra.gmra.mxu1 %vm1381_vm4, %v1628_v29 }
 0x6cd   : > { %4644 = vmatpush3.bf16.xpose.msra.mxu1 %v1785_v31  ;;  %4645 = vmatprep.mubr.msk.bf16.mxu1 %vm5408_vm0, %v5407_v0 }
 0x6ce   : > { %4655 = vmatprep.subr.bf16.mxu1 %v5407_v0 }
 0x6d4   : > { %4646 = vmatmul.mubr.msk.bf16.vlgmr.msra.gmra.mxu1 %vm1286_vm2, %v1778_v32 }
 0x6d5   : > { %4657 = vmatprep.mubr.msk.bf16.mxu1 %vm5408_vm0, %v5407_v0 }
 0x782   : > { %v5984_v33 = vpop.f32.mrf.mxu0 }
 0x784   : > { %v4629_v34 = vpop.f32.mrf.mxu0 }
 0x786   : > { %v1675_v36 = vpop.f32.mrf.mxu0 }
 0x788   : > { %v4630_v37 = vpop.f32.mrf.mxu0 }
 0x78a   : > { %v1771_v39 = vpop.f32.mrf.mxu0 }
 0x78b   : > { %v1827_v40 = vmul.f32 0.25, %v1771_v39 }
 0x78c   : > { %v5986_v41 = vpop.f32.mrf.mxu1  ;;  %v4641_v42 = vpop.f32.mrf.mxu0 }
 0x78d   : > { %v4897_v43 = vpack.i.bf16 %v5986_v41, %v5984_v33  ;;  %v1829_v44 = vsel %vm1381_vm4, %v1827_v40, -inf }
 0x78e   : > { %1830 = vmax.xlane.f32.xlu0 %v1829_v44  ;;  %v4635_v47 = vpop.f32.mrf.mxu1  ;;  %v1774_v49 = vpop.f32.mrf.mxu0 }
 0x790   : > { %v1724_v52 = vpop.f32.mrf.mxu1  ;;  %v4642_v53 = vpop.f32.mrf.mxu0 }
 0x792   : > { %v4636_v54 = vpop.f32.mrf.mxu1 }
 0x794   : > { %v1821_v55 = vpop.f32.mrf.mxu1 }
 0x795   : > { %v1828_v56 = vmul.f32 0.25, %v1821_v55 }
 0x796   : > { %v4647_v57 = vpop.f32.mrf.mxu1 }
 0x797   : > { %v1832_v59 = vsel %vm1381_vm4, %v1828_v56, -inf }
 0x798   : > { %1833 = vmax.xlane.f32.xlu1 %v1832_v59  ;;  %v1824_v60 = vpop.f32.mrf.mxu1 }
 0x79a   : > { %v4648_v61 = vpop.f32.mrf.mxu1 }
 0x7a9   : > { %1901 = vrot.lane.b32.xlu1 %v5925_v17, %s5411_s26 }
 0x7ad   : > { %1951 = vrot.lane.b32.xlu1 %v5880_v38, %s5412_s13 }
 0x7b1   : > { %2001 = vrot.lane.b32.xlu1 %v5887_v45, %s5412_s13 }
 0x7b5   : > { %1999 = vrot.lane.b32.xlu1 %v5900_v51, %s5412_s13 }
 0x817   : > { %v1831_v62 = vpop.xlane.xlu0 %1830 }
 0x818   : > { %v1835_v63 = vsub.f32 %v1827_v40, %v1831_v62 }
 0x81a   : > { %v1837_v1 = vmul.f32 1.442695, %v1835_v63 }
 0x81c   : > { %5092 = vpow2.f32 %v1837_v1 }
 0x821   : > { %v1834_v2 = vpop.xlane.xlu1 %1833 }
 0x822   : > { %v1836_v3 = vsub.f32 %v1828_v56, %v1834_v2 }
 0x824   : > { %v1839_v4 = vmul.f32 1.442695, %v1836_v3 }
 0x825   : > { %v1902_v5 = vpop.permute.xlu1 %1901 }
 0x826   : > { %5094 = vpow2.f32 %v1839_v4  ;;  %v1907_v6 = vsel %vm1409_vm3, %v1902_v5, 0 }
 0x827   : > { %4656 = vmatpush3.bf16.msra.mxu1 %v1907_v6 }
 0x828   : > { %4667 = vmatprep.subr.bf16.mxu1 %v5407_v0 }
 0x829   : > { %v5093_v7 = vpop.eup %5092  ;;  %v1952_v18 = vpop.permute.xlu1 %1951 }
 0x82a   : > { %v1841_v8 = vsel %vm1381_vm4, %v5093_v7, 0.0  ;;  %v1957_v22 = vsel %vm1286_vm2, %v1952_v18, 0 }
 0x82b   : > { %1842 = vadd.xlane.f32.xlu0 %v1841_v8 }
 0x82d   : > { %v2002_v28 = vpop.permute.xlu1 %2001 }
 0x82e   : > { %v2007_v32 = vsel %vm1286_vm2, %v2002_v28, 0 }
 0x831   : > { %v2000_v34 = vpop.permute.xlu1 %1999 }
 0x833   : > { %v5095_v9 = vpop.eup %5094 }
 0x834   : > { %v1844_v10 = vsel %vm1381_vm4, %v5095_v9, 0.0 }
 0x835   : > { %1845 = vadd.xlane.f32.xlu0 %v1844_v10 }
 0x84b   : > { %1853 = vrot.lane.b32.xlu0 %v5898_v50, %s5411_s26 }
 0x84f   : > { %1949 = vrot.lane.b32.xlu0 %v5889_v46, %s5412_s13 }
 0x8b4   : > { %v1843_v11 = vpop.xlane.xlu0 %1842 }
 0x8b5   : > { %5096 = vrcp.f32 %v1843_v11 }
 0x8be   : > { %v1846_v12 = vpop.xlane.xlu0 %1845 }
 0x8bf   : > { %5098 = vrcp.f32 %v1846_v12 }
 0x8c2   : > { %v5097_v13 = vpop.eup %5096  ;;  %v1854_v14 = vpop.permute.xlu0 %1853 }
 0x8c3   : > { %v1859_v15 = vsel %vm1409_vm3, %v1854_v14, 0  ;;  %v1848_v16 = vmul.f32 %v5097_v13, %v5093_v7 }
 0x8c4   : > { %4650 = vmatpush3.bf16.msra.mxu0 %v1859_v15 }
 0x8c5   : > { %v1851_v21 = vpack.c.bf16 %v1848_v16, %v1848_v16  ;;  %4661 = vmatprep.subr.bf16.mxu0 %v5407_v0 }
 0x8c6   : > { %v1950_v29 = vpop.permute.xlu0 %1949 }
 0x8c7   : > { %4652 = vmatmul.mubr.msk.bf16.vlgmr.msra.gmra.mxu0 %vm1381_vm4, %v1851_v21 }
 0x8c8   : > { %4662 = vmatpush3.bf16.xpose.msra.mxu0 %v1957_v22  ;;  %4663 = vmatprep.mubr.msk.bf16.mxu0 %vm5408_vm0, %v5407_v0 }
 0x8c9   : > { %4673 = vmatprep.subr.bf16.mxu0 %v5407_v0 }
 0x8cc   : > { %v5099_v25 = vpop.eup %5098 }
 0x8cd   : > { %v1850_v27 = vmul.f32 %v5099_v25, %v5095_v9 }
 0x8cf   : > { %4664 = vmatmul.mubr.msk.bf16.vlgmr.msra.gmra.mxu0 %vm1286_vm2, %v1950_v29  ;;  %v1852_v31 = vpack.c.bf16 %v1850_v27, %v1850_v27 }
 0x8d0   : > { %4675 = vmatprep.mubr.msk.bf16.mxu0 %vm5408_vm0, %v5407_v0 }
 0x8d1   : > { %4658 = vmatmul.mubr.msk.bf16.vlgmr.msra.gmra.mxu1 %vm1381_vm4, %v1852_v31 }
 0x8d2   : > { %4668 = vmatpush3.bf16.xpose.msra.mxu1 %v2007_v32  ;;  %4669 = vmatprep.mubr.msk.bf16.mxu1 %vm5408_vm0, %v5407_v0 }
 0x8d3   : > { %4679 = vmatprep.subr.bf16.mxu1 %v5407_v0 }
 0x8d9   : > { %4670 = vmatmul.mubr.msk.bf16.vlgmr.msra.gmra.mxu1 %vm1286_vm2, %v2000_v34 }
 0x8da   : > { %4681 = vmatprep.mubr.msk.bf16.mxu1 %vm5408_vm0, %v5407_v0 }
 0x987   : > { %v6026_v36 = vpop.f32.mrf.mxu0 }
 0x989   : > { %v4653_v37 = vpop.f32.mrf.mxu0 }
 0x98b   : > { %v1898_v39 = vpop.f32.mrf.mxu0 }
 0x98d   : > { %v4654_v40 = vpop.f32.mrf.mxu0 }
 0x98f   : > { %v1993_v42 = vpop.f32.mrf.mxu0 }
 0x990   : > { %v2049_v44 = vmul.f32 0.25, %v1993_v42 }
 0x991   : > { %v6028_v47 = vpop.f32.mrf.mxu1  ;;  %v4665_v49 = vpop.f32.mrf.mxu0 }
 0x992   : > { %v4902_v52 = vpack.i.bf16 %v6028_v47, %v6026_v36  ;;  %v2051_v53 = vsel %vm1381_vm4, %v2049_v44, -inf }
 0x993   : > { %2052 = vmax.xlane.f32.xlu0 %v2051_v53  ;;  %v4659_v54 = vpop.f32.mrf.mxu1  ;;  %v1996_v55 = vpop.f32.mrf.mxu0 }
 0x995   : > { %v1946_v56 = vpop.f32.mrf.mxu1  ;;  %v4666_v57 = vpop.f32.mrf.mxu0 }
 0x997   : > { %v4660_v59 = vpop.f32.mrf.mxu1 }
 0x999   : > { %v2043_v60 = vpop.f32.mrf.mxu1 }
 0x99a   : > { %v2050_v61 = vmul.f32 0.25, %v2043_v60 }
 0x99b   : > { %v4671_v62 = vpop.f32.mrf.mxu1 }
 0x99c   : > { %v2054_v63 = vsel %vm1381_vm4, %v2050_v61, -inf }
 0x99d   : > { %2055 = vmax.xlane.f32.xlu1 %v2054_v63  ;;  %v2046_v1 = vpop.f32.mrf.mxu1 }
 0x99f   : > { %v4672_v2 = vpop.f32.mrf.mxu1 }
 0x9ae   : > { %2123 = vrot.lane.b32.xlu1 %v5925_v17, %s5412_s13 }
 0x9b2   : > { %2173 = vrot.lane.b32.xlu1 %v5880_v38, %s5413_s0 }
 0x9b6   : > { %2223 = vrot.lane.b32.xlu1 %v5887_v45, %s5413_s0 }
 0x9ba   : > { %2221 = vrot.lane.b32.xlu1 %v5900_v51, %s5413_s0 }
 0xa1c   : > { %v2053_v3 = vpop.xlane.xlu0 %2052 }
 0xa1d   : > { %v2057_v4 = vsub.f32 %v2049_v44, %v2053_v3 }
 0xa1f   : > { %v2059_v5 = vmul.f32 1.442695, %v2057_v4 }
 0xa21   : > { %5100 = vpow2.f32 %v2059_v5 }
 0xa26   : > { %v2056_v6 = vpop.xlane.xlu1 %2055 }
 0xa27   : > { %v2058_v7 = vsub.f32 %v2050_v61, %v2056_v6 }
 0xa29   : > { %v2061_v8 = vmul.f32 1.442695, %v2058_v7 }
 0xa2a   : > { %v2124_v9 = vpop.permute.xlu1 %2123 }
 0xa2b   : > { %5102 = vpow2.f32 %v2061_v8  ;;  %v2129_v10 = vsel %vm1409_vm3, %v2124_v9, 0 }
 0xa2c   : > { %4680 = vmatpush3.bf16.msra.mxu1 %v2129_v10 }
 0xa2d   : > { %4691 = vmatprep.subr.bf16.mxu1 %v5407_v0 }
 0xa2e   : > { %v5101_v11 = vpop.eup %5100  ;;  %v2174_v27 = vpop.permute.xlu1 %2173 }
 0xa2f   : > { %v2063_v12 = vsel %vm1381_vm4, %v5101_v11, 0.0  ;;  %v2179_v29 = vsel %vm1286_vm2, %v2174_v27, 0 }
 0xa30   : > { %2064 = vadd.xlane.f32.xlu0 %v2063_v12 }
 0xa32   : > { %v2224_v34 = vpop.permute.xlu1 %2223 }
 0xa33   : > { %v2229_v40 = vsel %vm1286_vm2, %v2224_v34, 0 }
 0xa36   : > { %v2222_v42 = vpop.permute.xlu1 %2221 }
 0xa38   : > { %v5103_v13 = vpop.eup %5102 }
 0xa39   : > { %v2066_v14 = vsel %vm1381_vm4, %v5103_v13, 0.0 }
 0xa3a   : > { %2067 = vadd.xlane.f32.xlu0 %v2066_v14 }
 0xa50   : > { %2075 = vrot.lane.b32.xlu0 %v5898_v50, %s5412_s13 }
 0xa54   : > { %2171 = vrot.lane.b32.xlu0 %v5889_v46, %s5413_s0 }
 0xab9   : > { %v2065_v15 = vpop.xlane.xlu0 %2064 }
 0xaba   : > { %5104 = vrcp.f32 %v2065_v15 }
 0xac3   : > { %v2068_v16 = vpop.xlane.xlu0 %2067 }
 0xac4   : > { %5106 = vrcp.f32 %v2068_v16 }
 0xac7   : > { %v5105_v18 = vpop.eup %5104  ;;  %v2076_v21 = vpop.permute.xlu0 %2075 }
 0xac8   : > { %v2081_v22 = vsel %vm1409_vm3, %v2076_v21, 0  ;;  %v2070_v25 = vmul.f32 %v5105_v18, %v5101_v11 }
 0xac9   : > { %4674 = vmatpush3.bf16.msra.mxu0 %v2081_v22 }
 0xaca   : > { %v2073_v28 = vpack.c.bf16 %v2070_v25, %v2070_v25  ;;  %4685 = vmatprep.subr.bf16.mxu0 %v5407_v0 }
 0xacb   : > { %v2172_v37 = vpop.permute.xlu0 %2171 }
 0xacc   : > { %4676 = vmatmul.mubr.msk.bf16.vlgmr.msra.gmra.mxu0 %vm1381_vm4, %v2073_v28 }
 0xacd   : > { %4686 = vmatpush3.bf16.xpose.msra.mxu0 %v2179_v29  ;;  %4687 = vmatprep.mubr.msk.bf16.mxu0 %vm5408_vm0, %v5407_v0 }
 0xace   : > { %4697 = vmatprep.subr.bf16.mxu0 %v5407_v0 }
 0xad1   : > { %v5107_v31 = vpop.eup %5106 }
 0xad2   : > { %v2072_v32 = vmul.f32 %v5107_v31, %v5103_v13 }
 0xad4   : > { %4688 = vmatmul.mubr.msk.bf16.vlgmr.msra.gmra.mxu0 %vm1286_vm2, %v2172_v37  ;;  %v2074_v39 = vpack.c.bf16 %v2072_v32, %v2072_v32 }
 0xad5   : > { %4699 = vmatprep.mubr.msk.bf16.mxu0 %vm5408_vm0, %v5407_v0 }
 0xad6   : > { %4682 = vmatmul.mubr.msk.bf16.vlgmr.msra.gmra.mxu1 %vm1381_vm4, %v2074_v39 }
 0xad7   : > { %4692 = vmatpush3.bf16.xpose.msra.mxu1 %v2229_v40  ;;  %4693 = vmatprep.mubr.msk.bf16.mxu1 %vm5408_vm0, %v5407_v0 }
 0xad8   : > { %4703 = vmatprep.subr.bf16.mxu1 %v5407_v0 }
 0xade   : > { %4694 = vmatmul.mubr.msk.bf16.vlgmr.msra.gmra.mxu1 %vm1286_vm2, %v2222_v42 }
 0xadf   : > { %4705 = vmatprep.mubr.msk.bf16.mxu1 %vm5408_vm0, %v5407_v0 }
 0xb8c   : > { %v6068_v44 = vpop.f32.mrf.mxu0 }
 0xb8e   : > { %v4677_v49 = vpop.f32.mrf.mxu0 }
 0xb90   : > { %v2120_v53 = vpop.f32.mrf.mxu0 }
 0xb92   : > { %v4678_v54 = vpop.f32.mrf.mxu0 }
 0xb94   : > { %v2215_v55 = vpop.f32.mrf.mxu0 }
 0xb95   : > { %v2271_v56 = vmul.f32 0.25, %v2215_v55 }
 0xb96   : > { %v6070_v57 = vpop.f32.mrf.mxu1  ;;  %v4689_v59 = vpop.f32.mrf.mxu0 }
 0xb97   : > { %v4907_v60 = vpack.i.bf16 %v6070_v57, %v6068_v44  ;;  %v2273_v61 = vsel %vm1381_vm4, %v2271_v56, -inf }
 0xb98   : > { %2274 = vmax.xlane.f32.xlu0 %v2273_v61  ;;  %v4683_v62 = vpop.f32.mrf.mxu1  ;;  %v2218_v63 = vpop.f32.mrf.mxu0 }
 0xb9a   : > { %v2168_v1 = vpop.f32.mrf.mxu1  ;;  %v4690_v2 = vpop.f32.mrf.mxu0 }
 0xb9c   : > { %v4684_v3 = vpop.f32.mrf.mxu1 }
 0xb9e   : > { %v2265_v4 = vpop.f32.mrf.mxu1 }
 0xb9f   : > { %v2272_v5 = vmul.f32 0.25, %v2265_v4 }
 0xba0   : > { %v4695_v6 = vpop.f32.mrf.mxu1 }
 0xba1   : > { %v2276_v7 = vsel %vm1381_vm4, %v2272_v5, -inf }
 0xba2   : > { %2277 = vmax.xlane.f32.xlu1 %v2276_v7  ;;  %v2268_v8 = vpop.f32.mrf.mxu1 }
 0xba4   : > { %v4696_v9 = vpop.f32.mrf.mxu1 }
 0xbb3   : > { %2345 = vrot.lane.b32.xlu1 %v5925_v17, %s5413_s0 }
 0xbb7   : > { %2395 = vrot.lane.b32.xlu1 %v5880_v38, %s5414_s24 }
 0xbbb   : > { %2445 = vrot.lane.b32.xlu1 %v5887_v45, %s5414_s24 }
 0xbbf   : > { %2443 = vrot.lane.b32.xlu1 %v5900_v51, %s5414_s24 }
 0xc21   : > { %v2275_v10 = vpop.xlane.xlu0 %2274 }
 0xc22   : > { %v2279_v11 = vsub.f32 %v2271_v56, %v2275_v10 }
 0xc24   : > { %v2281_v12 = vmul.f32 1.442695, %v2279_v11 }
 0xc26   : > { %5108 = vpow2.f32 %v2281_v12 }
 0xc2b   : > { %v2278_v13 = vpop.xlane.xlu1 %2277 }
 0xc2c   : > { %v2280_v14 = vsub.f32 %v2272_v5, %v2278_v13 }
 0xc2e   : > { %v2283_v15 = vmul.f32 1.442695, %v2280_v14 }
 0xc2f   : > { %v2346_v16 = vpop.permute.xlu1 %2345 }
 0xc30   : > { %5110 = vpow2.f32 %v2283_v15  ;;  %v2351_v18 = vsel %vm1409_vm3, %v2346_v16, 0 }
 0xc31   : > { %4704 = vmatpush3.bf16.msra.mxu1 %v2351_v18 }
 0xc32   : > { %4715 = vmatprep.subr.bf16.mxu1 %v5407_v0 }
 0xc33   : > { %v5109_v21 = vpop.eup %5108  ;;  %v2396_v39 = vpop.permute.xlu1 %2395 }
 0xc34   : > { %v2285_v22 = vsel %vm1381_vm4, %v5109_v21, 0.0  ;;  %v2401_v42 = vsel %vm1286_vm2, %v2396_v39, 0 }
 0xc35   : > { %2286 = vadd.xlane.f32.xlu0 %v2285_v22 }
 0xc37   : > { %v2446_v54 = vpop.permute.xlu1 %2445 }
 0xc38   : > { %v2451_v59 = vsel %vm1286_vm2, %v2446_v54, 0 }
 0xc3b   : > { %v2444_v61 = vpop.permute.xlu1 %2443 }
 0xc3d   : > { %v5111_v25 = vpop.eup %5110 }
 0xc3e   : > { %v2288_v27 = vsel %vm1381_vm4, %v5111_v25, 0.0 }
 0xc3f   : > { %2289 = vadd.xlane.f32.xlu0 %v2288_v27 }
 0xc55   : > { %2297 = vrot.lane.b32.xlu0 %v5898_v50, %s5413_s0 }
 0xc59   : > { %2393 = vrot.lane.b32.xlu0 %v5889_v46, %s5414_s24 }
 0xcbe   : > { %v2287_v28 = vpop.xlane.xlu0 %2286 }
 0xcbf   : > { %5112 = vrcp.f32 %v2287_v28 }
 0xcc8   : > { %v2290_v29 = vpop.xlane.xlu0 %2289 }
 0xcc9   : > { %5114 = vrcp.f32 %v2290_v29 }
 0xccc   : > { %v5113_v31 = vpop.eup %5112  ;;  %v2298_v32 = vpop.permute.xlu0 %2297 }
 0xccd   : > { %v2303_v34 = vsel %vm1409_vm3, %v2298_v32, 0  ;;  %v2292_v37 = vmul.f32 %v5113_v31, %v5109_v21 }
 0xcce   : > { %4698 = vmatpush3.bf16.msra.mxu0 %v2303_v34 }
 0xccf   : > { %v2295_v40 = vpack.c.bf16 %v2292_v37, %v2292_v37  ;;  %4709 = vmatprep.subr.bf16.mxu0 %v5407_v0 }
 0xcd0   : > { %v2394_v55 = vpop.permute.xlu0 %2393 }
 0xcd1   : > { %4700 = vmatmul.mubr.msk.bf16.vlgmr.msra.gmra.mxu0 %vm1381_vm4, %v2295_v40 }
 0xcd2   : > { %4710 = vmatpush3.bf16.xpose.msra.mxu0 %v2401_v42  ;;  %4711 = vmatprep.mubr.msk.bf16.mxu0 %vm5408_vm0, %v5407_v0 }
 0xcd3   : > { %4721 = vmatprep.subr.bf16.mxu0 %v5407_v0 }
 0xcd6   : > { %v5115_v49 = vpop.eup %5114 }
 0xcd7   : > { %v2294_v53 = vmul.f32 %v5115_v49, %v5111_v25 }
 0xcd9   : > { %4712 = vmatmul.mubr.msk.bf16.vlgmr.msra.gmra.mxu0 %vm1286_vm2, %v2394_v55  ;;  %v2296_v56 = vpack.c.bf16 %v2294_v53, %v2294_v53 }
 0xcda   : > { %4723 = vmatprep.mubr.msk.bf16.mxu0 %vm5408_vm0, %v5407_v0 }
 0xcdb   : > { %4706 = vmatmul.mubr.msk.bf16.vlgmr.msra.gmra.mxu1 %vm1381_vm4, %v2296_v56 }
 0xcdc   : > { %4716 = vmatpush3.bf16.xpose.msra.mxu1 %v2451_v59  ;;  %4717 = vmatprep.mubr.msk.bf16.mxu1 %vm5408_vm0, %v5407_v0 }
 0xcdd   : > { %4727 = vmatprep.subr.bf16.mxu1 %v5407_v0 }
 0xce3   : > { %4718 = vmatmul.mubr.msk.bf16.vlgmr.msra.gmra.mxu1 %vm1286_vm2, %v2444_v61 }
 0xce4   : > { %4729 = vmatprep.mubr.msk.bf16.mxu1 %vm5408_vm0, %v5407_v0 }
 0xd91   : > { %v6110_v62 = vpop.f32.mrf.mxu0 }
 0xd93   : > { %v4701_v63 = vpop.f32.mrf.mxu0 }
 0xd95   : > { %v2342_v1 = vpop.f32.mrf.mxu0 }
 0xd97   : > { %v4702_v2 = vpop.f32.mrf.mxu0 }
 0xd99   : > { %v2437_v3 = vpop.f32.mrf.mxu0 }
 0xd9a   : > { %v2493_v4 = vmul.f32 0.25, %v2437_v3 }
 0xd9b   : > { %v6112_v5 = vpop.f32.mrf.mxu1  ;;  %v4713_v6 = vpop.f32.mrf.mxu0 }
 0xd9c   : > { %v4912_v7 = vpack.i.bf16 %v6112_v5, %v6110_v62  ;;  %v2495_v8 = vsel %vm1381_vm4, %v2493_v4, -inf }
 0xd9d   : > { %2496 = vmax.xlane.f32.xlu0 %v2495_v8  ;;  %v4707_v9 = vpop.f32.mrf.mxu1  ;;  %v2440_v10 = vpop.f32.mrf.mxu0 }
 0xd9f   : > { %v2390_v11 = vpop.f32.mrf.mxu1  ;;  %v4714_v12 = vpop.f32.mrf.mxu0 }
 0xda1   : > { %v4708_v13 = vpop.f32.mrf.mxu1 }
 0xda3   : > { %v2487_v14 = vpop.f32.mrf.mxu1 }
 0xda4   : > { %v2494_v15 = vmul.f32 0.25, %v2487_v14 }
 0xda5   : > { %v4719_v16 = vpop.f32.mrf.mxu1 }
 0xda6   : > { %v2498_v18 = vsel %vm1381_vm4, %v2494_v15, -inf }
 0xda7   : > { %2499 = vmax.xlane.f32.xlu1 %v2498_v18  ;;  %v2490_v21 = vpop.f32.mrf.mxu1 }
 0xda9   : > { %v4720_v22 = vpop.f32.mrf.mxu1 }
 0xdb8   : > { %2567 = vrot.lane.b32.xlu1 %v5925_v17, %s5414_s24 }
 0xdbc   : > { %2617 = vrot.lane.b32.xlu1 %v5880_v38, %s5415_s6 }
 0xdc0   : > { %2667 = vrot.lane.b32.xlu1 %v5887_v45, %s5415_s6 }
 0xdc4   : > { %2665 = vrot.lane.b32.xlu1 %v5900_v51, %s5415_s6 }
 0xe26   : > { %v2497_v25 = vpop.xlane.xlu0 %2496 }
 0xe27   : > { %v2501_v27 = vsub.f32 %v2493_v4, %v2497_v25 }
 0xe29   : > { %v2503_v28 = vmul.f32 1.442695, %v2501_v27 }
 0xe2b   : > { %5116 = vpow2.f32 %v2503_v28 }
 0xe30   : > { %v2500_v29 = vpop.xlane.xlu1 %2499 }
 0xe31   : > { %v2502_v31 = vsub.f32 %v2494_v15, %v2500_v29 }
 0xe33   : > { %v2505_v32 = vmul.f32 1.442695, %v2502_v31 }
 0xe34   : > { %v2568_v34 = vpop.permute.xlu1 %2567 }
 0xe35   : > { %5118 = vpow2.f32 %v2505_v32  ;;  %v2573_v37 = vsel %vm1409_vm3, %v2568_v34, 0 }
 0xe36   : > { %4728 = vmatpush3.bf16.msra.mxu1 %v2573_v37 }
 0xe37   : > { %4739 = vmatprep.subr.bf16.mxu1 %v5407_v0 }
 0xe38   : > { %v5117_v39 = vpop.eup %5116  ;;  %v2618_v63 = vpop.permute.xlu1 %2617 }
 0xe39   : > { %v2507_v40 = vsel %vm1381_vm4, %v5117_v39, 0.0  ;;  %v2623_v2 = vsel %vm1286_vm2, %v2618_v63, 0 }
 0xe3a   : > { %2508 = vadd.xlane.f32.xlu0 %v2507_v40 }
 0xe3c   : > { %v2668_v6 = vpop.permute.xlu1 %2667 }
 0xe3d   : > { %v2673_v10 = vsel %vm1286_vm2, %v2668_v6, 0 }
 0xe40   : > { %v2666_v11 = vpop.permute.xlu1 %2665 }
 0xe42   : > { %v5119_v42 = vpop.eup %5118 }
 0xe43   : > { %v2510_v49 = vsel %vm1381_vm4, %v5119_v42, 0.0 }
 0xe44   : > { %2511 = vadd.xlane.f32.xlu0 %v2510_v49 }
 0xe5a   : > { %2519 = vrot.lane.b32.xlu0 %v5898_v50, %s5414_s24 }
 0xe5e   : > { %2615 = vrot.lane.b32.xlu0 %v5889_v46, %s5415_s6 }
 0xec3   : > { %v2509_v53 = vpop.xlane.xlu0 %2508 }
 0xec4   : > { %5120 = vrcp.f32 %v2509_v53 }
 0xecd   : > { %v2512_v54 = vpop.xlane.xlu0 %2511 }
 0xece   : > { %5122 = vrcp.f32 %v2512_v54 }
 0xed1   : > { %v5121_v55 = vpop.eup %5120  ;;  %v2520_v56 = vpop.permute.xlu0 %2519 }
 0xed2   : > { %v2525_v59 = vsel %vm1409_vm3, %v2520_v56, 0  ;;  %v2514_v61 = vmul.f32 %v5121_v55, %v5117_v39 }
 0xed3   : > { %4722 = vmatpush3.bf16.msra.mxu0 %v2525_v59 }
 0xed4   : > { %v2517_v1 = vpack.c.bf16 %v2514_v61, %v2514_v61  ;;  %4733 = vmatprep.subr.bf16.mxu0 %v5407_v0 }
 0xed5   : > { %v2616_v8 = vpop.permute.xlu0 %2615 }
 0xed6   : > { %4724 = vmatmul.mubr.msk.bf16.vlgmr.msra.gmra.mxu0 %vm1381_vm4, %v2517_v1 }
 0xed7   : > { %4734 = vmatpush3.bf16.xpose.msra.mxu0 %v2623_v2  ;;  %4735 = vmatprep.mubr.msk.bf16.mxu0 %vm5408_vm0, %v5407_v0 }
 0xed8   : > { %4745 = vmatprep.subr.bf16.mxu0 %v5407_v0 }
 0xedb   : > { %v5123_v3 = vpop.eup %5122 }
 0xedc   : > { %v2516_v4 = vmul.f32 %v5123_v3, %v5119_v42 }
 0xede   : > { %4736 = vmatmul.mubr.msk.bf16.vlgmr.msra.gmra.mxu0 %vm1286_vm2, %v2616_v8  ;;  %v2518_v9 = vpack.c.bf16 %v2516_v4, %v2516_v4 }
 0xedf   : > { %4747 = vmatprep.mubr.msk.bf16.mxu0 %vm5408_vm0, %v5407_v0 }
 0xee0   : > { %4730 = vmatmul.mubr.msk.bf16.vlgmr.msra.gmra.mxu1 %vm1381_vm4, %v2518_v9 }
 0xee1   : > { %4740 = vmatpush3.bf16.xpose.msra.mxu1 %v2673_v10  ;;  %4741 = vmatprep.mubr.msk.bf16.mxu1 %vm5408_vm0, %v5407_v0 }
 0xee2   : > { %4751 = vmatprep.subr.bf16.mxu1 %v5407_v0 }
 0xee8   : > { %4742 = vmatmul.mubr.msk.bf16.vlgmr.msra.gmra.mxu1 %vm1286_vm2, %v2666_v11 }
 0xee9   : > { %4753 = vmatprep.mubr.msk.bf16.mxu1 %vm5408_vm0, %v5407_v0 }
 0xf96   : > { %v6152_v12 = vpop.f32.mrf.mxu0 }
 0xf98   : > { %v4725_v13 = vpop.f32.mrf.mxu0 }
 0xf9a   : > { %v2564_v14 = vpop.f32.mrf.mxu0 }
 0xf9c   : > { %v4726_v15 = vpop.f32.mrf.mxu0 }
 0xf9e   : > { %v2659_v16 = vpop.f32.mrf.mxu0 }
 0xf9f   : > { %v2715_v18 = vmul.f32 0.25, %v2659_v16 }
 0xfa0   : > { %v6154_v21 = vpop.f32.mrf.mxu1  ;;  %v4737_v22 = vpop.f32.mrf.mxu0 }
 0xfa1   : > { %v4917_v25 = vpack.i.bf16 %v6154_v21, %v6152_v12  ;;  %v2717_v27 = vsel %vm1381_vm4, %v2715_v18, -inf  ;;  %v4988_v21 = vld [vmem:[%s5742_s4 + $0x38] sm:$0xff]  }
 0xfa2   : > { %2718 = vmax.xlane.f32.xlu0 %v2717_v27  ;;  %v4731_v28 = vpop.f32.mrf.mxu1  ;;  %v2662_v29 = vpop.f32.mrf.mxu0 }
 0xfa4   : > { %v2612_v31 = vpop.f32.mrf.mxu1  ;;  %v4738_v32 = vpop.f32.mrf.mxu0 }
 0xfa6   : > { %v4732_v34 = vpop.f32.mrf.mxu1 }
 0xfa8   : > { %v2709_v37 = vpop.f32.mrf.mxu1 }
 0xfa9   : > { %v2716_v39 = vmul.f32 0.25, %v2709_v37 }
 0xfaa   : > { %v4743_v40 = vpop.f32.mrf.mxu1 }
 0xfab   : > { %v2720_v42 = vsel %vm1381_vm4, %v2716_v39, -inf }
 0xfac   : > { %2721 = vmax.xlane.f32.xlu1 %v2720_v42  ;;  %v2712_v49 = vpop.f32.mrf.mxu1 }
 0xfae   : > { %v4744_v53 = vpop.f32.mrf.mxu1 }
 0xfbd   : > { %2789 = vrot.lane.b32.xlu1 %v5925_v17, %s5415_s6 }
 0xfc1   : > { %2839 = vrot.lane.b32.xlu1 %v5880_v38, %s5416_s16 }
 0xfc5   : > { %2889 = vrot.lane.b32.xlu1 %v5887_v45, %s5416_s16 }
 0xfc9   : > { %2887 = vrot.lane.b32.xlu1 %v5900_v51, %s5416_s16 }
0x102b   : > { %v2719_v54 = vpop.xlane.xlu0 %2718 }
0x102c   : > { %v2723_v55 = vsub.f32 %v2715_v18, %v2719_v54 }
0x102e   : > { %v2725_v56 = vmul.f32 1.442695, %v2723_v55 }
0x1030   : > { %5124 = vpow2.f32 %v2725_v56 }
0x1035   : > { %v2722_v59 = vpop.xlane.xlu1 %2721 }
0x1036   : > { %v2724_v61 = vsub.f32 %v2716_v39, %v2722_v59 }
0x1038   : > { %v2727_v63 = vmul.f32 1.442695, %v2724_v61 }
0x1039   : > { %v2790_v1 = vpop.permute.xlu1 %2789 }
0x103a   : > { %5126 = vpow2.f32 %v2727_v63  ;;  %v2795_v2 = vsel %vm1409_vm3, %v2790_v1, 0 }
0x103b   : > { %4752 = vmatpush3.bf16.msra.mxu1 %v2795_v2 }
0x103c   : > { %4763 = vmatprep.subr.bf16.mxu1 %v5407_v0 }
0x103d   : > { %v5125_v38 = vpop.eup %5124  ;;  %v2840_v13 = vpop.permute.xlu1 %2839 }
0x103e   : > { %v2729_v45 = vsel %vm1381_vm4, %v5125_v38, 0.0  ;;  %v2845_v15 = vsel %vm1286_vm2, %v2840_v13, 0 }
0x103f   : > { %2730 = vadd.xlane.f32.xlu0 %v2729_v45 }
0x1041   : > { %v2890_v18 = vpop.permute.xlu1 %2889 }
0x1042   : > { %v2895_v28 = vsel %vm1286_vm2, %v2890_v18, 0  ;;  %v4994_v18 = vld [vmem:[%s5742_s4 + $0x8] sm:$0xff]  }
0x1045   : > { %v2888_v29 = vpop.permute.xlu1 %2887 }
0x1047   : > { %v5127_v3 = vpop.eup %5126 }
0x1048   : > { %v2732_v51 = vsel %vm1381_vm4, %v5127_v3, 0.0 }
0x1049   : > { %2733 = vadd.xlane.f32.xlu0 %v2732_v51 }
0x105f   : > { %2741 = vrot.lane.b32.xlu0 %v5898_v50, %s5415_s6 }
0x1063   : > { %2837 = vrot.lane.b32.xlu0 %v5889_v46, %s5416_s16 }
0x10c8   : > { %v2731_v4 = vpop.xlane.xlu0 %2730 }
0x10c9   : > { %5128 = vrcp.f32 %v2731_v4 }
0x10d2   : > { %v2734_v6 = vpop.xlane.xlu0 %2733 }
0x10d3   : > { %5130 = vrcp.f32 %v2734_v6 }
0x10d6   : > { %v5129_v8 = vpop.eup %5128  ;;  %v2742_v9 = vpop.permute.xlu0 %2741 }
0x10d7   : > { %v2747_v10 = vsel %vm1409_vm3, %v2742_v9, 0  ;;  %v2736_v11 = vmul.f32 %v5129_v8, %v5125_v38 }
0x10d8   : > { %4746 = vmatpush3.bf16.msra.mxu0 %v2747_v10 }
0x10d9   : > { %v2739_v14 = vpack.c.bf16 %v2736_v11, %v2736_v11  ;;  %4757 = vmatprep.subr.bf16.mxu0 %v5407_v0 }
0x10da   : > { %v2838_v22 = vpop.permute.xlu0 %2837 }
0x10db   : > { %4748 = vmatmul.mubr.msk.bf16.vlgmr.msra.gmra.mxu0 %vm1381_vm4, %v2739_v14  ;;  %v4990_v14 = vld [vmem:[%s5742_s4 + $0x28] sm:$0xff]  }
0x10dc   : > { %4758 = vmatpush3.bf16.xpose.msra.mxu0 %v2845_v15  ;;  %4759 = vmatprep.mubr.msk.bf16.mxu0 %vm5408_vm0, %v5407_v0  ;;  %v4991_v15 = vld [vmem:[%s5742_s4 + $0x20] sm:$0xff]  }
0x10dd   : > { %4769 = vmatprep.subr.bf16.mxu0 %v5407_v0 }
0x10e0   : > { %v5131_v46 = vpop.eup %5130 }
0x10e1   : > { %v2738_v16 = vmul.f32 %v5131_v46, %v5127_v3  ;;  %v4992_v46 = vld [vmem:[%s5742_s4 + $0x18] sm:$0xff]  }
0x10e3   : > { %4760 = vmatmul.mubr.msk.bf16.vlgmr.msra.gmra.mxu0 %vm1286_vm2, %v2838_v22  ;;  %v2740_v27 = vpack.c.bf16 %v2738_v16, %v2738_v16  ;;  %v4993_v16 = vld [vmem:[%s5742_s4 + $0x10] sm:$0xff]  }
0x10e4   : > { %4771 = vmatprep.mubr.msk.bf16.mxu0 %vm5408_vm0, %v5407_v0 }
0x10e5   : > { %4754 = vmatmul.mubr.msk.bf16.vlgmr.msra.gmra.mxu1 %vm1381_vm4, %v2740_v27  ;;  %v4995_v27 = vld [vmem:[%s5742_s4] sm:$0xff]  }
0x10e6   : > { %4764 = vmatpush3.bf16.xpose.msra.mxu1 %v2895_v28  ;;  %4765 = vmatprep.mubr.msk.bf16.mxu1 %vm5408_vm0, %v5407_v0 }
0x10e7   : > { %4775 = vmatprep.subr.bf16.mxu1 %v5407_v0 }
0x10ed   : > { %4766 = vmatmul.mubr.msk.bf16.vlgmr.msra.gmra.mxu1 %vm1286_vm2, %v2888_v29 }
0x10ee   : > { %4777 = vmatprep.mubr.msk.bf16.mxu1 %vm5408_vm0, %v5407_v0 }
0x119b   : > { %v2783_v31 = vpop.f32.mrf.mxu0 }
0x119d   : > { %v4749_v32 = vpop.f32.mrf.mxu0 }
0x119f   : > { %v2786_v34 = vpop.f32.mrf.mxu0 }
0x11a1   : > { %v4750_v37 = vpop.f32.mrf.mxu0 }
0x11a3   : > { %v2881_v39 = vpop.f32.mrf.mxu0 }
0x11a4   : > { %v2937_v40 = vmul.f32 0.25, %v2881_v39 }
0x11a5   : > { %v2831_v42 = vpop.f32.mrf.mxu1  ;;  %v4761_v49 = vpop.f32.mrf.mxu0 }
0x11a6   : > { %v2939_v53 = vsel %vm1381_vm4, %v2937_v40, -inf  ;;  %v4922_v51 = vpack.i.bf16 %v2831_v42, %v2783_v31 }
0x11a7   : > { %2940 = vmax.xlane.f32.xlu0 %v2939_v53  ;;  %v4755_v54 = vpop.f32.mrf.mxu1  ;;  %v2884_v55 = vpop.f32.mrf.mxu0 }
0x11a9   : > { %v2834_v56 = vpop.f32.mrf.mxu1  ;;  %v4762_v59 = vpop.f32.mrf.mxu0 }
0x11ab   : > { %v4756_v61 = vpop.f32.mrf.mxu1 }
0x11ad   : > { %v2931_v63 = vpop.f32.mrf.mxu1 }
0x11ae   : > { %v2938_v1 = vmul.f32 0.25, %v2931_v63 }
0x11af   : > { %v4767_v2 = vpop.f32.mrf.mxu1 }
0x11b0   : > { %v2942_v38 = vsel %vm1381_vm4, %v2938_v1, -inf }
0x11b1   : > { %2943 = vmax.xlane.f32.xlu1 %v2942_v38  ;;  %v2934_v45 = vpop.f32.mrf.mxu1 }
0x11b3   : > { %v4768_v3 = vpop.f32.mrf.mxu1 }
0x11c2   : > { %3011 = vrot.lane.b32.xlu1 %v5925_v17, %s5416_s16 }
0x11c6   : > { %4898 = vrot.lane.b32.xlu1 %v4897_v43, %s5416_s16 }
0x11ca   : > { %4903 = vrot.lane.b32.xlu1 %v4902_v52, %s5415_s6 }
0x11ce   : > { %4913 = vrot.lane.b32.xlu1 %v4912_v7, %s5413_s0 }
0x11d2   : > { %4923 = vrot.lane.b32.xlu1 %v4922_v51, %s5411_s26 }
0x1230   : > { %v2941_v4 = vpop.xlane.xlu0 %2940 }
0x1231   : > { %v2945_v17 = vsub.f32 %v2937_v40, %v2941_v4 }
0x1233   : > { %v2947_v6 = vmul.f32 1.442695, %v2945_v17 }
0x1235   : > { %5132 = vpow2.f32 %v2947_v6 }
0x123a   : > { %v2944_v8 = vpop.xlane.xlu1 %2943 }
0x123b   : > { %v2946_v33 = vsub.f32 %v2938_v1, %v2944_v8 }
0x123d   : > { %v2949_v41 = vmul.f32 1.442695, %v2946_v33 }
0x123e   : > { %v3012_v43 = vpop.permute.xlu1 %3011 }
0x123f   : > { %5134 = vpow2.f32 %v2949_v41  ;;  %v3017_v36 = vsel %vm1409_vm3, %v3012_v43, 0 }
0x1240   : > { %4776 = vmatpush3.bf16.msra.mxu1 %v3017_v36 }
0x1242   : > { %v5133_v47 = vpop.eup %5132  ;;  %v4899_v42 = vpop.permute.xlu1 %4898 }
0x1243   : > { %v2951_v52 = vsel %vm1381_vm4, %v5133_v47, 0.0  ;;  %v4901_v54 = vunpack.i.h.bf16 %v4899_v42  ;;  %v4900_v55 = vunpack.i.l.bf16 %v4899_v42  ;;  %v5005_v42 = vld [vmem:[%s5749_s20 + $0xc8] ss:$16 sps:$4 sm:$0xff]  }
0x1244   : > { %2952 = vadd.xlane.f32.xlu0 %v2951_v52 }
0x1245   : > { %v3116_v2 = vsel %vm1286_vm2, %v5947_v48, %v4901_v54  ;;  %v3115_v38 = vsel %vm1286_vm2, %v5944_v35, %v4900_v55  ;;  %v5008_v54 = vld [vmem:[%s5749_s20 + $0xa0] ss:$16 sps:$4 sm:$0xff]   ;;  %v5011_v55 = vld [vmem:[%s5749_s20 + $0xa8] ss:$16 sps:$4 sm:$0xff]  }
0x1246   : > { %v4904_v49 = vpop.permute.xlu1 %4903 }
0x1247   : > { %v4906_v56 = vunpack.i.h.bf16 %v4904_v49 }
0x1249   : > { %v3119_v3 = vsel %vm3117_vm5, %v3116_v2, %v4906_v56  ;;  %v5014_v56 = vld [vmem:[%s5749_s20 + $0x80] ss:$16 sps:$4 sm:$0xff]  }
0x124a   : > { %v4914_v59 = vpop.permute.xlu1 %4913  ;;  %v5020_v2 = vld [vmem:[%s5749_s20 + $0x60] ss:$16 sps:$4 sm:$0xff]  }
0x124b   : > { %v4916_v8 = vunpack.i.h.bf16 %v4914_v59  ;;  %v4915_v33 = vunpack.i.l.bf16 %v4914_v59  ;;  %v5017_v59 = vld [vmem:[%s5749_s20 + $0x88] ss:$16 sps:$4 sm:$0xff]  }
0x124c   : > { %v5135_v62 = vpop.eup %5134 }
0x124d   : > { %v2954_v5 = vsel %vm1381_vm4, %v5135_v62, 0.0 }
0x124e   : > { %2955 = vadd.xlane.f32.xlu0 %v2954_v5  ;;  %v4924_v41 = vpop.permute.xlu1 %4923 }
0x124f   : > { %v4926_v48 = vunpack.i.h.bf16 %v4924_v41 }
0x1264   : > { %2963 = vrot.lane.b32.xlu0 %v5898_v50, %s5416_s16 }
0x1268   : > { %4908 = vrot.lane.b32.xlu0 %v4907_v60, %s5414_s24 }
0x126c   : > { %4918 = vrot.lane.b32.xlu0 %v4917_v25, %s5412_s13  ;;  %v4989_v25 = vld [vmem:[%s5742_s4 + $0x30] sm:$0xff]  }
0x12cd   : > { %v2953_v7 = vpop.xlane.xlu0 %2952 }
0x12ce   : > { %5136 = vrcp.f32 %v2953_v7 }
0x12d7   : > { %v2956_v9 = vpop.xlane.xlu0 %2955 }
0x12d8   : > { %5138 = vrcp.f32 %v2956_v9 }
0x12db   : > { %v5137_v10 = vpop.eup %5136  ;;  %v2964_v11 = vpop.permute.xlu0 %2963 }
0x12dc   : > { %v2969_v50 = vsel %vm1409_vm3, %v2964_v11, 0  ;;  %v2958_v13 = vmul.f32 %v5137_v10, %v5133_v47 }
0x12dd   : > { %4770 = vmatpush3.bf16.msra.mxu0 %v2969_v50 }
0x12de   : > { %v2961_v44 = vpack.c.bf16 %v2958_v13, %v2958_v13  ;;  %4781 = vmatprep.subr.bf16.mxu0 %v5407_v0 }
0x12df   : > { %v4909_v53 = vpop.permute.xlu0 %4908 }
0x12e0   : > { %4772 = vmatmul.mubr.msk.bf16.vlgmr.msra.gmra.mxu0 %vm1381_vm4, %v2961_v44  ;;  %v4911_v61 = vunpack.i.h.bf16 %v4909_v53  ;;  %v4910_v63 = vunpack.i.l.bf16 %v4909_v53  ;;  %v4313_v44 = vld [vmem:[%s708_s28] ss:$0 sm:$0xff]  ;;  %v5013_v53 = vld [vmem:[%s5749_s20 + $0xac] ss:$16 sps:$4 sm:$0xff]  }
0x12e1   : > { %4797 = vmatprep.mubr.msk.bf16.mxu0 %vm5408_vm0, %v5407_v0  ;;  %4782 = vmatpush3.bf16.msra.mxu0 %v4988_v21 }
0x12e2   : > { %4783 = vmatprep.subr.bf16.mxu0 %v5407_v0  ;;  %v3122_v4 = vsel %vm3120_vm6, %v3119_v3, %v4911_v61  ;;  %v5019_v61 = vld [vmem:[%s5749_s20 + $0x8c] ss:$16 sps:$4 sm:$0xff]  }
0x12e3   : > { %v4919_v1 = vpop.permute.xlu0 %4918  ;;  %v3125_v36 = vsel %vm3123_vm7, %v3122_v4, %v4916_v8  ;;  %v5031_v3 = vld [vmem:[%s5749_s20 + $0x4c] ss:$16 sps:$4 sm:$0xff]   ;;  %v5029_v4 = vld [vmem:[%s5749_s20 + $0x48] ss:$16 sps:$4 sm:$0xff]   ;;  %v5032_v8 = vld [vmem:[%s5749_s20 + $0x20] ss:$16 sps:$4 sm:$0xff]  }
0x12e4   : > { %v4921_v17 = vunpack.i.h.bf16 %v4919_v1  ;;  %v4920_v6 = vunpack.i.l.bf16 %v4919_v1  ;;  %v5025_v1 = vld [vmem:[%s5749_s20 + $0x6c] ss:$16 sps:$4 sm:$0xff]  }
0x12e5   : > { %v5139_v57 = vpop.eup %5138  ;;  %4784 = vmatpush3.bf16.msra.mxu0 %v4989_v25 }
0x12e6   : > { %v2960_v60 = vmul.f32 %v5139_v57, %v5135_v62  ;;  %4785 = vmatprep.subr.bf16.mxu0 %v5407_v0  ;;  %v3128_v52 = vsel %vm3126_vm8, %v3125_v36, %v4921_v17  ;;  %v4925_v62 = vunpack.i.l.bf16 %v4924_v41  ;;  %v5034_v17 = vld [vmem:[%s5749_s20 + $0x24] ss:$16 sps:$4 sm:$0xff]   ;;  %v5038_v36 = vld [vmem:[%s5749_s20] ss:$16 sps:$4 sm:$0xff]  }
0x12e7   : > { %v3131_v10 = vsel %vm3129_vm9, %v3128_v52, %v4926_v48  ;;  %v5040_v41 = vld [vmem:[%s5749_s20 + $0x4] ss:$16 sps:$4 sm:$0xff]   ;;  %v5044_v52 = vld [vmem:[%s5751_s7 + $0x78] sm:$0xff]  }
0x12e8   : > { %v2962_v12 = vpack.c.bf16 %v2960_v60, %v2960_v60  ;;  %v5045_v48 = vld [vmem:[%s5751_s7 + $0xf8] sm:$0xff]  }
0x12e9   : > { %4786 = vmatpush3.bf16.msra.mxu0 %v4990_v14 }
0x12ea   : > { %4778 = vmatmul.mubr.msk.bf16.vlgmr.msra.gmra.mxu1 %vm1381_vm4, %v2962_v12  ;;  %4787 = vmatprep.subr.bf16.mxu0 %v5407_v0 }
0x12eb   : > { %3532 = vmatprep.mubr.bf16.mxu1 %v5409_v58 }
0x12ed   : > { %4788 = vmatpush3.bf16.msra.mxu0 %v4991_v15 }
0x12ee   : > { %4789 = vmatprep.subr.bf16.mxu0 %v5407_v0 }
0x12f1   : > { %4790 = vmatpush3.bf16.msra.mxu0 %v4992_v46 }
0x12f2   : > { %4791 = vmatprep.subr.bf16.mxu0 %v5407_v0 }
0x12f5   : > { %4792 = vmatpush3.bf16.msra.mxu0 %v4993_v16  ;;  %v4996_v16 = vld [vmem:[%s5749_s20 + $0xe0] ss:$16 sps:$4 sm:$0xff]  }
0x12f6   : > { %4793 = vmatprep.subr.bf16.mxu0 %v5407_v0 }
0x12f9   : > { %4794 = vmatpush3.bf16.msra.mxu0 %v4994_v18  ;;  %v4999_v18 = vld [vmem:[%s5749_s20 + $0xe8] ss:$16 sps:$4 sm:$0xff]  }
0x12fa   : > { %4795 = vmatprep.subr.bf16.mxu0 %v5407_v0  ;;  %v4905_v0 = vunpack.i.l.bf16 %v4904_v49  ;;  %v5010_v49 = vld [vmem:[%s5749_s20 + $0xa4] ss:$16 sps:$4 sm:$0xff]  }
0x12fc   : > { %v3118_v45 = vsel %vm3117_vm5, %v3115_v38, %v4905_v0  ;;  %v5016_v0 = vld [vmem:[%s5749_s20 + $0x84] ss:$16 sps:$4 sm:$0xff]   ;;  %v5023_v38 = vld [vmem:[%s5749_s20 + $0x68] ss:$16 sps:$4 sm:$0xff]  }
0x12fd   : > { %4796 = vmatpush3.bf16.msra.mxu0 %v4995_v27  ;;  %v3121_v51 = vsel %vm3120_vm6, %v3118_v45, %v4910_v63  ;;  %v5022_v63 = vld [vmem:[%s5749_s20 + $0x64] ss:$16 sps:$4 sm:$0xff]  }
0x12fe   : > { %v3124_v43 = vsel %vm3123_vm7, %v3121_v51, %v4915_v33  ;;  %v5028_v45 = vld [vmem:[%s5749_s20 + $0x44] ss:$16 sps:$4 sm:$0xff]   ;;  %v5026_v51 = vld [vmem:[%s5749_s20 + $0x40] ss:$16 sps:$4 sm:$0xff]   ;;  %v5035_v33 = vld [vmem:[%s5749_s20 + $0x28] ss:$16 sps:$4 sm:$0xff]  }
0x12ff   : > { %v3127_v47 = vsel %vm3126_vm8, %v3124_v43, %v4920_v6  ;;  %v5037_v6 = vld [vmem:[%s5749_s20 + $0x2c] ss:$16 sps:$4 sm:$0xff]  }
0x1300   : > { %v3130_v9 = vsel %vm3129_vm9, %v3127_v47, %v4925_v62  ;;  %v5043_v43 = vld [vmem:[%s5749_s20 + $0xc] ss:$16 sps:$4 sm:$0xff]   ;;  %v5041_v47 = vld [vmem:[%s5749_s20 + $0x8] ss:$16 sps:$4 sm:$0xff]  }
0x13a0   : > { %v3005_v22 = vpop.f32.mrf.mxu0 }
0x13a2   : > { %v4773_v28 = vpop.f32.mrf.mxu0 }
0x13a4   : > { %v3008_v29 = vpop.f32.mrf.mxu0 }
0x13a6   : > { %v4774_v31 = vpop.f32.mrf.mxu0 }
0x13aa   : > { %v3053_v32 = vpop.f32.mrf.mxu1 }
0x13ab   : > { %v4927_v34 = vpack.i.bf16 %v3053_v32, %v3005_v22  ;;  %v5001_v22 = vld [vmem:[%s5749_s20 + $0xec] ss:$16 sps:$4 sm:$0xff]  }
0x13ac   : > { %v4779_v37 = vpop.f32.mrf.mxu1  ;;  %3543 = vmatprep.subr.bf16.mxu0 %v5001_v22  ;;  %v5049_v22 = vld [vmem:[%s5751_s7 + $0xf0] sm:$0xff]  }
0x13ad   : > { %4928 = vrot.lane.b32.xlu0 %v4927_v34, %s5410_s3  ;;  %v5004_v37 = vld [vmem:[%s5749_s20 + $0xc4] ss:$16 sps:$4 sm:$0xff]  }
0x13ae   : > { %v3056_v39 = vpop.f32.mrf.mxu1 }
0x13af   : > { %v5007_v39 = vld [vmem:[%s5749_s20 + $0xcc] ss:$16 sps:$4 sm:$0xff]  }
0x13b0   : > { %v4780_v40 = vpop.f32.mrf.mxu1 }
0x13b1   : > { %v5002_v40 = vld [vmem:[%s5749_s20 + $0xc0] ss:$16 sps:$4 sm:$0xff]  }
0x141f   : > { %v4929_v35 = vpop.permute.xlu0 %4928 }
0x1420   : > { %v4931_v5 = vunpack.i.h.bf16 %v4929_v35  ;;  %v4930_v7 = vunpack.i.l.bf16 %v4929_v35 }
0x1422   : > { %v3134_v11 = vsel %vm3132_vm10, %v3131_v10, %v4931_v5  ;;  %v3133_v50 = vsel %vm3132_vm10, %v3130_v9, %v4930_v7 }
0x1423   : > { %v3135_v13 = vpack.c.bf16 %v3134_v11, %v3133_v50  ;;  %v6301_v11 = vld [vmem:[%s5759_s21] sm:$0xf] }
0x1425   : > { %4798 = vmatmul.mubr.bf16.vlgmr.msra.gmra.mxu0 %v3135_v13 }
0x1426   : > { %3575 = vmatprep.mubr.bf16.mxu0 %v5409_v58  ;;  %v4998_v58 = vld [vmem:[%s5749_s20 + $0xe4] ss:$16 sps:$4 sm:$0xff]   ;;  %3544 = vmatpush1.bf16.msra.mxu0 %v4999_v18  ;;  %s4231_s20 = sshll.u32 %s5778_s22, 2 }
0x1427   : > { %3500 = vmatprep.subr.bf16.mxu1 %v4998_v58  ;;  %3545 = vmatprep.subr.bf16.mxu0 %v5007_v39  ;;  %v5048_v18 = vld [vmem:[%s5751_s7 + $0x70] sm:$0xff]   ;;  %v5059_v39 = vld [vmem:[%s5751_s7 + $0xa0] sm:$0xff]   ;;  %s712_s17 = scalar_lea.vmem %s6453_s19, %s4231_s20 }
0x1428   : > { %3501 = vmatpush1.bf16.msra.mxu1 %v4996_v16  ;;  %v5047_v16 = vld [vmem:[%s5751_s7 + $0xb8] sm:$0xff]  }
0x1429   : > { %3502 = vmatprep.subr.bf16.mxu1 %v5004_v37  ;;  %v5058_v37 = vld [vmem:[%s5751_s7 + $0x20] sm:$0xff]  }
0x142a   : > { %3546 = vmatpush1.bf16.msra.mxu0 %v5005_v42  ;;  %v5061_v42 = vld [vmem:[%s5751_s7 + $0xd8] sm:$0xff]  }
0x142b   : > { %3547 = vmatprep.subr.bf16.mxu0 %v5013_v53  ;;  %v5063_v53 = vld [vmem:[%s5751_s7 + $0x98] sm:$0xff]  }
0x142c   : > { %3503 = vmatpush1.bf16.msra.mxu1 %v5002_v40  ;;  %v5060_v40 = vld [vmem:[%s5751_s7 + $0x58] sm:$0xff]  }
0x142d   : > { %3504 = vmatprep.subr.bf16.mxu1 %v5010_v49  ;;  %v5062_v49 = vld [vmem:[%s5751_s7 + $0x18] sm:$0xff]  }
0x142e   : > { %3548 = vmatpush1.bf16.msra.mxu0 %v5011_v55  ;;  %v5065_v55 = vld [vmem:[%s5751_s7 + $0xd0] sm:$0xff]  }
0x142f   : > { %3549 = vmatprep.subr.bf16.mxu0 %v5019_v61  ;;  %v5069_v61 = vld [vmem:[%s5751_s7 + $0xc8] sm:$0xff]  }
0x1430   : > { %3505 = vmatpush1.bf16.msra.mxu1 %v5008_v54  ;;  %v5064_v54 = vld [vmem:[%s5751_s7 + $0x50] sm:$0xff]  }
0x1431   : > { %3506 = vmatprep.subr.bf16.mxu1 %v5016_v0  ;;  %v5067_v0 = vld [vmem:[%s5751_s7 + $0x90] sm:$0xff]  }
0x1432   : > { %3550 = vmatpush1.bf16.msra.mxu0 %v5017_v59  ;;  %v5068_v59 = vld [vmem:[%s5751_s7 + $0x48] sm:$0xff]  }
0x1433   : > { %3551 = vmatprep.subr.bf16.mxu0 %v5025_v1  ;;  %v5071_v1 = vld [vmem:[%s5751_s7 + $0x88] sm:$0xff]  }
0x1434   : > { %3507 = vmatpush1.bf16.msra.mxu1 %v5014_v56  ;;  %v5066_v56 = vld [vmem:[%s5751_s7 + $0x10] sm:$0xff]  }
0x1435   : > { %3508 = vmatprep.subr.bf16.mxu1 %v5022_v63  ;;  %v5070_v63 = vld [vmem:[%s5751_s7 + $0x8] sm:$0xff]  }
0x1436   : > { %3552 = vmatpush1.bf16.msra.mxu0 %v5023_v38  ;;  %v5073_v38 = vld [vmem:[%s5751_s7 + $0xc0] sm:$0xff]  }
0x1437   : > { %3553 = vmatprep.subr.bf16.mxu0 %v5031_v3  ;;  %v5075_v3 = vld [vmem:[%s5751_s7 + $0x80] sm:$0xff]  }
0x1438   : > { %3509 = vmatpush1.bf16.msra.mxu1 %v5020_v2  ;;  %v5072_v2 = vld [vmem:[%s5751_s7 + $0x40] sm:$0xff]  }
0x1439   : > { %3510 = vmatprep.subr.bf16.mxu1 %v5028_v45  ;;  %v5074_v45 = vld [vmem:[%s5751_s7] sm:$0xff]  }
0x143a   : > { %3554 = vmatpush1.bf16.msra.mxu0 %v5029_v4  ;;  %v3318_v4 = vld [vmem:[%s712_s17] sm:$0xf] }
0x143b   : > { %3555 = vmatprep.subr.bf16.mxu0 %v5037_v6 }
0x143c   : > { %3511 = vmatpush1.bf16.msra.mxu1 %v5026_v51  ;;  %v3334_v51 = vsub.s32 3, %v5863_v23 }
0x143d   : > { %3512 = vmatprep.subr.bf16.mxu1 %v5034_v17 }
0x143e   : > { %3556 = vmatpush1.bf16.msra.mxu0 %v5035_v33  ;;  %v3335_v33 = vrot.slane %v3318_v4, %v3334_v51 }
0x143f   : > { %3557 = vmatprep.subr.bf16.mxu0 %v5043_v43  ;;  %v3331_v43 = vrot.slane %v3318_v4, %v5872_v26 }
0x1440   : > { %3513 = vmatpush1.bf16.msra.mxu1 %v5032_v8  ;;  %v3327_v8 = vrot.slane %v3318_v4, %v5869_v24 }
0x1441   : > { %3514 = vmatprep.subr.bf16.mxu1 %v5040_v41  ;;  %v3323_v41 = vrot.slane %v3318_v4, %v5876_v30 }
0x1442   : > { %3558 = vmatpush1.bf16.msra.mxu0 %v5041_v47 }
0x1443   : > { %4527 = vmatprep.subr.bf16.mxu0 %v5045_v48 }
0x1444   : > { %3515 = vmatpush1.bf16.msra.mxu1 %v5038_v36 }
0x1445   : > { %4505 = vmatprep.subr.bf16.mxu1 %v5044_v52 }
0x14e5   : > { %v3241_v57 = vpop.f32.mrf.mxu0 }
0x14e6   : > { %v3242_v60 = vadd.f32 %v4313_v44, %v3241_v57 }
0x14e7   : > { %v4799_v12 = vpop.f32.mrf.mxu0 }
0x14e8   : > { %v3248_v21 = vadd.f32 %v3242_v60, %v5852_v19 }
0x14e9   : > { %v3244_v25 = vpop.f32.mrf.mxu0 }
0x14ea   : > { %v3245_v14 = vadd.f32 %v4313_v44, %v3244_v25  ;;  %3250 = vadd.xlane.f32.xlu1 %v3248_v21  ;;  %v3276_v44 = vrot.slane %v6301_v11, %v5876_v30 }
0x14eb   : > { %v4800_v15 = vpop.f32.mrf.mxu0 }
0x14ec   : > { %v3249_v46 = vadd.f32 %v3245_v14, %v5854_v20 }
0x14ee   : > { %3252 = vadd.xlane.f32.xlu0 %v3249_v46 }
0x1573   : > { %v3251_v19 = vpop.xlane.xlu1 %3250 }
0x1574   : > { %v3255_v27 = vmul.f32 0.0078125, %v3251_v19  ;;  %v5050_v19 = vld [vmem:[%s5751_s7 + $0x30] sm:$0xff]  }
0x1576   : > { %v6262_v28 = vsub.f32 %v3248_v21, %v3255_v27  ;;  %v3282_v21 = vrot.slane %v6301_v11, %v5869_v24  ;;  %v5051_v27 = vld [vmem:[%s5751_s7 + $0xb0] sm:$0xff]  }
0x1577   : > { %v3253_v29 = vpop.xlane.xlu0 %3252 }
0x1578   : > { %v3256_v20 = vmul.f32 0.0078125, %v3253_v29  ;;  %v3259_v31 = vmul.f32 %v6262_v28, %v6262_v28  ;;  %v5053_v29 = vld [vmem:[%s5751_s7 + $0xe8] sm:$0xff]  }
0x157a   : > { %v6266_v32 = vsub.f32 %v3249_v46, %v3256_v20  ;;  %3261 = vadd.xlane.f32.xlu0 %v3259_v31  ;;  %v5046_v46 = vld [vmem:[%s5751_s7 + $0x38] sm:$0xff]   ;;  %v5054_v20 = vld [vmem:[%s5751_s7 + $0x28] sm:$0xff]  }
0x157b   : > { %v5055_v31 = vld [vmem:[%s5751_s7 + $0xa8] sm:$0xff]  }
0x157c   : > { %v3260_v34 = vmul.f32 %v6266_v32, %v6266_v32 }
0x157e   : > { %3263 = vadd.xlane.f32.xlu0 %v3260_v34  ;;  %v5057_v34 = vld [vmem:[%s5751_s7 + $0xe0] sm:$0xff]  }
0x1603   : > { %v3262_v62 = vpop.xlane.xlu0 %3261 }
0x1604   : > { %v3265_v35 = vmul.f32 0.0078125, %v3262_v62 }
0x1606   : > { %v3267_v5 = vadd.f32 1e-05, %v3265_v35 }
0x1607   : > { %v3264_v7 = vpop.xlane.xlu0 %3263 }
0x1608   : > { %5140 = vrsqrt.f32 %v3267_v5  ;;  %v3266_v9 = vmul.f32 0.0078125, %v3264_v7 }
0x160a   : > { %v3268_v10 = vadd.f32 1e-05, %v3266_v9 }
0x160c   : > { %5142 = vrsqrt.f32 %v3268_v10 }
0x1615   : > { %v5141_v50 = vpop.eup %5140 }
0x1616   : > { %v3271_v13 = vmul.f32 %v5141_v50, %v6262_v28  ;;  %v5052_v28 = vld [vmem:[%s5751_s7 + $0x68] sm:$0xff]  }
0x1618   : > { %v3277_v12 = vmul.f32 %v3276_v44, %v3271_v13 }
0x1619   : > { %v5143_v57 = vpop.eup %5142 }
0x161a   : > { %v3272_v60 = vmul.f32 %v5143_v57, %v6266_v32  ;;  %v6309_v14 = vadd.f32 %v3282_v21, %v3277_v12  ;;  %v5056_v32 = vld [vmem:[%s5751_s7 + $0x60] sm:$0xff]  }
0x161c   : > { %v3278_v25 = vmul.f32 %v3276_v44, %v3272_v60 }
0x161e   : > { %v6311_v15 = vadd.f32 %v3282_v21, %v3278_v25 }
0x1620   : > { %v3285_v58 = vpack.c.bf16 %v6311_v15, %v6309_v14 }
0x1622   : > { %3533 = vmatmul.mubr.bf16.vlgmr.msra.gmra.mxu1 %v3285_v58  ;;  %3576 = vmatmul.mubr.bf16.vlgmr.msra.gmra.mxu0 %v3285_v58 }
0x1623   : > { %4506 = vmatpush3.bf16.msra.mxu1 %v5046_v46  ;;  %4528 = vmatpush3.bf16.msra.mxu0 %v5047_v16 }
0x1624   : > { %4507 = vmatprep.subr.bf16.mxu1 %v5048_v18  ;;  %4529 = vmatprep.subr.bf16.mxu0 %v5049_v22 }
0x1627   : > { %4508 = vmatpush3.bf16.msra.mxu1 %v5050_v19  ;;  %4530 = vmatpush3.bf16.msra.mxu0 %v5051_v27 }
0x1628   : > { %4509 = vmatprep.subr.bf16.mxu1 %v5052_v28  ;;  %4531 = vmatprep.subr.bf16.mxu0 %v5053_v29 }
0x162b   : > { %4510 = vmatpush3.bf16.msra.mxu1 %v5054_v20  ;;  %4532 = vmatpush3.bf16.msra.mxu0 %v5055_v31  ;;  %v4354_v31 = vld [vmem:[%s609_s9] ss:$0 sm:$0xff]  ;;  %s6454_s9 = sld [smem:[#allocation31_spill]] }
0x162c   : > { %4511 = vmatprep.subr.bf16.mxu1 %v5056_v32  ;;  %4533 = vmatprep.subr.bf16.mxu0 %v5057_v34 }
0x162f   : > { %4512 = vmatpush3.bf16.msra.mxu1 %v5058_v37  ;;  %4534 = vmatpush3.bf16.msra.mxu0 %v5059_v39 }
0x1630   : > { %4513 = vmatprep.subr.bf16.mxu1 %v5060_v40  ;;  %4535 = vmatprep.subr.bf16.mxu0 %v5061_v42 }
0x1633   : > { %4514 = vmatpush3.bf16.msra.mxu1 %v5062_v49  ;;  %4536 = vmatpush3.bf16.msra.mxu0 %v5063_v53 }
0x1634   : > { %4515 = vmatprep.subr.bf16.mxu1 %v5064_v54  ;;  %4537 = vmatprep.subr.bf16.mxu0 %v5065_v55 }
0x1637   : > { %4516 = vmatpush3.bf16.msra.mxu1 %v5066_v56  ;;  %4538 = vmatpush3.bf16.msra.mxu0 %v5067_v0 }
0x1638   : > { %4517 = vmatprep.subr.bf16.mxu1 %v5068_v59  ;;  %4539 = vmatprep.subr.bf16.mxu0 %v5069_v61 }
0x163b   : > { %4518 = vmatpush3.bf16.msra.mxu1 %v5070_v63  ;;  %4540 = vmatpush3.bf16.msra.mxu0 %v5071_v1 }
0x163c   : > { %4519 = vmatprep.subr.bf16.mxu1 %v5072_v2  ;;  %4541 = vmatprep.subr.bf16.mxu0 %v5073_v38 }
0x163f   : > { %4520 = vmatpush3.bf16.msra.mxu1 %v5074_v45  ;;  %4542 = vmatpush3.bf16.msra.mxu0 %v5075_v3 }
0x16e2   : > { %v3534_v17 = vpop.f32.mrf.mxu1  ;;  %v3577_v6 = vpop.f32.mrf.mxu0 }
0x16e3   : > { %v3535_v9 = vadd.f32 %v3534_v17, %v3323_v41  ;;  %v3578_v10 = vadd.f32 %v3577_v6, %v3331_v43 }
0x16e4   : > { %v3536_v36 = vpop.f32.mrf.mxu1  ;;  %v3579_v47 = vpop.f32.mrf.mxu0 }
0x16e5   : > { %v3537_v62 = vadd.f32 %v3536_v36, %v3327_v8  ;;  %v3580_v35 = vadd.f32 %v3579_v47, %v3335_v33  ;;  %v3586_v58 = vmax.f32 %v3535_v9, 0.0  ;;  %v3588_v18 = vmax.f32 %v3578_v10, 0.0 }
0x16e6   : > { %v3538_v52 = vpop.f32.mrf.mxu1  ;;  %v3581_v48 = vpop.f32.mrf.mxu0 }
0x16e7   : > { %v3539_v5 = vadd.f32 %v3538_v52, %v3323_v41  ;;  %v3582_v7 = vadd.f32 %v3581_v48, %v3331_v43  ;;  %v3587_v21 = vmax.f32 %v3537_v62, 0.0  ;;  %v3589_v25 = vmax.f32 %v3580_v35, 0.0 }
0x16e8   : > { %v3540_v50 = vpop.f32.mrf.mxu1  ;;  %v3583_v13 = vpop.f32.mrf.mxu0  ;;  %v3976_v62 = vrot.slane %v6301_v11, %v3334_v51 }
0x16e9   : > { %v3541_v44 = vadd.f32 %v3540_v50, %v3327_v8  ;;  %v3584_v57 = vadd.f32 %v3583_v13, %v3335_v33  ;;  %v3590_v60 = vmax.f32 %v3539_v5, 0.0  ;;  %v3592_v12 = vmax.f32 %v3582_v7, 0.0 }
0x16eb   : > { %v3591_v46 = vmax.f32 %v3541_v44, 0.0  ;;  %v3593_v16 = vmax.f32 %v3584_v57, 0.0  ;;  %v3594_v27 = vpack.c.bf16 %v3590_v60, %v3586_v58  ;;  %v3596_v28 = vpack.c.bf16 %v3592_v12, %v3588_v18  ;;  %v3981_v18 = vld [vmem:[#allocation13] sm:$0x3] }
0x16ed   : > { %v3595_v22 = vpack.c.bf16 %v3591_v46, %v3587_v21  ;;  %v3597_v19 = vpack.c.bf16 %v3593_v16, %v3589_v25 }
0x16ef   : > { %3893 = vmatprep.mubr.bf16.mxu1 %v3595_v22  ;;  %3934 = vmatprep.mubr.bf16.mxu0 %v3597_v19  ;;  %v4007_v22 = vrot.slane %v3981_v18, %v5876_v30 }
0x16f0   : > { %3894 = vmatmul.mubr.bf16.vlgmr.msra.gmra.mxu1 %v3594_v27  ;;  %3935 = vmatmul.mubr.bf16.vlgmr.msra.gmra.mxu0 %v3596_v28  ;;  %v4013_v27 = vrot.slane %v3981_v18, %v5869_v24 }
0x17b0   : > { %v4521_v29 = vpop.f32.mrf.mxu1  ;;  %v4543_v20 = vpop.f32.mrf.mxu0 }
0x17b2   : > { %v4522_v32 = vpop.f32.mrf.mxu1  ;;  %v4544_v34 = vpop.f32.mrf.mxu0 }
0x17b3   : > { %v4523_v37 = vadd.f32 %v4522_v32, %v4521_v29  ;;  %v4545_v49 = vadd.f32 %v4544_v34, %v4543_v20 }
0x17b4   : > { %v4524_v39 = vpop.f32.mrf.mxu1  ;;  %v4546_v40 = vpop.f32.mrf.mxu0 }
0x17b5   : > { %v3896_v42 = vadd.f32 %v4523_v37, %v4354_v31 }
0x17b6   : > { %v4525_v53 = vpop.f32.mrf.mxu1  ;;  %v4547_v54 = vpop.f32.mrf.mxu0 }
0x17b7   : > { %v3937_v55 = vadd.f32 %v4545_v49, %v3896_v42  ;;  %v4526_v56 = vadd.f32 %v4525_v53, %v4524_v39  ;;  %v4548_v59 = vadd.f32 %v4547_v54, %v4546_v40 }
0x17b9   : > { %v3899_v0 = vadd.f32 %v4526_v56, %v4354_v31  ;;  %v3943_v61 = vadd.f32 %v3937_v55, %v6309_v14 }
0x17bb   : > { %v3940_v63 = vadd.f32 %v4548_v59, %v3899_v0  ;;  %3945 = vadd.xlane.f32.xlu1 %v3943_v61 }
0x17bd   : > { %v3944_v1 = vadd.f32 %v3940_v63, %v6311_v15  ;;  %v3970_v15 = vrot.slane %v6301_v11, %v5872_v26 }
0x17bf   : > { %3947 = vadd.xlane.f32.xlu0 %v3944_v1 }
0x1844   : > { %v3946_v2 = vpop.xlane.xlu1 %3945 }
0x1845   : > { %v3949_v38 = vmul.f32 0.0078125, %v3946_v2 }
0x1847   : > { %v3951_v45 = vsub.f32 %v3943_v61, %v3949_v38 }
0x1848   : > { %v3948_v3 = vpop.xlane.xlu0 %3947 }
0x1849   : > { %v3950_v4 = vmul.f32 0.0078125, %v3948_v3  ;;  %v3953_v17 = vmul.f32 %v3951_v45, %v3951_v45 }
0x184b   : > { %v3952_v6 = vsub.f32 %v3944_v1, %v3950_v4  ;;  %3955 = vadd.xlane.f32.xlu1 %v3953_v17 }
0x184d   : > { %v3954_v8 = vmul.f32 %v3952_v6, %v3952_v6 }
0x184f   : > { %3957 = vadd.xlane.f32.xlu0 %v3954_v8 }
0x18d4   : > { %v3956_v33 = vpop.xlane.xlu1 %3955 }
0x18d5   : > { %v3959_v41 = vmul.f32 0.0078125, %v3956_v33 }
0x18d7   : > { %v3961_v43 = vadd.f32 1e-05, %v3959_v41 }
0x18d8   : > { %v3958_v36 = vpop.xlane.xlu0 %3957 }
0x18d9   : > { %5144 = vrsqrt.f32 %v3961_v43  ;;  %v3960_v14 = vmul.f32 0.0078125, %v3958_v36 }
0x18db   : > { %v3962_v47 = vadd.f32 1e-05, %v3960_v14 }
0x18dd   : > { %5146 = vrsqrt.f32 %v3962_v47 }
0x18e6   : > { %v5145_v52 = vpop.eup %5144 }
0x18e7   : > { %v3965_v48 = vmul.f32 %v5145_v52, %v3951_v45 }
0x18e9   : > { %v3971_v35 = vmul.f32 %v3970_v15, %v3965_v48 }
0x18ea   : > { %v5147_v5 = vpop.eup %5146 }
0x18eb   : > { %v3977_v7 = vadd.f32 %v3976_v62, %v3971_v35  ;;  %v3966_v9 = vmul.f32 %v5147_v5, %v3952_v6 }
0x18ed   : > { %3982 = vadd.xlane.f32.xlu1 %v3977_v7  ;;  %3979 = vst [vmem:[#allocation2] sm:$0xff] %v3977_v7  ;;  %v3972_v10 = vmul.f32 %v3970_v15, %v3966_v9 }
0x18ef   : > { %v3978_v50 = vadd.f32 %v3976_v62, %v3972_v10 }
0x18f1   : > { %3984 = vadd.xlane.f32.xlu0 %v3978_v50  ;;  %3980 = vst [vmem:[#allocation2 + $0x8] sm:$0xff] %v3978_v50 }
0x1976   : > { %v3983_v13 = vpop.xlane.xlu1 %3982 }
0x1977   : > { %v3986_v44 = vmul.f32 0.0078125, %v3983_v13 }
0x1979   : > { %v3988_v57 = vsub.f32 %v3977_v7, %v3986_v44 }
0x197a   : > { %v3985_v26 = vpop.xlane.xlu0 %3984 }
0x197b   : > { %v3987_v60 = vmul.f32 0.0078125, %v3985_v26  ;;  %v3990_v12 = vmul.f32 %v3988_v57, %v3988_v57 }
0x197d   : > { %v3989_v21 = vsub.f32 %v3978_v50, %v3987_v60  ;;  %3992 = vadd.xlane.f32.xlu1 %v3990_v12 }
0x197f   : > { %v3991_v23 = vmul.f32 %v3989_v21, %v3989_v21 }
0x1981   : > { %3994 = vadd.xlane.f32.xlu0 %v3991_v23 }
0x1a06   : > { %v3993_v11 = vpop.xlane.xlu1 %3992 }
0x1a07   : > { %v3996_v51 = vmul.f32 0.0078125, %v3993_v11 }
0x1a09   : > { %v3998_v25 = vadd.f32 1e-05, %v3996_v51 }
0x1a0a   : > { %v3995_v46 = vpop.xlane.xlu0 %3994 }
0x1a0b   : > { %5148 = vrsqrt.f32 %v3998_v25  ;;  %v3997_v16 = vmul.f32 0.0078125, %v3995_v46 }
0x1a0d   : > { %v3999_v58 = vadd.f32 1e-05, %v3997_v16 }
0x1a0f   : > { %5150 = vrsqrt.f32 %v3999_v58 }
0x1a18   : > { %v5149_v19 = vpop.eup %5148 }
0x1a19   : > { %v4002_v28 = vmul.f32 %v5149_v19, %v3988_v57 }
0x1a1b   : > { %v4008_v29 = vmul.f32 %v4007_v22, %v4002_v28 }
0x1a1c   : > { %v5151_v20 = vpop.eup %5150 }
0x1a1d   : > { %v4014_v31 = vadd.f32 %v4013_v27, %v4008_v29  ;;  %v4003_v32 = vmul.f32 %v5151_v20, %v3989_v21 }
0x1a1f   : > { %4016 = vst [vmem:[%s6454_s9] sm:$0xff] %v4014_v31  ;;  %v4009_v34 = vmul.f32 %v4007_v22, %v4003_v32 }
0x1a21   : > { %v4015_v37 = vadd.f32 %v4013_v27, %v4009_v34 }
0x1a23   : > { %4017 = vst [vmem:[%s6454_s9 + $0x8] sm:$0xff] %v4015_v37 }
0x1a24 PF: > { %s6455_s16 = sld [smem:[#allocation20_spill]]  ;;  %s6458_s29 = smov %s5386_s30 }
0x1a25   : > { %s6456_s25 = sld [smem:[#allocation19_spill]] }
0x1a26   : > { %s6457_s15 = sld [smem:[#allocation21_spill]] }
0x1a2a   : > { %p31_p11 = scmp.ge.s32.totalorder %s6455_s16, 5  }
0x1a2b   : > { %s6459_s30 = smov %s6456_s25 }
0x1a2c   :  { %33 = sbr.rel (!%p31_p11) target bundleno = 19 (0x13), region = 181 }
0x1a31   :  { %4029 = vsyncpa [#allocation4], 1 }
0x1a32   :  { %4031 = vsyncpa [#allocation4 + $0x1], 1 }
0x1a33   :  { %4032 = vsyncpa [#allocation6], 1 }
0x1a34   :  { %4034 = vsyncpa [#allocation6 + $0x1], 1 }
0x1a35   :  { %4035 = vsyncpa [#allocation9], 1 }
0x1a36   :  { %4037 = vsyncpa [#allocation9 + $0x1], 1 }
0x1a37   :  { %4038 = vsyncpa [#allocation12], 1 }
0x1a38   :  { %4040 = vsyncpa [#allocation12 + $0x1], 1 }

// kernel: _lambda_.3
= control target key start
LH: loop header
LB: loop body
LE: loop exit
PB: predicated region body
PF: predicated region fallthrough
CT: control target
= control target key end

     0   :  { %s7267_s27 = smov 0   ;;  %s8339_s0 = inlined_call_operand.vmem [shape: f32[8,128], index: 0, kind: input, shape index: {}]   ;;  %s8340_s1 = inlined_call_operand.vmem [shape: f32[16,128], index: 1, kind: input, shape index: {}]   ;;  %s8341_s2 = inlined_call_operand.vmem [shape: bf16[2,128,384], index: 2, kind: input, shape index: {}]   ;;  %s8342_s3 = inlined_call_operand.vmem [shape: f32[2,1,384], index: 3, kind: input, shape index: {}]   ;;  %s8343_s4 = inlined_call_operand.vmem [shape: bf16[2,128,128], index: 4, kind: input, shape index: {}]   ;;  %s8344_s5 = inlined_call_operand.vmem [shape: f32[2,1,128], index: 5, kind: input, shape index: {}]   ;;  %s8345_s6 = inlined_call_operand.vmem [shape: bf16[2,128,128], index: 6, kind: input, shape index: {}]   ;;  %s8346_s7 = inlined_call_operand.vmem [shape: f32[2,1,128], index: 7, kind: input, shape index: {}]   ;;  %s8347_s8 = inlined_call_operand.vmem [shape: bf16[2,128,256], index: 8, kind: input, shape index: {}]   ;;  %s8348_s9 = inlined_call_operand.vmem [shape: f32[2,1,256], index: 9, kind: input, shape index: {}]   ;;  %s8349_s10 = inlined_call_operand.vmem [shape: bf16[2,128,128], index: 10, kind: input, shape index: {}]   ;;  %s8350_s11 = inlined_call_operand.vmem [shape: f32[2,1,128], index: 11, kind: input, shape index: {}]   ;;  %s8351_s12 = inlined_call_operand.vmem [shape: bf16[2,128,256], index: 12, kind: input, shape index: {}]   ;;  %s8352_s13 = inlined_call_operand.vmem [shape: f32[2,1,256], index: 13, kind: input, shape index: {}]   ;;  %s8353_s14 = inlined_call_operand.vmem [shape: bf16[2,256,128], index: 14, kind: input, shape index: {}]   ;;  %s8354_s15 = inlined_call_operand.vmem [shape: f32[2,1,128], index: 15, kind: input, shape index: {}]   ;;  %s8355_s16 = inlined_call_operand.vmem [shape: f32[2,6,128], index: 16, kind: input, shape index: {}]   ;;  %s8356_s17 = inlined_call_operand.vmem [shape: f32[2,128], index: 17, kind: input, shape index: {}]   ;;  %s8357_s18 = inlined_call_operand.vmem [shape: f32[16,128], index: 18, kind: output, shape index: {}]  }
   0x1   :  { %8371 = sst [smem:[#allocation3_spill]] %s8339_s0 }
   0x2   :  { %8372 = sst [smem:[#allocation4_spill]] %s8340_s1 }
   0x3   :  { %8373 = sst [smem:[#allocation5_spill]] %s8341_s2 }
   0x4 LB: > { %s7273_s28 = sadd.s32 4294967295, %s7160_s27   ;;  %p5960_p0 = scmp.ge.s32.totalorder %s7160_s27, 1  ;;  %s7160_s27 = sphi %s7267_s27, %s28_s27  }
   0x5   : > { %p635_p1 = scmp.lt.s32.totalorder %s7160_s27, 3 }
   0x7   : > { %p636_p2 = pnand %p5960_p0, %p635_p1 }
   0x8   : > { %p742_p3 = scmp.lt.s32.totalorder (!%p636_p2), %s7273_s28, 1  ;;  %s8374_s1 = sld [smem:[#allocation5_spill]] (!%p636_p2) }
   0x9   : > { %639 = sbr.rel (%p636_p2) target bundleno = 11453 (0x2cbd), region = 92  ;;  %p807_p4 = scmp.eq.s32.totalorder (!%p636_p2), %s7273_s28, 0 }
   0xa   : > { %s8375_s23 = sld [smem:[#allocation3_spill]] (!%p636_p2)  ;;  %s8369_s0 = smov (!%p636_p2), 96  }
   0xb   : > { %s8367_s19 = smov (!%p636_p2), 80   ;;  %s8359_s22 = smov (!%p636_p2), 16  }
   0xe   : > { %v7162_v0 = vmov 0   ;;  %s7280_s29 = scalar_select %p742_p3, %s7273_s28, 1  ;;  %v7163_v1 = vmov 0.0   ;;  %v808_v23 = vld [vmem:[#allocation2] sm:$0xff]  ;;  %v809_v24 = vld [vmem:[#allocation2 + $0x8] sm:$0xff]  ;;  %vm7164_vm1 = vmmov 0   ;;  %v851_v33 = vlaneseq }
   0xf   : > { %1026 = vmatprep.mubr.bf16.mxu0 %v7162_v0  ;;  %6335 = vmatprep.subr.bf16.mxu1 %v7163_v1  ;;  %s810_s21 = scalar_select %p807_p4, 1, 0  ;;  %vm1086_vm2 = vcmask 130048   ;;  %vm1212_vm3 = vcmask 1043456   ;;  %vm1184_vm5 = vcmask 64512   ;;  %vm2934_vm6 = vcmask 261120  }
  0x10   : > { %s6799_s30 = smul.u32 192, %s7280_s29  ;;  %v806_v21 = vld [vmem:[%s8375_s23] sm:$0xff]  ;;  %6351 = vmatprep.mubr.msk.bf16.mxu1 %vm7164_vm1, %v7163_v1  ;;  %v7339_v34 = vshrl.u32 %v851_v33, 7  ;;  %s7740_s2 = sshll.u32 %s7280_s29, 6  ;;  %vm2937_vm7 = vcmask 392192   ;;  %vm2940_vm8 = vcmask 523264  }
  0x11   : > { %v811_v18 = vstv %s810_s21  ;;  %s6800_s24 = smul.u32 3, %s7280_s29  ;;  %s8361_s21 = smov 32   ;;  %vm2943_vm9 = vcmask 654336   ;;  %vm2946_vm10 = vcmask 785408   ;;  %vm2949_vm11 = vcmask 916480  }
  0x12   : > { %s7287_s20 = scalar_lea.vmem %s8374_s1, %s6799_s30  ;;  %vm812_vm0 = vcmp.eq.s32.totalorder %v811_v18, 1  ;;  %v7345_v35 = vsub.s32 1, %v7339_v34  ;;  %v7349_v39 = vsub.s32 0, %v7339_v34  ;;  %v861_v54 = vsub.s32 2, %v7339_v34  ;;  %s7165_s30 = smov 112  }
  0x13   : > { %v6889_v2 = vld [vmem:[%s7287_s20 + $0xac] ss:$12 sps:$4 sm:$0xff]   ;;  %v6891_v3 = vld [vmem:[%s7287_s20 + $0xa8] ss:$12 sps:$4 sm:$0xff]   ;;  %v6894_v5 = vld [vmem:[%s7287_s20 + $0x90] ss:$12 sps:$4 sm:$0xff]   ;;  %v7318_v27 = vsel %vm812_vm0, %v806_v21, %v808_v23  ;;  %v7320_v28 = vsel %vm812_vm0, %v806_v21, %v809_v24  ;;  %s750_s28 = scalar_lea.vmem %s8342_s3, %s6800_s24  ;;  %s755_s25 = scalar_lea.vmem %s8343_s4, %s7740_s2 }
  0x14   : > { %994 = vmatprep.subr.bf16.mxu0 %v6889_v2  ;;  %v6892_v4 = vld [vmem:[%s7287_s20 + $0x94] ss:$12 sps:$4 sm:$0xff]   ;;  %v6895_v6 = vld [vmem:[%s7287_s20 + $0x7c] ss:$12 sps:$4 sm:$0xff]   ;;  %v6897_v7 = vld [vmem:[%s7287_s20 + $0x78] ss:$12 sps:$4 sm:$0xff]   ;;  %v816_v30 = vpack.c.bf16 %v7320_v28, %v7318_v27  ;;  %s758_s23 = scalar_lea.vmem %s8344_s5, %s7280_s29  ;;  %s7784_s26 = scalar_lea.vmem %s8345_s6, %s7740_s2 }
  0x15   : > { %995 = vmatpush1.bf16.msra.mxu0 %v6891_v3  ;;  %v6898_v8 = vld [vmem:[%s7287_s20 + $0x64] ss:$12 sps:$4 sm:$0xff]   ;;  %v6900_v9 = vld [vmem:[%s7287_s20 + $0x60] ss:$12 sps:$4 sm:$0xff]   ;;  %v6903_v13 = vld [vmem:[%s7287_s20 + $0x48] ss:$12 sps:$4 sm:$0xff]  }
  0x16   : > { %996 = vmatprep.subr.bf16.mxu0 %v6892_v4  ;;  %v6913_v10 = vld [vmem:[%s7287_s20 + $0xb0] ss:$12 sps:$4 sm:$0xff]   ;;  %v6901_v11 = vld [vmem:[%s7287_s20 + $0x4c] ss:$12 sps:$4 sm:$0xff]   ;;  %v6904_v14 = vld [vmem:[%s7287_s20 + $0x34] ss:$12 sps:$4 sm:$0xff]  }
  0x17   : > { %6336 = vmatpush3.bf16.msra.mxu1 %v6913_v10  ;;  %v6914_v12 = vld [vmem:[%s7287_s20 + $0x98] ss:$12 sps:$4 sm:$0xff]   ;;  %v6915_v15 = vld [vmem:[%s7287_s20 + $0x80] ss:$12 sps:$4 sm:$0xff]   ;;  %v6906_v16 = vld [vmem:[%s7287_s20 + $0x30] ss:$12 sps:$4 sm:$0xff]  }
  0x18   : > { %6337 = vmatprep.subr.bf16.mxu1 %v7163_v1  ;;  %v6907_v17 = vld [vmem:[%s7287_s20 + $0x1c] ss:$12 sps:$4 sm:$0xff]   ;;  %v6909_v20 = vld [vmem:[%s7287_s20 + $0x18] ss:$12 sps:$4 sm:$0xff]   ;;  %v6912_v26 = vld [vmem:[%s7287_s20] ss:$12 sps:$4 sm:$0xff]  }
  0x19   : > { %997 = vmatpush1.bf16.msra.mxu0 %v6894_v5  ;;  %v6916_v19 = vld [vmem:[%s7287_s20 + $0x68] ss:$12 sps:$4 sm:$0xff]   ;;  %v6910_v22 = vld [vmem:[%s7287_s20 + $0x4] ss:$12 sps:$4 sm:$0xff]   ;;  %v6919_v31 = vld [vmem:[%s7287_s20 + $0x20] ss:$12 sps:$4 sm:$0xff]  }
  0x1a   : > { %998 = vmatprep.subr.bf16.mxu0 %v6895_v6  ;;  %v6917_v25 = vld [vmem:[%s7287_s20 + $0x50] ss:$12 sps:$4 sm:$0xff]   ;;  %v6918_v29 = vld [vmem:[%s7287_s20 + $0x38] ss:$12 sps:$4 sm:$0xff]   ;;  %v6920_v32 = vld [vmem:[%s7287_s20 + $0x8] ss:$12 sps:$4 sm:$0xff]  }
  0x1b   : > { %6338 = vmatpush3.bf16.msra.mxu1 %v6914_v12  ;;  %v849_v36 = vld [vmem:[%s750_s28] sm:$0x7]  ;;  %v7382_v2 = vand.u32 127, %v851_v33  ;;  %s8365_s1 = smov 64   ;;  %s8363_s20 = smov 48  }
  0x1c   : > { %6339 = vmatprep.subr.bf16.mxu1 %v7163_v1  ;;  %v858_v37 = vrot.slane %v849_v36, %v7345_v35  ;;  %v854_v43 = vrot.slane %v849_v36, %v7349_v39  ;;  %v862_v55 = vrot.slane %v849_v36, %v861_v54  ;;  %s7778_s24 = sshll.u32 %s7280_s29, 7 }
  0x1d   : > { %999 = vmatpush1.bf16.msra.mxu0 %v6897_v7  ;;  %vm1181_vm4 = vcmp.lt.s32.totalorder %v7382_v2, 5  ;;  %s7806_s28 = scalar_lea.vmem %s8353_s14, %s7778_s24 }
  0x1e   : > { %1000 = vmatprep.subr.bf16.mxu0 %v6898_v8 }
  0x1f   : > { %6340 = vmatpush3.bf16.msra.mxu1 %v6915_v15 }
  0x20   : > { %6341 = vmatprep.subr.bf16.mxu1 %v7163_v1 }
  0x21   : > { %1001 = vmatpush1.bf16.msra.mxu0 %v6900_v9 }
  0x22   : > { %1002 = vmatprep.subr.bf16.mxu0 %v6901_v11 }
  0x23   : > { %6342 = vmatpush3.bf16.msra.mxu1 %v6916_v19 }
  0x24   : > { %6343 = vmatprep.subr.bf16.mxu1 %v7163_v1 }
  0x25   : > { %1003 = vmatpush1.bf16.msra.mxu0 %v6903_v13 }
  0x26   : > { %1004 = vmatprep.subr.bf16.mxu0 %v6904_v14 }
  0x27   : > { %6344 = vmatpush3.bf16.msra.mxu1 %v6917_v25 }
  0x28   : > { %6345 = vmatprep.subr.bf16.mxu1 %v7163_v1 }
  0x29   : > { %1005 = vmatpush1.bf16.msra.mxu0 %v6906_v16 }
  0x2a   : > { %1006 = vmatprep.subr.bf16.mxu0 %v6907_v17 }
  0x2b   : > { %6346 = vmatpush3.bf16.msra.mxu1 %v6918_v29 }
  0x2c   : > { %6347 = vmatprep.subr.bf16.mxu1 %v7163_v1 }
  0x2d   : > { %1007 = vmatpush1.bf16.msra.mxu0 %v6909_v20 }
  0x2e   : > { %1008 = vmatprep.subr.bf16.mxu0 %v6910_v22 }
  0x2f   : > { %6348 = vmatpush3.bf16.msra.mxu1 %v6919_v31 }
  0x30   : > { %6349 = vmatprep.subr.bf16.mxu1 %v7163_v1 }
  0x31   : > { %1009 = vmatpush1.bf16.msra.mxu0 %v6912_v26 }
  0x32   : > { %6379 = vmatprep.subr.bf16.mxu0 %v7163_v1 }
  0x33   : > { %6350 = vmatpush3.bf16.msra.mxu1 %v6920_v32 }
  0x34   : > { %1027 = vmatmul.mubr.bf16.vlgmr.msra.gmra.mxu0 %v816_v30  ;;  %6355 = vmatprep.subr.bf16.mxu1 %v7163_v1 }
  0x35   : > { %6381 = vmatprep.mubr.msk.bf16.mxu0 %vm7164_vm1, %v7163_v1 }
  0x36   : > { %6352 = vmatmul.mubr.bf16.vlgmr.msra.gmra.mxu1 %v816_v30 }
  0x37   : > { %6357 = vmatprep.mubr.msk.bf16.mxu1 %vm7164_vm1, %v7163_v1 }
  0xf4   : > { %v1028_v38 = vpop.f32.mrf.mxu0 }
  0xf5   : > { %v1029_v48 = vadd.f32 %v1028_v38, %v854_v43 }
  0xf6   : > { %v1030_v40 = vpop.f32.mrf.mxu0  ;;  %v1071_v56 = vpop.f32.mrf.mxu1 }
  0xf7   : > { %v1031_v41 = vadd.f32 %v1030_v40, %v858_v37  ;;  %v7359_v50 = vpack.c.bf16 %v1029_v48, %v1029_v48  ;;  %v1072_v57 = vadd.f32 %v1071_v56, %v862_v55 }
  0xf8   : > { %v1032_v42 = vpop.f32.mrf.mxu0  ;;  %v6353_v58 = vpop.f32.mrf.mxu1 }
  0xf9   : > { %v7352_v44 = vpack.c.bf16 %v1031_v41, %v1031_v41  ;;  %v1033_v52 = vadd.f32 %v1032_v42, %v854_v43  ;;  %v7377_v59 = vpack.c.bf16 %v1072_v57, %v1072_v57 }
  0xfa   : > { %v1034_v45 = vpop.f32.mrf.mxu0  ;;  %v1074_v60 = vpop.f32.mrf.mxu1 }
  0xfb   : > { %v1035_v46 = vadd.f32 %v1034_v45, %v858_v37  ;;  %v1091_v47 = vsel %vm1086_vm2, %v7352_v44, 0  ;;  %v7368_v53 = vpack.c.bf16 %v1033_v52, %v1033_v52  ;;  %v1075_v61 = vadd.f32 %v1074_v60, %v862_v55 }
  0xfc   : > { %6356 = vmatpush3.bf16.xpose.msra.mxu1 %v1091_v47  ;;  %v1214_v62 = vsel %vm1212_vm3, %v7377_v59, 0  ;;  %v6354_v63 = vpop.f32.mrf.mxu1 }
  0xfd   : > { %6361 = vmatprep.subr.bf16.mxu1 %v7163_v1  ;;  %v7357_v49 = vpack.c.bf16 %v1035_v46, %v1035_v46  ;;  %v7403_v33 = vpack.c.bf16 %v1075_v61, %v1075_v61 }
  0xff   : > { %v1137_v51 = vsel %vm1086_vm2, %v7357_v49, 0  ;;  %v1260_v38 = vsel %vm1212_vm3, %v7403_v33, 0 }
 0x103   : > { %6358 = vmatmul.mubr.msk.bf16.vlgmr.msra.gmra.mxu1 %vm1086_vm2, %v7359_v50 }
 0x104   : > { %6362 = vmatpush3.bf16.xpose.msra.mxu1 %v1137_v51  ;;  %6363 = vmatprep.mubr.msk.bf16.mxu1 %vm7164_vm1, %v7163_v1 }
 0x105   : > { %6367 = vmatprep.subr.bf16.mxu1 %v7163_v1 }
 0x10b   : > { %6364 = vmatmul.mubr.msk.bf16.vlgmr.msra.gmra.mxu1 %vm1086_vm2, %v7368_v53 }
 0x10c   : > { %6369 = vmatprep.mubr.msk.bf16.mxu1 %vm7164_vm1, %v7163_v1  ;;  %6368 = vmatpush3.bf16.msra.mxu1 %v1214_v62 }
 0x10d   : > { %6373 = vmatprep.subr.bf16.mxu1 %v7163_v1 }
 0x1c3   : > { %v1127_v3 = vpop.f32.mrf.mxu1 }
 0x1c4   : > { %v1179_v4 = vmul.f32 0.25, %v1127_v3 }
 0x1c5   : > { %v6359_v5 = vpop.f32.mrf.mxu1 }
 0x1c6   : > { %v1182_v6 = vsel %vm1181_vm4, %v1179_v4, -1e+30 }
 0x1c7   : > { %v1130_v7 = vpop.f32.mrf.mxu1  ;;  %v1185_v8 = vsel %vm1184_vm5, %v1182_v6, -inf }
 0x1c8   : > { %1186 = vmax.xlane.f32.xlu0 %v1185_v8 }
 0x1c9   : > { %v6360_v9 = vpop.f32.mrf.mxu1 }
 0x1cb   : > { %v1173_v10 = vpop.f32.mrf.mxu1 }
 0x1cc   : > { %v1180_v11 = vmul.f32 0.25, %v1173_v10 }
 0x1cd   : > { %v6365_v12 = vpop.f32.mrf.mxu1 }
 0x1ce   : > { %v1183_v13 = vsel %vm1181_vm4, %v1180_v11, -1e+30 }
 0x1cf   : > { %v1176_v14 = vpop.f32.mrf.mxu1  ;;  %v1188_v15 = vsel %vm1184_vm5, %v1183_v13, -inf }
 0x1d0   : > { %1189 = vmax.xlane.f32.xlu0 %v1188_v15 }
 0x1d1   : > { %v6366_v16 = vpop.f32.mrf.mxu1 }
 0x1e6   : > { %1306 = vrot.lane.b32.xlu0 %v7352_v44, %s7165_s30 }
 0x251   : > { %v1187_v17 = vpop.xlane.xlu0 %1186 }
 0x252   : > { %v1191_v18 = vsub.f32 %v1182_v6, %v1187_v17 }
 0x254   : > { %v1193_v19 = vmul.f32 1.442695, %v1191_v18 }
 0x256   : > { %7009 = vpow2.f32 %v1193_v19 }
 0x259   : > { %v1190_v20 = vpop.xlane.xlu0 %1189 }
 0x25a   : > { %v1192_v25 = vsub.f32 %v1183_v13, %v1190_v20 }
 0x25c   : > { %v1195_v26 = vmul.f32 1.442695, %v1192_v25 }
 0x25d   : > { %v1307_v21 = vpop.permute.xlu0 %1306 }
 0x25e   : > { %v1312_v22 = vsel %vm1086_vm2, %v1307_v21, 0  ;;  %7011 = vpow2.f32 %v1195_v26 }
 0x25f   : > { %6380 = vmatpush3.bf16.xpose.msra.mxu0 %v1312_v22 }
 0x260   : > { %6391 = vmatprep.subr.bf16.mxu0 %v7163_v1 }
 0x263   : > { %v7010_v23 = vpop.eup %7009 }
 0x264   : > { %v1197_v24 = vsel %vm1184_vm5, %v7010_v23, 0.0 }
 0x265   : > { %1198 = vadd.xlane.f32.xlu1 %v1197_v24 }
 0x26b   : > { %v7012_v29 = vpop.eup %7011 }
 0x26c   : > { %v1200_v30 = vsel %vm1184_vm5, %v7012_v29, 0.0 }
 0x276   : > { %1358 = vrot.lane.b32.xlu1 %v7357_v49, %s7165_s30 }
 0x29a   : > { %1201 = vadd.xlane.f32.xlu1 %v1200_v30 }
 0x2ab   : > { %1303 = vrot.lane.b32.xlu1 %v7359_v50, %s7165_s30 }
 0x2af   : > { %1355 = vrot.lane.b32.xlu1 %v7368_v53, %s7165_s30 }
 0x2ee   : > { %v1199_v31 = vpop.xlane.xlu1 %1198 }
 0x2ef   : > { %7013 = vrcp.f32 %v1199_v31 }
 0x2f2   : > { %v1359_v40 = vpop.permute.xlu1 %1358 }
 0x2f3   : > { %v1364_v47 = vsel %vm1086_vm2, %v1359_v40, 0 }
 0x2fc   : > { %v7014_v32 = vpop.eup %7013 }
 0x2fd   : > { %v1204_v36 = vmul.f32 %v7014_v32, %v7010_v23 }
 0x2ff   : > { %v1207_v37 = vpack.c.bf16 %v1204_v36, %v1204_v36 }
 0x301   : > { %6370 = vmatmul.mubr.msk.bf16.vlgmr.msra.gmra.mxu1 %vm1184_vm5, %v1207_v37 }
 0x302   : > { %6374 = vmatpush3.bf16.msra.mxu1 %v1260_v38  ;;  %6375 = vmatprep.mubr.msk.bf16.mxu1 %vm7164_vm1, %v7163_v1 }
 0x303   : > { %6385 = vmatprep.subr.bf16.mxu1 %v7163_v1 }
 0x323   : > { %v1202_v41 = vpop.xlane.xlu1 %1201 }
 0x324   : > { %7015 = vrcp.f32 %v1202_v41 }
 0x327   : > { %v1304_v42 = vpop.permute.xlu1 %1303 }
 0x328   : > { %6382 = vmatmul.mubr.msk.bf16.vlgmr.msra.gmra.mxu0 %vm1086_vm2, %v1304_v42 }
 0x329   : > { %6393 = vmatprep.mubr.msk.bf16.mxu0 %vm7164_vm1, %v7163_v1 }
 0x32b   : > { %v1356_v48 = vpop.permute.xlu1 %1355 }
 0x331   : > { %v7016_v43 = vpop.eup %7015 }
 0x332   : > { %v1206_v45 = vmul.f32 %v7016_v43, %v7012_v29 }
 0x334   : > { %v1208_v46 = vpack.c.bf16 %v1206_v45, %v1206_v45 }
 0x336   : > { %6376 = vmatmul.mubr.msk.bf16.vlgmr.msra.gmra.mxu1 %vm1184_vm5, %v1208_v46 }
 0x337   : > { %6386 = vmatpush3.bf16.xpose.msra.mxu1 %v1364_v47  ;;  %6387 = vmatprep.mubr.msk.bf16.mxu1 %vm7164_vm1, %v7163_v1 }
 0x338   : > { %6397 = vmatprep.subr.bf16.mxu1 %v7163_v1 }
 0x33e   : > { %6388 = vmatmul.mubr.msk.bf16.vlgmr.msra.gmra.mxu1 %vm1086_vm2, %v1356_v48 }
 0x33f   : > { %6399 = vmatprep.mubr.msk.bf16.mxu1 %vm7164_vm1, %v7163_v1 }
 0x3c1   : > { %v7422_v51 = vpop.f32.mrf.mxu1 }
 0x3c3   : > { %v6371_v52 = vpop.f32.mrf.mxu1 }
 0x3c5   : > { %v1253_v55 = vpop.f32.mrf.mxu1 }
 0x3c7   : > { %v6372_v56 = vpop.f32.mrf.mxu1 }
 0x3e8   : > { %v1348_v57 = vpop.f32.mrf.mxu0 }
 0x3e9   : > { %v1406_v58 = vmul.f32 0.25, %v1348_v57 }
 0x3ea   : > { %v6383_v60 = vpop.f32.mrf.mxu0 }
 0x3eb   : > { %v1408_v61 = vsel %vm1181_vm4, %v1406_v58, -1e+30 }
 0x3ec   : > { %v1351_v62 = vpop.f32.mrf.mxu0  ;;  %v1410_v63 = vsel %vm1184_vm5, %v1408_v61, -inf }
 0x3ed   : > { %1411 = vmax.xlane.f32.xlu0 %v1410_v63 }
 0x3ee   : > { %v6384_v3 = vpop.f32.mrf.mxu0 }
 0x3f6   : > { %v7427_v4 = vpop.f32.mrf.mxu1 }
 0x3f8   : > { %v6377_v5 = vpop.f32.mrf.mxu1 }
 0x3fa   : > { %v1299_v6 = vpop.f32.mrf.mxu1 }
 0x3fc   : > { %v6378_v7 = vpop.f32.mrf.mxu1 }
 0x3fe   : > { %v1400_v8 = vpop.f32.mrf.mxu1 }
 0x3ff   : > { %v1407_v9 = vmul.f32 0.25, %v1400_v8 }
 0x400   : > { %v6389_v10 = vpop.f32.mrf.mxu1 }
 0x401   : > { %v1409_v11 = vsel %vm1181_vm4, %v1407_v9, -1e+30 }
 0x402   : > { %v1403_v12 = vpop.f32.mrf.mxu1  ;;  %v1413_v13 = vsel %vm1184_vm5, %v1409_v11, -inf }
 0x403   : > { %1414 = vmax.xlane.f32.xlu1 %v1413_v13 }
 0x404   : > { %v6390_v14 = vpop.f32.mrf.mxu1 }
 0x414   : > { %1484 = vrot.lane.b32.xlu1 %v7403_v33, %s7165_s30 }
 0x418   : > { %1534 = vrot.lane.b32.xlu1 %v7352_v44, %s8369_s0 }
 0x41c   : > { %1584 = vrot.lane.b32.xlu1 %v7357_v49, %s8369_s0 }
 0x420   : > { %1582 = vrot.lane.b32.xlu1 %v7368_v53, %s8369_s0 }
 0x476   : > { %v1412_v15 = vpop.xlane.xlu0 %1411 }
 0x477   : > { %v1416_v16 = vsub.f32 %v1408_v61, %v1412_v15 }
 0x479   : > { %v1418_v17 = vmul.f32 1.442695, %v1416_v16 }
 0x47b   : > { %7017 = vpow2.f32 %v1418_v17 }
 0x488   : > { %v7018_v18 = vpop.eup %7017 }
 0x489   : > { %v1422_v19 = vsel %vm1184_vm5, %v7018_v18, 0.0 }
 0x48a   : > { %1423 = vadd.xlane.f32.xlu0 %v1422_v19 }
 0x48c   : > { %v1415_v20 = vpop.xlane.xlu1 %1414 }
 0x48d   : > { %v1417_v21 = vsub.f32 %v1409_v11, %v1415_v20 }
 0x48f   : > { %v1420_v22 = vmul.f32 1.442695, %v1417_v21 }
 0x490   : > { %v1485_v23 = vpop.permute.xlu1 %1484 }
 0x491   : > { %7019 = vpow2.f32 %v1420_v22  ;;  %v1490_v24 = vsel %vm1212_vm3, %v1485_v23, 0 }
 0x492   : > { %6398 = vmatpush3.bf16.msra.mxu1 %v1490_v24 }
 0x493   : > { %6409 = vmatprep.subr.bf16.mxu1 %v7163_v1 }
 0x494   : > { %v1535_v38 = vpop.permute.xlu1 %1534 }
 0x495   : > { %v1540_v41 = vsel %vm1086_vm2, %v1535_v38, 0 }
 0x498   : > { %v1585_v45 = vpop.permute.xlu1 %1584 }
 0x499   : > { %v1590_v48 = vsel %vm1086_vm2, %v1585_v45, 0 }
 0x49c   : > { %v1583_v52 = vpop.permute.xlu1 %1582 }
 0x49e   : > { %v7020_v25 = vpop.eup %7019 }
 0x49f   : > { %v1425_v26 = vsel %vm1184_vm5, %v7020_v25, 0.0 }
 0x4a0   : > { %1426 = vadd.xlane.f32.xlu0 %v1425_v26 }
 0x4b6   : > { %1435 = vrot.lane.b32.xlu0 %v7377_v59, %s7165_s30 }
 0x4ba   : > { %1532 = vrot.lane.b32.xlu0 %v7359_v50, %s8369_s0 }
 0x513   : > { %v1424_v29 = vpop.xlane.xlu0 %1423 }
 0x514   : > { %7021 = vrcp.f32 %v1424_v29 }
 0x521   : > { %v7022_v30 = vpop.eup %7021 }
 0x522   : > { %v1429_v32 = vmul.f32 %v7022_v30, %v7018_v18 }
 0x524   : > { %v1432_v40 = vpack.c.bf16 %v1429_v32, %v1429_v32 }
 0x529   : > { %v1427_v31 = vpop.xlane.xlu0 %1426 }
 0x52a   : > { %7023 = vrcp.f32 %v1427_v31 }
 0x52d   : > { %v1436_v36 = vpop.permute.xlu0 %1435 }
 0x52e   : > { %v1441_v37 = vsel %vm1212_vm3, %v1436_v36, 0 }
 0x52f   : > { %6392 = vmatpush3.bf16.msra.mxu0 %v1441_v37 }
 0x530   : > { %6403 = vmatprep.subr.bf16.mxu0 %v7163_v1 }
 0x531   : > { %v1533_v46 = vpop.permute.xlu0 %1532 }
 0x532   : > { %6394 = vmatmul.mubr.msk.bf16.vlgmr.msra.gmra.mxu0 %vm1184_vm5, %v1432_v40 }
 0x533   : > { %6404 = vmatpush3.bf16.xpose.msra.mxu0 %v1540_v41  ;;  %6405 = vmatprep.mubr.msk.bf16.mxu0 %vm7164_vm1, %v7163_v1 }
 0x534   : > { %6415 = vmatprep.subr.bf16.mxu0 %v7163_v1 }
 0x537   : > { %v7024_v42 = vpop.eup %7023 }
 0x538   : > { %v1431_v43 = vmul.f32 %v7024_v42, %v7020_v25 }
 0x53a   : > { %6406 = vmatmul.mubr.msk.bf16.vlgmr.msra.gmra.mxu0 %vm1086_vm2, %v1533_v46  ;;  %v1433_v47 = vpack.c.bf16 %v1431_v43, %v1431_v43 }
 0x53b   : > { %6417 = vmatprep.mubr.msk.bf16.mxu0 %vm7164_vm1, %v7163_v1 }
 0x53c   : > { %6400 = vmatmul.mubr.msk.bf16.vlgmr.msra.gmra.mxu1 %vm1184_vm5, %v1433_v47 }
 0x53d   : > { %6410 = vmatpush3.bf16.xpose.msra.mxu1 %v1590_v48  ;;  %6411 = vmatprep.mubr.msk.bf16.mxu1 %vm7164_vm1, %v7163_v1 }
 0x53e   : > { %6421 = vmatprep.subr.bf16.mxu1 %v7163_v1 }
 0x544   : > { %6412 = vmatmul.mubr.msk.bf16.vlgmr.msra.gmra.mxu1 %vm1086_vm2, %v1583_v52 }
 0x545   : > { %6423 = vmatprep.mubr.msk.bf16.mxu1 %vm7164_vm1, %v7163_v1 }
 0x5f2   : > { %v7466_v55 = vpop.f32.mrf.mxu0 }
 0x5f4   : > { %v6395_v56 = vpop.f32.mrf.mxu0 }
 0x5f6   : > { %v1480_v57 = vpop.f32.mrf.mxu0 }
 0x5f8   : > { %v6396_v58 = vpop.f32.mrf.mxu0 }
 0x5fa   : > { %v1576_v60 = vpop.f32.mrf.mxu0 }
 0x5fb   : > { %v1632_v61 = vmul.f32 0.25, %v1576_v60 }
 0x5fc   : > { %v7468_v62 = vpop.f32.mrf.mxu1  ;;  %v6407_v63 = vpop.f32.mrf.mxu0 }
 0x5fd   : > { %v6819_v3 = vpack.i.bf16 %v7468_v62, %v7466_v55  ;;  %v1634_v5 = vsel %vm1181_vm4, %v1632_v61, -1e+30 }
 0x5fe   : > { %v6401_v6 = vpop.f32.mrf.mxu1  ;;  %v1579_v7 = vpop.f32.mrf.mxu0  ;;  %v1636_v8 = vsel %vm1184_vm5, %v1634_v5, -inf }
 0x5ff   : > { %1637 = vmax.xlane.f32.xlu0 %v1636_v8 }
 0x600   : > { %v1529_v9 = vpop.f32.mrf.mxu1  ;;  %v6408_v10 = vpop.f32.mrf.mxu0 }
 0x602   : > { %v6402_v11 = vpop.f32.mrf.mxu1 }
 0x604   : > { %v1626_v12 = vpop.f32.mrf.mxu1 }
 0x605   : > { %v1633_v13 = vmul.f32 0.25, %v1626_v12 }
 0x606   : > { %v6413_v14 = vpop.f32.mrf.mxu1 }
 0x607   : > { %v1635_v15 = vsel %vm1181_vm4, %v1633_v13, -1e+30 }
 0x608   : > { %v1629_v16 = vpop.f32.mrf.mxu1  ;;  %v1639_v17 = vsel %vm1184_vm5, %v1635_v15, -inf }
 0x609   : > { %1640 = vmax.xlane.f32.xlu1 %v1639_v17 }
 0x60a   : > { %v6414_v18 = vpop.f32.mrf.mxu1 }
 0x61a   : > { %1708 = vrot.lane.b32.xlu1 %v7403_v33, %s8369_s0 }
 0x61e   : > { %1758 = vrot.lane.b32.xlu1 %v7352_v44, %s8367_s19 }
 0x622   : > { %1808 = vrot.lane.b32.xlu1 %v7357_v49, %s8367_s19 }
 0x626   : > { %1806 = vrot.lane.b32.xlu1 %v7368_v53, %s8367_s19 }
 0x688   : > { %v1638_v19 = vpop.xlane.xlu0 %1637 }
 0x689   : > { %v1642_v20 = vsub.f32 %v1634_v5, %v1638_v19 }
 0x68b   : > { %v1644_v21 = vmul.f32 1.442695, %v1642_v20 }
 0x68d   : > { %7025 = vpow2.f32 %v1644_v21 }
 0x692   : > { %v1641_v22 = vpop.xlane.xlu1 %1640 }
 0x693   : > { %v1643_v23 = vsub.f32 %v1635_v15, %v1641_v22 }
 0x695   : > { %v1646_v24 = vmul.f32 1.442695, %v1643_v23 }
 0x696   : > { %v1709_v25 = vpop.permute.xlu1 %1708 }
 0x697   : > { %7027 = vpow2.f32 %v1646_v24  ;;  %v1714_v26 = vsel %vm1212_vm3, %v1709_v25, 0 }
 0x698   : > { %6422 = vmatpush3.bf16.msra.mxu1 %v1714_v26 }
 0x699   : > { %6433 = vmatprep.subr.bf16.mxu1 %v7163_v1 }
 0x69a   : > { %v7026_v29 = vpop.eup %7025  ;;  %v1759_v43 = vpop.permute.xlu1 %1758 }
 0x69b   : > { %v1648_v30 = vsel %vm1184_vm5, %v7026_v29, 0.0  ;;  %v1764_v46 = vsel %vm1086_vm2, %v1759_v43, 0 }
 0x69c   : > { %1649 = vadd.xlane.f32.xlu0 %v1648_v30 }
 0x69e   : > { %v1809_v52 = vpop.permute.xlu1 %1808 }
 0x69f   : > { %v1814_v58 = vsel %vm1086_vm2, %v1809_v52, 0 }
 0x6a2   : > { %v1807_v60 = vpop.permute.xlu1 %1806 }
 0x6a4   : > { %v7028_v31 = vpop.eup %7027 }
 0x6a5   : > { %v1651_v32 = vsel %vm1184_vm5, %v7028_v31, 0.0 }
 0x6a6   : > { %1652 = vadd.xlane.f32.xlu0 %v1651_v32 }
 0x6bc   : > { %1660 = vrot.lane.b32.xlu0 %v7377_v59, %s8369_s0 }
 0x6c0   : > { %1756 = vrot.lane.b32.xlu0 %v7359_v50, %s8367_s19 }
 0x725   : > { %v1650_v36 = vpop.xlane.xlu0 %1649 }
 0x726   : > { %7029 = vrcp.f32 %v1650_v36 }
 0x72f   : > { %v1653_v37 = vpop.xlane.xlu0 %1652 }
 0x730   : > { %7031 = vrcp.f32 %v1653_v37 }
 0x733   : > { %v7030_v38 = vpop.eup %7029  ;;  %v1661_v40 = vpop.permute.xlu0 %1660 }
 0x734   : > { %v1666_v41 = vsel %vm1212_vm3, %v1661_v40, 0  ;;  %v1655_v42 = vmul.f32 %v7030_v38, %v7026_v29 }
 0x735   : > { %6416 = vmatpush3.bf16.msra.mxu0 %v1666_v41 }
 0x736   : > { %v1658_v45 = vpack.c.bf16 %v1655_v42, %v1655_v42  ;;  %6427 = vmatprep.subr.bf16.mxu0 %v7163_v1 }
 0x737   : > { %v1757_v56 = vpop.permute.xlu0 %1756 }
 0x738   : > { %6418 = vmatmul.mubr.msk.bf16.vlgmr.msra.gmra.mxu0 %vm1184_vm5, %v1658_v45 }
 0x739   : > { %6428 = vmatpush3.bf16.xpose.msra.mxu0 %v1764_v46  ;;  %6429 = vmatprep.mubr.msk.bf16.mxu0 %vm7164_vm1, %v7163_v1 }
 0x73a   : > { %6439 = vmatprep.subr.bf16.mxu0 %v7163_v1 }
 0x73d   : > { %v7032_v47 = vpop.eup %7031 }
 0x73e   : > { %v1657_v48 = vmul.f32 %v7032_v47, %v7028_v31 }
 0x740   : > { %6430 = vmatmul.mubr.msk.bf16.vlgmr.msra.gmra.mxu0 %vm1086_vm2, %v1757_v56  ;;  %v1659_v57 = vpack.c.bf16 %v1657_v48, %v1657_v48 }
 0x741   : > { %6441 = vmatprep.mubr.msk.bf16.mxu0 %vm7164_vm1, %v7163_v1 }
 0x742   : > { %6424 = vmatmul.mubr.msk.bf16.vlgmr.msra.gmra.mxu1 %vm1184_vm5, %v1659_v57 }
 0x743   : > { %6434 = vmatpush3.bf16.xpose.msra.mxu1 %v1814_v58  ;;  %6435 = vmatprep.mubr.msk.bf16.mxu1 %vm7164_vm1, %v7163_v1 }
 0x744   : > { %6445 = vmatprep.subr.bf16.mxu1 %v7163_v1 }
 0x74a   : > { %6436 = vmatmul.mubr.msk.bf16.vlgmr.msra.gmra.mxu1 %vm1086_vm2, %v1807_v60 }
 0x74b   : > { %6447 = vmatprep.mubr.msk.bf16.mxu1 %vm7164_vm1, %v7163_v1 }
 0x7f8   : > { %v7512_v61 = vpop.f32.mrf.mxu0 }
 0x7fa   : > { %v6419_v63 = vpop.f32.mrf.mxu0 }
 0x7fc   : > { %v1705_v5 = vpop.f32.mrf.mxu0 }
 0x7fe   : > { %v6420_v6 = vpop.f32.mrf.mxu0 }
 0x800   : > { %v1800_v7 = vpop.f32.mrf.mxu0 }
 0x801   : > { %v1856_v8 = vmul.f32 0.25, %v1800_v7 }
 0x802   : > { %v7514_v9 = vpop.f32.mrf.mxu1  ;;  %v6431_v10 = vpop.f32.mrf.mxu0 }
 0x803   : > { %v6824_v11 = vpack.i.bf16 %v7514_v9, %v7512_v61  ;;  %v1858_v12 = vsel %vm1181_vm4, %v1856_v8, -1e+30 }
 0x804   : > { %v6425_v13 = vpop.f32.mrf.mxu1  ;;  %v1803_v14 = vpop.f32.mrf.mxu0  ;;  %v1860_v15 = vsel %vm1184_vm5, %v1858_v12, -inf }
 0x805   : > { %1861 = vmax.xlane.f32.xlu0 %v1860_v15 }
 0x806   : > { %v1753_v16 = vpop.f32.mrf.mxu1  ;;  %v6432_v17 = vpop.f32.mrf.mxu0 }
 0x808   : > { %v6426_v18 = vpop.f32.mrf.mxu1 }
 0x80a   : > { %v1850_v19 = vpop.f32.mrf.mxu1 }
 0x80b   : > { %v1857_v20 = vmul.f32 0.25, %v1850_v19 }
 0x80c   : > { %v6437_v21 = vpop.f32.mrf.mxu1 }
 0x80d   : > { %v1859_v22 = vsel %vm1181_vm4, %v1857_v20, -1e+30 }
 0x80e   : > { %v1853_v23 = vpop.f32.mrf.mxu1  ;;  %v1863_v24 = vsel %vm1184_vm5, %v1859_v22, -inf }
 0x80f   : > { %1864 = vmax.xlane.f32.xlu1 %v1863_v24 }
 0x810   : > { %v6438_v25 = vpop.f32.mrf.mxu1 }
 0x820   : > { %1932 = vrot.lane.b32.xlu1 %v7403_v33, %s8367_s19 }
 0x824   : > { %1982 = vrot.lane.b32.xlu1 %v7352_v44, %s8365_s1 }
 0x828   : > { %2032 = vrot.lane.b32.xlu1 %v7357_v49, %s8365_s1 }
 0x82c   : > { %2030 = vrot.lane.b32.xlu1 %v7368_v53, %s8365_s1 }
 0x88e   : > { %v1862_v26 = vpop.xlane.xlu0 %1861 }
 0x88f   : > { %v1866_v29 = vsub.f32 %v1858_v12, %v1862_v26 }
 0x891   : > { %v1868_v30 = vmul.f32 1.442695, %v1866_v29 }
 0x893   : > { %7033 = vpow2.f32 %v1868_v30 }
 0x898   : > { %v1865_v31 = vpop.xlane.xlu1 %1864 }
 0x899   : > { %v1867_v32 = vsub.f32 %v1859_v22, %v1865_v31 }
 0x89b   : > { %v1870_v36 = vmul.f32 1.442695, %v1867_v32 }
 0x89c   : > { %v1933_v37 = vpop.permute.xlu1 %1932 }
 0x89d   : > { %7035 = vpow2.f32 %v1870_v36  ;;  %v1938_v38 = vsel %vm1212_vm3, %v1933_v37, 0 }
 0x89e   : > { %6446 = vmatpush3.bf16.msra.mxu1 %v1938_v38 }
 0x89f   : > { %6457 = vmatprep.subr.bf16.mxu1 %v7163_v1 }
 0x8a0   : > { %v7034_v40 = vpop.eup %7033  ;;  %v1983_v57 = vpop.permute.xlu1 %1982 }
 0x8a1   : > { %v1872_v41 = vsel %vm1184_vm5, %v7034_v40, 0.0  ;;  %v1988_v60 = vsel %vm1086_vm2, %v1983_v57, 0 }
 0x8a2   : > { %1873 = vadd.xlane.f32.xlu0 %v1872_v41 }
 0x8a4   : > { %v2033_v6 = vpop.permute.xlu1 %2032 }
 0x8a5   : > { %v2038_v10 = vsel %vm1086_vm2, %v2033_v6, 0 }
 0x8a8   : > { %v2031_v12 = vpop.permute.xlu1 %2030 }
 0x8aa   : > { %v7036_v42 = vpop.eup %7035 }
 0x8ab   : > { %v1875_v43 = vsel %vm1184_vm5, %v7036_v42, 0.0 }
 0x8ac   : > { %1876 = vadd.xlane.f32.xlu0 %v1875_v43 }
 0x8c2   : > { %1884 = vrot.lane.b32.xlu0 %v7377_v59, %s8367_s19 }
 0x8c6   : > { %1980 = vrot.lane.b32.xlu0 %v7359_v50, %s8365_s1 }
 0x92b   : > { %v1874_v45 = vpop.xlane.xlu0 %1873 }
 0x92c   : > { %7037 = vrcp.f32 %v1874_v45 }
 0x935   : > { %v1877_v46 = vpop.xlane.xlu0 %1876 }
 0x936   : > { %7039 = vrcp.f32 %v1877_v46 }
 0x939   : > { %v7038_v47 = vpop.eup %7037  ;;  %v1885_v48 = vpop.permute.xlu0 %1884 }
 0x93a   : > { %v1890_v52 = vsel %vm1212_vm3, %v1885_v48, 0  ;;  %v1879_v56 = vmul.f32 %v7038_v47, %v7034_v40 }
 0x93b   : > { %6440 = vmatpush3.bf16.msra.mxu0 %v1890_v52 }
 0x93c   : > { %v1882_v58 = vpack.c.bf16 %v1879_v56, %v1879_v56  ;;  %6451 = vmatprep.subr.bf16.mxu0 %v7163_v1 }
 0x93d   : > { %v1981_v7 = vpop.permute.xlu0 %1980 }
 0x93e   : > { %6442 = vmatmul.mubr.msk.bf16.vlgmr.msra.gmra.mxu0 %vm1184_vm5, %v1882_v58 }
 0x93f   : > { %6452 = vmatpush3.bf16.xpose.msra.mxu0 %v1988_v60  ;;  %6453 = vmatprep.mubr.msk.bf16.mxu0 %vm7164_vm1, %v7163_v1 }
 0x940   : > { %6463 = vmatprep.subr.bf16.mxu0 %v7163_v1 }
 0x943   : > { %v7040_v63 = vpop.eup %7039 }
 0x944   : > { %v1881_v5 = vmul.f32 %v7040_v63, %v7036_v42 }
 0x946   : > { %6454 = vmatmul.mubr.msk.bf16.vlgmr.msra.gmra.mxu0 %vm1086_vm2, %v1981_v7  ;;  %v1883_v8 = vpack.c.bf16 %v1881_v5, %v1881_v5 }
 0x947   : > { %6465 = vmatprep.mubr.msk.bf16.mxu0 %vm7164_vm1, %v7163_v1 }
 0x948   : > { %6448 = vmatmul.mubr.msk.bf16.vlgmr.msra.gmra.mxu1 %vm1184_vm5, %v1883_v8 }
 0x949   : > { %6458 = vmatpush3.bf16.xpose.msra.mxu1 %v2038_v10  ;;  %6459 = vmatprep.mubr.msk.bf16.mxu1 %vm7164_vm1, %v7163_v1 }
 0x94a   : > { %6469 = vmatprep.subr.bf16.mxu1 %v7163_v1 }
 0x950   : > { %6460 = vmatmul.mubr.msk.bf16.vlgmr.msra.gmra.mxu1 %vm1086_vm2, %v2031_v12 }
 0x951   : > { %6471 = vmatprep.mubr.msk.bf16.mxu1 %vm7164_vm1, %v7163_v1 }
 0x9fe   : > { %v7558_v13 = vpop.f32.mrf.mxu0 }
 0xa00   : > { %v6443_v14 = vpop.f32.mrf.mxu0 }
 0xa02   : > { %v1929_v15 = vpop.f32.mrf.mxu0 }
 0xa04   : > { %v6444_v16 = vpop.f32.mrf.mxu0 }
 0xa06   : > { %v2024_v17 = vpop.f32.mrf.mxu0 }
 0xa07   : > { %v2080_v18 = vmul.f32 0.25, %v2024_v17 }
 0xa08   : > { %v7560_v19 = vpop.f32.mrf.mxu1  ;;  %v6455_v20 = vpop.f32.mrf.mxu0 }
 0xa09   : > { %v6829_v21 = vpack.i.bf16 %v7560_v19, %v7558_v13  ;;  %v2082_v22 = vsel %vm1181_vm4, %v2080_v18, -1e+30 }
 0xa0a   : > { %v6449_v23 = vpop.f32.mrf.mxu1  ;;  %v2027_v24 = vpop.f32.mrf.mxu0  ;;  %v2084_v25 = vsel %vm1184_vm5, %v2082_v22, -inf }
 0xa0b   : > { %2085 = vmax.xlane.f32.xlu0 %v2084_v25 }
 0xa0c   : > { %v1977_v26 = vpop.f32.mrf.mxu1  ;;  %v6456_v29 = vpop.f32.mrf.mxu0 }
 0xa0e   : > { %v6450_v30 = vpop.f32.mrf.mxu1 }
 0xa10   : > { %v2074_v31 = vpop.f32.mrf.mxu1 }
 0xa11   : > { %v2081_v32 = vmul.f32 0.25, %v2074_v31 }
 0xa12   : > { %v6461_v36 = vpop.f32.mrf.mxu1 }
 0xa13   : > { %v2083_v37 = vsel %vm1181_vm4, %v2081_v32, -1e+30 }
 0xa14   : > { %v2077_v38 = vpop.f32.mrf.mxu1  ;;  %v2087_v40 = vsel %vm1184_vm5, %v2083_v37, -inf }
 0xa15   : > { %2088 = vmax.xlane.f32.xlu1 %v2087_v40 }
 0xa16   : > { %v6462_v41 = vpop.f32.mrf.mxu1 }
 0xa26   : > { %2156 = vrot.lane.b32.xlu1 %v7403_v33, %s8365_s1 }
 0xa2a   : > { %2206 = vrot.lane.b32.xlu1 %v7352_v44, %s8363_s20 }
 0xa2e   : > { %2256 = vrot.lane.b32.xlu1 %v7357_v49, %s8363_s20 }
 0xa32   : > { %2254 = vrot.lane.b32.xlu1 %v7368_v53, %s8363_s20 }
 0xa94   : > { %v2086_v42 = vpop.xlane.xlu0 %2085 }
 0xa95   : > { %v2090_v43 = vsub.f32 %v2082_v22, %v2086_v42 }
 0xa97   : > { %v2092_v45 = vmul.f32 1.442695, %v2090_v43 }
 0xa99   : > { %7041 = vpow2.f32 %v2092_v45 }
 0xa9e   : > { %v2089_v46 = vpop.xlane.xlu1 %2088 }
 0xa9f   : > { %v2091_v47 = vsub.f32 %v2083_v37, %v2089_v46 }
 0xaa1   : > { %v2094_v48 = vmul.f32 1.442695, %v2091_v47 }
 0xaa2   : > { %v2157_v52 = vpop.permute.xlu1 %2156 }
 0xaa3   : > { %7043 = vpow2.f32 %v2094_v48  ;;  %v2162_v56 = vsel %vm1212_vm3, %v2157_v52, 0 }
 0xaa4   : > { %6470 = vmatpush3.bf16.msra.mxu1 %v2162_v56 }
 0xaa5   : > { %6481 = vmatprep.subr.bf16.mxu1 %v7163_v1 }
 0xaa6   : > { %v7042_v57 = vpop.eup %7041  ;;  %v2207_v14 = vpop.permute.xlu1 %2206 }
 0xaa7   : > { %v2096_v58 = vsel %vm1184_vm5, %v7042_v57, 0.0  ;;  %v2212_v16 = vsel %vm1086_vm2, %v2207_v14, 0 }
 0xaa8   : > { %2097 = vadd.xlane.f32.xlu0 %v2096_v58 }
 0xaaa   : > { %v2257_v20 = vpop.permute.xlu1 %2256 }
 0xaab   : > { %v2262_v24 = vsel %vm1086_vm2, %v2257_v20, 0 }
 0xaae   : > { %v2255_v25 = vpop.permute.xlu1 %2254 }
 0xab0   : > { %v7044_v60 = vpop.eup %7043 }
 0xab1   : > { %v2099_v63 = vsel %vm1184_vm5, %v7044_v60, 0.0 }
 0xab2   : > { %2100 = vadd.xlane.f32.xlu0 %v2099_v63 }
 0xac8   : > { %2108 = vrot.lane.b32.xlu0 %v7377_v59, %s8365_s1 }
 0xacc   : > { %2204 = vrot.lane.b32.xlu0 %v7359_v50, %s8363_s20 }
 0xb31   : > { %v2098_v5 = vpop.xlane.xlu0 %2097 }
 0xb32   : > { %7045 = vrcp.f32 %v2098_v5 }
 0xb3b   : > { %v2101_v6 = vpop.xlane.xlu0 %2100 }
 0xb3c   : > { %7047 = vrcp.f32 %v2101_v6 }
 0xb3f   : > { %v7046_v7 = vpop.eup %7045  ;;  %v2109_v8 = vpop.permute.xlu0 %2108 }
 0xb40   : > { %v2114_v10 = vsel %vm1212_vm3, %v2109_v8, 0  ;;  %v2103_v12 = vmul.f32 %v7046_v7, %v7042_v57 }
 0xb41   : > { %6464 = vmatpush3.bf16.msra.mxu0 %v2114_v10 }
 0xb42   : > { %v2106_v15 = vpack.c.bf16 %v2103_v12, %v2103_v12  ;;  %6475 = vmatprep.subr.bf16.mxu0 %v7163_v1 }
 0xb43   : > { %v2205_v22 = vpop.permute.xlu0 %2204 }
 0xb44   : > { %6466 = vmatmul.mubr.msk.bf16.vlgmr.msra.gmra.mxu0 %vm1184_vm5, %v2106_v15 }
 0xb45   : > { %6476 = vmatpush3.bf16.xpose.msra.mxu0 %v2212_v16  ;;  %6477 = vmatprep.mubr.msk.bf16.mxu0 %vm7164_vm1, %v7163_v1 }
 0xb46   : > { %6487 = vmatprep.subr.bf16.mxu0 %v7163_v1 }
 0xb49   : > { %v7048_v17 = vpop.eup %7047 }
 0xb4a   : > { %v2105_v18 = vmul.f32 %v7048_v17, %v7044_v60 }
 0xb4c   : > { %6478 = vmatmul.mubr.msk.bf16.vlgmr.msra.gmra.mxu0 %vm1086_vm2, %v2205_v22  ;;  %v2107_v23 = vpack.c.bf16 %v2105_v18, %v2105_v18 }
 0xb4d   : > { %6489 = vmatprep.mubr.msk.bf16.mxu0 %vm7164_vm1, %v7163_v1 }
 0xb4e   : > { %6472 = vmatmul.mubr.msk.bf16.vlgmr.msra.gmra.mxu1 %vm1184_vm5, %v2107_v23 }
 0xb4f   : > { %6482 = vmatpush3.bf16.xpose.msra.mxu1 %v2262_v24  ;;  %6483 = vmatprep.mubr.msk.bf16.mxu1 %vm7164_vm1, %v7163_v1 }
 0xb50   : > { %6493 = vmatprep.subr.bf16.mxu1 %v7163_v1 }
 0xb56   : > { %6484 = vmatmul.mubr.msk.bf16.vlgmr.msra.gmra.mxu1 %vm1086_vm2, %v2255_v25 }
 0xb57   : > { %6495 = vmatprep.mubr.msk.bf16.mxu1 %vm7164_vm1, %v7163_v1 }
 0xc04   : > { %v7604_v26 = vpop.f32.mrf.mxu0 }
 0xc06   : > { %v6467_v29 = vpop.f32.mrf.mxu0 }
 0xc08   : > { %v2153_v30 = vpop.f32.mrf.mxu0 }
 0xc0a   : > { %v6468_v31 = vpop.f32.mrf.mxu0 }
 0xc0c   : > { %v2248_v32 = vpop.f32.mrf.mxu0 }
 0xc0d   : > { %v2304_v36 = vmul.f32 0.25, %v2248_v32 }
 0xc0e   : > { %v7606_v37 = vpop.f32.mrf.mxu1  ;;  %v6479_v38 = vpop.f32.mrf.mxu0 }
 0xc0f   : > { %v6834_v40 = vpack.i.bf16 %v7606_v37, %v7604_v26  ;;  %v2306_v41 = vsel %vm1181_vm4, %v2304_v36, -1e+30 }
 0xc10   : > { %v6473_v42 = vpop.f32.mrf.mxu1  ;;  %v2251_v43 = vpop.f32.mrf.mxu0  ;;  %v2308_v45 = vsel %vm1184_vm5, %v2306_v41, -inf }
 0xc11   : > { %2309 = vmax.xlane.f32.xlu0 %v2308_v45 }
 0xc12   : > { %v2201_v46 = vpop.f32.mrf.mxu1  ;;  %v6480_v47 = vpop.f32.mrf.mxu0 }
 0xc14   : > { %v6474_v48 = vpop.f32.mrf.mxu1 }
 0xc16   : > { %v2298_v52 = vpop.f32.mrf.mxu1 }
 0xc17   : > { %v2305_v56 = vmul.f32 0.25, %v2298_v52 }
 0xc18   : > { %v6485_v57 = vpop.f32.mrf.mxu1 }
 0xc19   : > { %v2307_v58 = vsel %vm1181_vm4, %v2305_v56, -1e+30 }
 0xc1a   : > { %v2301_v60 = vpop.f32.mrf.mxu1  ;;  %v2311_v63 = vsel %vm1184_vm5, %v2307_v58, -inf }
 0xc1b   : > { %2312 = vmax.xlane.f32.xlu1 %v2311_v63 }
 0xc1c   : > { %v6486_v5 = vpop.f32.mrf.mxu1 }
 0xc2c   : > { %2380 = vrot.lane.b32.xlu1 %v7403_v33, %s8363_s20 }
 0xc30   : > { %2430 = vrot.lane.b32.xlu1 %v7352_v44, %s8361_s21 }
 0xc34   : > { %2480 = vrot.lane.b32.xlu1 %v7357_v49, %s8361_s21 }
 0xc38   : > { %2478 = vrot.lane.b32.xlu1 %v7368_v53, %s8361_s21 }
 0xc9a   : > { %v2310_v6 = vpop.xlane.xlu0 %2309 }
 0xc9b   : > { %v2314_v7 = vsub.f32 %v2306_v41, %v2310_v6 }
 0xc9d   : > { %v2316_v8 = vmul.f32 1.442695, %v2314_v7 }
 0xc9f   : > { %7049 = vpow2.f32 %v2316_v8 }
 0xca4   : > { %v2313_v10 = vpop.xlane.xlu1 %2312 }
 0xca5   : > { %v2315_v12 = vsub.f32 %v2307_v58, %v2313_v10 }
 0xca7   : > { %v2318_v14 = vmul.f32 1.442695, %v2315_v12 }
 0xca8   : > { %v2381_v15 = vpop.permute.xlu1 %2380 }
 0xca9   : > { %7051 = vpow2.f32 %v2318_v14  ;;  %v2386_v16 = vsel %vm1212_vm3, %v2381_v15, 0 }
 0xcaa   : > { %6494 = vmatpush3.bf16.msra.mxu1 %v2386_v16 }
 0xcab   : > { %6505 = vmatprep.subr.bf16.mxu1 %v7163_v1 }
 0xcac   : > { %v7050_v17 = vpop.eup %7049  ;;  %v2431_v32 = vpop.permute.xlu1 %2430 }
 0xcad   : > { %v2320_v18 = vsel %vm1184_vm5, %v7050_v17, 0.0  ;;  %v2436_v38 = vsel %vm1086_vm2, %v2431_v32, 0 }
 0xcae   : > { %2321 = vadd.xlane.f32.xlu0 %v2320_v18 }
 0xcb0   : > { %v2481_v43 = vpop.permute.xlu1 %2480 }
 0xcb1   : > { %v2486_v47 = vsel %vm1086_vm2, %v2481_v43, 0 }
 0xcb4   : > { %v2479_v48 = vpop.permute.xlu1 %2478 }
 0xcb6   : > { %v7052_v20 = vpop.eup %7051 }
 0xcb7   : > { %v2323_v22 = vsel %vm1184_vm5, %v7052_v20, 0.0 }
 0xcb8   : > { %2324 = vadd.xlane.f32.xlu0 %v2323_v22 }
 0xcce   : > { %2332 = vrot.lane.b32.xlu0 %v7377_v59, %s8363_s20 }
 0xcd2   : > { %2428 = vrot.lane.b32.xlu0 %v7359_v50, %s8361_s21 }
 0xd37   : > { %v2322_v23 = vpop.xlane.xlu0 %2321 }
 0xd38   : > { %7053 = vrcp.f32 %v2322_v23 }
 0xd41   : > { %v2325_v24 = vpop.xlane.xlu0 %2324 }
 0xd42   : > { %7055 = vrcp.f32 %v2325_v24 }
 0xd45   : > { %v7054_v25 = vpop.eup %7053  ;;  %v2333_v29 = vpop.permute.xlu0 %2332 }
 0xd46   : > { %v2338_v30 = vsel %vm1212_vm3, %v2333_v29, 0  ;;  %v2327_v31 = vmul.f32 %v7054_v25, %v7050_v17 }
 0xd47   : > { %6488 = vmatpush3.bf16.msra.mxu0 %v2338_v30 }
 0xd48   : > { %v2330_v36 = vpack.c.bf16 %v2327_v31, %v2327_v31  ;;  %6499 = vmatprep.subr.bf16.mxu0 %v7163_v1 }
 0xd49   : > { %v2429_v45 = vpop.permute.xlu0 %2428 }
 0xd4a   : > { %6490 = vmatmul.mubr.msk.bf16.vlgmr.msra.gmra.mxu0 %vm1184_vm5, %v2330_v36 }
 0xd4b   : > { %6500 = vmatpush3.bf16.xpose.msra.mxu0 %v2436_v38  ;;  %6501 = vmatprep.mubr.msk.bf16.mxu0 %vm7164_vm1, %v7163_v1 }
 0xd4c   : > { %6511 = vmatprep.subr.bf16.mxu0 %v7163_v1 }
 0xd4f   : > { %v7056_v41 = vpop.eup %7055 }
 0xd50   : > { %v2329_v42 = vmul.f32 %v7056_v41, %v7052_v20 }
 0xd52   : > { %6502 = vmatmul.mubr.msk.bf16.vlgmr.msra.gmra.mxu0 %vm1086_vm2, %v2429_v45  ;;  %v2331_v46 = vpack.c.bf16 %v2329_v42, %v2329_v42 }
 0xd53   : > { %6513 = vmatprep.mubr.msk.bf16.mxu0 %vm7164_vm1, %v7163_v1 }
 0xd54   : > { %6496 = vmatmul.mubr.msk.bf16.vlgmr.msra.gmra.mxu1 %vm1184_vm5, %v2331_v46 }
 0xd55   : > { %6506 = vmatpush3.bf16.xpose.msra.mxu1 %v2486_v47  ;;  %6507 = vmatprep.mubr.msk.bf16.mxu1 %vm7164_vm1, %v7163_v1 }
 0xd56   : > { %6517 = vmatprep.subr.bf16.mxu1 %v7163_v1 }
 0xd5c   : > { %6508 = vmatmul.mubr.msk.bf16.vlgmr.msra.gmra.mxu1 %vm1086_vm2, %v2479_v48 }
 0xd5d   : > { %6519 = vmatprep.mubr.msk.bf16.mxu1 %vm7164_vm1, %v7163_v1 }
 0xe0a   : > { %v7650_v52 = vpop.f32.mrf.mxu0 }
 0xe0c   : > { %v6491_v56 = vpop.f32.mrf.mxu0 }
 0xe0e   : > { %v2377_v57 = vpop.f32.mrf.mxu0 }
 0xe10   : > { %v6492_v58 = vpop.f32.mrf.mxu0 }
 0xe12   : > { %v2472_v60 = vpop.f32.mrf.mxu0 }
 0xe13   : > { %v2528_v63 = vmul.f32 0.25, %v2472_v60 }
 0xe14   : > { %v7652_v5 = vpop.f32.mrf.mxu1  ;;  %v6503_v6 = vpop.f32.mrf.mxu0 }
 0xe15   : > { %v6839_v7 = vpack.i.bf16 %v7652_v5, %v7650_v52  ;;  %v2530_v8 = vsel %vm1181_vm4, %v2528_v63, -1e+30  ;;  %v6921_v52 = vld [vmem:[%s755_s25 + $0x38] sm:$0xff]   ;;  %v6922_v5 = vld [vmem:[%s755_s25 + $0x30] sm:$0xff]  }
 0xe16   : > { %v6497_v10 = vpop.f32.mrf.mxu1  ;;  %v2475_v12 = vpop.f32.mrf.mxu0  ;;  %v2532_v14 = vsel %vm1184_vm5, %v2530_v8, -inf }
 0xe17   : > { %2533 = vmax.xlane.f32.xlu0 %v2532_v14 }
 0xe18   : > { %v2425_v15 = vpop.f32.mrf.mxu1  ;;  %v6504_v16 = vpop.f32.mrf.mxu0 }
 0xe1a   : > { %v6498_v17 = vpop.f32.mrf.mxu1 }
 0xe1c   : > { %v2522_v18 = vpop.f32.mrf.mxu1 }
 0xe1d   : > { %v2529_v20 = vmul.f32 0.25, %v2522_v18 }
 0xe1e   : > { %v6509_v22 = vpop.f32.mrf.mxu1 }
 0xe1f   : > { %v2531_v23 = vsel %vm1181_vm4, %v2529_v20, -1e+30 }
 0xe20   : > { %v2525_v24 = vpop.f32.mrf.mxu1  ;;  %v2535_v25 = vsel %vm1184_vm5, %v2531_v23, -inf }
 0xe21   : > { %2536 = vmax.xlane.f32.xlu1 %v2535_v25 }
 0xe22   : > { %v6510_v29 = vpop.f32.mrf.mxu1 }
 0xe32   : > { %2604 = vrot.lane.b32.xlu1 %v7403_v33, %s8361_s21 }
 0xe36   : > { %2654 = vrot.lane.b32.xlu1 %v7352_v44, %s8359_s22 }
 0xe3a   : > { %2704 = vrot.lane.b32.xlu1 %v7357_v49, %s8359_s22 }
 0xe3e   : > { %2702 = vrot.lane.b32.xlu1 %v7368_v53, %s8359_s22 }
 0xea0   : > { %v2534_v30 = vpop.xlane.xlu0 %2533 }
 0xea1   : > { %v2538_v31 = vsub.f32 %v2530_v8, %v2534_v30 }
 0xea3   : > { %v2540_v32 = vmul.f32 1.442695, %v2538_v31 }
 0xea5   : > { %7057 = vpow2.f32 %v2540_v32 }
 0xeaa   : > { %v2537_v36 = vpop.xlane.xlu1 %2536 }
 0xeab   : > { %v2539_v38 = vsub.f32 %v2531_v23, %v2537_v36 }
 0xead   : > { %v2542_v41 = vmul.f32 1.442695, %v2539_v38 }
 0xeae   : > { %v2605_v42 = vpop.permute.xlu1 %2604 }
 0xeaf   : > { %7059 = vpow2.f32 %v2542_v41  ;;  %v2610_v43 = vsel %vm1212_vm3, %v2605_v42, 0 }
 0xeb0   : > { %6518 = vmatpush3.bf16.msra.mxu1 %v2610_v43 }
 0xeb1   : > { %6529 = vmatprep.subr.bf16.mxu1 %v7163_v1 }
 0xeb2   : > { %v7058_v44 = vpop.eup %7057  ;;  %v2655_v60 = vpop.permute.xlu1 %2654 }
 0xeb3   : > { %v2544_v49 = vsel %vm1184_vm5, %v7058_v44, 0.0  ;;  %v2660_v6 = vsel %vm1086_vm2, %v2655_v60, 0 }
 0xeb4   : > { %2545 = vadd.xlane.f32.xlu0 %v2544_v49 }
 0xeb6   : > { %v2705_v10 = vpop.permute.xlu1 %2704 }
 0xeb7   : > { %v2710_v15 = vsel %vm1086_vm2, %v2705_v10, 0  ;;  %v6925_v10 = vld [vmem:[%s755_s25 + $0x18] sm:$0xff]  }
 0xeba   : > { %v2703_v16 = vpop.permute.xlu1 %2702 }
 0xebc   : > { %v7060_v45 = vpop.eup %7059 }
 0xebd   : > { %v2547_v53 = vsel %vm1184_vm5, %v7060_v45, 0.0 }
 0xebe   : > { %2548 = vadd.xlane.f32.xlu0 %v2547_v53 }
 0xed4   : > { %2556 = vrot.lane.b32.xlu0 %v7377_v59, %s8361_s21 }
 0xed8   : > { %2652 = vrot.lane.b32.xlu0 %v7359_v50, %s8359_s22 }
 0xf3d   : > { %v2546_v46 = vpop.xlane.xlu0 %2545 }
 0xf3e   : > { %7061 = vrcp.f32 %v2546_v46 }
 0xf47   : > { %v2549_v47 = vpop.xlane.xlu0 %2548 }
 0xf48   : > { %7063 = vrcp.f32 %v2549_v47 }
 0xf4b   : > { %v7062_v48 = vpop.eup %7061  ;;  %v2557_v56 = vpop.permute.xlu0 %2556 }
 0xf4c   : > { %v2562_v57 = vsel %vm1212_vm3, %v2557_v56, 0  ;;  %v2551_v58 = vmul.f32 %v7062_v48, %v7058_v44 }
 0xf4d   : > { %6512 = vmatpush3.bf16.msra.mxu0 %v2562_v57 }
 0xf4e   : > { %v2554_v63 = vpack.c.bf16 %v2551_v58, %v2551_v58  ;;  %6523 = vmatprep.subr.bf16.mxu0 %v7163_v1 }
 0xf4f   : > { %v2653_v12 = vpop.permute.xlu0 %2652 }
 0xf50   : > { %6514 = vmatmul.mubr.msk.bf16.vlgmr.msra.gmra.mxu0 %vm1184_vm5, %v2554_v63 }
 0xf51   : > { %6524 = vmatpush3.bf16.xpose.msra.mxu0 %v2660_v6  ;;  %6525 = vmatprep.mubr.msk.bf16.mxu0 %vm7164_vm1, %v7163_v1 }
 0xf52   : > { %6535 = vmatprep.subr.bf16.mxu0 %v7163_v1 }
 0xf55   : > { %v7064_v50 = vpop.eup %7063 }
 0xf56   : > { %v2553_v8 = vmul.f32 %v7064_v50, %v7060_v45 }
 0xf58   : > { %6526 = vmatmul.mubr.msk.bf16.vlgmr.msra.gmra.mxu0 %vm1086_vm2, %v2653_v12  ;;  %v2555_v14 = vpack.c.bf16 %v2553_v8, %v2553_v8  ;;  %v6924_v8 = vld [vmem:[%s755_s25 + $0x20] sm:$0xff]   ;;  %v6926_v12 = vld [vmem:[%s755_s25 + $0x10] sm:$0xff]  }
 0xf59   : > { %6537 = vmatprep.mubr.msk.bf16.mxu0 %vm7164_vm1, %v7163_v1 }
 0xf5a   : > { %6520 = vmatmul.mubr.msk.bf16.vlgmr.msra.gmra.mxu1 %vm1184_vm5, %v2555_v14  ;;  %v6927_v14 = vld [vmem:[%s755_s25 + $0x8] sm:$0xff]  }
 0xf5b   : > { %6530 = vmatpush3.bf16.xpose.msra.mxu1 %v2710_v15  ;;  %6531 = vmatprep.mubr.msk.bf16.mxu1 %vm7164_vm1, %v7163_v1 }
 0xf5c   : > { %6541 = vmatprep.subr.bf16.mxu1 %v7163_v1 }
 0xf62   : > { %6532 = vmatmul.mubr.msk.bf16.vlgmr.msra.gmra.mxu1 %vm1086_vm2, %v2703_v16  ;;  %v6928_v16 = vld [vmem:[%s755_s25] sm:$0xff]  }
 0xf63   : > { %6543 = vmatprep.mubr.msk.bf16.mxu1 %vm7164_vm1, %v7163_v1 }
0x1010   : > { %v2598_v17 = vpop.f32.mrf.mxu0 }
0x1012   : > { %v6515_v18 = vpop.f32.mrf.mxu0 }
0x1014   : > { %v2601_v20 = vpop.f32.mrf.mxu0 }
0x1016   : > { %v6516_v22 = vpop.f32.mrf.mxu0 }
0x1018   : > { %v2696_v23 = vpop.f32.mrf.mxu0 }
0x1019   : > { %v2752_v24 = vmul.f32 0.25, %v2696_v23 }
0x101a   : > { %v2646_v25 = vpop.f32.mrf.mxu1  ;;  %v6527_v29 = vpop.f32.mrf.mxu0 }
0x101b   : > { %v2754_v30 = vsel %vm1181_vm4, %v2752_v24, -1e+30  ;;  %v6844_v2 = vpack.i.bf16 %v2646_v25, %v2598_v17 }
0x101c   : > { %v6521_v31 = vpop.f32.mrf.mxu1  ;;  %v2699_v32 = vpop.f32.mrf.mxu0  ;;  %v2756_v36 = vsel %vm1184_vm5, %v2754_v30, -inf }
0x101d   : > { %2757 = vmax.xlane.f32.xlu0 %v2756_v36 }
0x101e   : > { %v2649_v38 = vpop.f32.mrf.mxu1  ;;  %v6528_v41 = vpop.f32.mrf.mxu0 }
0x1020   : > { %v6522_v42 = vpop.f32.mrf.mxu1 }
0x1022   : > { %v2746_v43 = vpop.f32.mrf.mxu1 }
0x1023   : > { %v2753_v44 = vmul.f32 0.25, %v2746_v43 }
0x1024   : > { %v6533_v49 = vpop.f32.mrf.mxu1 }
0x1025   : > { %v2755_v45 = vsel %vm1181_vm4, %v2753_v44, -1e+30 }
0x1026   : > { %v2749_v53 = vpop.f32.mrf.mxu1  ;;  %v2759_v46 = vsel %vm1184_vm5, %v2755_v45, -inf }
0x1027   : > { %2760 = vmax.xlane.f32.xlu1 %v2759_v46 }
0x1028   : > { %v6534_v47 = vpop.f32.mrf.mxu1 }
0x1038   : > { %2828 = vrot.lane.b32.xlu1 %v7403_v33, %s8359_s22 }
0x103c   : > { %6820 = vrot.lane.b32.xlu1 %v6819_v3, %s8359_s22 }
0x1040   : > { %6825 = vrot.lane.b32.xlu1 %v6824_v11, %s8361_s21  ;;  %s7790_s21 = scalar_lea.vmem %s8347_s8, %s7778_s24 }
0x1044   : > { %6835 = vrot.lane.b32.xlu1 %v6834_v40, %s8365_s1  ;;  %s5976_s1 = sshll.u32 %s7280_s29, 3 }
0x1048   : > { %6845 = vrot.lane.b32.xlu1 %v6844_v2, %s8369_s0  ;;  %s766_s0 = scalar_lea.vmem %s8346_s7, %s7280_s29 }
0x10a6   : > { %v2758_v48 = vpop.xlane.xlu0 %2757 }
0x10a7   : > { %v2762_v33 = vsub.f32 %v2754_v30, %v2758_v48 }
0x10a9   : > { %v2764_v56 = vmul.f32 1.442695, %v2762_v33 }
0x10ab   : > { %7065 = vpow2.f32 %v2764_v56 }
0x10b0   : > { %v2761_v57 = vpop.xlane.xlu1 %2760 }
0x10b1   : > { %v2763_v55 = vsub.f32 %v2755_v45, %v2761_v57 }
0x10b3   : > { %v2766_v62 = vmul.f32 1.442695, %v2763_v55 }
0x10b4   : > { %v2829_v3 = vpop.permute.xlu1 %2828 }
0x10b5   : > { %7067 = vpow2.f32 %v2766_v62  ;;  %v2834_v61 = vsel %vm1212_vm3, %v2829_v3, 0 }
0x10b6   : > { %6542 = vmatpush3.bf16.msra.mxu1 %v2834_v61 }
0x10b7   : > { %6567 = vmatprep.subr.bf16.mxu1 %v7163_v1 }
0x10b8   : > { %v7066_v9 = vpop.eup %7065  ;;  %v6821_v30 = vpop.permute.xlu1 %6820 }
0x10b9   : > { %v2768_v11 = vsel %vm1184_vm5, %v7066_v9, 0.0  ;;  %v6823_v36 = vunpack.i.h.bf16 %v6821_v30  ;;  %v6822_v38 = vunpack.i.l.bf16 %v6821_v30 }
0x10ba   : > { %2769 = vadd.xlane.f32.xlu0 %v2768_v11 }
0x10bb   : > { %v2933_v53 = vsel %vm1086_vm2, %v7427_v4, %v6823_v36  ;;  %v2932_v46 = vsel %vm1086_vm2, %v7422_v51, %v6822_v38  ;;  %v6944_v38 = vld [vmem:[%s7790_s21 + $0x34] ss:$8 sps:$4 sm:$0xff]  }
0x10bc   : > { %v6826_v31 = vpop.permute.xlu1 %6825 }
0x10bd   : > { %v6828_v41 = vunpack.i.h.bf16 %v6826_v31  ;;  %v6827_v42 = vunpack.i.l.bf16 %v6826_v31 }
0x10bf   : > { %v2935_v47 = vsel %vm2934_vm6, %v2932_v46, %v6827_v42  ;;  %v2936_v2 = vsel %vm2934_vm6, %v2933_v53, %v6828_v41  ;;  %v6942_v41 = vld [vmem:[%s7790_s21 + $0x30] ss:$8 sps:$4 sm:$0xff]   ;;  %v6953_v46 = vld [vmem:[%s7784_s26 + $0x20] sm:$0xff]  }
0x10c0   : > { %v6836_v43 = vpop.permute.xlu1 %6835  ;;  %v6945_v42 = vld [vmem:[%s7784_s26 + $0x30] sm:$0xff]  }
0x10c1   : > { %v6838_v55 = vunpack.i.h.bf16 %v6836_v43  ;;  %v6837_v62 = vunpack.i.l.bf16 %v6836_v43  ;;  %v6948_v43 = vld [vmem:[%s7790_s21 + $0x24] ss:$8 sps:$4 sm:$0xff]   ;;  %v6950_v53 = vld [vmem:[%s7790_s21 + $0x10] ss:$8 sps:$4 sm:$0xff]  }
0x10c2   : > { %v7068_v26 = vpop.eup %7067 }
0x10c3   : > { %v2771_v37 = vsel %vm1184_vm5, %v7068_v26, 0.0 }
0x10c4   : > { %2772 = vadd.xlane.f32.xlu0 %v2771_v37  ;;  %v6846_v3 = vpop.permute.xlu1 %6845 }
0x10c5   : > { %v6848_v11 = vunpack.i.h.bf16 %v6846_v3 }
0x10da   : > { %2780 = vrot.lane.b32.xlu0 %v7377_v59, %s8359_s22  ;;  %s8379_s22 = smov 64  }
0x10de   : > { %6830 = vrot.lane.b32.xlu0 %v6829_v21, %s8363_s20 }
0x10e2   : > { %6840 = vrot.lane.b32.xlu0 %v6839_v7, %s8367_s19  ;;  %v6923_v7 = vld [vmem:[%s755_s25 + $0x28] sm:$0xff]   ;;  %s8376_s25 = sld [smem:[#allocation4_spill]]  ;;  %s8378_s19 = smov 80  }
0x1143   : > { %v2770_v40 = vpop.xlane.xlu0 %2769 }
0x1144   : > { %7069 = vrcp.f32 %v2770_v40 }
0x114d   : > { %v2773_v58 = vpop.xlane.xlu0 %2772 }
0x114e   : > { %7071 = vrcp.f32 %v2773_v58 }
0x1151   : > { %v7070_v60 = vpop.eup %7069  ;;  %v2781_v63 = vpop.permute.xlu0 %2780 }
0x1152   : > { %v2786_v6 = vsel %vm1212_vm3, %v2781_v63, 0  ;;  %v2775_v59 = vmul.f32 %v7070_v60, %v7066_v9 }
0x1153   : > { %6536 = vmatpush3.bf16.msra.mxu0 %v2786_v6 }
0x1154   : > { %v2778_v50 = vpack.c.bf16 %v2775_v59, %v2775_v59  ;;  %6547 = vmatprep.subr.bf16.mxu0 %v7163_v1 }
0x1155   : > { %v6831_v32 = vpop.permute.xlu0 %6830 }
0x1156   : > { %6538 = vmatmul.mubr.msk.bf16.vlgmr.msra.gmra.mxu0 %vm1184_vm5, %v2778_v50  ;;  %v6833_v44 = vunpack.i.h.bf16 %v6831_v32  ;;  %v6832_v49 = vunpack.i.l.bf16 %v6831_v32 }
0x1157   : > { %6563 = vmatprep.mubr.msk.bf16.mxu0 %vm7164_vm1, %v7163_v1  ;;  %6548 = vmatpush3.bf16.msra.mxu0 %v6921_v52 }
0x1158   : > { %6549 = vmatprep.subr.bf16.mxu0 %v7163_v1  ;;  %v2938_v48 = vsel %vm2937_vm7, %v2935_v47, %v6832_v49  ;;  %v2939_v33 = vsel %vm2937_vm7, %v2936_v2, %v6833_v44  ;;  %v6946_v44 = vld [vmem:[%s7790_s21 + $0x20] ss:$8 sps:$4 sm:$0xff]   ;;  %v6956_v47 = vld [vmem:[%s7790_s21 + $0x4] ss:$8 sps:$4 sm:$0xff]  }
0x1159   : > { %v6841_v45 = vpop.permute.xlu0 %6840  ;;  %v2941_v4 = vsel %vm2940_vm8, %v2938_v48, %v6837_v62  ;;  %v2942_v61 = vsel %vm2940_vm8, %v2939_v33, %v6838_v55  ;;  %v6949_v49 = vld [vmem:[%s7784_s26 + $0x28] sm:$0xff]   ;;  %v3215_v48 = vld [vmem:[%s8376_s25] sm:$0xff]  ;;  %v6958_v55 = vld [vmem:[%s7784_s26 + $0x10] sm:$0xff]  }
0x115a   : > { %v6843_v56 = vunpack.i.h.bf16 %v6841_v45  ;;  %v6842_v57 = vunpack.i.l.bf16 %v6841_v45  ;;  %v6952_v45 = vld [vmem:[%s7790_s21 + $0x14] ss:$8 sps:$4 sm:$0xff]   ;;  %v6954_v2 = vld [vmem:[%s7790_s21] ss:$8 sps:$4 sm:$0xff]  }
0x115b   : > { %v7072_v13 = vpop.eup %7071  ;;  %6550 = vmatpush3.bf16.msra.mxu0 %v6922_v5  ;;  %v3216_v33 = vld [vmem:[%s8376_s25 + $0x8] sm:$0xff] }
0x115c   : > { %v2777_v19 = vmul.f32 %v7072_v13, %v7068_v26  ;;  %6551 = vmatprep.subr.bf16.mxu0 %v7163_v1  ;;  %v2944_v51 = vsel %vm2943_vm9, %v2941_v4, %v6842_v57  ;;  %v2945_v9 = vsel %vm2943_vm9, %v2942_v61, %v6843_v56  ;;  %v6847_v26 = vunpack.i.l.bf16 %v6846_v3  ;;  %v6033_v13 = vld [vmem:[%s758_s23] ss:$0 sm:$0xff]  ;;  %v6957_v56 = vld [vmem:[%s7784_s26 + $0x18] sm:$0xff]   ;;  %v6959_v62 = vld [vmem:[%s7784_s26 + $0x8] sm:$0xff]   ;;  %s7847_s23 = scalar_lea.vmem %s8355_s16, %s5976_s1  ;;  %s8380_s1 = smov 48  }
0x115d   : > { %v2948_v63 = vsel %vm2946_vm10, %v2945_v9, %v6848_v11  ;;  %v3217_v57 = vpack.c.bf16 %v3216_v33, %v3215_v48  ;;  %v6960_v3 = vld [vmem:[%s7784_s26] sm:$0xff]  }
0x115e   : > { %v2779_v21 = vpack.c.bf16 %v2777_v19, %v2777_v19  ;;  %v2947_v60 = vsel %vm2946_vm10, %v2944_v51, %v6847_v26 }
0x115f   : > { %6552 = vmatpush3.bf16.msra.mxu0 %v6923_v7 }
0x1160   : > { %6544 = vmatmul.mubr.msk.bf16.vlgmr.msra.gmra.mxu1 %vm1184_vm5, %v2779_v21  ;;  %6553 = vmatprep.subr.bf16.mxu0 %v7163_v1 }
0x1161   : > { %6583 = vmatprep.mubr.msk.bf16.mxu1 %vm7164_vm1, %v7163_v1 }
0x1163   : > { %6554 = vmatpush3.bf16.msra.mxu0 %v6924_v8 }
0x1164   : > { %6555 = vmatprep.subr.bf16.mxu0 %v7163_v1 }
0x1167   : > { %6556 = vmatpush3.bf16.msra.mxu0 %v6925_v10 }
0x1168   : > { %6557 = vmatprep.subr.bf16.mxu0 %v7163_v1 }
0x116b   : > { %6558 = vmatpush3.bf16.msra.mxu0 %v6926_v12 }
0x116c   : > { %6559 = vmatprep.subr.bf16.mxu0 %v7163_v1 }
0x116f   : > { %6560 = vmatpush3.bf16.msra.mxu0 %v6927_v14  ;;  %v6931_v14 = vld [vmem:[%s7790_s21 + $0x74] ss:$8 sps:$4 sm:$0xff]  }
0x1170   : > { %6561 = vmatprep.subr.bf16.mxu0 %v7163_v1 }
0x1173   : > { %6562 = vmatpush3.bf16.msra.mxu0 %v6928_v16  ;;  %v6932_v16 = vld [vmem:[%s7790_s21 + $0x60] ss:$8 sps:$4 sm:$0xff]  }
0x1174   : > { %3326 = vmatprep.subr.bf16.mxu0 %v6931_v14 }
0x1216   : > { %v2822_v15 = vpop.f32.mrf.mxu0 }
0x1218   : > { %v6539_v17 = vpop.f32.mrf.mxu0 }
0x1219   : > { %v6937_v17 = vld [vmem:[%s7790_s21 + $0x54] ss:$8 sps:$4 sm:$0xff]  }
0x121a   : > { %v2825_v18 = vpop.f32.mrf.mxu0 }
0x121b   : > { %v6935_v18 = vld [vmem:[%s7790_s21 + $0x50] ss:$8 sps:$4 sm:$0xff]  }
0x121c   : > { %v6540_v20 = vpop.f32.mrf.mxu0 }
0x121d   : > { %v6940_v20 = vld [vmem:[%s7790_s21 + $0x44] ss:$8 sps:$4 sm:$0xff]  }
0x1220   : > { %v2870_v22 = vpop.f32.mrf.mxu1 }
0x1221   : > { %v6849_v23 = vpack.i.bf16 %v2870_v22, %v2822_v15  ;;  %v6934_v15 = vld [vmem:[%s7790_s21 + $0x64] ss:$8 sps:$4 sm:$0xff]   ;;  %v6938_v22 = vld [vmem:[%s7790_s21 + $0x40] ss:$8 sps:$4 sm:$0xff]  }
0x1222   : > { %v6545_v24 = vpop.f32.mrf.mxu1 }
0x1223   : > { %6850 = vrot.lane.b32.xlu0 %v6849_v23, %s7165_s30 }
0x1224   : > { %v2873_v25 = vpop.f32.mrf.mxu1 }
0x1226   : > { %v6546_v29 = vpop.f32.mrf.mxu1 }
0x1295   : > { %v6851_v37 = vpop.permute.xlu0 %6850 }
0x1296   : > { %v6853_v40 = vunpack.i.h.bf16 %v6851_v37  ;;  %v6852_v58 = vunpack.i.l.bf16 %v6851_v37  ;;  %v815_v37 = vld [vmem:[%s7847_s23] sm:$0x3f] }
0x1298   : > { %v2951_v6 = vsel %vm2949_vm11, %v2948_v63, %v6853_v40  ;;  %v2950_v59 = vsel %vm2949_vm11, %v2947_v60, %v6852_v58  ;;  %v3093_v60 = vrot.slane %v815_v37, %v7349_v39 }
0x1299   : > { %v2952_v50 = vpack.c.bf16 %v2951_v6, %v2950_v59 }
0x129b   : > { %6564 = vmatmul.mubr.bf16.vlgmr.msra.gmra.mxu0 %v2952_v50  ;;  %v3099_v50 = vrot.slane %v815_v37, %v7345_v35 }
0x129c   : > { %3358 = vmatprep.mubr.bf16.mxu0 %v7162_v0 }
0x135b   : > { %v3058_v19 = vpop.f32.mrf.mxu0 }
0x135c   : > { %v3059_v21 = vadd.f32 %v6033_v13, %v3058_v19 }
0x135d   : > { %v6565_v52 = vpop.f32.mrf.mxu0 }
0x135e   : > { %v3065_v5 = vadd.f32 %v3059_v21, %v7318_v27  ;;  %v6941_v27 = vld [vmem:[%s7784_s26 + $0x38] sm:$0xff]   ;;  %s5968_s26 = sshll.u32 %s7280_s29, 1 }
0x135f   : > { %v3061_v7 = vpop.f32.mrf.mxu0  ;;  %6568 = vmatpush3.bf16.msra.mxu1 %v6941_v27  ;;  %s775_s20 = scalar_lea.vmem %s8348_s9, %s5968_s26 }
0x1360   : > { %v3062_v8 = vadd.f32 %v6033_v13, %v3061_v7  ;;  %3067 = vadd.xlane.f32.xlu1 %v3065_v5  ;;  %6569 = vmatprep.subr.bf16.mxu1 %v7163_v1 }
0x1361   : > { %v6566_v10 = vpop.f32.mrf.mxu0 }
0x1362   : > { %v3066_v12 = vadd.f32 %v3062_v8, %v7320_v28  ;;  %v6929_v28 = vld [vmem:[%s7790_s21 + $0x70] ss:$8 sps:$4 sm:$0xff]   ;;  %s8382_s21 = smov 16  }
0x1363   : > { %3327 = vmatpush1.bf16.msra.mxu0 %v6929_v28  ;;  %6570 = vmatpush3.bf16.msra.mxu1 %v6945_v42 }
0x1364   : > { %3069 = vadd.xlane.f32.xlu0 %v3066_v12  ;;  %3328 = vmatprep.subr.bf16.mxu0 %v6934_v15 }
0x1365   : > { %6571 = vmatprep.subr.bf16.mxu1 %v7163_v1 }
0x1367   : > { %3329 = vmatpush1.bf16.msra.mxu0 %v6932_v16  ;;  %6572 = vmatpush3.bf16.msra.mxu1 %v6949_v49  ;;  %v6042_v16 = vld [vmem:[%s766_s0] ss:$0 sm:$0xff]  ;;  %s8377_s0 = smov 96  }
0x1368   : > { %3330 = vmatprep.subr.bf16.mxu0 %v6937_v17  ;;  %6573 = vmatprep.subr.bf16.mxu1 %v7163_v1 }
0x136b   : > { %3331 = vmatpush1.bf16.msra.mxu0 %v6935_v18  ;;  %6574 = vmatpush3.bf16.msra.mxu1 %v6953_v46 }
0x136c   : > { %3332 = vmatprep.subr.bf16.mxu0 %v6940_v20  ;;  %6575 = vmatprep.subr.bf16.mxu1 %v7163_v1 }
0x136f   : > { %3333 = vmatpush1.bf16.msra.mxu0 %v6938_v22  ;;  %6576 = vmatpush3.bf16.msra.mxu1 %v6957_v56 }
0x1370   : > { %3334 = vmatprep.subr.bf16.mxu0 %v6944_v38  ;;  %6577 = vmatprep.subr.bf16.mxu1 %v7163_v1 }
0x1373   : > { %3335 = vmatpush1.bf16.msra.mxu0 %v6942_v41  ;;  %6578 = vmatpush3.bf16.msra.mxu1 %v6958_v55 }
0x1374   : > { %3336 = vmatprep.subr.bf16.mxu0 %v6948_v43  ;;  %6579 = vmatprep.subr.bf16.mxu1 %v7163_v1 }
0x1377   : > { %3337 = vmatpush1.bf16.msra.mxu0 %v6946_v44  ;;  %6580 = vmatpush3.bf16.msra.mxu1 %v6959_v62 }
0x1378   : > { %3338 = vmatprep.subr.bf16.mxu0 %v6952_v45  ;;  %6581 = vmatprep.subr.bf16.mxu1 %v7163_v1 }
0x137b   : > { %3339 = vmatpush1.bf16.msra.mxu0 %v6950_v53  ;;  %6582 = vmatpush3.bf16.msra.mxu1 %v6960_v3 }
0x137c   : > { %3340 = vmatprep.subr.bf16.mxu0 %v6956_v47  ;;  %6587 = vmatprep.subr.bf16.mxu1 %v7163_v1 }
0x137f   : > { %3341 = vmatpush1.bf16.msra.mxu0 %v6954_v2 }
0x1380   : > { %6611 = vmatprep.subr.bf16.mxu0 %v7163_v1 }
0x1382   : > { %3359 = vmatmul.mubr.bf16.vlgmr.msra.gmra.mxu0 %v3217_v57 }
0x1383   : > { %6613 = vmatprep.mubr.msk.bf16.mxu0 %vm7164_vm1, %v7163_v1 }
0x13e9   : > { %v3068_v23 = vpop.xlane.xlu1 %3067 }
0x13ea   : > { %v3072_v24 = vmul.f32 0.0078125, %v3068_v23 }
0x13ec   : > { %v7808_v25 = vsub.f32 %v3065_v5, %v3072_v24  ;;  %v3234_v5 = vld [vmem:[%s775_s20] sm:$0x3]  ;;  %s8381_s20 = smov 32  }
0x13ed   : > { %v3070_v29 = vpop.xlane.xlu0 %3069  ;;  %v3239_v7 = vrot.slane %v3234_v5, %v7349_v39  ;;  %v3243_v18 = vrot.slane %v3234_v5, %v7345_v35 }
0x13ee   : > { %v3073_v30 = vmul.f32 0.0078125, %v3070_v29  ;;  %v3076_v31 = vmul.f32 %v7808_v25, %v7808_v25 }
0x13f0   : > { %v3075_v32 = vsub.f32 %v3066_v12, %v3073_v30  ;;  %3078 = vadd.xlane.f32.xlu0 %v3076_v31 }
0x13f2   : > { %v3077_v36 = vmul.f32 %v3075_v32, %v3075_v32 }
0x13f4   : > { %3080 = vadd.xlane.f32.xlu0 %v3077_v36 }
0x1442   : > { %v3360_v8 = vpop.f32.mrf.mxu0 }
0x1443   : > { %v3361_v10 = vadd.f32 %v3360_v8, %v3239_v7 }
0x1444   : > { %v3362_v28 = vpop.f32.mrf.mxu0 }
0x1445   : > { %v7868_v12 = vpack.c.bf16 %v3361_v10, %v3361_v10  ;;  %v3363_v29 = vadd.f32 %v3362_v28, %v3243_v18 }
0x1446   : > { %v3364_v14 = vpop.f32.mrf.mxu0 }
0x1447   : > { %v3379_v27 = vsel %vm1086_vm2, %v7868_v12, 0  ;;  %v3365_v15 = vadd.f32 %v3364_v14, %v3239_v7  ;;  %v7889_v36 = vpack.c.bf16 %v3363_v29, %v3363_v29 }
0x1449   : > { %v7878_v20 = vpack.c.bf16 %v3365_v15, %v3365_v15  ;;  %v3497_v41 = vsel %vm1212_vm3, %v7889_v36, 0 }
0x144b   : > { %v3425_v30 = vsel %vm1086_vm2, %v7878_v20, 0 }
0x1479   : > { %v3079_v4 = vpop.xlane.xlu0 %3078 }
0x147a   : > { %v3082_v61 = vmul.f32 0.0078125, %v3079_v4 }
0x147c   : > { %v3084_v51 = vadd.f32 1e-05, %v3082_v61 }
0x147d   : > { %v3081_v9 = vpop.xlane.xlu0 %3080 }
0x147e   : > { %7073 = vrsqrt.f32 %v3084_v51  ;;  %v3083_v11 = vmul.f32 0.0078125, %v3081_v9 }
0x1480   : > { %v3085_v26 = vadd.f32 1e-05, %v3083_v11 }
0x1482   : > { %7075 = vrsqrt.f32 %v3085_v26 }
0x148b   : > { %v7074_v40 = vpop.eup %7073 }
0x148c   : > { %v3088_v58 = vmul.f32 %v7074_v40, %v7808_v25 }
0x148e   : > { %v3094_v59 = vmul.f32 %v3093_v60, %v3088_v58 }
0x148f   : > { %v7076_v63 = vpop.eup %7075 }
0x1490   : > { %v3089_v6 = vmul.f32 %v7076_v63, %v3075_v32  ;;  %v7853_v19 = vadd.f32 %v3099_v50, %v3094_v59 }
0x1492   : > { %v3095_v13 = vmul.f32 %v3093_v60, %v3089_v6  ;;  %v3366_v60 = vpop.f32.mrf.mxu0 }
0x1493   : > { %v3367_v6 = vadd.f32 %v3366_v60, %v3243_v18 }
0x1494   : > { %v7855_v21 = vadd.f32 %v3099_v50, %v3095_v13 }
0x1495   : > { %v7917_v13 = vpack.c.bf16 %v3367_v6, %v3367_v6 }
0x1496   : > { %v3102_v52 = vpack.c.bf16 %v7855_v21, %v7853_v19 }
0x1497   : > { %v3543_v7 = vsel %vm1212_vm3, %v7917_v13, 0 }
0x1498   : > { %6584 = vmatmul.mubr.bf16.vlgmr.msra.gmra.mxu1 %v3102_v52 }
0x1499   : > { %6589 = vmatprep.mubr.msk.bf16.mxu1 %vm7164_vm1, %v7163_v1  ;;  %6588 = vmatpush3.bf16.xpose.msra.mxu1 %v3379_v27 }
0x149a   : > { %6593 = vmatprep.subr.bf16.mxu1 %v7163_v1 }
0x1558   : > { %v3208_v17 = vpop.f32.mrf.mxu1 }
0x1559   : > { %v3209_v22 = vadd.f32 %v6042_v16, %v3208_v17 }
0x155a   : > { %v6585_v23 = vpop.f32.mrf.mxu1 }
0x155b   : > { %v7880_v24 = vpack.c.bf16 %v3209_v22, %v3209_v22 }
0x155c   : > { %v3211_v25 = vpop.f32.mrf.mxu1 }
0x155d   : > { %6590 = vmatmul.mubr.msk.bf16.vlgmr.msra.gmra.mxu1 %vm1086_vm2, %v7880_v24  ;;  %v3212_v32 = vadd.f32 %v6042_v16, %v3211_v25 }
0x155e   : > { %6594 = vmatpush3.bf16.xpose.msra.mxu1 %v3425_v30  ;;  %v6586_v31 = vpop.f32.mrf.mxu1  ;;  %6595 = vmatprep.mubr.msk.bf16.mxu1 %vm7164_vm1, %v7163_v1 }
0x155f   : > { %6599 = vmatprep.subr.bf16.mxu1 %v7163_v1  ;;  %v7891_v38 = vpack.c.bf16 %v3212_v32, %v3212_v32 }
0x1565   : > { %6596 = vmatmul.mubr.msk.bf16.vlgmr.msra.gmra.mxu1 %vm1086_vm2, %v7891_v38 }
0x1566   : > { %6600 = vmatpush3.bf16.msra.mxu1 %v3497_v41  ;;  %6601 = vmatprep.mubr.msk.bf16.mxu1 %vm7164_vm1, %v7163_v1 }
0x1567   : > { %6605 = vmatprep.subr.bf16.mxu1 %v7163_v1 }
0x161d   : > { %v3415_v42 = vpop.f32.mrf.mxu1 }
0x161e   : > { %v3467_v43 = vmul.f32 0.25, %v3415_v42 }
0x161f   : > { %v6591_v44 = vpop.f32.mrf.mxu1 }
0x1620   : > { %v3469_v49 = vsel %vm1184_vm5, %v3467_v43, -inf }
0x1621   : > { %3470 = vmax.xlane.f32.xlu1 %v3469_v49  ;;  %v3418_v45 = vpop.f32.mrf.mxu1 }
0x1623   : > { %v6592_v53 = vpop.f32.mrf.mxu1 }
0x1625   : > { %v3461_v46 = vpop.f32.mrf.mxu1 }
0x1626   : > { %v3468_v47 = vmul.f32 0.25, %v3461_v46 }
0x1627   : > { %v6597_v2 = vpop.f32.mrf.mxu1 }
0x1628   : > { %v3472_v48 = vsel %vm1184_vm5, %v3468_v47, -inf }
0x1629   : > { %3473 = vmax.xlane.f32.xlu0 %v3472_v48  ;;  %v3464_v33 = vpop.f32.mrf.mxu1 }
0x162b   : > { %v6598_v56 = vpop.f32.mrf.mxu1 }
0x16aa   : > { %v3471_v57 = vpop.xlane.xlu1 %3470 }
0x16ab   : > { %v3475_v55 = vsub.f32 %v3467_v43, %v3471_v57 }
0x16ad   : > { %v3477_v62 = vmul.f32 1.442695, %v3475_v55 }
0x16af   : > { %7077 = vpow2.f32 %v3477_v62 }
0x16b2   : > { %v3474_v3 = vpop.xlane.xlu0 %3473 }
0x16b3   : > { %v3476_v4 = vsub.f32 %v3468_v47, %v3474_v3 }
0x16b5   : > { %v3479_v61 = vmul.f32 1.442695, %v3476_v4 }
0x16b7   : > { %7079 = vpow2.f32 %v3479_v61 }
0x16bc   : > { %v7078_v51 = vpop.eup %7077 }
0x16bd   : > { %v3481_v9 = vsel %vm1184_vm5, %v7078_v51, 0.0 }
0x16be   : > { %3482 = vadd.xlane.f32.xlu1 %v3481_v9 }
0x16c4   : > { %v7080_v11 = vpop.eup %7079 }
0x16c5   : > { %v3484_v26 = vsel %vm1184_vm5, %v7080_v11, 0.0 }
0x16c6   : > { %3485 = vadd.xlane.f32.xlu0 %v3484_v26 }
0x16cf   : > { %3589 = vrot.lane.b32.xlu1 %v7868_v12, %s7165_s30 }
0x16d3   : > { %3586 = vrot.lane.b32.xlu1 %v7880_v24, %s7165_s30 }
0x16d7   : > { %3638 = vrot.lane.b32.xlu1 %v7891_v38, %s7165_s30 }
0x16dc   : > { %3641 = vrot.lane.b32.xlu0 %v7878_v20, %s7165_s30 }
0x1747   : > { %v3483_v37 = vpop.xlane.xlu1 %3482 }
0x1748   : > { %7081 = vrcp.f32 %v3483_v37 }
0x174b   : > { %v3590_v40 = vpop.permute.xlu1 %3589 }
0x174c   : > { %v3595_v58 = vsel %vm1086_vm2, %v3590_v40, 0 }
0x174d   : > { %6612 = vmatpush3.bf16.xpose.msra.mxu0 %v3595_v58 }
0x174e   : > { %6623 = vmatprep.subr.bf16.mxu0 %v7163_v1 }
0x174f   : > { %v3486_v63 = vpop.xlane.xlu0 %3485  ;;  %v3587_v59 = vpop.permute.xlu1 %3586 }
0x1750   : > { %7083 = vrcp.f32 %v3486_v63 }
0x1753   : > { %v3642_v27 = vpop.permute.xlu0 %3641  ;;  %v3639_v15 = vpop.permute.xlu1 %3638 }
0x1754   : > { %6614 = vmatmul.mubr.msk.bf16.vlgmr.msra.gmra.mxu0 %vm1086_vm2, %v3587_v59  ;;  %v3647_v14 = vsel %vm1086_vm2, %v3642_v27, 0 }
0x1755   : > { %v7082_v50 = vpop.eup %7081  ;;  %6625 = vmatprep.mubr.msk.bf16.mxu0 %vm7164_vm1, %v7163_v1 }
0x1756   : > { %v3488_v52 = vmul.f32 %v7082_v50, %v7078_v51 }
0x1758   : > { %v3491_v5 = vpack.c.bf16 %v3488_v52, %v3488_v52 }
0x175a   : > { %6602 = vmatmul.mubr.msk.bf16.vlgmr.msra.gmra.mxu1 %vm1184_vm5, %v3491_v5 }
0x175b   : > { %6606 = vmatpush3.bf16.msra.mxu1 %v3543_v7  ;;  %6607 = vmatprep.mubr.msk.bf16.mxu1 %vm7164_vm1, %v7163_v1 }
0x175c   : > { %6617 = vmatprep.subr.bf16.mxu1 %v7163_v1 }
0x175d   : > { %v7084_v8 = vpop.eup %7083 }
0x175e   : > { %v3490_v10 = vmul.f32 %v7084_v8, %v7080_v11 }
0x1760   : > { %v3492_v28 = vpack.c.bf16 %v3490_v10, %v3490_v10 }
0x1762   : > { %6608 = vmatmul.mubr.msk.bf16.vlgmr.msra.gmra.mxu1 %vm1184_vm5, %v3492_v28 }
0x1763   : > { %6618 = vmatpush3.bf16.xpose.msra.mxu1 %v3647_v14  ;;  %6619 = vmatprep.mubr.msk.bf16.mxu1 %vm7164_vm1, %v7163_v1 }
0x1764   : > { %6629 = vmatprep.subr.bf16.mxu1 %v7163_v1 }
0x176a   : > { %6620 = vmatmul.mubr.msk.bf16.vlgmr.msra.gmra.mxu1 %vm1086_vm2, %v3639_v15 }
0x176b   : > { %6631 = vmatprep.mubr.msk.bf16.mxu1 %vm7164_vm1, %v7163_v1 }
0x1814   : > { %v3631_v16 = vpop.f32.mrf.mxu0 }
0x1815   : > { %v3689_v17 = vmul.f32 0.25, %v3631_v16 }
0x1816   : > { %v6615_v18 = vpop.f32.mrf.mxu0 }
0x1817   : > { %v3691_v22 = vsel %vm1184_vm5, %v3689_v17, -inf }
0x1818   : > { %3692 = vmax.xlane.f32.xlu1 %v3691_v22  ;;  %v3634_v23 = vpop.f32.mrf.mxu0 }
0x181a   : > { %v7934_v25 = vpop.f32.mrf.mxu1  ;;  %v6616_v29 = vpop.f32.mrf.mxu0 }
0x181c   : > { %v6603_v30 = vpop.f32.mrf.mxu1 }
0x181e   : > { %v3536_v31 = vpop.f32.mrf.mxu1 }
0x1820   : > { %v6604_v32 = vpop.f32.mrf.mxu1 }
0x1822   : > { %v7936_v41 = vpop.f32.mrf.mxu1 }
0x1824   : > { %v6609_v42 = vpop.f32.mrf.mxu1 }
0x1826   : > { %v3582_v43 = vpop.f32.mrf.mxu1 }
0x1828   : > { %v6610_v44 = vpop.f32.mrf.mxu1 }
0x1829   : > { %3716 = vrot.lane.b32.xlu1 %v7889_v36, %s7165_s30 }
0x182a   : > { %v3683_v49 = vpop.f32.mrf.mxu1 }
0x182b   : > { %v3690_v45 = vmul.f32 0.25, %v3683_v49 }
0x182c   : > { %v6621_v53 = vpop.f32.mrf.mxu1 }
0x182d   : > { %3815 = vrot.lane.b32.xlu1 %v7868_v12, %s8377_s0  ;;  %v3694_v46 = vsel %vm1184_vm5, %v3690_v45, -inf }
0x182e   : > { %3695 = vmax.xlane.f32.xlu0 %v3694_v46  ;;  %v3686_v47 = vpop.f32.mrf.mxu1 }
0x1830   : > { %v6622_v2 = vpop.f32.mrf.mxu1 }
0x1831   : > { %3865 = vrot.lane.b32.xlu1 %v7878_v20, %s8377_s0 }
0x1835   : > { %3813 = vrot.lane.b32.xlu1 %v7880_v24, %s8377_s0 }
0x18a1   : > { %v3693_v48 = vpop.xlane.xlu1 %3692 }
0x18a2   : > { %v3697_v33 = vsub.f32 %v3689_v17, %v3693_v48 }
0x18a4   : > { %v3699_v56 = vmul.f32 1.442695, %v3697_v33 }
0x18a5   : > { %v3717_v57 = vpop.permute.xlu1 %3716 }
0x18a6   : > { %7085 = vpow2.f32 %v3699_v56  ;;  %v3722_v55 = vsel %vm1212_vm3, %v3717_v57, 0 }
0x18a7   : > { %6624 = vmatpush3.bf16.msra.mxu0 %v3722_v55 }
0x18a8   : > { %6635 = vmatprep.subr.bf16.mxu0 %v7163_v1 }
0x18a9   : > { %v3816_v40 = vpop.permute.xlu1 %3815 }
0x18aa   : > { %v3821_v63 = vsel %vm1086_vm2, %v3816_v40, 0 }
0x18ad   : > { %v3866_v6 = vpop.permute.xlu1 %3865 }
0x18ae   : > { %v3871_v27 = vsel %vm1086_vm2, %v3866_v6, 0 }
0x18b1   : > { %v3814_v50 = vpop.permute.xlu1 %3813 }
0x18b3   : > { %v7086_v62 = vpop.eup %7085 }
0x18b4   : > { %v3703_v3 = vsel %vm1184_vm5, %v7086_v62, 0.0 }
0x18b5   : > { %3704 = vadd.xlane.f32.xlu0 %v3703_v3 }
0x18b7   : > { %v3696_v4 = vpop.xlane.xlu0 %3695 }
0x18b8   : > { %v3698_v61 = vsub.f32 %v3690_v45, %v3696_v4 }
0x18ba   : > { %v3701_v51 = vmul.f32 1.442695, %v3698_v61 }
0x18bc   : > { %7087 = vpow2.f32 %v3701_v51 }
0x18c9   : > { %v7088_v9 = vpop.eup %7087 }
0x18ca   : > { %v3706_v11 = vsel %vm1184_vm5, %v7088_v9, 0.0 }
0x18cb   : > { %3707 = vadd.xlane.f32.xlu0 %v3706_v11 }
0x18e1   : > { %3765 = vrot.lane.b32.xlu0 %v7917_v13, %s7165_s30 }
0x18e5   : > { %3863 = vrot.lane.b32.xlu0 %v7891_v38, %s8377_s0 }
0x193e   : > { %v3705_v26 = vpop.xlane.xlu0 %3704 }
0x193f   : > { %7089 = vrcp.f32 %v3705_v26 }
0x194c   : > { %v7090_v37 = vpop.eup %7089 }
0x194d   : > { %v3710_v58 = vmul.f32 %v7090_v37, %v7086_v62 }
0x194f   : > { %v3713_v60 = vpack.c.bf16 %v3710_v58, %v3710_v58 }
0x1951   : > { %6626 = vmatmul.mubr.msk.bf16.vlgmr.msra.gmra.mxu0 %vm1184_vm5, %v3713_v60 }
0x1952   : > { %6636 = vmatpush3.bf16.xpose.msra.mxu0 %v3821_v63  ;;  %6637 = vmatprep.mubr.msk.bf16.mxu0 %vm7164_vm1, %v7163_v1 }
0x1953   : > { %6647 = vmatprep.subr.bf16.mxu0 %v7163_v1 }
0x1954   : > { %v3708_v59 = vpop.xlane.xlu0 %3707 }
0x1955   : > { %7091 = vrcp.f32 %v3708_v59 }
0x1958   : > { %v3766_v52 = vpop.permute.xlu0 %3765 }
0x1959   : > { %v3771_v5 = vsel %vm1212_vm3, %v3766_v52, 0  ;;  %6638 = vmatmul.mubr.msk.bf16.vlgmr.msra.gmra.mxu0 %vm1086_vm2, %v3814_v50 }
0x195a   : > { %6630 = vmatpush3.bf16.msra.mxu1 %v3771_v5  ;;  %6649 = vmatprep.mubr.msk.bf16.mxu0 %vm7164_vm1, %v7163_v1 }
0x195b   : > { %6641 = vmatprep.subr.bf16.mxu1 %v7163_v1 }
0x195c   : > { %v3864_v28 = vpop.permute.xlu0 %3863 }
0x1962   : > { %v7092_v7 = vpop.eup %7091 }
0x1963   : > { %v3712_v8 = vmul.f32 %v7092_v7, %v7088_v9 }
0x1965   : > { %v3714_v10 = vpack.c.bf16 %v3712_v8, %v3712_v8 }
0x1967   : > { %6632 = vmatmul.mubr.msk.bf16.vlgmr.msra.gmra.mxu1 %vm1184_vm5, %v3714_v10 }
0x1968   : > { %6642 = vmatpush3.bf16.xpose.msra.mxu1 %v3871_v27  ;;  %6643 = vmatprep.mubr.msk.bf16.mxu1 %vm7164_vm1, %v7163_v1 }
0x1969   : > { %6653 = vmatprep.subr.bf16.mxu1 %v7163_v1 }
0x196f   : > { %6644 = vmatmul.mubr.msk.bf16.vlgmr.msra.gmra.mxu1 %vm1086_vm2, %v3864_v28 }
0x1970   : > { %6655 = vmatprep.mubr.msk.bf16.mxu1 %vm7164_vm1, %v7163_v1 }
0x1a11   : > { %v7973_v14 = vpop.f32.mrf.mxu0 }
0x1a13   : > { %v6627_v15 = vpop.f32.mrf.mxu0 }
0x1a15   : > { %v3761_v16 = vpop.f32.mrf.mxu0 }
0x1a17   : > { %v6628_v17 = vpop.f32.mrf.mxu0 }
0x1a19   : > { %v3857_v18 = vpop.f32.mrf.mxu0 }
0x1a1a   : > { %v3913_v22 = vmul.f32 0.25, %v3857_v18 }
0x1a1b   : > { %v6639_v23 = vpop.f32.mrf.mxu0 }
0x1a1c   : > { %v3915_v29 = vsel %vm1184_vm5, %v3913_v22, -inf }
0x1a1d   : > { %3916 = vmax.xlane.f32.xlu1 %v3915_v29  ;;  %v3860_v30 = vpop.f32.mrf.mxu0 }
0x1a1f   : > { %v6640_v31 = vpop.f32.mrf.mxu0 }
0x1a27   : > { %v7976_v32 = vpop.f32.mrf.mxu1 }
0x1a28   : > { %v6854_v42 = vpack.i.bf16 %v7976_v32, %v7973_v14 }
0x1a29   : > { %v6633_v43 = vpop.f32.mrf.mxu1 }
0x1a2b   : > { %v3810_v44 = vpop.f32.mrf.mxu1 }
0x1a2d   : > { %v6634_v49 = vpop.f32.mrf.mxu1 }
0x1a2e   : > { %3939 = vrot.lane.b32.xlu1 %v7889_v36, %s8377_s0 }
0x1a2f   : > { %v3907_v45 = vpop.f32.mrf.mxu1 }
0x1a30   : > { %v3914_v53 = vmul.f32 0.25, %v3907_v45 }
0x1a31   : > { %v6645_v46 = vpop.f32.mrf.mxu1 }
0x1a32   : > { %4037 = vrot.lane.b32.xlu1 %v7868_v12, %s8378_s19  ;;  %v3918_v47 = vsel %vm1184_vm5, %v3914_v53, -inf }
0x1a33   : > { %3919 = vmax.xlane.f32.xlu0 %v3918_v47  ;;  %v3910_v2 = vpop.f32.mrf.mxu1 }
0x1a35   : > { %v6646_v48 = vpop.f32.mrf.mxu1 }
0x1a36   : > { %4087 = vrot.lane.b32.xlu1 %v7878_v20, %s8378_s19 }
0x1a3a   : > { %4035 = vrot.lane.b32.xlu1 %v7880_v24, %s8378_s19 }
0x1aa6   : > { %v3917_v33 = vpop.xlane.xlu1 %3916 }
0x1aa7   : > { %v3921_v56 = vsub.f32 %v3913_v22, %v3917_v33 }
0x1aa9   : > { %v3923_v57 = vmul.f32 1.442695, %v3921_v56 }
0x1aaa   : > { %v3940_v55 = vpop.permute.xlu1 %3939 }
0x1aab   : > { %7093 = vpow2.f32 %v3923_v57  ;;  %v3945_v62 = vsel %vm1212_vm3, %v3940_v55, 0 }
0x1aac   : > { %6648 = vmatpush3.bf16.msra.mxu0 %v3945_v62 }
0x1aad   : > { %6659 = vmatprep.subr.bf16.mxu0 %v7163_v1 }
0x1aae   : > { %v4038_v58 = vpop.permute.xlu1 %4037 }
0x1aaf   : > { %v4043_v6 = vsel %vm1086_vm2, %v4038_v58, 0 }
0x1ab2   : > { %v4088_v59 = vpop.permute.xlu1 %4087 }
0x1ab3   : > { %v4093_v28 = vsel %vm1086_vm2, %v4088_v59, 0 }
0x1ab6   : > { %v4036_v52 = vpop.permute.xlu1 %4035 }
0x1ab8   : > { %v7094_v3 = vpop.eup %7093 }
0x1ab9   : > { %v3927_v4 = vsel %vm1184_vm5, %v7094_v3, 0.0 }
0x1aba   : > { %3928 = vadd.xlane.f32.xlu0 %v3927_v4 }
0x1abc   : > { %v3920_v61 = vpop.xlane.xlu0 %3919 }
0x1abd   : > { %v3922_v51 = vsub.f32 %v3914_v53, %v3920_v61 }
0x1abf   : > { %v3925_v9 = vmul.f32 1.442695, %v3922_v51 }
0x1ac1   : > { %7095 = vpow2.f32 %v3925_v9 }
0x1ace   : > { %v7096_v11 = vpop.eup %7095 }
0x1acf   : > { %v3930_v26 = vsel %vm1184_vm5, %v7096_v11, 0.0 }
0x1ad0   : > { %3931 = vadd.xlane.f32.xlu0 %v3930_v26 }
0x1ae6   : > { %3987 = vrot.lane.b32.xlu0 %v7917_v13, %s8377_s0 }
0x1aea   : > { %4085 = vrot.lane.b32.xlu0 %v7891_v38, %s8378_s19 }
0x1b43   : > { %v3929_v37 = vpop.xlane.xlu0 %3928 }
0x1b44   : > { %7097 = vrcp.f32 %v3929_v37 }
0x1b51   : > { %v7098_v40 = vpop.eup %7097 }
0x1b52   : > { %v3934_v60 = vmul.f32 %v7098_v40, %v7094_v3 }
0x1b54   : > { %v3937_v63 = vpack.c.bf16 %v3934_v60, %v3934_v60 }
0x1b56   : > { %6650 = vmatmul.mubr.msk.bf16.vlgmr.msra.gmra.mxu0 %vm1184_vm5, %v3937_v63 }
0x1b57   : > { %6660 = vmatpush3.bf16.xpose.msra.mxu0 %v4043_v6  ;;  %6661 = vmatprep.mubr.msk.bf16.mxu0 %vm7164_vm1, %v7163_v1 }
0x1b58   : > { %6671 = vmatprep.subr.bf16.mxu0 %v7163_v1 }
0x1b59   : > { %v3932_v50 = vpop.xlane.xlu0 %3931 }
0x1b5a   : > { %7099 = vrcp.f32 %v3932_v50 }
0x1b5d   : > { %v3988_v5 = vpop.permute.xlu0 %3987 }
0x1b5e   : > { %v3993_v7 = vsel %vm1212_vm3, %v3988_v5, 0  ;;  %6662 = vmatmul.mubr.msk.bf16.vlgmr.msra.gmra.mxu0 %vm1086_vm2, %v4036_v52 }
0x1b5f   : > { %6654 = vmatpush3.bf16.msra.mxu1 %v3993_v7  ;;  %6673 = vmatprep.mubr.msk.bf16.mxu0 %vm7164_vm1, %v7163_v1 }
0x1b60   : > { %6665 = vmatprep.subr.bf16.mxu1 %v7163_v1 }
0x1b61   : > { %v4086_v15 = vpop.permute.xlu0 %4085 }
0x1b67   : > { %v7100_v8 = vpop.eup %7099 }
0x1b68   : > { %v3936_v10 = vmul.f32 %v7100_v8, %v7096_v11 }
0x1b6a   : > { %v3938_v27 = vpack.c.bf16 %v3936_v10, %v3936_v10 }
0x1b6c   : > { %6656 = vmatmul.mubr.msk.bf16.vlgmr.msra.gmra.mxu1 %vm1184_vm5, %v3938_v27 }
0x1b6d   : > { %6666 = vmatpush3.bf16.xpose.msra.mxu1 %v4093_v28  ;;  %6667 = vmatprep.mubr.msk.bf16.mxu1 %vm7164_vm1, %v7163_v1 }
0x1b6e   : > { %6677 = vmatprep.subr.bf16.mxu1 %v7163_v1 }
0x1b74   : > { %6668 = vmatmul.mubr.msk.bf16.vlgmr.msra.gmra.mxu1 %vm1086_vm2, %v4086_v15 }
0x1b75   : > { %6679 = vmatprep.mubr.msk.bf16.mxu1 %vm7164_vm1, %v7163_v1 }
0x1c16   : > { %v8015_v16 = vpop.f32.mrf.mxu0 }
0x1c18   : > { %v6651_v17 = vpop.f32.mrf.mxu0 }
0x1c1a   : > { %v3984_v18 = vpop.f32.mrf.mxu0 }
0x1c1c   : > { %v6652_v22 = vpop.f32.mrf.mxu0 }
0x1c1e   : > { %v4079_v23 = vpop.f32.mrf.mxu0 }
0x1c1f   : > { %v4135_v29 = vmul.f32 0.25, %v4079_v23 }
0x1c20   : > { %v6663_v30 = vpop.f32.mrf.mxu0 }
0x1c21   : > { %v4137_v31 = vsel %vm1184_vm5, %v4135_v29, -inf }
0x1c22   : > { %4138 = vmax.xlane.f32.xlu1 %v4137_v31  ;;  %v4082_v43 = vpop.f32.mrf.mxu0 }
0x1c24   : > { %v6664_v44 = vpop.f32.mrf.mxu0 }
0x1c2c   : > { %v8018_v49 = vpop.f32.mrf.mxu1 }
0x1c2d   : > { %v6859_v45 = vpack.i.bf16 %v8018_v49, %v8015_v16 }
0x1c2e   : > { %v6657_v53 = vpop.f32.mrf.mxu1 }
0x1c30   : > { %v4032_v46 = vpop.f32.mrf.mxu1 }
0x1c32   : > { %v6658_v47 = vpop.f32.mrf.mxu1 }
0x1c33   : > { %4161 = vrot.lane.b32.xlu1 %v7889_v36, %s8378_s19 }
0x1c34   : > { %v4129_v2 = vpop.f32.mrf.mxu1 }
0x1c35   : > { %v4136_v48 = vmul.f32 0.25, %v4129_v2 }
0x1c36   : > { %v6669_v33 = vpop.f32.mrf.mxu1 }
0x1c37   : > { %4259 = vrot.lane.b32.xlu1 %v7868_v12, %s8379_s22  ;;  %v4140_v56 = vsel %vm1184_vm5, %v4136_v48, -inf }
0x1c38   : > { %4141 = vmax.xlane.f32.xlu0 %v4140_v56  ;;  %v4132_v57 = vpop.f32.mrf.mxu1 }
0x1c3a   : > { %v6670_v55 = vpop.f32.mrf.mxu1 }
0x1c3b   : > { %4309 = vrot.lane.b32.xlu1 %v7878_v20, %s8379_s22 }
0x1c3f   : > { %4257 = vrot.lane.b32.xlu1 %v7880_v24, %s8379_s22 }
0x1cab   : > { %v4139_v62 = vpop.xlane.xlu1 %4138 }
0x1cac   : > { %v4143_v3 = vsub.f32 %v4135_v29, %v4139_v62 }
0x1cae   : > { %v4145_v4 = vmul.f32 1.442695, %v4143_v3 }
0x1caf   : > { %v4162_v61 = vpop.permute.xlu1 %4161 }
0x1cb0   : > { %7101 = vpow2.f32 %v4145_v4  ;;  %v4167_v51 = vsel %vm1212_vm3, %v4162_v61, 0 }
0x1cb1   : > { %6672 = vmatpush3.bf16.msra.mxu0 %v4167_v51 }
0x1cb2   : > { %6683 = vmatprep.subr.bf16.mxu0 %v7163_v1 }
0x1cb3   : > { %v4260_v59 = vpop.permute.xlu1 %4259 }
0x1cb4   : > { %v4265_v5 = vsel %vm1086_vm2, %v4260_v59, 0 }
0x1cb7   : > { %v4310_v7 = vpop.permute.xlu1 %4309 }
0x1cb8   : > { %v4315_v22 = vsel %vm1086_vm2, %v4310_v7, 0 }
0x1cbb   : > { %v4258_v10 = vpop.permute.xlu1 %4257 }
0x1cbd   : > { %v7102_v9 = vpop.eup %7101 }
0x1cbe   : > { %v4149_v11 = vsel %vm1184_vm5, %v7102_v9, 0.0 }
0x1cbf   : > { %4150 = vadd.xlane.f32.xlu0 %v4149_v11 }
0x1cc1   : > { %v4142_v26 = vpop.xlane.xlu0 %4141 }
0x1cc2   : > { %v4144_v37 = vsub.f32 %v4136_v48, %v4142_v26 }
0x1cc4   : > { %v4147_v40 = vmul.f32 1.442695, %v4144_v37 }
0x1cc6   : > { %7103 = vpow2.f32 %v4147_v40 }
0x1cd3   : > { %v7104_v58 = vpop.eup %7103 }
0x1cd4   : > { %v4152_v60 = vsel %vm1184_vm5, %v7104_v58, 0.0 }
0x1cd5   : > { %4153 = vadd.xlane.f32.xlu0 %v4152_v60 }
0x1ceb   : > { %4209 = vrot.lane.b32.xlu0 %v7917_v13, %s8378_s19 }
0x1cef   : > { %4307 = vrot.lane.b32.xlu0 %v7891_v38, %s8379_s22 }
0x1d48   : > { %v4151_v63 = vpop.xlane.xlu0 %4150 }
0x1d49   : > { %7105 = vrcp.f32 %v4151_v63 }
0x1d56   : > { %v7106_v6 = vpop.eup %7105 }
0x1d57   : > { %v4156_v50 = vmul.f32 %v7106_v6, %v7102_v9 }
0x1d59   : > { %v4159_v52 = vpack.c.bf16 %v4156_v50, %v4156_v50 }
0x1d5b   : > { %6674 = vmatmul.mubr.msk.bf16.vlgmr.msra.gmra.mxu0 %vm1184_vm5, %v4159_v52 }
0x1d5c   : > { %6684 = vmatpush3.bf16.xpose.msra.mxu0 %v4265_v5  ;;  %6685 = vmatprep.mubr.msk.bf16.mxu0 %vm7164_vm1, %v7163_v1 }
0x1d5d   : > { %6695 = vmatprep.subr.bf16.mxu0 %v7163_v1 }
0x1d5e   : > { %v4154_v8 = vpop.xlane.xlu0 %4153 }
0x1d5f   : > { %7107 = vrcp.f32 %v4154_v8 }
0x1d62   : > { %v4210_v27 = vpop.permute.xlu0 %4209 }
0x1d63   : > { %v4215_v28 = vsel %vm1212_vm3, %v4210_v27, 0  ;;  %6686 = vmatmul.mubr.msk.bf16.vlgmr.msra.gmra.mxu0 %vm1086_vm2, %v4258_v10 }
0x1d64   : > { %6678 = vmatpush3.bf16.msra.mxu1 %v4215_v28  ;;  %6697 = vmatprep.mubr.msk.bf16.mxu0 %vm7164_vm1, %v7163_v1 }
0x1d65   : > { %6689 = vmatprep.subr.bf16.mxu1 %v7163_v1 }
0x1d66   : > { %v4308_v23 = vpop.permute.xlu0 %4307 }
0x1d6c   : > { %v7108_v15 = vpop.eup %7107 }
0x1d6d   : > { %v4158_v17 = vmul.f32 %v7108_v15, %v7104_v58 }
0x1d6f   : > { %v4160_v18 = vpack.c.bf16 %v4158_v17, %v4158_v17 }
0x1d71   : > { %6680 = vmatmul.mubr.msk.bf16.vlgmr.msra.gmra.mxu1 %vm1184_vm5, %v4160_v18 }
0x1d72   : > { %6690 = vmatpush3.bf16.xpose.msra.mxu1 %v4315_v22  ;;  %6691 = vmatprep.mubr.msk.bf16.mxu1 %vm7164_vm1, %v7163_v1 }
0x1d73   : > { %6701 = vmatprep.subr.bf16.mxu1 %v7163_v1 }
0x1d79   : > { %6692 = vmatmul.mubr.msk.bf16.vlgmr.msra.gmra.mxu1 %vm1086_vm2, %v4308_v23 }
0x1d7a   : > { %6703 = vmatprep.mubr.msk.bf16.mxu1 %vm7164_vm1, %v7163_v1 }
0x1e1b   : > { %v8057_v29 = vpop.f32.mrf.mxu0 }
0x1e1d   : > { %v6675_v30 = vpop.f32.mrf.mxu0 }
0x1e1f   : > { %v4206_v31 = vpop.f32.mrf.mxu0 }
0x1e21   : > { %v6676_v43 = vpop.f32.mrf.mxu0 }
0x1e23   : > { %v4301_v44 = vpop.f32.mrf.mxu0 }
0x1e24   : > { %v4357_v53 = vmul.f32 0.25, %v4301_v44 }
0x1e25   : > { %v6687_v46 = vpop.f32.mrf.mxu0 }
0x1e26   : > { %v4359_v47 = vsel %vm1184_vm5, %v4357_v53, -inf }
0x1e27   : > { %4360 = vmax.xlane.f32.xlu1 %v4359_v47  ;;  %v4304_v2 = vpop.f32.mrf.mxu0 }
0x1e29   : > { %v6688_v48 = vpop.f32.mrf.mxu0 }
0x1e31   : > { %v8060_v33 = vpop.f32.mrf.mxu1 }
0x1e32   : > { %v6864_v56 = vpack.i.bf16 %v8060_v33, %v8057_v29 }
0x1e33   : > { %v6681_v57 = vpop.f32.mrf.mxu1 }
0x1e35   : > { %v4254_v55 = vpop.f32.mrf.mxu1 }
0x1e37   : > { %v6682_v62 = vpop.f32.mrf.mxu1 }
0x1e38   : > { %4383 = vrot.lane.b32.xlu1 %v7889_v36, %s8379_s22 }
0x1e39   : > { %v4351_v3 = vpop.f32.mrf.mxu1 }
0x1e3a   : > { %v4358_v4 = vmul.f32 0.25, %v4351_v3 }
0x1e3b   : > { %v6693_v61 = vpop.f32.mrf.mxu1 }
0x1e3c   : > { %4481 = vrot.lane.b32.xlu1 %v7868_v12, %s8380_s1  ;;  %v4362_v51 = vsel %vm1184_vm5, %v4358_v4, -inf }
0x1e3d   : > { %4363 = vmax.xlane.f32.xlu0 %v4362_v51  ;;  %v4354_v9 = vpop.f32.mrf.mxu1 }
0x1e3f   : > { %v6694_v11 = vpop.f32.mrf.mxu1 }
0x1e40   : > { %4531 = vrot.lane.b32.xlu1 %v7878_v20, %s8380_s1 }
0x1e44   : > { %4479 = vrot.lane.b32.xlu1 %v7880_v24, %s8380_s1 }
0x1eb0   : > { %v4361_v26 = vpop.xlane.xlu1 %4360 }
0x1eb1   : > { %v4365_v37 = vsub.f32 %v4357_v53, %v4361_v26 }
0x1eb3   : > { %v4367_v40 = vmul.f32 1.442695, %v4365_v37 }
0x1eb4   : > { %v4384_v58 = vpop.permute.xlu1 %4383 }
0x1eb5   : > { %7109 = vpow2.f32 %v4367_v40  ;;  %v4389_v60 = vsel %vm1212_vm3, %v4384_v58, 0 }
0x1eb6   : > { %6696 = vmatpush3.bf16.msra.mxu0 %v4389_v60 }
0x1eb7   : > { %6707 = vmatprep.subr.bf16.mxu0 %v7163_v1 }
0x1eb8   : > { %v4482_v27 = vpop.permute.xlu1 %4481 }
0x1eb9   : > { %v4487_v17 = vsel %vm1086_vm2, %v4482_v27, 0 }
0x1ebc   : > { %v4532_v18 = vpop.permute.xlu1 %4531 }
0x1ebd   : > { %v4537_v46 = vsel %vm1086_vm2, %v4532_v18, 0 }
0x1ec0   : > { %v4480_v23 = vpop.permute.xlu1 %4479 }
0x1ec2   : > { %v7110_v63 = vpop.eup %7109 }
0x1ec3   : > { %v4371_v6 = vsel %vm1184_vm5, %v7110_v63, 0.0 }
0x1ec4   : > { %4372 = vadd.xlane.f32.xlu0 %v4371_v6 }
0x1ec6   : > { %v4364_v59 = vpop.xlane.xlu0 %4363 }
0x1ec7   : > { %v4366_v50 = vsub.f32 %v4358_v4, %v4364_v59 }
0x1ec9   : > { %v4369_v52 = vmul.f32 1.442695, %v4366_v50 }
0x1ecb   : > { %7111 = vpow2.f32 %v4369_v52 }
0x1ed8   : > { %v7112_v5 = vpop.eup %7111 }
0x1ed9   : > { %v4374_v7 = vsel %vm1184_vm5, %v7112_v5, 0.0 }
0x1eda   : > { %4375 = vadd.xlane.f32.xlu0 %v4374_v7 }
0x1ef0   : > { %4431 = vrot.lane.b32.xlu0 %v7917_v13, %s8379_s22 }
0x1ef4   : > { %4529 = vrot.lane.b32.xlu0 %v7891_v38, %s8380_s1 }
0x1f4d   : > { %v4373_v8 = vpop.xlane.xlu0 %4372 }
0x1f4e   : > { %7113 = vrcp.f32 %v4373_v8 }
0x1f5b   : > { %v7114_v10 = vpop.eup %7113 }
0x1f5c   : > { %v4378_v28 = vmul.f32 %v7114_v10, %v7110_v63 }
0x1f5e   : > { %v4381_v15 = vpack.c.bf16 %v4378_v28, %v4378_v28 }
0x1f60   : > { %6698 = vmatmul.mubr.msk.bf16.vlgmr.msra.gmra.mxu0 %vm1184_vm5, %v4381_v15 }
0x1f61   : > { %6708 = vmatpush3.bf16.xpose.msra.mxu0 %v4487_v17  ;;  %6709 = vmatprep.mubr.msk.bf16.mxu0 %vm7164_vm1, %v7163_v1 }
0x1f62   : > { %6719 = vmatprep.subr.bf16.mxu0 %v7163_v1 }
0x1f63   : > { %v4376_v22 = vpop.xlane.xlu0 %4375 }
0x1f64   : > { %7115 = vrcp.f32 %v4376_v22 }
0x1f67   : > { %v4432_v30 = vpop.permute.xlu0 %4431 }
0x1f68   : > { %v4437_v31 = vsel %vm1212_vm3, %v4432_v30, 0  ;;  %6710 = vmatmul.mubr.msk.bf16.vlgmr.msra.gmra.mxu0 %vm1086_vm2, %v4480_v23 }
0x1f69   : > { %6702 = vmatpush3.bf16.msra.mxu1 %v4437_v31  ;;  %6721 = vmatprep.mubr.msk.bf16.mxu0 %vm7164_vm1, %v7163_v1 }
0x1f6a   : > { %6713 = vmatprep.subr.bf16.mxu1 %v7163_v1 }
0x1f6b   : > { %v4530_v47 = vpop.permute.xlu0 %4529 }
0x1f71   : > { %v7116_v43 = vpop.eup %7115 }
0x1f72   : > { %v4380_v44 = vmul.f32 %v7116_v43, %v7112_v5 }
0x1f74   : > { %v4382_v53 = vpack.c.bf16 %v4380_v44, %v4380_v44 }
0x1f76   : > { %6704 = vmatmul.mubr.msk.bf16.vlgmr.msra.gmra.mxu1 %vm1184_vm5, %v4382_v53 }
0x1f77   : > { %6714 = vmatpush3.bf16.xpose.msra.mxu1 %v4537_v46  ;;  %6715 = vmatprep.mubr.msk.bf16.mxu1 %vm7164_vm1, %v7163_v1 }
0x1f78   : > { %6725 = vmatprep.subr.bf16.mxu1 %v7163_v1 }
0x1f7e   : > { %6716 = vmatmul.mubr.msk.bf16.vlgmr.msra.gmra.mxu1 %vm1086_vm2, %v4530_v47 }
0x1f7f   : > { %6727 = vmatprep.mubr.msk.bf16.mxu1 %vm7164_vm1, %v7163_v1 }
0x2020   : > { %v8099_v2 = vpop.f32.mrf.mxu0 }
0x2022   : > { %v6699_v48 = vpop.f32.mrf.mxu0 }
0x2024   : > { %v4428_v57 = vpop.f32.mrf.mxu0 }
0x2026   : > { %v6700_v55 = vpop.f32.mrf.mxu0 }
0x2028   : > { %v4523_v62 = vpop.f32.mrf.mxu0 }
0x2029   : > { %v4579_v3 = vmul.f32 0.25, %v4523_v62 }
0x202a   : > { %v6711_v4 = vpop.f32.mrf.mxu0 }
0x202b   : > { %v4581_v61 = vsel %vm1184_vm5, %v4579_v3, -inf }
0x202c   : > { %4582 = vmax.xlane.f32.xlu1 %v4581_v61  ;;  %v4526_v51 = vpop.f32.mrf.mxu0 }
0x202e   : > { %v6712_v9 = vpop.f32.mrf.mxu0 }
0x2036   : > { %v8102_v11 = vpop.f32.mrf.mxu1 }
0x2037   : > { %v6869_v26 = vpack.i.bf16 %v8102_v11, %v8099_v2 }
0x2038   : > { %v6705_v37 = vpop.f32.mrf.mxu1 }
0x203a   : > { %v4476_v40 = vpop.f32.mrf.mxu1 }
0x203c   : > { %v6706_v58 = vpop.f32.mrf.mxu1 }
0x203d   : > { %4605 = vrot.lane.b32.xlu1 %v7889_v36, %s8380_s1 }
0x203e   : > { %v4573_v60 = vpop.f32.mrf.mxu1 }
0x203f   : > { %v4580_v63 = vmul.f32 0.25, %v4573_v60 }
0x2040   : > { %v6717_v6 = vpop.f32.mrf.mxu1 }
0x2041   : > { %4703 = vrot.lane.b32.xlu1 %v7868_v12, %s8381_s20  ;;  %v4584_v59 = vsel %vm1184_vm5, %v4580_v63, -inf }
0x2042   : > { %4585 = vmax.xlane.f32.xlu0 %v4584_v59  ;;  %v4576_v50 = vpop.f32.mrf.mxu1 }
0x2044   : > { %v6718_v52 = vpop.f32.mrf.mxu1 }
0x2045   : > { %4753 = vrot.lane.b32.xlu1 %v7878_v20, %s8381_s20 }
0x2049   : > { %4701 = vrot.lane.b32.xlu1 %v7880_v24, %s8381_s20 }
0x20b5   : > { %v4583_v5 = vpop.xlane.xlu1 %4582 }
0x20b6   : > { %v4587_v7 = vsub.f32 %v4579_v3, %v4583_v5 }
0x20b8   : > { %v4589_v8 = vmul.f32 1.442695, %v4587_v7 }
0x20b9   : > { %v4606_v10 = vpop.permute.xlu1 %4605 }
0x20ba   : > { %7117 = vpow2.f32 %v4589_v8  ;;  %v4611_v27 = vsel %vm1212_vm3, %v4606_v10, 0 }
0x20bb   : > { %6720 = vmatpush3.bf16.msra.mxu0 %v4611_v27 }
0x20bc   : > { %6731 = vmatprep.subr.bf16.mxu0 %v7163_v1 }
0x20bd   : > { %v4704_v44 = vpop.permute.xlu1 %4703 }
0x20be   : > { %v4709_v47 = vsel %vm1086_vm2, %v4704_v44, 0 }
0x20c1   : > { %v4754_v48 = vpop.permute.xlu1 %4753 }
0x20c2   : > { %v4759_v9 = vsel %vm1086_vm2, %v4754_v48, 0 }
0x20c5   : > { %v4702_v55 = vpop.permute.xlu1 %4701 }
0x20c7   : > { %v7118_v28 = vpop.eup %7117 }
0x20c8   : > { %v4593_v15 = vsel %vm1184_vm5, %v7118_v28, 0.0 }
0x20c9   : > { %4594 = vadd.xlane.f32.xlu0 %v4593_v15 }
0x20cb   : > { %v4586_v17 = vpop.xlane.xlu0 %4585 }
0x20cc   : > { %v4588_v18 = vsub.f32 %v4580_v63, %v4586_v17 }
0x20ce   : > { %v4591_v22 = vmul.f32 1.442695, %v4588_v18 }
0x20d0   : > { %7119 = vpow2.f32 %v4591_v22 }
0x20dd   : > { %v7120_v23 = vpop.eup %7119 }
0x20de   : > { %v4596_v30 = vsel %vm1184_vm5, %v7120_v23, 0.0 }
0x20df   : > { %4597 = vadd.xlane.f32.xlu0 %v4596_v30 }
0x20f5   : > { %4653 = vrot.lane.b32.xlu0 %v7917_v13, %s8380_s1 }
0x20f9   : > { %4751 = vrot.lane.b32.xlu0 %v7891_v38, %s8381_s20 }
0x2152   : > { %v4595_v31 = vpop.xlane.xlu0 %4594 }
0x2153   : > { %7121 = vrcp.f32 %v4595_v31 }
0x2160   : > { %v7122_v43 = vpop.eup %7121 }
0x2161   : > { %v4600_v53 = vmul.f32 %v7122_v43, %v7118_v28 }
0x2163   : > { %v4603_v46 = vpack.c.bf16 %v4600_v53, %v4600_v53 }
0x2165   : > { %6722 = vmatmul.mubr.msk.bf16.vlgmr.msra.gmra.mxu0 %vm1184_vm5, %v4603_v46 }
0x2166   : > { %6732 = vmatpush3.bf16.xpose.msra.mxu0 %v4709_v47  ;;  %6733 = vmatprep.mubr.msk.bf16.mxu0 %vm7164_vm1, %v7163_v1 }
0x2167   : > { %6743 = vmatprep.subr.bf16.mxu0 %v7163_v1 }
0x2168   : > { %v4598_v57 = vpop.xlane.xlu0 %4597 }
0x2169   : > { %7123 = vrcp.f32 %v4598_v57 }
0x216c   : > { %v4654_v62 = vpop.permute.xlu0 %4653 }
0x216d   : > { %v4659_v3 = vsel %vm1212_vm3, %v4654_v62, 0  ;;  %6734 = vmatmul.mubr.msk.bf16.vlgmr.msra.gmra.mxu0 %vm1086_vm2, %v4702_v55 }
0x216e   : > { %6726 = vmatpush3.bf16.msra.mxu1 %v4659_v3  ;;  %6745 = vmatprep.mubr.msk.bf16.mxu0 %vm7164_vm1, %v7163_v1 }
0x216f   : > { %6737 = vmatprep.subr.bf16.mxu1 %v7163_v1 }
0x2170   : > { %v4752_v37 = vpop.permute.xlu0 %4751 }
0x2176   : > { %v7124_v4 = vpop.eup %7123 }
0x2177   : > { %v4602_v61 = vmul.f32 %v7124_v4, %v7120_v23 }
0x2179   : > { %v4604_v51 = vpack.c.bf16 %v4602_v61, %v4602_v61 }
0x217b   : > { %6728 = vmatmul.mubr.msk.bf16.vlgmr.msra.gmra.mxu1 %vm1184_vm5, %v4604_v51 }
0x217c   : > { %6738 = vmatpush3.bf16.xpose.msra.mxu1 %v4759_v9  ;;  %6739 = vmatprep.mubr.msk.bf16.mxu1 %vm7164_vm1, %v7163_v1 }
0x217d   : > { %6749 = vmatprep.subr.bf16.mxu1 %v7163_v1 }
0x2183   : > { %6740 = vmatmul.mubr.msk.bf16.vlgmr.msra.gmra.mxu1 %vm1086_vm2, %v4752_v37 }
0x2184   : > { %6751 = vmatprep.mubr.msk.bf16.mxu1 %vm7164_vm1, %v7163_v1 }
0x2225   : > { %v8141_v40 = vpop.f32.mrf.mxu0 }
0x2227   : > { %v6723_v58 = vpop.f32.mrf.mxu0 }
0x2229   : > { %v4650_v60 = vpop.f32.mrf.mxu0 }
0x222b   : > { %v6724_v63 = vpop.f32.mrf.mxu0 }
0x222d   : > { %v4745_v6 = vpop.f32.mrf.mxu0 }
0x222e   : > { %v4801_v59 = vmul.f32 0.25, %v4745_v6 }
0x222f   : > { %v6735_v50 = vpop.f32.mrf.mxu0 }
0x2230   : > { %v4803_v52 = vsel %vm1184_vm5, %v4801_v59, -inf }
0x2231   : > { %4804 = vmax.xlane.f32.xlu1 %v4803_v52  ;;  %v4748_v5 = vpop.f32.mrf.mxu0 }
0x2233   : > { %v6736_v7 = vpop.f32.mrf.mxu0 }
0x223b   : > { %v8144_v8 = vpop.f32.mrf.mxu1 }
0x223c   : > { %v6874_v10 = vpack.i.bf16 %v8144_v8, %v8141_v40 }
0x223d   : > { %v6729_v27 = vpop.f32.mrf.mxu1 }
0x223f   : > { %v4698_v28 = vpop.f32.mrf.mxu1 }
0x2241   : > { %v6730_v15 = vpop.f32.mrf.mxu1 }
0x2242   : > { %4827 = vrot.lane.b32.xlu1 %v7889_v36, %s8381_s20 }
0x2243   : > { %v4795_v17 = vpop.f32.mrf.mxu1 }
0x2244   : > { %v4802_v18 = vmul.f32 0.25, %v4795_v17 }
0x2245   : > { %v6741_v22 = vpop.f32.mrf.mxu1 }
0x2246   : > { %4925 = vrot.lane.b32.xlu1 %v7868_v12, %s8382_s21  ;;  %v4806_v23 = vsel %vm1184_vm5, %v4802_v18, -inf }
0x2247   : > { %4807 = vmax.xlane.f32.xlu0 %v4806_v23  ;;  %v4798_v30 = vpop.f32.mrf.mxu1 }
0x2249   : > { %v6742_v31 = vpop.f32.mrf.mxu1 }
0x224a   : > { %4975 = vrot.lane.b32.xlu1 %v7878_v20, %s8382_s21 }
0x224e   : > { %4923 = vrot.lane.b32.xlu1 %v7880_v24, %s8382_s21 }
0x22ba   : > { %v4805_v43 = vpop.xlane.xlu1 %4804 }
0x22bb   : > { %v4809_v44 = vsub.f32 %v4801_v59, %v4805_v43 }
0x22bd   : > { %v4811_v53 = vmul.f32 1.442695, %v4809_v44 }
0x22be   : > { %v4828_v46 = vpop.permute.xlu1 %4827 }
0x22bf   : > { %7125 = vpow2.f32 %v4811_v53  ;;  %v4833_v47 = vsel %vm1212_vm3, %v4828_v46, 0 }
0x22c0   : > { %6744 = vmatpush3.bf16.msra.mxu0 %v4833_v47 }
0x22c1   : > { %6755 = vmatprep.subr.bf16.mxu0 %v7163_v1 }
0x22c2   : > { %v4926_v61 = vpop.permute.xlu1 %4925 }
0x22c3   : > { %v4931_v37 = vsel %vm1086_vm2, %v4926_v61, 0 }
0x22c6   : > { %v4976_v58 = vpop.permute.xlu1 %4975 }
0x22c7   : > { %v4981_v5 = vsel %vm1086_vm2, %v4976_v58, 0 }
0x22cc   : > { %v7126_v12 = vpop.eup %7125 }
0x22cd   : > { %v4815_v48 = vsel %vm1184_vm5, %v7126_v12, 0.0 }
0x22ce   : > { %4816 = vadd.xlane.f32.xlu0 %v4815_v48 }
0x22d0   : > { %v4808_v57 = vpop.xlane.xlu0 %4807 }
0x22d1   : > { %v4810_v55 = vsub.f32 %v4802_v18, %v4808_v57 }
0x22d3   : > { %v4813_v20 = vmul.f32 1.442695, %v4810_v55 }
0x22d5   : > { %7127 = vpow2.f32 %v4813_v20 }
0x22e2   : > { %v7128_v62 = vpop.eup %7127 }
0x22e3   : > { %v4818_v24 = vsel %vm1184_vm5, %v7128_v62, 0.0 }
0x22e4   : > { %4819 = vadd.xlane.f32.xlu0 %v4818_v24 }
0x22fa   : > { %4875 = vrot.lane.b32.xlu0 %v7917_v13, %s8381_s20 }
0x22fe   : > { %4973 = vrot.lane.b32.xlu0 %v7891_v38, %s8382_s21  ;;  %v4924_v38 = vpop.permute.xlu1 %4923 }
0x2357   : > { %v4817_v3 = vpop.xlane.xlu0 %4816 }
0x2358   : > { %7129 = vrcp.f32 %v4817_v3 }
0x2365   : > { %v7130_v4 = vpop.eup %7129 }
0x2366   : > { %v4822_v51 = vmul.f32 %v7130_v4, %v7126_v12 }
0x2368   : > { %v4825_v9 = vpack.c.bf16 %v4822_v51, %v4822_v51 }
0x236a   : > { %6746 = vmatmul.mubr.msk.bf16.vlgmr.msra.gmra.mxu0 %vm1184_vm5, %v4825_v9 }
0x236b   : > { %6756 = vmatpush3.bf16.xpose.msra.mxu0 %v4931_v37  ;;  %6757 = vmatprep.mubr.msk.bf16.mxu0 %vm7164_vm1, %v7163_v1 }
0x236c   : > { %6767 = vmatprep.subr.bf16.mxu0 %v7163_v1 }
0x236d   : > { %v4820_v60 = vpop.xlane.xlu0 %4819 }
0x236e   : > { %7131 = vrcp.f32 %v4820_v60 }
0x2371   : > { %v4876_v63 = vpop.permute.xlu0 %4875 }
0x2372   : > { %v4881_v6 = vsel %vm1212_vm3, %v4876_v63, 0  ;;  %6758 = vmatmul.mubr.msk.bf16.vlgmr.msra.gmra.mxu0 %vm1086_vm2, %v4924_v38 }
0x2373   : > { %6750 = vmatpush3.bf16.msra.mxu1 %v4881_v6  ;;  %6769 = vmatprep.mubr.msk.bf16.mxu0 %vm7164_vm1, %v7163_v1 }
0x2374   : > { %6761 = vmatprep.subr.bf16.mxu1 %v7163_v1 }
0x2375   : > { %v4974_v7 = vpop.permute.xlu0 %4973 }
0x237b   : > { %v7132_v59 = vpop.eup %7131 }
0x237c   : > { %v4824_v50 = vmul.f32 %v7132_v59, %v7128_v62 }
0x237e   : > { %v4826_v52 = vpack.c.bf16 %v4824_v50, %v4824_v50 }
0x2380   : > { %6752 = vmatmul.mubr.msk.bf16.vlgmr.msra.gmra.mxu1 %vm1184_vm5, %v4826_v52 }
0x2381   : > { %6762 = vmatpush3.bf16.xpose.msra.mxu1 %v4981_v5  ;;  %6763 = vmatprep.mubr.msk.bf16.mxu1 %vm7164_vm1, %v7163_v1 }
0x2382   : > { %6773 = vmatprep.subr.bf16.mxu1 %v7163_v1 }
0x2388   : > { %6764 = vmatmul.mubr.msk.bf16.vlgmr.msra.gmra.mxu1 %vm1086_vm2, %v4974_v7 }
0x2389   : > { %6775 = vmatprep.mubr.msk.bf16.mxu1 %vm7164_vm1, %v7163_v1 }
0x242a   : > { %v4869_v27 = vpop.f32.mrf.mxu0 }
0x242c   : > { %v6747_v28 = vpop.f32.mrf.mxu0 }
0x242e   : > { %v4872_v15 = vpop.f32.mrf.mxu0 }
0x2430   : > { %v6748_v17 = vpop.f32.mrf.mxu0 }
0x2432   : > { %v4967_v18 = vpop.f32.mrf.mxu0 }
0x2433   : > { %v5023_v22 = vmul.f32 0.25, %v4967_v18 }
0x2434   : > { %v6759_v23 = vpop.f32.mrf.mxu0 }
0x2435   : > { %v5025_v30 = vsel %vm1184_vm5, %v5023_v22, -inf }
0x2436   : > { %5026 = vmax.xlane.f32.xlu1 %v5025_v30  ;;  %v4970_v31 = vpop.f32.mrf.mxu0 }
0x2438   : > { %v6760_v43 = vpop.f32.mrf.mxu0 }
0x2440   : > { %v4917_v44 = vpop.f32.mrf.mxu1 }
0x2441   : > { %v6879_v53 = vpack.i.bf16 %v4917_v44, %v4869_v27 }
0x2442   : > { %v6753_v46 = vpop.f32.mrf.mxu1 }
0x2444   : > { %v4920_v47 = vpop.f32.mrf.mxu1 }
0x2446   : > { %v6754_v12 = vpop.f32.mrf.mxu1 }
0x2447   : > { %5049 = vrot.lane.b32.xlu1 %v7889_v36, %s8382_s21 }
0x2448   : > { %v5017_v48 = vpop.f32.mrf.mxu1 }
0x2449   : > { %v5024_v57 = vmul.f32 0.25, %v5017_v48 }
0x244a   : > { %v6765_v55 = vpop.f32.mrf.mxu1 }
0x244b   : > { %6855 = vrot.lane.b32.xlu1 %v6854_v42, %s8382_s21  ;;  %v5028_v20 = vsel %vm1184_vm5, %v5024_v57, -inf }
0x244c   : > { %5029 = vmax.xlane.f32.xlu0 %v5028_v20  ;;  %v5020_v62 = vpop.f32.mrf.mxu1 }
0x244e   : > { %v6766_v24 = vpop.f32.mrf.mxu1 }
0x244f   : > { %6860 = vrot.lane.b32.xlu1 %v6859_v45, %s8381_s20 }
0x2453   : > { %6865 = vrot.lane.b32.xlu1 %v6864_v56, %s8380_s1  ;;  %s783_s1 = scalar_lea.vmem %s8350_s11, %s7280_s29 }
0x2457   : > { %6875 = vrot.lane.b32.xlu1 %v6874_v10, %s8378_s19  ;;  %s792_s19 = scalar_lea.vmem %s8352_s13, %s5968_s26 }
0x24bf   : > { %v5027_v36 = vpop.xlane.xlu1 %5026 }
0x24c0   : > { %v5031_v14 = vsub.f32 %v5023_v22, %v5027_v36 }
0x24c2   : > { %v5033_v32 = vmul.f32 1.442695, %v5031_v14 }
0x24c3   : > { %v5050_v42 = vpop.permute.xlu1 %5049 }
0x24c4   : > { %7133 = vpow2.f32 %v5033_v32  ;;  %v5055_v3 = vsel %vm1212_vm3, %v5050_v42, 0 }
0x24c5   : > { %6768 = vmatpush3.bf16.msra.mxu0 %v5055_v3 }
0x24c6   : > { %6779 = vmatprep.subr.bf16.mxu0 %v7163_v1 }
0x24c7   : > { %v6856_v22 = vpop.permute.xlu1 %6855 }
0x24c8   : > { %v6858_v43 = vunpack.i.h.bf16 %v6856_v22  ;;  %v6857_v44 = vunpack.i.l.bf16 %v6856_v22 }
0x24ca   : > { %v5201_v55 = vsel %vm1086_vm2, %v7934_v25, %v6857_v44 }
0x24cb   : > { %v6861_v23 = vpop.permute.xlu1 %6860 }
0x24cf   : > { %v6866_v31 = vpop.permute.xlu1 %6865 }
0x24d0   : > { %v6868_v46 = vunpack.i.h.bf16 %v6866_v31  ;;  %v6867_v47 = vunpack.i.l.bf16 %v6866_v31 }
0x24d1   : > { %v7134_v16 = vpop.eup %7133 }
0x24d2   : > { %v5037_v49 = vsel %vm1184_vm5, %v7134_v16, 0.0 }
0x24d3   : > { %5038 = vadd.xlane.f32.xlu0 %v5037_v49  ;;  %v6876_v36 = vpop.permute.xlu1 %6875 }
0x24d4   : > { %v6878_v49 = vunpack.i.h.bf16 %v6876_v36 }
0x24d5   : > { %v5030_v45 = vpop.xlane.xlu0 %5029 }
0x24d6   : > { %v5032_v29 = vsub.f32 %v5024_v57, %v5030_v45  ;;  %v5202_v57 = vsel %vm1086_vm2, %v7936_v41, %v6858_v43  ;;  %v6877_v45 = vunpack.i.l.bf16 %v6876_v36  ;;  %v7001_v36 = vld [vmem:[%s7806_s28 + $0x58] sm:$0xff]  }
0x24d8   : > { %v5035_v33 = vmul.f32 1.442695, %v5032_v29 }
0x24da   : > { %7135 = vpow2.f32 %v5035_v33 }
0x24e7   : > { %v7136_v56 = vpop.eup %7135 }
0x24e8   : > { %v5040_v40 = vsel %vm1184_vm5, %v7136_v56, 0.0 }
0x24e9   : > { %5041 = vadd.xlane.f32.xlu0 %v5040_v40 }
0x24ff   : > { %5097 = vrot.lane.b32.xlu0 %v7917_v13, %s8382_s21 }
0x2503   : > { %6870 = vrot.lane.b32.xlu0 %v6869_v26, %s8379_s22  ;;  %s780_s22 = scalar_lea.vmem %s8349_s10, %s7740_s2 }
0x2504   : > { %v6961_v37 = vld [vmem:[%s780_s22 + $0x38] sm:$0xff]   ;;  %v6962_v58 = vld [vmem:[%s780_s22 + $0x30] sm:$0xff]   ;;  %v6963_v60 = vld [vmem:[%s780_s22 + $0x28] sm:$0xff]  }
0x2505   : > { %v6964_v38 = vld [vmem:[%s780_s22 + $0x20] sm:$0xff]   ;;  %v6965_v63 = vld [vmem:[%s780_s22 + $0x18] sm:$0xff]   ;;  %v6967_v6 = vld [vmem:[%s780_s22 + $0x8] sm:$0xff]  }
0x2506   : > { %v6968_v7 = vld [vmem:[%s780_s22] sm:$0xff]  }
0x2507   : > { %6880 = vrot.lane.b32.xlu0 %v6879_v53, %s8377_s0  ;;  %v6862_v53 = vunpack.i.l.bf16 %v6861_v23  ;;  %s8258_s0 = scalar_lea.vmem %s8351_s12, %s7778_s24 }
0x2508   : > { %v6978_v22 = vld [vmem:[%s8258_s0 + $0x40] ss:$8 sps:$4 sm:$0xff]   ;;  %v6986_v31 = vld [vmem:[%s8258_s0 + $0x24] ss:$8 sps:$4 sm:$0xff]   ;;  %v6989_v44 = vld [vmem:[%s8258_s0 + $0x14] ss:$8 sps:$4 sm:$0xff]  }
0x2509   : > { %v5203_v62 = vsel %vm2934_vm6, %v5201_v55, %v6862_v53  ;;  %v6984_v43 = vld [vmem:[%s8258_s0 + $0x20] ss:$8 sps:$4 sm:$0xff]   ;;  %v6992_v53 = vld [vmem:[%s8258_s0 + $0x4] ss:$8 sps:$4 sm:$0xff]  }
0x250a   : > { %v5205_v14 = vsel %vm2937_vm7, %v5203_v62, %v6867_v47  ;;  %v6993_v47 = vld [vmem:[%s7806_s28 + $0x78] sm:$0xff]   ;;  %v6997_v55 = vld [vmem:[%s7806_s28 + $0x68] sm:$0xff]   ;;  %v6999_v62 = vld [vmem:[%s7806_s28 + $0x60] sm:$0xff]  }
0x255c   : > { %v5039_v8 = vpop.xlane.xlu0 %5038 }
0x255d   : > { %7137 = vrcp.f32 %v5039_v8 }
0x256a   : > { %v7138_v10 = vpop.eup %7137 }
0x256b   : > { %v5044_v4 = vmul.f32 %v7138_v10, %v7134_v16 }
0x256d   : > { %v5047_v61 = vpack.c.bf16 %v5044_v4, %v5044_v4 }
0x256f   : > { %6770 = vmatmul.mubr.msk.bf16.vlgmr.msra.gmra.mxu0 %vm1184_vm5, %v5047_v61 }
0x2570   : > { %6795 = vmatprep.mubr.msk.bf16.mxu0 %vm7164_vm1, %v7163_v1  ;;  %6780 = vmatpush3.bf16.msra.mxu0 %v6961_v37 }
0x2571   : > { %6781 = vmatprep.subr.bf16.mxu0 %v7163_v1 }
0x2572   : > { %v5042_v51 = vpop.xlane.xlu0 %5041 }
0x2573   : > { %7139 = vrcp.f32 %v5042_v51 }
0x2574   : > { %6782 = vmatpush3.bf16.msra.mxu0 %v6962_v58 }
0x2575   : > { %6783 = vmatprep.subr.bf16.mxu0 %v7163_v1 }
0x2576   : > { %v5098_v13 = vpop.permute.xlu0 %5097 }
0x2577   : > { %v5103_v9 = vsel %vm1212_vm3, %v5098_v13, 0  ;;  %v6099_v13 = vld [vmem:[%s783_s1] ss:$0 sm:$0xff] }
0x2578   : > { %6774 = vmatpush3.bf16.msra.mxu1 %v5103_v9  ;;  %6784 = vmatpush3.bf16.msra.mxu0 %v6963_v60 }
0x2579   : > { %6785 = vmatprep.subr.bf16.mxu0 %v7163_v1 }
0x257a   : > { %v6871_v30 = vpop.permute.xlu0 %6870 }
0x257b   : > { %v6873_v12 = vunpack.i.h.bf16 %v6871_v30  ;;  %v6872_v48 = vunpack.i.l.bf16 %v6871_v30  ;;  %v6981_v30 = vld [vmem:[%s8258_s0 + $0x30] ss:$8 sps:$4 sm:$0xff]  }
0x257c   : > { %6786 = vmatpush3.bf16.msra.mxu0 %v6964_v38 }
0x257d   : > { %6787 = vmatprep.subr.bf16.mxu0 %v7163_v1  ;;  %v5207_v3 = vsel %vm2940_vm8, %v5205_v14, %v6872_v48  ;;  %v6995_v48 = vld [vmem:[%s7806_s28 + $0x70] sm:$0xff]   ;;  %v7002_v14 = vld [vmem:[%s7806_s28 + $0x18] sm:$0xff]  }
0x257e   : > { %v6881_v20 = vpop.permute.xlu0 %6880  ;;  %v5209_v29 = vsel %vm2943_vm9, %v5207_v3, %v6877_v45 }
0x257f   : > { %v6883_v16 = vunpack.i.h.bf16 %v6881_v20  ;;  %v6882_v41 = vunpack.i.l.bf16 %v6881_v20  ;;  %v6998_v20 = vld [vmem:[%s7806_s28 + $0x28] sm:$0xff]  }
0x2580   : > { %v7140_v2 = vpop.eup %7139  ;;  %6788 = vmatpush3.bf16.msra.mxu0 %v6965_v63  ;;  %v6969_v63 = vld [vmem:[%s8258_s0 + $0x70] ss:$8 sps:$4 sm:$0xff]  }
0x2581   : > { %v5046_v11 = vmul.f32 %v7140_v2, %v7136_v56  ;;  %6789 = vmatprep.subr.bf16.mxu0 %v7163_v1  ;;  %v5211_v8 = vsel %vm2946_vm10, %v5209_v29, %v6882_v41 }
0x2583   : > { %v5048_v26 = vpack.c.bf16 %v5046_v11, %v5046_v11 }
0x2585   : > { %6776 = vmatmul.mubr.msk.bf16.vlgmr.msra.gmra.mxu1 %vm1184_vm5, %v5048_v26 }
0x2586   : > { %5505 = vmatprep.mubr.bf16.mxu1 %v7162_v0  ;;  %v6966_v0 = vld [vmem:[%s780_s22 + $0x10] sm:$0xff]   ;;  %s800_s22 = scalar_lea.vmem %s8354_s15, %s7280_s29 }
0x2587   : > { %6790 = vmatpush3.bf16.msra.mxu0 %v6966_v0  ;;  %v6971_v0 = vld [vmem:[%s8258_s0 + $0x74] ss:$8 sps:$4 sm:$0xff]  }
0x2588   : > { %6791 = vmatprep.subr.bf16.mxu0 %v7163_v1  ;;  %5473 = vmatprep.subr.bf16.mxu1 %v6971_v0 }
0x2589   : > { %5474 = vmatpush1.bf16.msra.mxu1 %v6969_v63 }
0x258b   : > { %6792 = vmatpush3.bf16.msra.mxu0 %v6967_v6 }
0x258c   : > { %6793 = vmatprep.subr.bf16.mxu0 %v7163_v1  ;;  %v6863_v1 = vunpack.i.h.bf16 %v6861_v23  ;;  %v6983_v23 = vld [vmem:[%s8258_s0 + $0x34] ss:$8 sps:$4 sm:$0xff]  }
0x258e   : > { %v5204_v24 = vsel %vm2934_vm6, %v5202_v57, %v6863_v1  ;;  %v6987_v1 = vld [vmem:[%s8258_s0 + $0x10] ss:$8 sps:$4 sm:$0xff]  }
0x258f   : > { %6794 = vmatpush3.bf16.msra.mxu0 %v6968_v7  ;;  %v5206_v32 = vsel %vm2937_vm7, %v5204_v24, %v6868_v46  ;;  %v6990_v46 = vld [vmem:[%s8258_s0] ss:$8 sps:$4 sm:$0xff]   ;;  %v6996_v57 = vld [vmem:[%s7806_s28 + $0x30] sm:$0xff]  }
0x2590   : > { %v5208_v42 = vsel %vm2940_vm8, %v5206_v32, %v6873_v12  ;;  %v6994_v12 = vld [vmem:[%s7806_s28 + $0x38] sm:$0xff]   ;;  %6313 = vmatprep.subr.bf16.mxu0 %v6993_v47  ;;  %v7000_v24 = vld [vmem:[%s7806_s28 + $0x20] sm:$0xff]  }
0x2591   : > { %v5210_v33 = vsel %vm2943_vm9, %v5208_v42, %v6878_v49 }
0x2592   : > { %v5212_v10 = vsel %vm2946_vm10, %v5210_v33, %v6883_v16 }
0x262f   : > { %v5091_v59 = vpop.f32.mrf.mxu0 }
0x2631   : > { %v6771_v50 = vpop.f32.mrf.mxu0 }
0x2633   : > { %v5094_v52 = vpop.f32.mrf.mxu0 }
0x2635   : > { %v6772_v5 = vpop.f32.mrf.mxu0 }
0x2645   : > { %v5139_v27 = vpop.f32.mrf.mxu1 }
0x2646   : > { %v6884_v28 = vpack.i.bf16 %v5139_v27, %v5091_v59  ;;  %v6974_v27 = vld [vmem:[%s8258_s0 + $0x64] ss:$8 sps:$4 sm:$0xff]  }
0x2647   : > { %v6777_v15 = vpop.f32.mrf.mxu1  ;;  %5475 = vmatprep.subr.bf16.mxu1 %v6974_v27 }
0x2648   : > { %6885 = vrot.lane.b32.xlu1 %v6884_v28, %s7165_s30  ;;  %v6972_v28 = vld [vmem:[%s8258_s0 + $0x60] ss:$8 sps:$4 sm:$0xff]   ;;  %v6977_v15 = vld [vmem:[%s8258_s0 + $0x54] ss:$8 sps:$4 sm:$0xff]  }
0x2649   : > { %v5142_v17 = vpop.f32.mrf.mxu1  ;;  %5476 = vmatpush1.bf16.msra.mxu1 %v6972_v28 }
0x264a   : > { %v6975_v17 = vld [vmem:[%s8258_s0 + $0x50] ss:$8 sps:$4 sm:$0xff]   ;;  %5477 = vmatprep.subr.bf16.mxu1 %v6977_v15 }
0x264b   : > { %v6778_v18 = vpop.f32.mrf.mxu1 }
0x264c   : > { %v6980_v18 = vld [vmem:[%s8258_s0 + $0x44] ss:$8 sps:$4 sm:$0xff]  }
0x264d   : > { %5478 = vmatpush1.bf16.msra.mxu1 %v6975_v17 }
0x264e   : > { %5479 = vmatprep.subr.bf16.mxu1 %v6980_v18 }
0x2651   : > { %5480 = vmatpush1.bf16.msra.mxu1 %v6978_v22 }
0x2652   : > { %5481 = vmatprep.subr.bf16.mxu1 %v6983_v23  ;;  %v6124_v23 = vld [vmem:[%s800_s22] ss:$0 sm:$0xff] }
0x2655   : > { %5482 = vmatpush1.bf16.msra.mxu1 %v6981_v30 }
0x2656   : > { %5483 = vmatprep.subr.bf16.mxu1 %v6986_v31 }
0x2659   : > { %5484 = vmatpush1.bf16.msra.mxu1 %v6984_v43 }
0x265a   : > { %5485 = vmatprep.subr.bf16.mxu1 %v6989_v44 }
0x265d   : > { %5486 = vmatpush1.bf16.msra.mxu1 %v6987_v1 }
0x265e   : > { %5487 = vmatprep.subr.bf16.mxu1 %v6992_v53 }
0x2661   : > { %5488 = vmatpush1.bf16.msra.mxu1 %v6990_v46 }
0x26ba   : > { %v6886_v25 = vpop.permute.xlu1 %6885 }
0x26bb   : > { %v6888_v56 = vunpack.i.h.bf16 %v6886_v25  ;;  %v6887_v40 = vunpack.i.l.bf16 %v6886_v25  ;;  %v8295_v25 = vld [vmem:[%s7847_s23] sm:$0x3f] }
0x26bc   : > { %v5355_v29 = vrot.slane %v8295_v25, %v861_v54  ;;  %v7003_v54 = vld [vmem:[%s7806_s28 + $0x50] sm:$0xff]  }
0x26bd   : > { %v5214_v4 = vsel %vm2949_vm11, %v5212_v10, %v6888_v56  ;;  %v5213_v61 = vsel %vm2949_vm11, %v5211_v8, %v6887_v40  ;;  %v5360_v56 = vsub.s32 3, %v7339_v34 }
0x26be   : > { %v5215_v51 = vpack.c.bf16 %v5214_v4, %v5213_v61 }
0x26bf   : > { %v5361_v4 = vrot.slane %v8295_v25, %v5360_v56 }
0x26c0   : > { %6796 = vmatmul.mubr.bf16.vlgmr.msra.gmra.mxu0 %v5215_v51 }
0x26c1   : > { %6314 = vmatpush3.bf16.msra.mxu0 %v6994_v12 }
0x26c2   : > { %6315 = vmatprep.subr.bf16.mxu0 %v6995_v48 }
0x26c5   : > { %6316 = vmatpush3.bf16.msra.mxu0 %v6996_v57 }
0x26c6   : > { %6317 = vmatprep.subr.bf16.mxu0 %v6997_v55 }
0x26c9   : > { %6318 = vmatpush3.bf16.msra.mxu0 %v6998_v20 }
0x26ca   : > { %6319 = vmatprep.subr.bf16.mxu0 %v6999_v62 }
0x26cd   : > { %6320 = vmatpush3.bf16.msra.mxu0 %v7000_v24 }
0x26ce   : > { %6321 = vmatprep.subr.bf16.mxu0 %v7001_v36 }
0x26d1   : > { %6322 = vmatpush3.bf16.msra.mxu0 %v7002_v14 }
0x26d2   : > { %6323 = vmatprep.subr.bf16.mxu0 %v7003_v54 }
0x2780   : > { %v5321_v9 = vpop.f32.mrf.mxu0 }
0x2781   : > { %v5322_v2 = vadd.f32 %v6099_v13, %v5321_v9 }
0x2782   : > { %v6797_v11 = vpop.f32.mrf.mxu0 }
0x2783   : > { %v5328_v26 = vadd.f32 %v5322_v2, %v7853_v19  ;;  %v7004_v2 = vld [vmem:[%s7806_s28 + $0x10] sm:$0xff]   ;;  %v7005_v11 = vld [vmem:[%s7806_s28 + $0x48] sm:$0xff]  }
0x2784   : > { %v5324_v37 = vpop.f32.mrf.mxu0  ;;  %6324 = vmatpush3.bf16.msra.mxu0 %v7004_v2 }
0x2785   : > { %v5325_v58 = vadd.f32 %v6099_v13, %v5324_v37  ;;  %5330 = vadd.xlane.f32.xlu0 %v5328_v26  ;;  %6325 = vmatprep.subr.bf16.mxu0 %v7005_v11  ;;  %v7007_v37 = vld [vmem:[%s7806_s28 + $0x40] sm:$0xff]  }
0x2786   : > { %v6798_v60 = vpop.f32.mrf.mxu0 }
0x2787   : > { %v5329_v38 = vadd.f32 %v5325_v58, %v7855_v21  ;;  %v7008_v58 = vld [vmem:[%s7806_s28] sm:$0xff]  }
0x2788   : > { %v5381_v60 = vld [vmem:[%s792_s19] sm:$0x3] }
0x2789   : > { %5332 = vadd.xlane.f32.xlu1 %v5329_v38  ;;  %v5390_v63 = vrot.slane %v5381_v60, %v7345_v35  ;;  %v5386_v0 = vrot.slane %v5381_v60, %v7349_v39 }
0x280e   : > { %v5331_v19 = vpop.xlane.xlu0 %5330 }
0x280f   : > { %v5334_v6 = vmul.f32 0.0078125, %v5331_v19 }
0x2811   : > { %v8262_v59 = vsub.f32 %v5328_v26, %v5334_v6  ;;  %v7006_v26 = vld [vmem:[%s7806_s28 + $0x8] sm:$0xff]  }
0x2812   : > { %v5333_v21 = vpop.xlane.xlu1 %5332  ;;  %6326 = vmatpush3.bf16.msra.mxu0 %v7006_v26 }
0x2813   : > { %v5335_v50 = vmul.f32 0.0078125, %v5333_v21  ;;  %v5338_v52 = vmul.f32 %v8262_v59, %v8262_v59  ;;  %6327 = vmatprep.subr.bf16.mxu0 %v7007_v37 }
0x2815   : > { %v8266_v5 = vsub.f32 %v5329_v38, %v5335_v50  ;;  %5340 = vadd.xlane.f32.xlu0 %v5338_v52 }
0x2816   : > { %6328 = vmatpush3.bf16.msra.mxu0 %v7008_v58 }
0x2817   : > { %v5339_v7 = vmul.f32 %v8266_v5, %v8266_v5 }
0x2819   : > { %5342 = vadd.xlane.f32.xlu0 %v5339_v7 }
0x289e   : > { %v5341_v32 = vpop.xlane.xlu0 %5340 }
0x289f   : > { %v5344_v42 = vmul.f32 0.0078125, %v5341_v32 }
0x28a1   : > { %v5346_v3 = vadd.f32 1e-05, %v5344_v42 }
0x28a2   : > { %v5343_v16 = vpop.xlane.xlu0 %5342 }
0x28a3   : > { %7141 = vrsqrt.f32 %v5346_v3  ;;  %v5345_v41 = vmul.f32 0.0078125, %v5343_v16 }
0x28a5   : > { %v5347_v49 = vadd.f32 1e-05, %v5345_v41 }
0x28a7   : > { %7143 = vrsqrt.f32 %v5347_v49 }
0x28b0   : > { %v7142_v45 = vpop.eup %7141 }
0x28b1   : > { %v5350_v33 = vmul.f32 %v7142_v45, %v8262_v59  ;;  %v5724_v45 = vsub.s32 4, %v7339_v34 }
0x28b3   : > { %v5356_v10 = vmul.f32 %v5355_v29, %v5350_v33  ;;  %v5725_v33 = vrot.slane %v8295_v25, %v5724_v45 }
0x28b4   : > { %v7144_v40 = vpop.eup %7143 }
0x28b5   : > { %v5351_v8 = vmul.f32 %v7144_v40, %v8266_v5  ;;  %v5362_v51 = vadd.f32 %v5361_v4, %v5356_v10 }
0x28b7   : > { %v5357_v61 = vmul.f32 %v5355_v29, %v5351_v8  ;;  %v5730_v29 = vsub.s32 5, %v7339_v34 }
0x28b9   : > { %v5363_v13 = vadd.f32 %v5361_v4, %v5357_v61  ;;  %v5731_v8 = vrot.slane %v8295_v25, %v5730_v29 }
0x28bb   : > { %v5364_v9 = vpack.c.bf16 %v5363_v13, %v5362_v51 }
0x28bd   : > { %5506 = vmatmul.mubr.bf16.vlgmr.msra.gmra.mxu1 %v5364_v9 }
0x297d   : > { %v5507_v38 = vpop.f32.mrf.mxu1 }
0x297e   : > { %v5508_v50 = vadd.f32 %v5507_v38, %v5386_v0 }
0x297f   : > { %v5509_v19 = vpop.f32.mrf.mxu1 }
0x2980   : > { %v5510_v59 = vadd.f32 %v5509_v19, %v5390_v63  ;;  %v5516_v15 = vmax.f32 %v5508_v50, 0.0 }
0x2981   : > { %v5511_v6 = vpop.f32.mrf.mxu1 }
0x2982   : > { %v5512_v21 = vadd.f32 %v5511_v6, %v5386_v0  ;;  %v5517_v27 = vmax.f32 %v5510_v59, 0.0  ;;  %v5736_v59 = vld [vmem:[%s8356_s17] sm:$0x3] }
0x2983   : > { %v5513_v52 = vpop.f32.mrf.mxu1 }
0x2984   : > { %v5514_v5 = vadd.f32 %v5513_v52, %v5390_v63  ;;  %v5518_v7 = vmax.f32 %v5512_v21, 0.0  ;;  %v5762_v21 = vrot.slane %v5736_v59, %v7349_v39  ;;  %v5768_v52 = vrot.slane %v5736_v59, %v7345_v35 }
0x2986   : > { %v5519_v28 = vmax.f32 %v5514_v5, 0.0  ;;  %v5520_v18 = vpack.c.bf16 %v5518_v7, %v5516_v15 }
0x2988   : > { %v5521_v17 = vpack.c.bf16 %v5519_v28, %v5517_v27 }
0x298a   : > { %5689 = vmatprep.mubr.bf16.mxu0 %v5521_v17 }
0x298b   : > { %5690 = vmatmul.mubr.bf16.vlgmr.msra.gmra.mxu0 %v5520_v18 }
0x2a4b   : > { %v6329_v22 = vpop.f32.mrf.mxu0 }
0x2a4d   : > { %v6330_v30 = vpop.f32.mrf.mxu0 }
0x2a4e   : > { %v6331_v31 = vadd.f32 %v6330_v30, %v6329_v22 }
0x2a4f   : > { %v6332_v43 = vpop.f32.mrf.mxu0 }
0x2a50   : > { %v5692_v44 = vadd.f32 %v6331_v31, %v6124_v23 }
0x2a51   : > { %v6333_v1 = vpop.f32.mrf.mxu0 }
0x2a52   : > { %v6334_v53 = vadd.f32 %v6333_v1, %v6332_v43  ;;  %v5698_v46 = vadd.f32 %v5692_v44, %v5362_v51 }
0x2a54   : > { %v5695_v47 = vadd.f32 %v6334_v53, %v6124_v23  ;;  %5700 = vadd.xlane.f32.xlu0 %v5698_v46 }
0x2a56   : > { %v5699_v12 = vadd.f32 %v5695_v47, %v5363_v13 }
0x2a58   : > { %5702 = vadd.xlane.f32.xlu1 %v5699_v12 }
0x2add   : > { %v5701_v48 = vpop.xlane.xlu0 %5700 }
0x2ade   : > { %v5704_v57 = vmul.f32 0.0078125, %v5701_v48 }
0x2ae0   : > { %v5706_v55 = vsub.f32 %v5698_v46, %v5704_v57 }
0x2ae1   : > { %v5703_v20 = vpop.xlane.xlu1 %5702 }
0x2ae2   : > { %v5705_v62 = vmul.f32 0.0078125, %v5703_v20  ;;  %v5708_v24 = vmul.f32 %v5706_v55, %v5706_v55 }
0x2ae4   : > { %v5707_v36 = vsub.f32 %v5699_v12, %v5705_v62  ;;  %5710 = vadd.xlane.f32.xlu0 %v5708_v24 }
0x2ae6   : > { %v5709_v14 = vmul.f32 %v5707_v36, %v5707_v36 }
0x2ae8   : > { %5712 = vadd.xlane.f32.xlu1 %v5709_v14 }
0x2b6d   : > { %v5711_v32 = vpop.xlane.xlu0 %5710 }
0x2b6e   : > { %v5714_v42 = vmul.f32 0.0078125, %v5711_v32 }
0x2b70   : > { %v5716_v3 = vadd.f32 1e-05, %v5714_v42 }
0x2b71   : > { %v5713_v16 = vpop.xlane.xlu1 %5712 }
0x2b72   : > { %7145 = vrsqrt.f32 %v5716_v3  ;;  %v5715_v41 = vmul.f32 0.0078125, %v5713_v16 }
0x2b74   : > { %v5717_v49 = vadd.f32 1e-05, %v5715_v41 }
0x2b76   : > { %7147 = vrsqrt.f32 %v5717_v49 }
0x2b7f   : > { %v7146_v56 = vpop.eup %7145 }
0x2b80   : > { %v5720_v40 = vmul.f32 %v7146_v56, %v5706_v55 }
0x2b82   : > { %v5726_v10 = vmul.f32 %v5725_v33, %v5720_v40 }
0x2b83   : > { %v7148_v4 = vpop.eup %7147 }
0x2b84   : > { %v5732_v61 = vadd.f32 %v5731_v8, %v5726_v10  ;;  %v5721_v51 = vmul.f32 %v7148_v4, %v5707_v36 }
0x2b86   : > { %5737 = vadd.xlane.f32.xlu0 %v5732_v61  ;;  %5734 = vst [vmem:[#allocation2] sm:$0xff] %v5732_v61  ;;  %v5727_v13 = vmul.f32 %v5725_v33, %v5721_v51 }
0x2b88   : > { %v5733_v9 = vadd.f32 %v5731_v8, %v5727_v13 }
0x2b8a   : > { %5739 = vadd.xlane.f32.xlu1 %v5733_v9  ;;  %5735 = vst [vmem:[#allocation2 + $0x8] sm:$0xff] %v5733_v9 }
0x2c0f   : > { %v5738_v54 = vpop.xlane.xlu0 %5737 }
0x2c10   : > { %v5741_v2 = vmul.f32 0.0078125, %v5738_v54 }
0x2c12   : > { %v5743_v11 = vsub.f32 %v5732_v61, %v5741_v2 }
0x2c13   : > { %v5740_v34 = vpop.xlane.xlu1 %5739 }
0x2c14   : > { %v5742_v26 = vmul.f32 0.0078125, %v5740_v34  ;;  %v5745_v37 = vmul.f32 %v5743_v11, %v5743_v11 }
0x2c16   : > { %v5744_v58 = vsub.f32 %v5733_v9, %v5742_v26  ;;  %5747 = vadd.xlane.f32.xlu0 %v5745_v37 }
0x2c18   : > { %v5746_v60 = vmul.f32 %v5744_v58, %v5744_v58 }
0x2c1a   : > { %5749 = vadd.xlane.f32.xlu1 %v5746_v60 }
0x2c9f   : > { %v5748_v25 = vpop.xlane.xlu0 %5747 }
0x2ca0   : > { %v5751_v38 = vmul.f32 0.0078125, %v5748_v25 }
0x2ca2   : > { %v5753_v63 = vadd.f32 1e-05, %v5751_v38 }
0x2ca3   : > { %v5750_v0 = vpop.xlane.xlu1 %5749 }
0x2ca4   : > { %7149 = vrsqrt.f32 %v5753_v63  ;;  %v5752_v19 = vmul.f32 0.0078125, %v5750_v0 }
0x2ca6   : > { %v5754_v6 = vadd.f32 1e-05, %v5752_v19 }
0x2ca8   : > { %7151 = vrsqrt.f32 %v5754_v6 }
0x2cb1   : > { %v7150_v50 = vpop.eup %7149 }
0x2cb2   : > { %v5757_v5 = vmul.f32 %v7150_v50, %v5743_v11 }
0x2cb4   : > { %v5763_v7 = vmul.f32 %v5762_v21, %v5757_v5 }
0x2cb5   : > { %v7152_v27 = vpop.eup %7151 }
0x2cb6   : > { %v5769_v28 = vadd.f32 %v5768_v52, %v5763_v7  ;;  %v5758_v15 = vmul.f32 %v7152_v27, %v5744_v58 }
0x2cb8   : > { %5771 = vst [vmem:[%s8357_s18] sm:$0xff] %v5769_v28  ;;  %v5764_v17 = vmul.f32 %v5762_v21, %v5758_v15 }
0x2cba   : > { %v5770_v18 = vadd.f32 %v5768_v52, %v5764_v17 }
0x2cbc   : > { %5772 = vst [vmem:[%s8357_s18 + $0x8] sm:$0xff] %v5770_v18 }
0x2cbd PF: > { %s28_s27 = sadd.s32 1, %s7160_s27  }
0x2cbe   : > { %p25_p5 = scmp.ge.s32.totalorder %s28_s27, 4  }
0x2cc0   :  { %27 = sbr.rel (!%p25_p5) target bundleno = 4 (0x4), region = 160 }

</bundles_post_ra>
